<compile_context>
chip_gen: v7x
topology: tpu7x:2x2x1
jax: 0.10.0
libtpu: 0.0.40
codegen_flags: <defaults>
</compile_context>

<pallas_src>
import functools

import jax
import jax.numpy as jnp
from jax.experimental import pallas as pl
from jax.experimental.pallas import tpu as pltpu

BN_EPS = 1e-5
VMEM_LIMIT = 32 * 1024 * 1024        # explicit scoped-VMEM cap (fits all gens)
ROW_BYTES_BUDGET = 16 * 1024 * 1024  # budget for double-buffered row blocks
MAX_ROW_TILE = 32768                 # hard cap on rows per grid step
MIN_PIPELINE_ROWS = 4096             # keep >=4 steps above this size


def _round_up(x, m):
    return (x + m - 1) // m * m


def _cdiv(a, b):
    return -(-a // b)


def _pick_row_tile(R, bytes_per_row):
    """Largest row tile (multiple of 8) whose double-buffered in+out blocks fit
    ROW_BYTES_BUDGET; keep at least 4 grid steps for DMA/compute overlap when
    the layer is big enough for that to matter."""
    cap = ROW_BYTES_BUDGET // (2 * bytes_per_row)
    cap = min(cap, MAX_ROW_TILE, R)
    cap = max(cap, 8)
    if R >= MIN_PIPELINE_ROWS:
        cap = min(cap, _round_up(_cdiv(R, 4), 8))
    G = _cdiv(R, cap)
    rt = _round_up(_cdiv(R, G), 8)
    return rt, G, rt * G


# ----------------------------------------------------------------------------
# Pallas kernels
# ----------------------------------------------------------------------------
def conv_stats_kernel(p_ref, w_ref, conv_ref, stats_ref):
    """Conv row-tile as a single big-K matmul + partial BN statistics.

    p_ref    : (rt, K)       bf16 im2col rows of this tile (K = KH*KW*Cin)
    w_ref    : (K, Cout)     bf16 reshaped conv weight
    conv_ref : (rt, Cout)    bf16 conv output rows for this tile
    stats_ref: (1, 2, Cout)  f32 per-tile [sum ; sum-of-squares] (from f32 acc)
    """
    acc = jnp.dot(p_ref[...], w_ref[...], preferred_element_type=jnp.float32)
    conv_ref[...] = acc.astype(conv_ref.dtype)
    s = jnp.sum(acc, axis=0, keepdims=True)             # (1, Cout)
    sq = jnp.sum(acc * acc, axis=0, keepdims=True)       # (1, Cout)
    stats_ref[...] = jnp.concatenate([s, sq], axis=0)[None]


def bn_relu_kernel(stats_ref, g_ref, be_ref, x_ref, o_ref, *, inv_n):
    """Finalize BatchNorm2d (training-mode batch stats over ALL rows) + ReLU.

    stats_ref: (G, 2, Cout) f32 per-tile partial stats (constant block)
    g_ref    : (1, Cout)    BN gamma
    be_ref   : (1, Cout)    BN beta
    x_ref    : (rt, Cout)   bf16 conv rows of this tile
    o_ref    : (rt, Cout)   output rows (bf16 intermediate / f32 final)
    """
    stats = stats_ref[...]
    total = jnp.sum(stats[:, 0, :], axis=0, keepdims=True)
    total_sq = jnp.sum(stats[:, 1, :], axis=0, keepdims=True)
    mean = total * inv_n
    var = jnp.maximum(total_sq * inv_n - mean * mean, 0.0)
    a = g_ref[...] * jax.lax.rsqrt(var + BN_EPS)
    b = be_ref[...] - mean * a
    y = jnp.maximum(x_ref[...].astype(jnp.float32) * a + b, 0.0)
    o_ref[...] = y.astype(o_ref.dtype)


# ----------------------------------------------------------------------------
# Wrappers (JAX glue + pallas_call)
# ----------------------------------------------------------------------------
def _extract_patches(x, KH, KW, stride, padding):
    """im2col: (N,H,W,C) -> (N*Ho*Wo, KH*KW*C), column order matches
    w.reshape(KH*KW*C, Cout). Pure data-movement glue."""
    N, H, W, C = x.shape
    xp = jnp.pad(x, ((0, 0), (padding, padding), (padding, padding), (0, 0)))
    Ho = (H + 2 * padding - KH) // stride + 1
    Wo = (W + 2 * padding - KW) // stride + 1
    cols = []
    for kh in range(KH):
        for kw in range(KW):
            t = xp[:, kh:kh + (Ho - 1) * stride + 1:stride,
                      kw:kw + (Wo - 1) * stride + 1:stride, :]
            cols.append(t.reshape(N * Ho * Wo, C))
    return jnp.concatenate(cols, axis=1), Ho, Wo


def conv_bn_relu(x, w, gamma, beta, *, stride, padding,
                 out_dtype=jnp.bfloat16):
    """x: (N,H,W,Cin) NHWC, w: (KH,KW,Cin,Cout). Returns (N,Ho,Wo,Cout)."""
    N, H, W, Cin = x.shape
    KH, KW, _, Cout = w.shape

    patches, Ho, Wo = _extract_patches(x, KH, KW, stride, padding)
    R = N * Ho * Wo
    K = KH * KW * Cin

    patches = patches.astype(jnp.bfloat16)
    wk = w.reshape(K, Cout).astype(jnp.bfloat16)

    conv_dtype = jnp.bfloat16
    # Per-row working-set (bytes) of the row-tiled blocks in each pass.
    bpr1 = 2 * K + jnp.dtype(conv_dtype).itemsize * Cout
    bpr2 = (jnp.dtype(conv_dtype).itemsize + jnp.dtype(out_dtype).itemsize) * Cout
    rt, G, R_pad = _pick_row_tile(R, max(bpr1, bpr2))

    if R_pad != R:      # zero rows add 0 to sum/sumsq -> stats stay exact
        patches = jnp.pad(patches, ((0, R_pad - R), (0, 0)))
    grid = (G,)

    # Pass 1: tiled conv (single big-K matmul) + per-tile partial BN stats.
    conv, stats = pl.pallas_call(
        conv_stats_kernel,
        out_shape=(jax.ShapeDtypeStruct((R_pad, Cout), conv_dtype),
                   jax.ShapeDtypeStruct((G, 2, Cout), jnp.float32)),
        grid=grid,
        in_specs=[pl.BlockSpec((rt, K), lambda i: (i, 0)),
                  pl.BlockSpec((K, Cout), lambda i: (0, 0))],
        out_specs=(pl.BlockSpec((rt, Cout), lambda i: (i, 0)),
                   pl.BlockSpec((1, 2, Cout), lambda i: (i, 0, 0))),
        compiler_params=pltpu.CompilerParams(
            dimension_semantics=("parallel",),
            vmem_limit_bytes=VMEM_LIMIT),
    )(patches, wk)

    # Pass 2: finalize BN over all rows (exact batch statistics) + ReLU.
    y = pl.pallas_call(
        functools.partial(bn_relu_kernel, inv_n=1.0 / R),
        out_shape=jax.ShapeDtypeStruct((R_pad, Cout), out_dtype),
        grid=grid,
        in_specs=[pl.BlockSpec((G, 2, Cout), lambda i: (0, 0, 0)),
                  pl.BlockSpec((1, Cout), lambda i: (0, 0)),
                  pl.BlockSpec((1, Cout), lambda i: (0, 0)),
                  pl.BlockSpec((rt, Cout), lambda i: (i, 0))],
        out_specs=pl.BlockSpec((rt, Cout), lambda i: (i, 0)),
        compiler_params=pltpu.CompilerParams(
            dimension_semantics=("parallel",),
            vmem_limit_bytes=VMEM_LIMIT),
    )(stats, gamma.reshape(1, Cout), beta.reshape(1, Cout), conv)

    return y[:R].reshape(N, Ho, Wo, Cout)


def maxpool2x2(x):
    """F.max_pool2d(kernel_size=2, stride=2) in NHWC as max of 4 strided
    views (no stacked tensor / extra HBM round trip)."""
    a = x[:, 0::2, 0::2, :]
    b = x[:, 1::2, 0::2, :]
    c = x[:, 0::2, 1::2, :]
    d = x[:, 1::2, 1::2, :]
    return jnp.maximum(jnp.maximum(a, b), jnp.maximum(c, d))


def upsample2x(x):
    """F.upsample(scale_factor=2), default 'nearest' (data-movement glue)."""
    return jnp.repeat(jnp.repeat(x, 2, axis=1), 2, axis=2)


# ----------------------------------------------------------------------------
# Model: parameters + forward
# ----------------------------------------------------------------------------
_LAYERS = [
    # name, cin, cout, ksize, padding, stride
    ("d1a", 3, 16, 3, 1, 1), ("d1b", 16, 32, 3, 1, 2),      # down_1
    ("d2a", 32, 64, 3, 1, 1), ("d2b", 64, 128, 3, 1, 1),    # down_2
    ("mid", 128, 128, 1, 0, 1),                              # middle
    ("u2a", 256, 128, 3, 1, 1), ("u2b", 128, 32, 3, 1, 1),   # up_2
    ("u1a", 64, 64, 3, 1, 1), ("u1b", 64, 32, 3, 1, 1),      # up_1
    ("oa", 32, 16, 3, 1, 1), ("ob", 16, 1, 1, 0, 1),         # output
]


def init_params(key):
    params = {}
    for name, cin, cout, k, pad, stride in _LAYERS:
        key, k1 = jax.random.split(key)
        fan_in = cin * k * k
        params[name] = dict(
            # Conv2d bias omitted: BatchNorm's mean subtraction cancels any
            # per-channel constant exactly, so the forward pass is unchanged.
            w=jax.random.normal(k1, (k, k, cin, cout), jnp.float32)
              * (2.0 / fan_in) ** 0.5,
            gamma=jnp.ones((cout,), jnp.float32),   # BatchNorm2d default init
            beta=jnp.zeros((cout,), jnp.float32),
            padding=pad, stride=stride,
        )
    return params


def small_unet_256_forward(x_nchw, params):
    x = jnp.transpose(x_nchw, (0, 2, 3, 1))  # NCHW -> NHWC

    def block(h, name, out_dtype=jnp.bfloat16):
        p = params[name]
        return conv_bn_relu(h, p["w"], p["gamma"], p["beta"],
                            stride=p["stride"], padding=p["padding"],
                            out_dtype=out_dtype)

    down1 = block(block(x, "d1a"), "d1b")          # (N, H/2, W/2, 32)
    out = maxpool2x2(down1)                        # (N, H/4, W/4, 32)
    down2 = block(block(out, "d2a"), "d2b")        # (N, H/4, W/4, 128)
    out = maxpool2x2(down2)                        # (N, H/8, W/8, 128)
    out = block(out, "mid")                        # (N, H/8, W/8, 128)
    out = upsample2x(out)                          # (N, H/4, W/4, 128)
    out = jnp.concatenate([down2, out], axis=-1)   # (N, H/4, W/4, 256)
    out = block(block(out, "u2a"), "u2b")          # (N, H/4, W/4, 32)
    out = upsample2x(out)                          # (N, H/2, W/2, 32)
    out = jnp.concatenate([down1, out], axis=-1)   # (N, H/2, W/2, 64)
    out = block(block(out, "u1a"), "u1b")          # (N, H/2, W/2, 32)
    out = upsample2x(out)                          # (N, H,   W,   32)
    out = block(out, "oa")                         # (N, H,   W,   16)
    out = block(out, "ob", out_dtype=jnp.float32)  # (N, H,   W,   1)

    # Cout == 1, so NHWC -> NCHW is effectively a reshape (free).
    return jnp.transpose(out, (0, 3, 1, 2))


# ----------------------------------------------------------------------------
if __name__ == "__main__":
    key = jax.random.PRNGKey(0)
    key, xkey = jax.random.split(key)

    # Small input consistent with the module: NCHW, 3 channels, square spatial.
    x = jax.random.normal(xkey, (2, 3, 16, 16), jnp.float32)
    params = init_params(key)

    fwd = jax.jit(lambda inp: small_unet_256_forward(inp, params))
    y = fwd(x)
    jax.block_until_ready(y)

    assert y.shape == (2, 1, 16, 16), y.shape
    assert bool(jnp.all(jnp.isfinite(y)))
    print("KERNEL_OK")
</pallas_src>

<mosaic_0001>
module attributes {stable_mosaic.version = 11 : i64} {
  func.func @conv_stats_kernel(%arg0: i32, %arg1: memref<512x27xbf16, #tpu.memory_space<vmem>>, %arg2: memref<27x16xbf16, #tpu.memory_space<vmem>>, %arg3: memref<512x16xbf16, #tpu.memory_space<vmem>>, %arg4: memref<1x2x16xf32, #tpu.memory_space<vmem>>) attributes {dimension_semantics = [#tpu.dimension_semantics<parallel>], iteration_bounds = array<i64: 1>, scalar_prefetch = 0 : i64, scratch_operands = 0 : i64, tpu.core_type = #tpu.core_type<tc>, window_params = [{transform_indices = @transform_0, window_bounds = array<i64: 512, 27>}, {pipeline_mode = #tpu.pipeline_mode<synchronous>, transform_indices = @transform_1, window_bounds = array<i64: 27, 16>}, {transform_indices = @transform_2, window_bounds = array<i64: 512, 16>}, {transform_indices = @transform_3, window_bounds = array<i64: 1, 2, 16>}]} {
    %c0 = arith.constant 0 : index
    %c0_0 = arith.constant 0 : index
    %0 = vector.load %arg1[%c0, %c0_0] : memref<512x27xbf16, #tpu.memory_space<vmem>>, vector<512x27xbf16>
    %c0_1 = arith.constant 0 : index
    %c0_2 = arith.constant 0 : index
    %1 = vector.load %arg2[%c0_1, %c0_2] : memref<27x16xbf16, #tpu.memory_space<vmem>>, vector<27x16xbf16>
    %cst = arith.constant dense<0.000000e+00> : vector<512x16xf32>
    %2 = tpu.matmul %0, %1, %cst {dimension_numbers = #tpu.dot_dimension_numbers<[1], [0], [0], [1], [0, 0, 1, 1], [], []>} : vector<512x27xbf16>, vector<27x16xbf16>, vector<512x16xf32> -> vector<512x16xf32>
    %3 = arith.truncf %2 : vector<512x16xf32> to vector<512x16xbf16>
    %c0_3 = arith.constant 0 : index
    %c0_4 = arith.constant 0 : index
    %4 = vector.load %arg3[%c0_3, %c0_4] : memref<512x16xbf16, #tpu.memory_space<vmem>>, vector<512x16xbf16>
    tpu.vector_store %arg3[%c0_3, %c0_4], %3 {strides = array<i32>} : memref<512x16xbf16, #tpu.memory_space<vmem>>, vector<512x16xbf16>,
    %cst_5 = arith.constant dense<0.000000e+00> : vector<16xf32>
    %5 = vector.multi_reduction <add>, %2, %cst_5 [0] : vector<512x16xf32> to vector<16xf32>
    %6 = vector.shape_cast %5 : vector<16xf32> to vector<1x16xf32>
    %7 = arith.mulf %2, %2 : vector<512x16xf32>
    %cst_6 = arith.constant dense<0.000000e+00> : vector<16xf32>
    %8 = vector.multi_reduction <add>, %7, %cst_6 [0] : vector<512x16xf32> to vector<16xf32>
    %9 = vector.shape_cast %8 : vector<16xf32> to vector<1x16xf32>
    %10 = tpu.concatenate %6, %9 in 0 : vector<1x16xf32>, vector<1x16xf32> -> vector<2x16xf32>
    %11 = vector.shape_cast %10 : vector<2x16xf32> to vector<1x2x16xf32>
    %c0_7 = arith.constant 0 : index
    %c0_8 = arith.constant 0 : index
    %c0_9 = arith.constant 0 : index
    %12 = vector.load %arg4[%c0_7, %c0_8, %c0_9] : memref<1x2x16xf32, #tpu.memory_space<vmem>>, vector<1x2x16xf32>
    tpu.vector_store %arg4[%c0_7, %c0_8, %c0_9], %11 {strides = array<i32>} : memref<1x2x16xf32, #tpu.memory_space<vmem>>, vector<1x2x16xf32>,
    return
  }
  func.func @transform_0(%arg0: i32) -> (i32, i32) {
    %c0_i32 = arith.constant 0 : i32
    %c0_i32_0 = arith.constant 0 : i32
    return %arg0, %c0_i32 : i32, i32
  }
  func.func @transform_1(%arg0: i32) -> (i32, i32) {
    %c0_i32 = arith.constant 0 : i32
    %c0_i32_0 = arith.constant 0 : i32
    %c0_i32_1 = arith.constant 0 : i32
    return %c0_i32, %c0_i32_0 : i32, i32
  }
  func.func @transform_2(%arg0: i32) -> (i32, i32) {
    %c0_i32 = arith.constant 0 : i32
    %c0_i32_0 = arith.constant 0 : i32
    return %arg0, %c0_i32 : i32, i32
  }
  func.func @transform_3(%arg0: i32) -> (i32, i32, i32) {
    %c0_i32 = arith.constant 0 : i32
    %c0_i32_0 = arith.constant 0 : i32
    %c0_i32_1 = arith.constant 0 : i32
    return %arg0, %c0_i32, %c0_i32_0 : i32, i32, i32
  }
}

module attributes {stable_mosaic.version = 11 : i64} {
  func.func @bn_relu_kernel(%arg0: i32, %arg1: memref<1x2x16xf32, #tpu.memory_space<vmem>>, %arg2: memref<1x16xf32, #tpu.memory_space<vmem>>, %arg3: memref<1x16xf32, #tpu.memory_space<vmem>>, %arg4: memref<512x16xbf16, #tpu.memory_space<vmem>>, %arg5: memref<512x16xbf16, #tpu.memory_space<vmem>>) attributes {dimension_semantics = [#tpu.dimension_semantics<parallel>], iteration_bounds = array<i64: 1>, scalar_prefetch = 0 : i64, scratch_operands = 0 : i64, tpu.core_type = #tpu.core_type<tc>, window_params = [{pipeline_mode = #tpu.pipeline_mode<synchronous>, transform_indices = @transform_0, window_bounds = array<i64: 1, 2, 16>}, {pipeline_mode = #tpu.pipeline_mode<synchronous>, transform_indices = @transform_1, window_bounds = array<i64: 1, 16>}, {pipeline_mode = #tpu.pipeline_mode<synchronous>, transform_indices = @transform_2, window_bounds = array<i64: 1, 16>}, {transform_indices = @transform_3, window_bounds = array<i64: 512, 16>}, {transform_indices = @transform_4, window_bounds = array<i64: 512, 16>}]} {
    %c0 = arith.constant 0 : index
    %c0_0 = arith.constant 0 : index
    %c0_1 = arith.constant 0 : index
    %0 = vector.load %arg1[%c0, %c0_0, %c0_1] : memref<1x2x16xf32, #tpu.memory_space<vmem>>, vector<1x2x16xf32>
    %1 = vector.extract_strided_slice %0 {offsets = [0, 0, 0], sizes = [1, 1, 16], strides = [1, 1, 1]} : vector<1x2x16xf32> to vector<1x1x16xf32>
    %2 = vector.shape_cast %1 : vector<1x1x16xf32> to vector<1x16xf32>
    %cst = arith.constant dense<0.000000e+00> : vector<16xf32>
    %3 = vector.multi_reduction <add>, %2, %cst [0] : vector<1x16xf32> to vector<16xf32>
    %4 = vector.shape_cast %3 : vector<16xf32> to vector<1x16xf32>
    %5 = vector.extract_strided_slice %0 {offsets = [0, 1, 0], sizes = [1, 1, 16], strides = [1, 1, 1]} : vector<1x2x16xf32> to vector<1x1x16xf32>
    %6 = vector.shape_cast %5 : vector<1x1x16xf32> to vector<1x16xf32>
    %cst_2 = arith.constant dense<0.000000e+00> : vector<16xf32>
    %7 = vector.multi_reduction <add>, %6, %cst_2 [0] : vector<1x16xf32> to vector<16xf32>
    %8 = vector.shape_cast %7 : vector<16xf32> to vector<1x16xf32>
    %cst_3 = arith.constant 0.001953125 : f32
    %9 = vector.broadcast %cst_3 : f32 to vector<1x16xf32>
    %10 = arith.mulf %4, %9 : vector<1x16xf32>
    %cst_4 = arith.constant 0.001953125 : f32
    %11 = vector.broadcast %cst_4 : f32 to vector<1x16xf32>
    %12 = arith.mulf %8, %11 : vector<1x16xf32>
    %13 = arith.mulf %10, %10 : vector<1x16xf32>
    %14 = arith.subf %12, %13 : vector<1x16xf32>
    %cst_5 = arith.constant 0.000000e+00 : f32
    %15 = vector.broadcast %cst_5 : f32 to vector<1x16xf32>
    %16 = arith.maximumf %14, %15 : vector<1x16xf32>
    %c0_6 = arith.constant 0 : index
    %c0_7 = arith.constant 0 : index
    %17 = vector.load %arg2[%c0_6, %c0_7] : memref<1x16xf32, #tpu.memory_space<vmem>>, vector<1x16xf32>
    %cst_8 = arith.constant 9.99999974E-6 : f32
    %18 = vector.broadcast %cst_8 : f32 to vector<1x16xf32>
    %19 = arith.addf %16, %18 : vector<1x16xf32>
    %20 = math.rsqrt %19 : vector<1x16xf32>
    %21 = arith.mulf %17, %20 : vector<1x16xf32>
    %c0_9 = arith.constant 0 : index
    %c0_10 = arith.constant 0 : index
    %22 = vector.load %arg3[%c0_9, %c0_10] : memref<1x16xf32, #tpu.memory_space<vmem>>, vector<1x16xf32>
    %23 = arith.mulf %10, %21 : vector<1x16xf32>
    %24 = arith.subf %22, %23 : vector<1x16xf32>
    %c0_11 = arith.constant 0 : index
    %c0_12 = arith.constant 0 : index
    %25 = vector.load %arg4[%c0_11, %c0_12] : memref<512x16xbf16, #tpu.memory_space<vmem>>, vector<512x16xbf16>
    %26 = arith.extf %25 : vector<512x16xbf16> to vector<512x16xf32>
    %27 = vector.broadcast %21 : vector<1x16xf32> to vector<512x16xf32>
    %28 = arith.mulf %26, %27 : vector<512x16xf32>
    %29 = vector.broadcast %24 : vector<1x16xf32> to vector<512x16xf32>
    %30 = arith.addf %28, %29 : vector<512x16xf32>
    %cst_13 = arith.constant 0.000000e+00 : f32
    %31 = vector.broadcast %cst_13 : f32 to vector<512x16xf32>
    %32 = arith.maximumf %30, %31 : vector<512x16xf32>
    %33 = arith.truncf %32 : vector<512x16xf32> to vector<512x16xbf16>
    %c0_14 = arith.constant 0 : index
    %c0_15 = arith.constant 0 : index
    %34 = vector.load %arg5[%c0_14, %c0_15] : memref<512x16xbf16, #tpu.memory_space<vmem>>, vector<512x16xbf16>
    tpu.vector_store %arg5[%c0_14, %c0_15], %33 {strides = array<i32>} : memref<512x16xbf16, #tpu.memory_space<vmem>>, vector<512x16xbf16>,
    return
  }
  func.func @transform_0(%arg0: i32) -> (i32, i32, i32) {
    %c0_i32 = arith.constant 0 : i32
    %c0_i32_0 = arith.constant 0 : i32
    %c0_i32_1 = arith.constant 0 : i32
    %c0_i32_2 = arith.constant 0 : i32
    return %c0_i32, %c0_i32_0, %c0_i32_1 : i32, i32, i32
  }
  func.func @transform_1(%arg0: i32) -> (i32, i32) {
    %c0_i32 = arith.constant 0 : i32
    %c0_i32_0 = arith.constant 0 : i32
    %c0_i32_1 = arith.constant 0 : i32
    return %c0_i32, %c0_i32_0 : i32, i32
  }
  func.func @transform_2(%arg0: i32) -> (i32, i32) {
    %c0_i32 = arith.constant 0 : i32
    %c0_i32_0 = arith.constant 0 : i32
    %c0_i32_1 = arith.constant 0 : i32
    return %c0_i32, %c0_i32_0 : i32, i32
  }
  func.func @transform_3(%arg0: i32) -> (i32, i32) {
    %c0_i32 = arith.constant 0 : i32
    %c0_i32_0 = arith.constant 0 : i32
    return %arg0, %c0_i32 : i32, i32
  }
  func.func @transform_4(%arg0: i32) -> (i32, i32) {
    %c0_i32 = arith.constant 0 : i32
    %c0_i32_0 = arith.constant 0 : i32
    return %arg0, %c0_i32 : i32, i32
  }
}

module attributes {stable_mosaic.version = 11 : i64} {
  func.func @conv_stats_kernel(%arg0: i32, %arg1: memref<128x144xbf16, #tpu.memory_space<vmem>>, %arg2: memref<144x32xbf16, #tpu.memory_space<vmem>>, %arg3: memref<128x32xbf16, #tpu.memory_space<vmem>>, %arg4: memref<1x2x32xf32, #tpu.memory_space<vmem>>) attributes {dimension_semantics = [#tpu.dimension_semantics<parallel>], iteration_bounds = array<i64: 1>, scalar_prefetch = 0 : i64, scratch_operands = 0 : i64, tpu.core_type = #tpu.core_type<tc>, window_params = [{transform_indices = @transform_0, window_bounds = array<i64: 128, 144>}, {pipeline_mode = #tpu.pipeline_mode<synchronous>, transform_indices = @transform_1, window_bounds = array<i64: 144, 32>}, {transform_indices = @transform_2, window_bounds = array<i64: 128, 32>}, {transform_indices = @transform_3, window_bounds = array<i64: 1, 2, 32>}]} {
    %c0 = arith.constant 0 : index
    %c0_0 = arith.constant 0 : index
    %0 = vector.load %arg1[%c0, %c0_0] : memref<128x144xbf16, #tpu.memory_space<vmem>>, vector<128x144xbf16>
    %c0_1 = arith.constant 0 : index
    %c0_2 = arith.constant 0 : index
    %1 = vector.load %arg2[%c0_1, %c0_2] : memref<144x32xbf16, #tpu.memory_space<vmem>>, vector<144x32xbf16>
    %cst = arith.constant dense<0.000000e+00> : vector<128x32xf32>
    %2 = tpu.matmul %0, %1, %cst {dimension_numbers = #tpu.dot_dimension_numbers<[1], [0], [0], [1], [0, 0, 1, 1], [], []>} : vector<128x144xbf16>, vector<144x32xbf16>, vector<128x32xf32> -> vector<128x32xf32>
    %3 = arith.truncf %2 : vector<128x32xf32> to vector<128x32xbf16>
    %c0_3 = arith.constant 0 : index
    %c0_4 = arith.constant 0 : index
    %4 = vector.load %arg3[%c0_3, %c0_4] : memref<128x32xbf16, #tpu.memory_space<vmem>>, vector<128x32xbf16>
    tpu.vector_store %arg3[%c0_3, %c0_4], %3 {strides = array<i32>} : memref<128x32xbf16, #tpu.memory_space<vmem>>, vector<128x32xbf16>,
    %cst_5 = arith.constant dense<0.000000e+00> : vector<32xf32>
    %5 = vector.multi_reduction <add>, %2, %cst_5 [0] : vector<128x32xf32> to vector<32xf32>
    %6 = vector.shape_cast %5 : vector<32xf32> to vector<1x32xf32>
    %7 = arith.mulf %2, %2 : vector<128x32xf32>
    %cst_6 = arith.constant dense<0.000000e+00> : vector<32xf32>
    %8 = vector.multi_reduction <add>, %7, %cst_6 [0] : vector<128x32xf32> to vector<32xf32>
    %9 = vector.shape_cast %8 : vector<32xf32> to vector<1x32xf32>
    %10 = tpu.concatenate %6, %9 in 0 : vector<1x32xf32>, vector<1x32xf32> -> vector<2x32xf32>
    %11 = vector.shape_cast %10 : vector<2x32xf32> to vector<1x2x32xf32>
    %c0_7 = arith.constant 0 : index
    %c0_8 = arith.constant 0 : index
    %c0_9 = arith.constant 0 : index
    %12 = vector.load %arg4[%c0_7, %c0_8, %c0_9] : memref<1x2x32xf32, #tpu.memory_space<vmem>>, vector<1x2x32xf32>
    tpu.vector_store %arg4[%c0_7, %c0_8, %c0_9], %11 {strides = array<i32>} : memref<1x2x32xf32, #tpu.memory_space<vmem>>, vector<1x2x32xf32>,
    return
  }
  func.func @transform_0(%arg0: i32) -> (i32, i32) {
    %c0_i32 = arith.constant 0 : i32
    %c0_i32_0 = arith.constant 0 : i32
    return %arg0, %c0_i32 : i32, i32
  }
  func.func @transform_1(%arg0: i32) -> (i32, i32) {
    %c0_i32 = arith.constant 0 : i32
    %c0_i32_0 = arith.constant 0 : i32
    %c0_i32_1 = arith.constant 0 : i32
    return %c0_i32, %c0_i32_0 : i32, i32
  }
  func.func @transform_2(%arg0: i32) -> (i32, i32) {
    %c0_i32 = arith.constant 0 : i32
    %c0_i32_0 = arith.constant 0 : i32
    return %arg0, %c0_i32 : i32, i32
  }
  func.func @transform_3(%arg0: i32) -> (i32, i32, i32) {
    %c0_i32 = arith.constant 0 : i32
    %c0_i32_0 = arith.constant 0 : i32
    %c0_i32_1 = arith.constant 0 : i32
    return %arg0, %c0_i32, %c0_i32_0 : i32, i32, i32
  }
}

module attributes {stable_mosaic.version = 11 : i64} {
  func.func @bn_relu_kernel(%arg0: i32, %arg1: memref<1x2x32xf32, #tpu.memory_space<vmem>>, %arg2: memref<1x32xf32, #tpu.memory_space<vmem>>, %arg3: memref<1x32xf32, #tpu.memory_space<vmem>>, %arg4: memref<128x32xbf16, #tpu.memory_space<vmem>>, %arg5: memref<128x32xbf16, #tpu.memory_space<vmem>>) attributes {dimension_semantics = [#tpu.dimension_semantics<parallel>], iteration_bounds = array<i64: 1>, scalar_prefetch = 0 : i64, scratch_operands = 0 : i64, tpu.core_type = #tpu.core_type<tc>, window_params = [{pipeline_mode = #tpu.pipeline_mode<synchronous>, transform_indices = @transform_0, window_bounds = array<i64: 1, 2, 32>}, {pipeline_mode = #tpu.pipeline_mode<synchronous>, transform_indices = @transform_1, window_bounds = array<i64: 1, 32>}, {pipeline_mode = #tpu.pipeline_mode<synchronous>, transform_indices = @transform_2, window_bounds = array<i64: 1, 32>}, {transform_indices = @transform_3, window_bounds = array<i64: 128, 32>}, {transform_indices = @transform_4, window_bounds = array<i64: 128, 32>}]} {
    %c0 = arith.constant 0 : index
    %c0_0 = arith.constant 0 : index
    %c0_1 = arith.constant 0 : index
    %0 = vector.load %arg1[%c0, %c0_0, %c0_1] : memref<1x2x32xf32, #tpu.memory_space<vmem>>, vector<1x2x32xf32>
    %1 = vector.extract_strided_slice %0 {offsets = [0, 0, 0], sizes = [1, 1, 32], strides = [1, 1, 1]} : vector<1x2x32xf32> to vector<1x1x32xf32>
    %2 = vector.shape_cast %1 : vector<1x1x32xf32> to vector<1x32xf32>
    %cst = arith.constant dense<0.000000e+00> : vector<32xf32>
    %3 = vector.multi_reduction <add>, %2, %cst [0] : vector<1x32xf32> to vector<32xf32>
    %4 = vector.shape_cast %3 : vector<32xf32> to vector<1x32xf32>
    %5 = vector.extract_strided_slice %0 {offsets = [0, 1, 0], sizes = [1, 1, 32], strides = [1, 1, 1]} : vector<1x2x32xf32> to vector<1x1x32xf32>
    %6 = vector.shape_cast %5 : vector<1x1x32xf32> to vector<1x32xf32>
    %cst_2 = arith.constant dense<0.000000e+00> : vector<32xf32>
    %7 = vector.multi_reduction <add>, %6, %cst_2 [0] : vector<1x32xf32> to vector<32xf32>
    %8 = vector.shape_cast %7 : vector<32xf32> to vector<1x32xf32>
    %cst_3 = arith.constant 7.812500e-03 : f32
    %9 = vector.broadcast %cst_3 : f32 to vector<1x32xf32>
    %10 = arith.mulf %4, %9 : vector<1x32xf32>
    %cst_4 = arith.constant 7.812500e-03 : f32
    %11 = vector.broadcast %cst_4 : f32 to vector<1x32xf32>
    %12 = arith.mulf %8, %11 : vector<1x32xf32>
    %13 = arith.mulf %10, %10 : vector<1x32xf32>
    %14 = arith.subf %12, %13 : vector<1x32xf32>
    %cst_5 = arith.constant 0.000000e+00 : f32
    %15 = vector.broadcast %cst_5 : f32 to vector<1x32xf32>
    %16 = arith.maximumf %14, %15 : vector<1x32xf32>
    %c0_6 = arith.constant 0 : index
    %c0_7 = arith.constant 0 : index
    %17 = vector.load %arg2[%c0_6, %c0_7] : memref<1x32xf32, #tpu.memory_space<vmem>>, vector<1x32xf32>
    %cst_8 = arith.constant 9.99999974E-6 : f32
    %18 = vector.broadcast %cst_8 : f32 to vector<1x32xf32>
    %19 = arith.addf %16, %18 : vector<1x32xf32>
    %20 = math.rsqrt %19 : vector<1x32xf32>
    %21 = arith.mulf %17, %20 : vector<1x32xf32>
    %c0_9 = arith.constant 0 : index
    %c0_10 = arith.constant 0 : index
    %22 = vector.load %arg3[%c0_9, %c0_10] : memref<1x32xf32, #tpu.memory_space<vmem>>, vector<1x32xf32>
    %23 = arith.mulf %10, %21 : vector<1x32xf32>
    %24 = arith.subf %22, %23 : vector<1x32xf32>
    %c0_11 = arith.constant 0 : index
    %c0_12 = arith.constant 0 : index
    %25 = vector.load %arg4[%c0_11, %c0_12] : memref<128x32xbf16, #tpu.memory_space<vmem>>, vector<128x32xbf16>
    %26 = arith.extf %25 : vector<128x32xbf16> to vector<128x32xf32>
    %27 = vector.broadcast %21 : vector<1x32xf32> to vector<128x32xf32>
    %28 = arith.mulf %26, %27 : vector<128x32xf32>
    %29 = vector.broadcast %24 : vector<1x32xf32> to vector<128x32xf32>
    %30 = arith.addf %28, %29 : vector<128x32xf32>
    %cst_13 = arith.constant 0.000000e+00 : f32
    %31 = vector.broadcast %cst_13 : f32 to vector<128x32xf32>
    %32 = arith.maximumf %30, %31 : vector<128x32xf32>
    %33 = arith.truncf %32 : vector<128x32xf32> to vector<128x32xbf16>
    %c0_14 = arith.constant 0 : index
    %c0_15 = arith.constant 0 : index
    %34 = vector.load %arg5[%c0_14, %c0_15] : memref<128x32xbf16, #tpu.memory_space<vmem>>, vector<128x32xbf16>
    tpu.vector_store %arg5[%c0_14, %c0_15], %33 {strides = array<i32>} : memref<128x32xbf16, #tpu.memory_space<vmem>>, vector<128x32xbf16>,
    return
  }
  func.func @transform_0(%arg0: i32) -> (i32, i32, i32) {
    %c0_i32 = arith.constant 0 : i32
    %c0_i32_0 = arith.constant 0 : i32
    %c0_i32_1 = arith.constant 0 : i32
    %c0_i32_2 = arith.constant 0 : i32
    return %c0_i32, %c0_i32_0, %c0_i32_1 : i32, i32, i32
  }
  func.func @transform_1(%arg0: i32) -> (i32, i32) {
    %c0_i32 = arith.constant 0 : i32
    %c0_i32_0 = arith.constant 0 : i32
    %c0_i32_1 = arith.constant 0 : i32
    return %c0_i32, %c0_i32_0 : i32, i32
  }
  func.func @transform_2(%arg0: i32) -> (i32, i32) {
    %c0_i32 = arith.constant 0 : i32
    %c0_i32_0 = arith.constant 0 : i32
    %c0_i32_1 = arith.constant 0 : i32
    return %c0_i32, %c0_i32_0 : i32, i32
  }
  func.func @transform_3(%arg0: i32) -> (i32, i32) {
    %c0_i32 = arith.constant 0 : i32
    %c0_i32_0 = arith.constant 0 : i32
    return %arg0, %c0_i32 : i32, i32
  }
  func.func @transform_4(%arg0: i32) -> (i32, i32) {
    %c0_i32 = arith.constant 0 : i32
    %c0_i32_0 = arith.constant 0 : i32
    return %arg0, %c0_i32 : i32, i32
  }
}

module attributes {stable_mosaic.version = 11 : i64} {
  func.func @conv_stats_kernel(%arg0: i32, %arg1: memref<32x288xbf16, #tpu.memory_space<vmem>>, %arg2: memref<288x64xbf16, #tpu.memory_space<vmem>>, %arg3: memref<32x64xbf16, #tpu.memory_space<vmem>>, %arg4: memref<1x2x64xf32, #tpu.memory_space<vmem>>) attributes {dimension_semantics = [#tpu.dimension_semantics<parallel>], iteration_bounds = array<i64: 1>, scalar_prefetch = 0 : i64, scratch_operands = 0 : i64, tpu.core_type = #tpu.core_type<tc>, window_params = [{transform_indices = @transform_0, window_bounds = array<i64: 32, 288>}, {pipeline_mode = #tpu.pipeline_mode<synchronous>, transform_indices = @transform_1, window_bounds = array<i64: 288, 64>}, {transform_indices = @transform_2, window_bounds = array<i64: 32, 64>}, {transform_indices = @transform_3, window_bounds = array<i64: 1, 2, 64>}]} {
    %c0 = arith.constant 0 : index
    %c0_0 = arith.constant 0 : index
    %0 = vector.load %arg1[%c0, %c0_0] : memref<32x288xbf16, #tpu.memory_space<vmem>>, vector<32x288xbf16>
    %c0_1 = arith.constant 0 : index
    %c0_2 = arith.constant 0 : index
    %1 = vector.load %arg2[%c0_1, %c0_2] : memref<288x64xbf16, #tpu.memory_space<vmem>>, vector<288x64xbf16>
    %cst = arith.constant dense<0.000000e+00> : vector<32x64xf32>
    %2 = tpu.matmul %0, %1, %cst {dimension_numbers = #tpu.dot_dimension_numbers<[1], [0], [0], [1], [0, 0, 1, 1], [], []>} : vector<32x288xbf16>, vector<288x64xbf16>, vector<32x64xf32> -> vector<32x64xf32>
    %3 = arith.truncf %2 : vector<32x64xf32> to vector<32x64xbf16>
    %c0_3 = arith.constant 0 : index
    %c0_4 = arith.constant 0 : index
    %4 = vector.load %arg3[%c0_3, %c0_4] : memref<32x64xbf16, #tpu.memory_space<vmem>>, vector<32x64xbf16>
    tpu.vector_store %arg3[%c0_3, %c0_4], %3 {strides = array<i32>} : memref<32x64xbf16, #tpu.memory_space<vmem>>, vector<32x64xbf16>,
    %cst_5 = arith.constant dense<0.000000e+00> : vector<64xf32>
    %5 = vector.multi_reduction <add>, %2, %cst_5 [0] : vector<32x64xf32> to vector<64xf32>
    %6 = vector.shape_cast %5 : vector<64xf32> to vector<1x64xf32>
    %7 = arith.mulf %2, %2 : vector<32x64xf32>
    %cst_6 = arith.constant dense<0.000000e+00> : vector<64xf32>
    %8 = vector.multi_reduction <add>, %7, %cst_6 [0] : vector<32x64xf32> to vector<64xf32>
    %9 = vector.shape_cast %8 : vector<64xf32> to vector<1x64xf32>
    %10 = tpu.concatenate %6, %9 in 0 : vector<1x64xf32>, vector<1x64xf32> -> vector<2x64xf32>
    %11 = vector.shape_cast %10 : vector<2x64xf32> to vector<1x2x64xf32>
    %c0_7 = arith.constant 0 : index
    %c0_8 = arith.constant 0 : index
    %c0_9 = arith.constant 0 : index
    %12 = vector.load %arg4[%c0_7, %c0_8, %c0_9] : memref<1x2x64xf32, #tpu.memory_space<vmem>>, vector<1x2x64xf32>
    tpu.vector_store %arg4[%c0_7, %c0_8, %c0_9], %11 {strides = array<i32>} : memref<1x2x64xf32, #tpu.memory_space<vmem>>, vector<1x2x64xf32>,
    return
  }
  func.func @transform_0(%arg0: i32) -> (i32, i32) {
    %c0_i32 = arith.constant 0 : i32
    %c0_i32_0 = arith.constant 0 : i32
    return %arg0, %c0_i32 : i32, i32
  }
  func.func @transform_1(%arg0: i32) -> (i32, i32) {
    %c0_i32 = arith.constant 0 : i32
    %c0_i32_0 = arith.constant 0 : i32
    %c0_i32_1 = arith.constant 0 : i32
    return %c0_i32, %c0_i32_0 : i32, i32
  }
  func.func @transform_2(%arg0: i32) -> (i32, i32) {
    %c0_i32 = arith.constant 0 : i32
    %c0_i32_0 = arith.constant 0 : i32
    return %arg0, %c0_i32 : i32, i32
  }
  func.func @transform_3(%arg0: i32) -> (i32, i32, i32) {
    %c0_i32 = arith.constant 0 : i32
    %c0_i32_0 = arith.constant 0 : i32
    %c0_i32_1 = arith.constant 0 : i32
    return %arg0, %c0_i32, %c0_i32_0 : i32, i32, i32
  }
}

module attributes {stable_mosaic.version = 11 : i64} {
  func.func @bn_relu_kernel(%arg0: i32, %arg1: memref<1x2x64xf32, #tpu.memory_space<vmem>>, %arg2: memref<1x64xf32, #tpu.memory_space<vmem>>, %arg3: memref<1x64xf32, #tpu.memory_space<vmem>>, %arg4: memref<32x64xbf16, #tpu.memory_space<vmem>>, %arg5: memref<32x64xbf16, #tpu.memory_space<vmem>>) attributes {dimension_semantics = [#tpu.dimension_semantics<parallel>], iteration_bounds = array<i64: 1>, scalar_prefetch = 0 : i64, scratch_operands = 0 : i64, tpu.core_type = #tpu.core_type<tc>, window_params = [{pipeline_mode = #tpu.pipeline_mode<synchronous>, transform_indices = @transform_0, window_bounds = array<i64: 1, 2, 64>}, {pipeline_mode = #tpu.pipeline_mode<synchronous>, transform_indices = @transform_1, window_bounds = array<i64: 1, 64>}, {pipeline_mode = #tpu.pipeline_mode<synchronous>, transform_indices = @transform_2, window_bounds = array<i64: 1, 64>}, {transform_indices = @transform_3, window_bounds = array<i64: 32, 64>}, {transform_indices = @transform_4, window_bounds = array<i64: 32, 64>}]} {
    %c0 = arith.constant 0 : index
    %c0_0 = arith.constant 0 : index
    %c0_1 = arith.constant 0 : index
    %0 = vector.load %arg1[%c0, %c0_0, %c0_1] : memref<1x2x64xf32, #tpu.memory_space<vmem>>, vector<1x2x64xf32>
    %1 = vector.extract_strided_slice %0 {offsets = [0, 0, 0], sizes = [1, 1, 64], strides = [1, 1, 1]} : vector<1x2x64xf32> to vector<1x1x64xf32>
    %2 = vector.shape_cast %1 : vector<1x1x64xf32> to vector<1x64xf32>
    %cst = arith.constant dense<0.000000e+00> : vector<64xf32>
    %3 = vector.multi_reduction <add>, %2, %cst [0] : vector<1x64xf32> to vector<64xf32>
    %4 = vector.shape_cast %3 : vector<64xf32> to vector<1x64xf32>
    %5 = vector.extract_strided_slice %0 {offsets = [0, 1, 0], sizes = [1, 1, 64], strides = [1, 1, 1]} : vector<1x2x64xf32> to vector<1x1x64xf32>
    %6 = vector.shape_cast %5 : vector<1x1x64xf32> to vector<1x64xf32>
    %cst_2 = arith.constant dense<0.000000e+00> : vector<64xf32>
    %7 = vector.multi_reduction <add>, %6, %cst_2 [0] : vector<1x64xf32> to vector<64xf32>
    %8 = vector.shape_cast %7 : vector<64xf32> to vector<1x64xf32>
    %cst_3 = arith.constant 3.125000e-02 : f32
    %9 = vector.broadcast %cst_3 : f32 to vector<1x64xf32>
    %10 = arith.mulf %4, %9 : vector<1x64xf32>
    %cst_4 = arith.constant 3.125000e-02 : f32
    %11 = vector.broadcast %cst_4 : f32 to vector<1x64xf32>
    %12 = arith.mulf %8, %11 : vector<1x64xf32>
    %13 = arith.mulf %10, %10 : vector<1x64xf32>
    %14 = arith.subf %12, %13 : vector<1x64xf32>
    %cst_5 = arith.constant 0.000000e+00 : f32
    %15 = vector.broadcast %cst_5 : f32 to vector<1x64xf32>
    %16 = arith.maximumf %14, %15 : vector<1x64xf32>
    %c0_6 = arith.constant 0 : index
    %c0_7 = arith.constant 0 : index
    %17 = vector.load %arg2[%c0_6, %c0_7] : memref<1x64xf32, #tpu.memory_space<vmem>>, vector<1x64xf32>
    %cst_8 = arith.constant 9.99999974E-6 : f32
    %18 = vector.broadcast %cst_8 : f32 to vector<1x64xf32>
    %19 = arith.addf %16, %18 : vector<1x64xf32>
    %20 = math.rsqrt %19 : vector<1x64xf32>
    %21 = arith.mulf %17, %20 : vector<1x64xf32>
    %c0_9 = arith.constant 0 : index
    %c0_10 = arith.constant 0 : index
    %22 = vector.load %arg3[%c0_9, %c0_10] : memref<1x64xf32, #tpu.memory_space<vmem>>, vector<1x64xf32>
    %23 = arith.mulf %10, %21 : vector<1x64xf32>
    %24 = arith.subf %22, %23 : vector<1x64xf32>
    %c0_11 = arith.constant 0 : index
    %c0_12 = arith.constant 0 : index
    %25 = vector.load %arg4[%c0_11, %c0_12] : memref<32x64xbf16, #tpu.memory_space<vmem>>, vector<32x64xbf16>
    %26 = arith.extf %25 : vector<32x64xbf16> to vector<32x64xf32>
    %27 = vector.broadcast %21 : vector<1x64xf32> to vector<32x64xf32>
    %28 = arith.mulf %26, %27 : vector<32x64xf32>
    %29 = vector.broadcast %24 : vector<1x64xf32> to vector<32x64xf32>
    %30 = arith.addf %28, %29 : vector<32x64xf32>
    %cst_13 = arith.constant 0.000000e+00 : f32
    %31 = vector.broadcast %cst_13 : f32 to vector<32x64xf32>
    %32 = arith.maximumf %30, %31 : vector<32x64xf32>
    %33 = arith.truncf %32 : vector<32x64xf32> to vector<32x64xbf16>
    %c0_14 = arith.constant 0 : index
    %c0_15 = arith.constant 0 : index
    %34 = vector.load %arg5[%c0_14, %c0_15] : memref<32x64xbf16, #tpu.memory_space<vmem>>, vector<32x64xbf16>
    tpu.vector_store %arg5[%c0_14, %c0_15], %33 {strides = array<i32>} : memref<32x64xbf16, #tpu.memory_space<vmem>>, vector<32x64xbf16>,
    return
  }
  func.func @transform_0(%arg0: i32) -> (i32, i32, i32) {
    %c0_i32 = arith.constant 0 : i32
    %c0_i32_0 = arith.constant 0 : i32
    %c0_i32_1 = arith.constant 0 : i32
    %c0_i32_2 = arith.constant 0 : i32
    return %c0_i32, %c0_i32_0, %c0_i32_1 : i32, i32, i32
  }
  func.func @transform_1(%arg0: i32) -> (i32, i32) {
    %c0_i32 = arith.constant 0 : i32
    %c0_i32_0 = arith.constant 0 : i32
    %c0_i32_1 = arith.constant 0 : i32
    return %c0_i32, %c0_i32_0 : i32, i32
  }
  func.func @transform_2(%arg0: i32) -> (i32, i32) {
    %c0_i32 = arith.constant 0 : i32
    %c0_i32_0 = arith.constant 0 : i32
    %c0_i32_1 = arith.constant 0 : i32
    return %c0_i32, %c0_i32_0 : i32, i32
  }
  func.func @transform_3(%arg0: i32) -> (i32, i32) {
    %c0_i32 = arith.constant 0 : i32
    %c0_i32_0 = arith.constant 0 : i32
    return %arg0, %c0_i32 : i32, i32
  }
  func.func @transform_4(%arg0: i32) -> (i32, i32) {
    %c0_i32 = arith.constant 0 : i32
    %c0_i32_0 = arith.constant 0 : i32
    return %arg0, %c0_i32 : i32, i32
  }
}

module attributes {stable_mosaic.version = 11 : i64} {
  func.func @conv_stats_kernel(%arg0: i32, %arg1: memref<32x576xbf16, #tpu.memory_space<vmem>>, %arg2: memref<576x128xbf16, #tpu.memory_space<vmem>>, %arg3: memref<32x128xbf16, #tpu.memory_space<vmem>>, %arg4: memref<1x2x128xf32, #tpu.memory_space<vmem>>) attributes {dimension_semantics = [#tpu.dimension_semantics<parallel>], iteration_bounds = array<i64: 1>, scalar_prefetch = 0 : i64, scratch_operands = 0 : i64, tpu.core_type = #tpu.core_type<tc>, window_params = [{transform_indices = @transform_0, window_bounds = array<i64: 32, 576>}, {pipeline_mode = #tpu.pipeline_mode<synchronous>, transform_indices = @transform_1, window_bounds = array<i64: 576, 128>}, {transform_indices = @transform_2, window_bounds = array<i64: 32, 128>}, {transform_indices = @transform_3, window_bounds = array<i64: 1, 2, 128>}]} {
    %c0 = arith.constant 0 : index
    %c0_0 = arith.constant 0 : index
    %0 = vector.load %arg1[%c0, %c0_0] : memref<32x576xbf16, #tpu.memory_space<vmem>>, vector<32x576xbf16>
    %c0_1 = arith.constant 0 : index
    %c0_2 = arith.constant 0 : index
    %1 = vector.load %arg2[%c0_1, %c0_2] : memref<576x128xbf16, #tpu.memory_space<vmem>>, vector<576x128xbf16>
    %cst = arith.constant dense<0.000000e+00> : vector<32x128xf32>
    %2 = tpu.matmul %0, %1, %cst {dimension_numbers = #tpu.dot_dimension_numbers<[1], [0], [0], [1], [0, 0, 1, 1], [], []>} : vector<32x576xbf16>, vector<576x128xbf16>, vector<32x128xf32> -> vector<32x128xf32>
    %3 = arith.truncf %2 : vector<32x128xf32> to vector<32x128xbf16>
    %c0_3 = arith.constant 0 : index
    %c0_4 = arith.constant 0 : index
    %4 = vector.load %arg3[%c0_3, %c0_4] : memref<32x128xbf16, #tpu.memory_space<vmem>>, vector<32x128xbf16>
    tpu.vector_store %arg3[%c0_3, %c0_4], %3 {strides = array<i32>} : memref<32x128xbf16, #tpu.memory_space<vmem>>, vector<32x128xbf16>,
    %cst_5 = arith.constant dense<0.000000e+00> : vector<128xf32>
    %5 = vector.multi_reduction <add>, %2, %cst_5 [0] : vector<32x128xf32> to vector<128xf32>
    %6 = vector.shape_cast %5 : vector<128xf32> to vector<1x128xf32>
    %7 = arith.mulf %2, %2 : vector<32x128xf32>
    %cst_6 = arith.constant dense<0.000000e+00> : vector<128xf32>
    %8 = vector.multi_reduction <add>, %7, %cst_6 [0] : vector<32x128xf32> to vector<128xf32>
    %9 = vector.shape_cast %8 : vector<128xf32> to vector<1x128xf32>
    %10 = tpu.concatenate %6, %9 in 0 : vector<1x128xf32>, vector<1x128xf32> -> vector<2x128xf32>
    %11 = vector.shape_cast %10 : vector<2x128xf32> to vector<1x2x128xf32>
    %c0_7 = arith.constant 0 : index
    %c0_8 = arith.constant 0 : index
    %c0_9 = arith.constant 0 : index
    %12 = vector.load %arg4[%c0_7, %c0_8, %c0_9] : memref<1x2x128xf32, #tpu.memory_space<vmem>>, vector<1x2x128xf32>
    tpu.vector_store %arg4[%c0_7, %c0_8, %c0_9], %11 {strides = array<i32>} : memref<1x2x128xf32, #tpu.memory_space<vmem>>, vector<1x2x128xf32>,
    return
  }
  func.func @transform_0(%arg0: i32) -> (i32, i32) {
    %c0_i32 = arith.constant 0 : i32
    %c0_i32_0 = arith.constant 0 : i32
    return %arg0, %c0_i32 : i32, i32
  }
  func.func @transform_1(%arg0: i32) -> (i32, i32) {
    %c0_i32 = arith.constant 0 : i32
    %c0_i32_0 = arith.constant 0 : i32
    %c0_i32_1 = arith.constant 0 : i32
    return %c0_i32, %c0_i32_0 : i32, i32
  }
  func.func @transform_2(%arg0: i32) -> (i32, i32) {
    %c0_i32 = arith.constant 0 : i32
    %c0_i32_0 = arith.constant 0 : i32
    return %arg0, %c0_i32 : i32, i32
  }
  func.func @transform_3(%arg0: i32) -> (i32, i32, i32) {
    %c0_i32 = arith.constant 0 : i32
    %c0_i32_0 = arith.constant 0 : i32
    %c0_i32_1 = arith.constant 0 : i32
    return %arg0, %c0_i32, %c0_i32_0 : i32, i32, i32
  }
}

module attributes {stable_mosaic.version = 11 : i64} {
  func.func @bn_relu_kernel(%arg0: i32, %arg1: memref<1x2x128xf32, #tpu.memory_space<vmem>>, %arg2: memref<1x128xf32, #tpu.memory_space<vmem>>, %arg3: memref<1x128xf32, #tpu.memory_space<vmem>>, %arg4: memref<32x128xbf16, #tpu.memory_space<vmem>>, %arg5: memref<32x128xbf16, #tpu.memory_space<vmem>>) attributes {dimension_semantics = [#tpu.dimension_semantics<parallel>], iteration_bounds = array<i64: 1>, scalar_prefetch = 0 : i64, scratch_operands = 0 : i64, tpu.core_type = #tpu.core_type<tc>, window_params = [{pipeline_mode = #tpu.pipeline_mode<synchronous>, transform_indices = @transform_0, window_bounds = array<i64: 1, 2, 128>}, {pipeline_mode = #tpu.pipeline_mode<synchronous>, transform_indices = @transform_1, window_bounds = array<i64: 1, 128>}, {pipeline_mode = #tpu.pipeline_mode<synchronous>, transform_indices = @transform_2, window_bounds = array<i64: 1, 128>}, {transform_indices = @transform_3, window_bounds = array<i64: 32, 128>}, {transform_indices = @transform_4, window_bounds = array<i64: 32, 128>}]} {
    %c0 = arith.constant 0 : index
    %c0_0 = arith.constant 0 : index
    %c0_1 = arith.constant 0 : index
    %0 = vector.load %arg1[%c0, %c0_0, %c0_1] : memref<1x2x128xf32, #tpu.memory_space<vmem>>, vector<1x2x128xf32>
    %1 = vector.extract_strided_slice %0 {offsets = [0, 0, 0], sizes = [1, 1, 128], strides = [1, 1, 1]} : vector<1x2x128xf32> to vector<1x1x128xf32>
    %2 = vector.shape_cast %1 : vector<1x1x128xf32> to vector<1x128xf32>
    %cst = arith.constant dense<0.000000e+00> : vector<128xf32>
    %3 = vector.multi_reduction <add>, %2, %cst [0] : vector<1x128xf32> to vector<128xf32>
    %4 = vector.shape_cast %3 : vector<128xf32> to vector<1x128xf32>
    %5 = vector.extract_strided_slice %0 {offsets = [0, 1, 0], sizes = [1, 1, 128], strides = [1, 1, 1]} : vector<1x2x128xf32> to vector<1x1x128xf32>
    %6 = vector.shape_cast %5 : vector<1x1x128xf32> to vector<1x128xf32>
    %cst_2 = arith.constant dense<0.000000e+00> : vector<128xf32>
    %7 = vector.multi_reduction <add>, %6, %cst_2 [0] : vector<1x128xf32> to vector<128xf32>
    %8 = vector.shape_cast %7 : vector<128xf32> to vector<1x128xf32>
    %cst_3 = arith.constant 3.125000e-02 : f32
    %9 = vector.broadcast %cst_3 : f32 to vector<1x128xf32>
    %10 = arith.mulf %4, %9 : vector<1x128xf32>
    %cst_4 = arith.constant 3.125000e-02 : f32
    %11 = vector.broadcast %cst_4 : f32 to vector<1x128xf32>
    %12 = arith.mulf %8, %11 : vector<1x128xf32>
    %13 = arith.mulf %10, %10 : vector<1x128xf32>
    %14 = arith.subf %12, %13 : vector<1x128xf32>
    %cst_5 = arith.constant 0.000000e+00 : f32
    %15 = vector.broadcast %cst_5 : f32 to vector<1x128xf32>
    %16 = arith.maximumf %14, %15 : vector<1x128xf32>
    %c0_6 = arith.constant 0 : index
    %c0_7 = arith.constant 0 : index
    %17 = vector.load %arg2[%c0_6, %c0_7] : memref<1x128xf32, #tpu.memory_space<vmem>>, vector<1x128xf32>
    %cst_8 = arith.constant 9.99999974E-6 : f32
    %18 = vector.broadcast %cst_8 : f32 to vector<1x128xf32>
    %19 = arith.addf %16, %18 : vector<1x128xf32>
    %20 = math.rsqrt %19 : vector<1x128xf32>
    %21 = arith.mulf %17, %20 : vector<1x128xf32>
    %c0_9 = arith.constant 0 : index
    %c0_10 = arith.constant 0 : index
    %22 = vector.load %arg3[%c0_9, %c0_10] : memref<1x128xf32, #tpu.memory_space<vmem>>, vector<1x128xf32>
    %23 = arith.mulf %10, %21 : vector<1x128xf32>
    %24 = arith.subf %22, %23 : vector<1x128xf32>
    %c0_11 = arith.constant 0 : index
    %c0_12 = arith.constant 0 : index
    %25 = vector.load %arg4[%c0_11, %c0_12] : memref<32x128xbf16, #tpu.memory_space<vmem>>, vector<32x128xbf16>
    %26 = arith.extf %25 : vector<32x128xbf16> to vector<32x128xf32>
    %27 = vector.broadcast %21 : vector<1x128xf32> to vector<32x128xf32>
    %28 = arith.mulf %26, %27 : vector<32x128xf32>
    %29 = vector.broadcast %24 : vector<1x128xf32> to vector<32x128xf32>
    %30 = arith.addf %28, %29 : vector<32x128xf32>
    %cst_13 = arith.constant 0.000000e+00 : f32
    %31 = vector.broadcast %cst_13 : f32 to vector<32x128xf32>
    %32 = arith.maximumf %30, %31 : vector<32x128xf32>
    %33 = arith.truncf %32 : vector<32x128xf32> to vector<32x128xbf16>
    %c0_14 = arith.constant 0 : index
    %c0_15 = arith.constant 0 : index
    %34 = vector.load %arg5[%c0_14, %c0_15] : memref<32x128xbf16, #tpu.memory_space<vmem>>, vector<32x128xbf16>
    tpu.vector_store %arg5[%c0_14, %c0_15], %33 {strides = array<i32>} : memref<32x128xbf16, #tpu.memory_space<vmem>>, vector<32x128xbf16>,
    return
  }
  func.func @transform_0(%arg0: i32) -> (i32, i32, i32) {
    %c0_i32 = arith.constant 0 : i32
    %c0_i32_0 = arith.constant 0 : i32
    %c0_i32_1 = arith.constant 0 : i32
    %c0_i32_2 = arith.constant 0 : i32
    return %c0_i32, %c0_i32_0, %c0_i32_1 : i32, i32, i32
  }
  func.func @transform_1(%arg0: i32) -> (i32, i32) {
    %c0_i32 = arith.constant 0 : i32
    %c0_i32_0 = arith.constant 0 : i32
    %c0_i32_1 = arith.constant 0 : i32
    return %c0_i32, %c0_i32_0 : i32, i32
  }
  func.func @transform_2(%arg0: i32) -> (i32, i32) {
    %c0_i32 = arith.constant 0 : i32
    %c0_i32_0 = arith.constant 0 : i32
    %c0_i32_1 = arith.constant 0 : i32
    return %c0_i32, %c0_i32_0 : i32, i32
  }
  func.func @transform_3(%arg0: i32) -> (i32, i32) {
    %c0_i32 = arith.constant 0 : i32
    %c0_i32_0 = arith.constant 0 : i32
    return %arg0, %c0_i32 : i32, i32
  }
  func.func @transform_4(%arg0: i32) -> (i32, i32) {
    %c0_i32 = arith.constant 0 : i32
    %c0_i32_0 = arith.constant 0 : i32
    return %arg0, %c0_i32 : i32, i32
  }
}

module attributes {stable_mosaic.version = 11 : i64} {
  func.func @conv_stats_kernel(%arg0: i32, %arg1: memref<8x128xbf16, #tpu.memory_space<vmem>>, %arg2: memref<128x128xbf16, #tpu.memory_space<vmem>>, %arg3: memref<8x128xbf16, #tpu.memory_space<vmem>>, %arg4: memref<1x2x128xf32, #tpu.memory_space<vmem>>) attributes {dimension_semantics = [#tpu.dimension_semantics<parallel>], iteration_bounds = array<i64: 1>, scalar_prefetch = 0 : i64, scratch_operands = 0 : i64, tpu.core_type = #tpu.core_type<tc>, window_params = [{transform_indices = @transform_0, window_bounds = array<i64: 8, 128>}, {pipeline_mode = #tpu.pipeline_mode<synchronous>, transform_indices = @transform_1, window_bounds = array<i64: 128, 128>}, {transform_indices = @transform_2, window_bounds = array<i64: 8, 128>}, {transform_indices = @transform_3, window_bounds = array<i64: 1, 2, 128>}]} {
    %c0 = arith.constant 0 : index
    %c0_0 = arith.constant 0 : index
    %0 = vector.load %arg1[%c0, %c0_0] : memref<8x128xbf16, #tpu.memory_space<vmem>>, vector<8x128xbf16>
    %c0_1 = arith.constant 0 : index
    %c0_2 = arith.constant 0 : index
    %1 = vector.load %arg2[%c0_1, %c0_2] : memref<128x128xbf16, #tpu.memory_space<vmem>>, vector<128x128xbf16>
    %cst = arith.constant dense<0.000000e+00> : vector<8x128xf32>
    %2 = tpu.matmul %0, %1, %cst {dimension_numbers = #tpu.dot_dimension_numbers<[1], [0], [0], [1], [0, 0, 1, 1], [], []>} : vector<8x128xbf16>, vector<128x128xbf16>, vector<8x128xf32> -> vector<8x128xf32>
    %3 = arith.truncf %2 : vector<8x128xf32> to vector<8x128xbf16>
    %c0_3 = arith.constant 0 : index
    %c0_4 = arith.constant 0 : index
    %4 = vector.load %arg3[%c0_3, %c0_4] : memref<8x128xbf16, #tpu.memory_space<vmem>>, vector<8x128xbf16>
    tpu.vector_store %arg3[%c0_3, %c0_4], %3 {strides = array<i32>} : memref<8x128xbf16, #tpu.memory_space<vmem>>, vector<8x128xbf16>,
    %cst_5 = arith.constant dense<0.000000e+00> : vector<128xf32>
    %5 = vector.multi_reduction <add>, %2, %cst_5 [0] : vector<8x128xf32> to vector<128xf32>
    %6 = vector.shape_cast %5 : vector<128xf32> to vector<1x128xf32>
    %7 = arith.mulf %2, %2 : vector<8x128xf32>
    %cst_6 = arith.constant dense<0.000000e+00> : vector<128xf32>
    %8 = vector.multi_reduction <add>, %7, %cst_6 [0] : vector<8x128xf32> to vector<128xf32>
    %9 = vector.shape_cast %8 : vector<128xf32> to vector<1x128xf32>
    %10 = tpu.concatenate %6, %9 in 0 : vector<1x128xf32>, vector<1x128xf32> -> vector<2x128xf32>
    %11 = vector.shape_cast %10 : vector<2x128xf32> to vector<1x2x128xf32>
    %c0_7 = arith.constant 0 : index
    %c0_8 = arith.constant 0 : index
    %c0_9 = arith.constant 0 : index
    %12 = vector.load %arg4[%c0_7, %c0_8, %c0_9] : memref<1x2x128xf32, #tpu.memory_space<vmem>>, vector<1x2x128xf32>
    tpu.vector_store %arg4[%c0_7, %c0_8, %c0_9], %11 {strides = array<i32>} : memref<1x2x128xf32, #tpu.memory_space<vmem>>, vector<1x2x128xf32>,
    return
  }
  func.func @transform_0(%arg0: i32) -> (i32, i32) {
    %c0_i32 = arith.constant 0 : i32
    %c0_i32_0 = arith.constant 0 : i32
    return %arg0, %c0_i32 : i32, i32
  }
  func.func @transform_1(%arg0: i32) -> (i32, i32) {
    %c0_i32 = arith.constant 0 : i32
    %c0_i32_0 = arith.constant 0 : i32
    %c0_i32_1 = arith.constant 0 : i32
    return %c0_i32, %c0_i32_0 : i32, i32
  }
  func.func @transform_2(%arg0: i32) -> (i32, i32) {
    %c0_i32 = arith.constant 0 : i32
    %c0_i32_0 = arith.constant 0 : i32
    return %arg0, %c0_i32 : i32, i32
  }
  func.func @transform_3(%arg0: i32) -> (i32, i32, i32) {
    %c0_i32 = arith.constant 0 : i32
    %c0_i32_0 = arith.constant 0 : i32
    %c0_i32_1 = arith.constant 0 : i32
    return %arg0, %c0_i32, %c0_i32_0 : i32, i32, i32
  }
}

module attributes {stable_mosaic.version = 11 : i64} {
  func.func @bn_relu_kernel(%arg0: i32, %arg1: memref<1x2x128xf32, #tpu.memory_space<vmem>>, %arg2: memref<1x128xf32, #tpu.memory_space<vmem>>, %arg3: memref<1x128xf32, #tpu.memory_space<vmem>>, %arg4: memref<8x128xbf16, #tpu.memory_space<vmem>>, %arg5: memref<8x128xbf16, #tpu.memory_space<vmem>>) attributes {dimension_semantics = [#tpu.dimension_semantics<parallel>], iteration_bounds = array<i64: 1>, scalar_prefetch = 0 : i64, scratch_operands = 0 : i64, tpu.core_type = #tpu.core_type<tc>, window_params = [{pipeline_mode = #tpu.pipeline_mode<synchronous>, transform_indices = @transform_0, window_bounds = array<i64: 1, 2, 128>}, {pipeline_mode = #tpu.pipeline_mode<synchronous>, transform_indices = @transform_1, window_bounds = array<i64: 1, 128>}, {pipeline_mode = #tpu.pipeline_mode<synchronous>, transform_indices = @transform_2, window_bounds = array<i64: 1, 128>}, {transform_indices = @transform_3, window_bounds = array<i64: 8, 128>}, {transform_indices = @transform_4, window_bounds = array<i64: 8, 128>}]} {
    %c0 = arith.constant 0 : index
    %c0_0 = arith.constant 0 : index
    %c0_1 = arith.constant 0 : index
    %0 = vector.load %arg1[%c0, %c0_0, %c0_1] : memref<1x2x128xf32, #tpu.memory_space<vmem>>, vector<1x2x128xf32>
    %1 = vector.extract_strided_slice %0 {offsets = [0, 0, 0], sizes = [1, 1, 128], strides = [1, 1, 1]} : vector<1x2x128xf32> to vector<1x1x128xf32>
    %2 = vector.shape_cast %1 : vector<1x1x128xf32> to vector<1x128xf32>
    %cst = arith.constant dense<0.000000e+00> : vector<128xf32>
    %3 = vector.multi_reduction <add>, %2, %cst [0] : vector<1x128xf32> to vector<128xf32>
    %4 = vector.shape_cast %3 : vector<128xf32> to vector<1x128xf32>
    %5 = vector.extract_strided_slice %0 {offsets = [0, 1, 0], sizes = [1, 1, 128], strides = [1, 1, 1]} : vector<1x2x128xf32> to vector<1x1x128xf32>
    %6 = vector.shape_cast %5 : vector<1x1x128xf32> to vector<1x128xf32>
    %cst_2 = arith.constant dense<0.000000e+00> : vector<128xf32>
    %7 = vector.multi_reduction <add>, %6, %cst_2 [0] : vector<1x128xf32> to vector<128xf32>
    %8 = vector.shape_cast %7 : vector<128xf32> to vector<1x128xf32>
    %cst_3 = arith.constant 1.250000e-01 : f32
    %9 = vector.broadcast %cst_3 : f32 to vector<1x128xf32>
    %10 = arith.mulf %4, %9 : vector<1x128xf32>
    %cst_4 = arith.constant 1.250000e-01 : f32
    %11 = vector.broadcast %cst_4 : f32 to vector<1x128xf32>
    %12 = arith.mulf %8, %11 : vector<1x128xf32>
    %13 = arith.mulf %10, %10 : vector<1x128xf32>
    %14 = arith.subf %12, %13 : vector<1x128xf32>
    %cst_5 = arith.constant 0.000000e+00 : f32
    %15 = vector.broadcast %cst_5 : f32 to vector<1x128xf32>
    %16 = arith.maximumf %14, %15 : vector<1x128xf32>
    %c0_6 = arith.constant 0 : index
    %c0_7 = arith.constant 0 : index
    %17 = vector.load %arg2[%c0_6, %c0_7] : memref<1x128xf32, #tpu.memory_space<vmem>>, vector<1x128xf32>
    %cst_8 = arith.constant 9.99999974E-6 : f32
    %18 = vector.broadcast %cst_8 : f32 to vector<1x128xf32>
    %19 = arith.addf %16, %18 : vector<1x128xf32>
    %20 = math.rsqrt %19 : vector<1x128xf32>
    %21 = arith.mulf %17, %20 : vector<1x128xf32>
    %c0_9 = arith.constant 0 : index
    %c0_10 = arith.constant 0 : index
    %22 = vector.load %arg3[%c0_9, %c0_10] : memref<1x128xf32, #tpu.memory_space<vmem>>, vector<1x128xf32>
    %23 = arith.mulf %10, %21 : vector<1x128xf32>
    %24 = arith.subf %22, %23 : vector<1x128xf32>
    %c0_11 = arith.constant 0 : index
    %c0_12 = arith.constant 0 : index
    %25 = vector.load %arg4[%c0_11, %c0_12] : memref<8x128xbf16, #tpu.memory_space<vmem>>, vector<8x128xbf16>
    %26 = arith.extf %25 : vector<8x128xbf16> to vector<8x128xf32>
    %27 = vector.broadcast %21 : vector<1x128xf32> to vector<8x128xf32>
    %28 = arith.mulf %26, %27 : vector<8x128xf32>
    %29 = vector.broadcast %24 : vector<1x128xf32> to vector<8x128xf32>
    %30 = arith.addf %28, %29 : vector<8x128xf32>
    %cst_13 = arith.constant 0.000000e+00 : f32
    %31 = vector.broadcast %cst_13 : f32 to vector<8x128xf32>
    %32 = arith.maximumf %30, %31 : vector<8x128xf32>
    %33 = arith.truncf %32 : vector<8x128xf32> to vector<8x128xbf16>
    %c0_14 = arith.constant 0 : index
    %c0_15 = arith.constant 0 : index
    %34 = vector.load %arg5[%c0_14, %c0_15] : memref<8x128xbf16, #tpu.memory_space<vmem>>, vector<8x128xbf16>
    tpu.vector_store %arg5[%c0_14, %c0_15], %33 {strides = array<i32>} : memref<8x128xbf16, #tpu.memory_space<vmem>>, vector<8x128xbf16>,
    return
  }
  func.func @transform_0(%arg0: i32) -> (i32, i32, i32) {
    %c0_i32 = arith.constant 0 : i32
    %c0_i32_0 = arith.constant 0 : i32
    %c0_i32_1 = arith.constant 0 : i32
    %c0_i32_2 = arith.constant 0 : i32
    return %c0_i32, %c0_i32_0, %c0_i32_1 : i32, i32, i32
  }
  func.func @transform_1(%arg0: i32) -> (i32, i32) {
    %c0_i32 = arith.constant 0 : i32
    %c0_i32_0 = arith.constant 0 : i32
    %c0_i32_1 = arith.constant 0 : i32
    return %c0_i32, %c0_i32_0 : i32, i32
  }
  func.func @transform_2(%arg0: i32) -> (i32, i32) {
    %c0_i32 = arith.constant 0 : i32
    %c0_i32_0 = arith.constant 0 : i32
    %c0_i32_1 = arith.constant 0 : i32
    return %c0_i32, %c0_i32_0 : i32, i32
  }
  func.func @transform_3(%arg0: i32) -> (i32, i32) {
    %c0_i32 = arith.constant 0 : i32
    %c0_i32_0 = arith.constant 0 : i32
    return %arg0, %c0_i32 : i32, i32
  }
  func.func @transform_4(%arg0: i32) -> (i32, i32) {
    %c0_i32 = arith.constant 0 : i32
    %c0_i32_0 = arith.constant 0 : i32
    return %arg0, %c0_i32 : i32, i32
  }
}

module attributes {stable_mosaic.version = 11 : i64} {
  func.func @conv_stats_kernel(%arg0: i32, %arg1: memref<32x2304xbf16, #tpu.memory_space<vmem>>, %arg2: memref<2304x128xbf16, #tpu.memory_space<vmem>>, %arg3: memref<32x128xbf16, #tpu.memory_space<vmem>>, %arg4: memref<1x2x128xf32, #tpu.memory_space<vmem>>) attributes {dimension_semantics = [#tpu.dimension_semantics<parallel>], iteration_bounds = array<i64: 1>, scalar_prefetch = 0 : i64, scratch_operands = 0 : i64, tpu.core_type = #tpu.core_type<tc>, window_params = [{transform_indices = @transform_0, window_bounds = array<i64: 32, 2304>}, {pipeline_mode = #tpu.pipeline_mode<synchronous>, transform_indices = @transform_1, window_bounds = array<i64: 2304, 128>}, {transform_indices = @transform_2, window_bounds = array<i64: 32, 128>}, {transform_indices = @transform_3, window_bounds = array<i64: 1, 2, 128>}]} {
    %c0 = arith.constant 0 : index
    %c0_0 = arith.constant 0 : index
    %0 = vector.load %arg1[%c0, %c0_0] : memref<32x2304xbf16, #tpu.memory_space<vmem>>, vector<32x2304xbf16>
    %c0_1 = arith.constant 0 : index
    %c0_2 = arith.constant 0 : index
    %1 = vector.load %arg2[%c0_1, %c0_2] : memref<2304x128xbf16, #tpu.memory_space<vmem>>, vector<2304x128xbf16>
    %cst = arith.constant dense<0.000000e+00> : vector<32x128xf32>
    %2 = tpu.matmul %0, %1, %cst {dimension_numbers = #tpu.dot_dimension_numbers<[1], [0], [0], [1], [0, 0, 1, 1], [], []>} : vector<32x2304xbf16>, vector<2304x128xbf16>, vector<32x128xf32> -> vector<32x128xf32>
    %3 = arith.truncf %2 : vector<32x128xf32> to vector<32x128xbf16>
    %c0_3 = arith.constant 0 : index
    %c0_4 = arith.constant 0 : index
    %4 = vector.load %arg3[%c0_3, %c0_4] : memref<32x128xbf16, #tpu.memory_space<vmem>>, vector<32x128xbf16>
    tpu.vector_store %arg3[%c0_3, %c0_4], %3 {strides = array<i32>} : memref<32x128xbf16, #tpu.memory_space<vmem>>, vector<32x128xbf16>,
    %cst_5 = arith.constant dense<0.000000e+00> : vector<128xf32>
    %5 = vector.multi_reduction <add>, %2, %cst_5 [0] : vector<32x128xf32> to vector<128xf32>
    %6 = vector.shape_cast %5 : vector<128xf32> to vector<1x128xf32>
    %7 = arith.mulf %2, %2 : vector<32x128xf32>
    %cst_6 = arith.constant dense<0.000000e+00> : vector<128xf32>
    %8 = vector.multi_reduction <add>, %7, %cst_6 [0] : vector<32x128xf32> to vector<128xf32>
    %9 = vector.shape_cast %8 : vector<128xf32> to vector<1x128xf32>
    %10 = tpu.concatenate %6, %9 in 0 : vector<1x128xf32>, vector<1x128xf32> -> vector<2x128xf32>
    %11 = vector.shape_cast %10 : vector<2x128xf32> to vector<1x2x128xf32>
    %c0_7 = arith.constant 0 : index
    %c0_8 = arith.constant 0 : index
    %c0_9 = arith.constant 0 : index
    %12 = vector.load %arg4[%c0_7, %c0_8, %c0_9] : memref<1x2x128xf32, #tpu.memory_space<vmem>>, vector<1x2x128xf32>
    tpu.vector_store %arg4[%c0_7, %c0_8, %c0_9], %11 {strides = array<i32>} : memref<1x2x128xf32, #tpu.memory_space<vmem>>, vector<1x2x128xf32>,
    return
  }
  func.func @transform_0(%arg0: i32) -> (i32, i32) {
    %c0_i32 = arith.constant 0 : i32
    %c0_i32_0 = arith.constant 0 : i32
    return %arg0, %c0_i32 : i32, i32
  }
  func.func @transform_1(%arg0: i32) -> (i32, i32) {
    %c0_i32 = arith.constant 0 : i32
    %c0_i32_0 = arith.constant 0 : i32
    %c0_i32_1 = arith.constant 0 : i32
    return %c0_i32, %c0_i32_0 : i32, i32
  }
  func.func @transform_2(%arg0: i32) -> (i32, i32) {
    %c0_i32 = arith.constant 0 : i32
    %c0_i32_0 = arith.constant 0 : i32
    return %arg0, %c0_i32 : i32, i32
  }
  func.func @transform_3(%arg0: i32) -> (i32, i32, i32) {
    %c0_i32 = arith.constant 0 : i32
    %c0_i32_0 = arith.constant 0 : i32
    %c0_i32_1 = arith.constant 0 : i32
    return %arg0, %c0_i32, %c0_i32_0 : i32, i32, i32
  }
}

module attributes {stable_mosaic.version = 11 : i64} {
  func.func @conv_stats_kernel(%arg0: i32, %arg1: memref<32x1152xbf16, #tpu.memory_space<vmem>>, %arg2: memref<1152x32xbf16, #tpu.memory_space<vmem>>, %arg3: memref<32x32xbf16, #tpu.memory_space<vmem>>, %arg4: memref<1x2x32xf32, #tpu.memory_space<vmem>>) attributes {dimension_semantics = [#tpu.dimension_semantics<parallel>], iteration_bounds = array<i64: 1>, scalar_prefetch = 0 : i64, scratch_operands = 0 : i64, tpu.core_type = #tpu.core_type<tc>, window_params = [{transform_indices = @transform_0, window_bounds = array<i64: 32, 1152>}, {pipeline_mode = #tpu.pipeline_mode<synchronous>, transform_indices = @transform_1, window_bounds = array<i64: 1152, 32>}, {transform_indices = @transform_2, window_bounds = array<i64: 32, 32>}, {transform_indices = @transform_3, window_bounds = array<i64: 1, 2, 32>}]} {
    %c0 = arith.constant 0 : index
    %c0_0 = arith.constant 0 : index
    %0 = vector.load %arg1[%c0, %c0_0] : memref<32x1152xbf16, #tpu.memory_space<vmem>>, vector<32x1152xbf16>
    %c0_1 = arith.constant 0 : index
    %c0_2 = arith.constant 0 : index
    %1 = vector.load %arg2[%c0_1, %c0_2] : memref<1152x32xbf16, #tpu.memory_space<vmem>>, vector<1152x32xbf16>
    %cst = arith.constant dense<0.000000e+00> : vector<32x32xf32>
    %2 = tpu.matmul %0, %1, %cst {dimension_numbers = #tpu.dot_dimension_numbers<[1], [0], [0], [1], [0, 0, 1, 1], [], []>} : vector<32x1152xbf16>, vector<1152x32xbf16>, vector<32x32xf32> -> vector<32x32xf32>
    %3 = arith.truncf %2 : vector<32x32xf32> to vector<32x32xbf16>
    %c0_3 = arith.constant 0 : index
    %c0_4 = arith.constant 0 : index
    %4 = vector.load %arg3[%c0_3, %c0_4] : memref<32x32xbf16, #tpu.memory_space<vmem>>, vector<32x32xbf16>
    tpu.vector_store %arg3[%c0_3, %c0_4], %3 {strides = array<i32>} : memref<32x32xbf16, #tpu.memory_space<vmem>>, vector<32x32xbf16>,
    %cst_5 = arith.constant dense<0.000000e+00> : vector<32xf32>
    %5 = vector.multi_reduction <add>, %2, %cst_5 [0] : vector<32x32xf32> to vector<32xf32>
    %6 = vector.shape_cast %5 : vector<32xf32> to vector<1x32xf32>
    %7 = arith.mulf %2, %2 : vector<32x32xf32>
    %cst_6 = arith.constant dense<0.000000e+00> : vector<32xf32>
    %8 = vector.multi_reduction <add>, %7, %cst_6 [0] : vector<32x32xf32> to vector<32xf32>
    %9 = vector.shape_cast %8 : vector<32xf32> to vector<1x32xf32>
    %10 = tpu.concatenate %6, %9 in 0 : vector<1x32xf32>, vector<1x32xf32> -> vector<2x32xf32>
    %11 = vector.shape_cast %10 : vector<2x32xf32> to vector<1x2x32xf32>
    %c0_7 = arith.constant 0 : index
    %c0_8 = arith.constant 0 : index
    %c0_9 = arith.constant 0 : index
    %12 = vector.load %arg4[%c0_7, %c0_8, %c0_9] : memref<1x2x32xf32, #tpu.memory_space<vmem>>, vector<1x2x32xf32>
    tpu.vector_store %arg4[%c0_7, %c0_8, %c0_9], %11 {strides = array<i32>} : memref<1x2x32xf32, #tpu.memory_space<vmem>>, vector<1x2x32xf32>,
    return
  }
  func.func @transform_0(%arg0: i32) -> (i32, i32) {
    %c0_i32 = arith.constant 0 : i32
    %c0_i32_0 = arith.constant 0 : i32
    return %arg0, %c0_i32 : i32, i32
  }
  func.func @transform_1(%arg0: i32) -> (i32, i32) {
    %c0_i32 = arith.constant 0 : i32
    %c0_i32_0 = arith.constant 0 : i32
    %c0_i32_1 = arith.constant 0 : i32
    return %c0_i32, %c0_i32_0 : i32, i32
  }
  func.func @transform_2(%arg0: i32) -> (i32, i32) {
    %c0_i32 = arith.constant 0 : i32
    %c0_i32_0 = arith.constant 0 : i32
    return %arg0, %c0_i32 : i32, i32
  }
  func.func @transform_3(%arg0: i32) -> (i32, i32, i32) {
    %c0_i32 = arith.constant 0 : i32
    %c0_i32_0 = arith.constant 0 : i32
    %c0_i32_1 = arith.constant 0 : i32
    return %arg0, %c0_i32, %c0_i32_0 : i32, i32, i32
  }
}

module attributes {stable_mosaic.version = 11 : i64} {
  func.func @bn_relu_kernel(%arg0: i32, %arg1: memref<1x2x32xf32, #tpu.memory_space<vmem>>, %arg2: memref<1x32xf32, #tpu.memory_space<vmem>>, %arg3: memref<1x32xf32, #tpu.memory_space<vmem>>, %arg4: memref<32x32xbf16, #tpu.memory_space<vmem>>, %arg5: memref<32x32xbf16, #tpu.memory_space<vmem>>) attributes {dimension_semantics = [#tpu.dimension_semantics<parallel>], iteration_bounds = array<i64: 1>, scalar_prefetch = 0 : i64, scratch_operands = 0 : i64, tpu.core_type = #tpu.core_type<tc>, window_params = [{pipeline_mode = #tpu.pipeline_mode<synchronous>, transform_indices = @transform_0, window_bounds = array<i64: 1, 2, 32>}, {pipeline_mode = #tpu.pipeline_mode<synchronous>, transform_indices = @transform_1, window_bounds = array<i64: 1, 32>}, {pipeline_mode = #tpu.pipeline_mode<synchronous>, transform_indices = @transform_2, window_bounds = array<i64: 1, 32>}, {transform_indices = @transform_3, window_bounds = array<i64: 32, 32>}, {transform_indices = @transform_4, window_bounds = array<i64: 32, 32>}]} {
    %c0 = arith.constant 0 : index
    %c0_0 = arith.constant 0 : index
    %c0_1 = arith.constant 0 : index
    %0 = vector.load %arg1[%c0, %c0_0, %c0_1] : memref<1x2x32xf32, #tpu.memory_space<vmem>>, vector<1x2x32xf32>
    %1 = vector.extract_strided_slice %0 {offsets = [0, 0, 0], sizes = [1, 1, 32], strides = [1, 1, 1]} : vector<1x2x32xf32> to vector<1x1x32xf32>
    %2 = vector.shape_cast %1 : vector<1x1x32xf32> to vector<1x32xf32>
    %cst = arith.constant dense<0.000000e+00> : vector<32xf32>
    %3 = vector.multi_reduction <add>, %2, %cst [0] : vector<1x32xf32> to vector<32xf32>
    %4 = vector.shape_cast %3 : vector<32xf32> to vector<1x32xf32>
    %5 = vector.extract_strided_slice %0 {offsets = [0, 1, 0], sizes = [1, 1, 32], strides = [1, 1, 1]} : vector<1x2x32xf32> to vector<1x1x32xf32>
    %6 = vector.shape_cast %5 : vector<1x1x32xf32> to vector<1x32xf32>
    %cst_2 = arith.constant dense<0.000000e+00> : vector<32xf32>
    %7 = vector.multi_reduction <add>, %6, %cst_2 [0] : vector<1x32xf32> to vector<32xf32>
    %8 = vector.shape_cast %7 : vector<32xf32> to vector<1x32xf32>
    %cst_3 = arith.constant 3.125000e-02 : f32
    %9 = vector.broadcast %cst_3 : f32 to vector<1x32xf32>
    %10 = arith.mulf %4, %9 : vector<1x32xf32>
    %cst_4 = arith.constant 3.125000e-02 : f32
    %11 = vector.broadcast %cst_4 : f32 to vector<1x32xf32>
    %12 = arith.mulf %8, %11 : vector<1x32xf32>
    %13 = arith.mulf %10, %10 : vector<1x32xf32>
    %14 = arith.subf %12, %13 : vector<1x32xf32>
    %cst_5 = arith.constant 0.000000e+00 : f32
    %15 = vector.broadcast %cst_5 : f32 to vector<1x32xf32>
    %16 = arith.maximumf %14, %15 : vector<1x32xf32>
    %c0_6 = arith.constant 0 : index
    %c0_7 = arith.constant 0 : index
    %17 = vector.load %arg2[%c0_6, %c0_7] : memref<1x32xf32, #tpu.memory_space<vmem>>, vector<1x32xf32>
    %cst_8 = arith.constant 9.99999974E-6 : f32
    %18 = vector.broadcast %cst_8 : f32 to vector<1x32xf32>
    %19 = arith.addf %16, %18 : vector<1x32xf32>
    %20 = math.rsqrt %19 : vector<1x32xf32>
    %21 = arith.mulf %17, %20 : vector<1x32xf32>
    %c0_9 = arith.constant 0 : index
    %c0_10 = arith.constant 0 : index
    %22 = vector.load %arg3[%c0_9, %c0_10] : memref<1x32xf32, #tpu.memory_space<vmem>>, vector<1x32xf32>
    %23 = arith.mulf %10, %21 : vector<1x32xf32>
    %24 = arith.subf %22, %23 : vector<1x32xf32>
    %c0_11 = arith.constant 0 : index
    %c0_12 = arith.constant 0 : index
    %25 = vector.load %arg4[%c0_11, %c0_12] : memref<32x32xbf16, #tpu.memory_space<vmem>>, vector<32x32xbf16>
    %26 = arith.extf %25 : vector<32x32xbf16> to vector<32x32xf32>
    %27 = vector.broadcast %21 : vector<1x32xf32> to vector<32x32xf32>
    %28 = arith.mulf %26, %27 : vector<32x32xf32>
    %29 = vector.broadcast %24 : vector<1x32xf32> to vector<32x32xf32>
    %30 = arith.addf %28, %29 : vector<32x32xf32>
    %cst_13 = arith.constant 0.000000e+00 : f32
    %31 = vector.broadcast %cst_13 : f32 to vector<32x32xf32>
    %32 = arith.maximumf %30, %31 : vector<32x32xf32>
    %33 = arith.truncf %32 : vector<32x32xf32> to vector<32x32xbf16>
    %c0_14 = arith.constant 0 : index
    %c0_15 = arith.constant 0 : index
    %34 = vector.load %arg5[%c0_14, %c0_15] : memref<32x32xbf16, #tpu.memory_space<vmem>>, vector<32x32xbf16>
    tpu.vector_store %arg5[%c0_14, %c0_15], %33 {strides = array<i32>} : memref<32x32xbf16, #tpu.memory_space<vmem>>, vector<32x32xbf16>,
    return
  }
  func.func @transform_0(%arg0: i32) -> (i32, i32, i32) {
    %c0_i32 = arith.constant 0 : i32
    %c0_i32_0 = arith.constant 0 : i32
    %c0_i32_1 = arith.constant 0 : i32
    %c0_i32_2 = arith.constant 0 : i32
    return %c0_i32, %c0_i32_0, %c0_i32_1 : i32, i32, i32
  }
  func.func @transform_1(%arg0: i32) -> (i32, i32) {
    %c0_i32 = arith.constant 0 : i32
    %c0_i32_0 = arith.constant 0 : i32
    %c0_i32_1 = arith.constant 0 : i32
    return %c0_i32, %c0_i32_0 : i32, i32
  }
  func.func @transform_2(%arg0: i32) -> (i32, i32) {
    %c0_i32 = arith.constant 0 : i32
    %c0_i32_0 = arith.constant 0 : i32
    %c0_i32_1 = arith.constant 0 : i32
    return %c0_i32, %c0_i32_0 : i32, i32
  }
  func.func @transform_3(%arg0: i32) -> (i32, i32) {
    %c0_i32 = arith.constant 0 : i32
    %c0_i32_0 = arith.constant 0 : i32
    return %arg0, %c0_i32 : i32, i32
  }
  func.func @transform_4(%arg0: i32) -> (i32, i32) {
    %c0_i32 = arith.constant 0 : i32
    %c0_i32_0 = arith.constant 0 : i32
    return %arg0, %c0_i32 : i32, i32
  }
}

module attributes {stable_mosaic.version = 11 : i64} {
  func.func @conv_stats_kernel(%arg0: i32, %arg1: memref<128x576xbf16, #tpu.memory_space<vmem>>, %arg2: memref<576x64xbf16, #tpu.memory_space<vmem>>, %arg3: memref<128x64xbf16, #tpu.memory_space<vmem>>, %arg4: memref<1x2x64xf32, #tpu.memory_space<vmem>>) attributes {dimension_semantics = [#tpu.dimension_semantics<parallel>], iteration_bounds = array<i64: 1>, scalar_prefetch = 0 : i64, scratch_operands = 0 : i64, tpu.core_type = #tpu.core_type<tc>, window_params = [{transform_indices = @transform_0, window_bounds = array<i64: 128, 576>}, {pipeline_mode = #tpu.pipeline_mode<synchronous>, transform_indices = @transform_1, window_bounds = array<i64: 576, 64>}, {transform_indices = @transform_2, window_bounds = array<i64: 128, 64>}, {transform_indices = @transform_3, window_bounds = array<i64: 1, 2, 64>}]} {
    %c0 = arith.constant 0 : index
    %c0_0 = arith.constant 0 : index
    %0 = vector.load %arg1[%c0, %c0_0] : memref<128x576xbf16, #tpu.memory_space<vmem>>, vector<128x576xbf16>
    %c0_1 = arith.constant 0 : index
    %c0_2 = arith.constant 0 : index
    %1 = vector.load %arg2[%c0_1, %c0_2] : memref<576x64xbf16, #tpu.memory_space<vmem>>, vector<576x64xbf16>
    %cst = arith.constant dense<0.000000e+00> : vector<128x64xf32>
    %2 = tpu.matmul %0, %1, %cst {dimension_numbers = #tpu.dot_dimension_numbers<[1], [0], [0], [1], [0, 0, 1, 1], [], []>} : vector<128x576xbf16>, vector<576x64xbf16>, vector<128x64xf32> -> vector<128x64xf32>
    %3 = arith.truncf %2 : vector<128x64xf32> to vector<128x64xbf16>
    %c0_3 = arith.constant 0 : index
    %c0_4 = arith.constant 0 : index
    %4 = vector.load %arg3[%c0_3, %c0_4] : memref<128x64xbf16, #tpu.memory_space<vmem>>, vector<128x64xbf16>
    tpu.vector_store %arg3[%c0_3, %c0_4], %3 {strides = array<i32>} : memref<128x64xbf16, #tpu.memory_space<vmem>>, vector<128x64xbf16>,
    %cst_5 = arith.constant dense<0.000000e+00> : vector<64xf32>
    %5 = vector.multi_reduction <add>, %2, %cst_5 [0] : vector<128x64xf32> to vector<64xf32>
    %6 = vector.shape_cast %5 : vector<64xf32> to vector<1x64xf32>
    %7 = arith.mulf %2, %2 : vector<128x64xf32>
    %cst_6 = arith.constant dense<0.000000e+00> : vector<64xf32>
    %8 = vector.multi_reduction <add>, %7, %cst_6 [0] : vector<128x64xf32> to vector<64xf32>
    %9 = vector.shape_cast %8 : vector<64xf32> to vector<1x64xf32>
    %10 = tpu.concatenate %6, %9 in 0 : vector<1x64xf32>, vector<1x64xf32> -> vector<2x64xf32>
    %11 = vector.shape_cast %10 : vector<2x64xf32> to vector<1x2x64xf32>
    %c0_7 = arith.constant 0 : index
    %c0_8 = arith.constant 0 : index
    %c0_9 = arith.constant 0 : index
    %12 = vector.load %arg4[%c0_7, %c0_8, %c0_9] : memref<1x2x64xf32, #tpu.memory_space<vmem>>, vector<1x2x64xf32>
    tpu.vector_store %arg4[%c0_7, %c0_8, %c0_9], %11 {strides = array<i32>} : memref<1x2x64xf32, #tpu.memory_space<vmem>>, vector<1x2x64xf32>,
    return
  }
  func.func @transform_0(%arg0: i32) -> (i32, i32) {
    %c0_i32 = arith.constant 0 : i32
    %c0_i32_0 = arith.constant 0 : i32
    return %arg0, %c0_i32 : i32, i32
  }
  func.func @transform_1(%arg0: i32) -> (i32, i32) {
    %c0_i32 = arith.constant 0 : i32
    %c0_i32_0 = arith.constant 0 : i32
    %c0_i32_1 = arith.constant 0 : i32
    return %c0_i32, %c0_i32_0 : i32, i32
  }
  func.func @transform_2(%arg0: i32) -> (i32, i32) {
    %c0_i32 = arith.constant 0 : i32
    %c0_i32_0 = arith.constant 0 : i32
    return %arg0, %c0_i32 : i32, i32
  }
  func.func @transform_3(%arg0: i32) -> (i32, i32, i32) {
    %c0_i32 = arith.constant 0 : i32
    %c0_i32_0 = arith.constant 0 : i32
    %c0_i32_1 = arith.constant 0 : i32
    return %arg0, %c0_i32, %c0_i32_0 : i32, i32, i32
  }
}

module attributes {stable_mosaic.version = 11 : i64} {
  func.func @bn_relu_kernel(%arg0: i32, %arg1: memref<1x2x64xf32, #tpu.memory_space<vmem>>, %arg2: memref<1x64xf32, #tpu.memory_space<vmem>>, %arg3: memref<1x64xf32, #tpu.memory_space<vmem>>, %arg4: memref<128x64xbf16, #tpu.memory_space<vmem>>, %arg5: memref<128x64xbf16, #tpu.memory_space<vmem>>) attributes {dimension_semantics = [#tpu.dimension_semantics<parallel>], iteration_bounds = array<i64: 1>, scalar_prefetch = 0 : i64, scratch_operands = 0 : i64, tpu.core_type = #tpu.core_type<tc>, window_params = [{pipeline_mode = #tpu.pipeline_mode<synchronous>, transform_indices = @transform_0, window_bounds = array<i64: 1, 2, 64>}, {pipeline_mode = #tpu.pipeline_mode<synchronous>, transform_indices = @transform_1, window_bounds = array<i64: 1, 64>}, {pipeline_mode = #tpu.pipeline_mode<synchronous>, transform_indices = @transform_2, window_bounds = array<i64: 1, 64>}, {transform_indices = @transform_3, window_bounds = array<i64: 128, 64>}, {transform_indices = @transform_4, window_bounds = array<i64: 128, 64>}]} {
    %c0 = arith.constant 0 : index
    %c0_0 = arith.constant 0 : index
    %c0_1 = arith.constant 0 : index
    %0 = vector.load %arg1[%c0, %c0_0, %c0_1] : memref<1x2x64xf32, #tpu.memory_space<vmem>>, vector<1x2x64xf32>
    %1 = vector.extract_strided_slice %0 {offsets = [0, 0, 0], sizes = [1, 1, 64], strides = [1, 1, 1]} : vector<1x2x64xf32> to vector<1x1x64xf32>
    %2 = vector.shape_cast %1 : vector<1x1x64xf32> to vector<1x64xf32>
    %cst = arith.constant dense<0.000000e+00> : vector<64xf32>
    %3 = vector.multi_reduction <add>, %2, %cst [0] : vector<1x64xf32> to vector<64xf32>
    %4 = vector.shape_cast %3 : vector<64xf32> to vector<1x64xf32>
    %5 = vector.extract_strided_slice %0 {offsets = [0, 1, 0], sizes = [1, 1, 64], strides = [1, 1, 1]} : vector<1x2x64xf32> to vector<1x1x64xf32>
    %6 = vector.shape_cast %5 : vector<1x1x64xf32> to vector<1x64xf32>
    %cst_2 = arith.constant dense<0.000000e+00> : vector<64xf32>
    %7 = vector.multi_reduction <add>, %6, %cst_2 [0] : vector<1x64xf32> to vector<64xf32>
    %8 = vector.shape_cast %7 : vector<64xf32> to vector<1x64xf32>
    %cst_3 = arith.constant 7.812500e-03 : f32
    %9 = vector.broadcast %cst_3 : f32 to vector<1x64xf32>
    %10 = arith.mulf %4, %9 : vector<1x64xf32>
    %cst_4 = arith.constant 7.812500e-03 : f32
    %11 = vector.broadcast %cst_4 : f32 to vector<1x64xf32>
    %12 = arith.mulf %8, %11 : vector<1x64xf32>
    %13 = arith.mulf %10, %10 : vector<1x64xf32>
    %14 = arith.subf %12, %13 : vector<1x64xf32>
    %cst_5 = arith.constant 0.000000e+00 : f32
    %15 = vector.broadcast %cst_5 : f32 to vector<1x64xf32>
    %16 = arith.maximumf %14, %15 : vector<1x64xf32>
    %c0_6 = arith.constant 0 : index
    %c0_7 = arith.constant 0 : index
    %17 = vector.load %arg2[%c0_6, %c0_7] : memref<1x64xf32, #tpu.memory_space<vmem>>, vector<1x64xf32>
    %cst_8 = arith.constant 9.99999974E-6 : f32
    %18 = vector.broadcast %cst_8 : f32 to vector<1x64xf32>
    %19 = arith.addf %16, %18 : vector<1x64xf32>
    %20 = math.rsqrt %19 : vector<1x64xf32>
    %21 = arith.mulf %17, %20 : vector<1x64xf32>
    %c0_9 = arith.constant 0 : index
    %c0_10 = arith.constant 0 : index
    %22 = vector.load %arg3[%c0_9, %c0_10] : memref<1x64xf32, #tpu.memory_space<vmem>>, vector<1x64xf32>
    %23 = arith.mulf %10, %21 : vector<1x64xf32>
    %24 = arith.subf %22, %23 : vector<1x64xf32>
    %c0_11 = arith.constant 0 : index
    %c0_12 = arith.constant 0 : index
    %25 = vector.load %arg4[%c0_11, %c0_12] : memref<128x64xbf16, #tpu.memory_space<vmem>>, vector<128x64xbf16>
    %26 = arith.extf %25 : vector<128x64xbf16> to vector<128x64xf32>
    %27 = vector.broadcast %21 : vector<1x64xf32> to vector<128x64xf32>
    %28 = arith.mulf %26, %27 : vector<128x64xf32>
    %29 = vector.broadcast %24 : vector<1x64xf32> to vector<128x64xf32>
    %30 = arith.addf %28, %29 : vector<128x64xf32>
    %cst_13 = arith.constant 0.000000e+00 : f32
    %31 = vector.broadcast %cst_13 : f32 to vector<128x64xf32>
    %32 = arith.maximumf %30, %31 : vector<128x64xf32>
    %33 = arith.truncf %32 : vector<128x64xf32> to vector<128x64xbf16>
    %c0_14 = arith.constant 0 : index
    %c0_15 = arith.constant 0 : index
    %34 = vector.load %arg5[%c0_14, %c0_15] : memref<128x64xbf16, #tpu.memory_space<vmem>>, vector<128x64xbf16>
    tpu.vector_store %arg5[%c0_14, %c0_15], %33 {strides = array<i32>} : memref<128x64xbf16, #tpu.memory_space<vmem>>, vector<128x64xbf16>,
    return
  }
  func.func @transform_0(%arg0: i32) -> (i32, i32, i32) {
    %c0_i32 = arith.constant 0 : i32
    %c0_i32_0 = arith.constant 0 : i32
    %c0_i32_1 = arith.constant 0 : i32
    %c0_i32_2 = arith.constant 0 : i32
    return %c0_i32, %c0_i32_0, %c0_i32_1 : i32, i32, i32
  }
  func.func @transform_1(%arg0: i32) -> (i32, i32) {
    %c0_i32 = arith.constant 0 : i32
    %c0_i32_0 = arith.constant 0 : i32
    %c0_i32_1 = arith.constant 0 : i32
    return %c0_i32, %c0_i32_0 : i32, i32
  }
  func.func @transform_2(%arg0: i32) -> (i32, i32) {
    %c0_i32 = arith.constant 0 : i32
    %c0_i32_0 = arith.constant 0 : i32
    %c0_i32_1 = arith.constant 0 : i32
    return %c0_i32, %c0_i32_0 : i32, i32
  }
  func.func @transform_3(%arg0: i32) -> (i32, i32) {
    %c0_i32 = arith.constant 0 : i32
    %c0_i32_0 = arith.constant 0 : i32
    return %arg0, %c0_i32 : i32, i32
  }
  func.func @transform_4(%arg0: i32) -> (i32, i32) {
    %c0_i32 = arith.constant 0 : i32
    %c0_i32_0 = arith.constant 0 : i32
    return %arg0, %c0_i32 : i32, i32
  }
}

module attributes {stable_mosaic.version = 11 : i64} {
  func.func @conv_stats_kernel(%arg0: i32, %arg1: memref<128x576xbf16, #tpu.memory_space<vmem>>, %arg2: memref<576x32xbf16, #tpu.memory_space<vmem>>, %arg3: memref<128x32xbf16, #tpu.memory_space<vmem>>, %arg4: memref<1x2x32xf32, #tpu.memory_space<vmem>>) attributes {dimension_semantics = [#tpu.dimension_semantics<parallel>], iteration_bounds = array<i64: 1>, scalar_prefetch = 0 : i64, scratch_operands = 0 : i64, tpu.core_type = #tpu.core_type<tc>, window_params = [{transform_indices = @transform_0, window_bounds = array<i64: 128, 576>}, {pipeline_mode = #tpu.pipeline_mode<synchronous>, transform_indices = @transform_1, window_bounds = array<i64: 576, 32>}, {transform_indices = @transform_2, window_bounds = array<i64: 128, 32>}, {transform_indices = @transform_3, window_bounds = array<i64: 1, 2, 32>}]} {
    %c0 = arith.constant 0 : index
    %c0_0 = arith.constant 0 : index
    %0 = vector.load %arg1[%c0, %c0_0] : memref<128x576xbf16, #tpu.memory_space<vmem>>, vector<128x576xbf16>
    %c0_1 = arith.constant 0 : index
    %c0_2 = arith.constant 0 : index
    %1 = vector.load %arg2[%c0_1, %c0_2] : memref<576x32xbf16, #tpu.memory_space<vmem>>, vector<576x32xbf16>
    %cst = arith.constant dense<0.000000e+00> : vector<128x32xf32>
    %2 = tpu.matmul %0, %1, %cst {dimension_numbers = #tpu.dot_dimension_numbers<[1], [0], [0], [1], [0, 0, 1, 1], [], []>} : vector<128x576xbf16>, vector<576x32xbf16>, vector<128x32xf32> -> vector<128x32xf32>
    %3 = arith.truncf %2 : vector<128x32xf32> to vector<128x32xbf16>
    %c0_3 = arith.constant 0 : index
    %c0_4 = arith.constant 0 : index
    %4 = vector.load %arg3[%c0_3, %c0_4] : memref<128x32xbf16, #tpu.memory_space<vmem>>, vector<128x32xbf16>
    tpu.vector_store %arg3[%c0_3, %c0_4], %3 {strides = array<i32>} : memref<128x32xbf16, #tpu.memory_space<vmem>>, vector<128x32xbf16>,
    %cst_5 = arith.constant dense<0.000000e+00> : vector<32xf32>
    %5 = vector.multi_reduction <add>, %2, %cst_5 [0] : vector<128x32xf32> to vector<32xf32>
    %6 = vector.shape_cast %5 : vector<32xf32> to vector<1x32xf32>
    %7 = arith.mulf %2, %2 : vector<128x32xf32>
    %cst_6 = arith.constant dense<0.000000e+00> : vector<32xf32>
    %8 = vector.multi_reduction <add>, %7, %cst_6 [0] : vector<128x32xf32> to vector<32xf32>
    %9 = vector.shape_cast %8 : vector<32xf32> to vector<1x32xf32>
    %10 = tpu.concatenate %6, %9 in 0 : vector<1x32xf32>, vector<1x32xf32> -> vector<2x32xf32>
    %11 = vector.shape_cast %10 : vector<2x32xf32> to vector<1x2x32xf32>
    %c0_7 = arith.constant 0 : index
    %c0_8 = arith.constant 0 : index
    %c0_9 = arith.constant 0 : index
    %12 = vector.load %arg4[%c0_7, %c0_8, %c0_9] : memref<1x2x32xf32, #tpu.memory_space<vmem>>, vector<1x2x32xf32>
    tpu.vector_store %arg4[%c0_7, %c0_8, %c0_9], %11 {strides = array<i32>} : memref<1x2x32xf32, #tpu.memory_space<vmem>>, vector<1x2x32xf32>,
    return
  }
  func.func @transform_0(%arg0: i32) -> (i32, i32) {
    %c0_i32 = arith.constant 0 : i32
    %c0_i32_0 = arith.constant 0 : i32
    return %arg0, %c0_i32 : i32, i32
  }
  func.func @transform_1(%arg0: i32) -> (i32, i32) {
    %c0_i32 = arith.constant 0 : i32
    %c0_i32_0 = arith.constant 0 : i32
    %c0_i32_1 = arith.constant 0 : i32
    return %c0_i32, %c0_i32_0 : i32, i32
  }
  func.func @transform_2(%arg0: i32) -> (i32, i32) {
    %c0_i32 = arith.constant 0 : i32
    %c0_i32_0 = arith.constant 0 : i32
    return %arg0, %c0_i32 : i32, i32
  }
  func.func @transform_3(%arg0: i32) -> (i32, i32, i32) {
    %c0_i32 = arith.constant 0 : i32
    %c0_i32_0 = arith.constant 0 : i32
    %c0_i32_1 = arith.constant 0 : i32
    return %arg0, %c0_i32, %c0_i32_0 : i32, i32, i32
  }
}

module attributes {stable_mosaic.version = 11 : i64} {
  func.func @conv_stats_kernel(%arg0: i32, %arg1: memref<512x288xbf16, #tpu.memory_space<vmem>>, %arg2: memref<288x16xbf16, #tpu.memory_space<vmem>>, %arg3: memref<512x16xbf16, #tpu.memory_space<vmem>>, %arg4: memref<1x2x16xf32, #tpu.memory_space<vmem>>) attributes {dimension_semantics = [#tpu.dimension_semantics<parallel>], iteration_bounds = array<i64: 1>, scalar_prefetch = 0 : i64, scratch_operands = 0 : i64, tpu.core_type = #tpu.core_type<tc>, window_params = [{transform_indices = @transform_0, window_bounds = array<i64: 512, 288>}, {pipeline_mode = #tpu.pipeline_mode<synchronous>, transform_indices = @transform_1, window_bounds = array<i64: 288, 16>}, {transform_indices = @transform_2, window_bounds = array<i64: 512, 16>}, {transform_indices = @transform_3, window_bounds = array<i64: 1, 2, 16>}]} {
    %c0 = arith.constant 0 : index
    %c0_0 = arith.constant 0 : index
    %0 = vector.load %arg1[%c0, %c0_0] : memref<512x288xbf16, #tpu.memory_space<vmem>>, vector<512x288xbf16>
    %c0_1 = arith.constant 0 : index
    %c0_2 = arith.constant 0 : index
    %1 = vector.load %arg2[%c0_1, %c0_2] : memref<288x16xbf16, #tpu.memory_space<vmem>>, vector<288x16xbf16>
    %cst = arith.constant dense<0.000000e+00> : vector<512x16xf32>
    %2 = tpu.matmul %0, %1, %cst {dimension_numbers = #tpu.dot_dimension_numbers<[1], [0], [0], [1], [0, 0, 1, 1], [], []>} : vector<512x288xbf16>, vector<288x16xbf16>, vector<512x16xf32> -> vector<512x16xf32>
    %3 = arith.truncf %2 : vector<512x16xf32> to vector<512x16xbf16>
    %c0_3 = arith.constant 0 : index
    %c0_4 = arith.constant 0 : index
    %4 = vector.load %arg3[%c0_3, %c0_4] : memref<512x16xbf16, #tpu.memory_space<vmem>>, vector<512x16xbf16>
    tpu.vector_store %arg3[%c0_3, %c0_4], %3 {strides = array<i32>} : memref<512x16xbf16, #tpu.memory_space<vmem>>, vector<512x16xbf16>,
    %cst_5 = arith.constant dense<0.000000e+00> : vector<16xf32>
    %5 = vector.multi_reduction <add>, %2, %cst_5 [0] : vector<512x16xf32> to vector<16xf32>
    %6 = vector.shape_cast %5 : vector<16xf32> to vector<1x16xf32>
    %7 = arith.mulf %2, %2 : vector<512x16xf32>
    %cst_6 = arith.constant dense<0.000000e+00> : vector<16xf32>
    %8 = vector.multi_reduction <add>, %7, %cst_6 [0] : vector<512x16xf32> to vector<16xf32>
    %9 = vector.shape_cast %8 : vector<16xf32> to vector<1x16xf32>
    %10 = tpu.concatenate %6, %9 in 0 : vector<1x16xf32>, vector<1x16xf32> -> vector<2x16xf32>
    %11 = vector.shape_cast %10 : vector<2x16xf32> to vector<1x2x16xf32>
    %c0_7 = arith.constant 0 : index
    %c0_8 = arith.constant 0 : index
    %c0_9 = arith.constant 0 : index
    %12 = vector.load %arg4[%c0_7, %c0_8, %c0_9] : memref<1x2x16xf32, #tpu.memory_space<vmem>>, vector<1x2x16xf32>
    tpu.vector_store %arg4[%c0_7, %c0_8, %c0_9], %11 {strides = array<i32>} : memref<1x2x16xf32, #tpu.memory_space<vmem>>, vector<1x2x16xf32>,
    return
  }
  func.func @transform_0(%arg0: i32) -> (i32, i32) {
    %c0_i32 = arith.constant 0 : i32
    %c0_i32_0 = arith.constant 0 : i32
    return %arg0, %c0_i32 : i32, i32
  }
  func.func @transform_1(%arg0: i32) -> (i32, i32) {
    %c0_i32 = arith.constant 0 : i32
    %c0_i32_0 = arith.constant 0 : i32
    %c0_i32_1 = arith.constant 0 : i32
    return %c0_i32, %c0_i32_0 : i32, i32
  }
  func.func @transform_2(%arg0: i32) -> (i32, i32) {
    %c0_i32 = arith.constant 0 : i32
    %c0_i32_0 = arith.constant 0 : i32
    return %arg0, %c0_i32 : i32, i32
  }
  func.func @transform_3(%arg0: i32) -> (i32, i32, i32) {
    %c0_i32 = arith.constant 0 : i32
    %c0_i32_0 = arith.constant 0 : i32
    %c0_i32_1 = arith.constant 0 : i32
    return %arg0, %c0_i32, %c0_i32_0 : i32, i32, i32
  }
}

module attributes {stable_mosaic.version = 11 : i64} {
  func.func @conv_stats_kernel(%arg0: i32, %arg1: memref<512x16xbf16, #tpu.memory_space<vmem>>, %arg2: memref<16x1xbf16, #tpu.memory_space<vmem>>, %arg3: memref<512x1xbf16, #tpu.memory_space<vmem>>, %arg4: memref<1x2x1xf32, #tpu.memory_space<vmem>>) attributes {dimension_semantics = [#tpu.dimension_semantics<parallel>], iteration_bounds = array<i64: 1>, scalar_prefetch = 0 : i64, scratch_operands = 0 : i64, tpu.core_type = #tpu.core_type<tc>, window_params = [{transform_indices = @transform_0, window_bounds = array<i64: 512, 16>}, {pipeline_mode = #tpu.pipeline_mode<synchronous>, transform_indices = @transform_1, window_bounds = array<i64: 16, 1>}, {transform_indices = @transform_2, window_bounds = array<i64: 512, 1>}, {transform_indices = @transform_3, window_bounds = array<i64: 1, 2, 1>}]} {
    %c0 = arith.constant 0 : index
    %c0_0 = arith.constant 0 : index
    %0 = vector.load %arg1[%c0, %c0_0] : memref<512x16xbf16, #tpu.memory_space<vmem>>, vector<512x16xbf16>
    %c0_1 = arith.constant 0 : index
    %c0_2 = arith.constant 0 : index
    %1 = vector.load %arg2[%c0_1, %c0_2] : memref<16x1xbf16, #tpu.memory_space<vmem>>, vector<16x1xbf16>
    %cst = arith.constant dense<0.000000e+00> : vector<512x1xf32>
    %2 = tpu.matmul %0, %1, %cst {dimension_numbers = #tpu.dot_dimension_numbers<[1], [0], [0], [1], [0, 0, 1, 1], [], []>} : vector<512x16xbf16>, vector<16x1xbf16>, vector<512x1xf32> -> vector<512x1xf32>
    %3 = arith.truncf %2 : vector<512x1xf32> to vector<512x1xbf16>
    %c0_3 = arith.constant 0 : index
    %c0_4 = arith.constant 0 : index
    %4 = vector.load %arg3[%c0_3, %c0_4] : memref<512x1xbf16, #tpu.memory_space<vmem>>, vector<512x1xbf16>
    tpu.vector_store %arg3[%c0_3, %c0_4], %3 {strides = array<i32>} : memref<512x1xbf16, #tpu.memory_space<vmem>>, vector<512x1xbf16>,
    %cst_5 = arith.constant dense<0.000000e+00> : vector<1xf32>
    %5 = vector.multi_reduction <add>, %2, %cst_5 [0] : vector<512x1xf32> to vector<1xf32>
    %6 = vector.shape_cast %5 : vector<1xf32> to vector<1x1xf32>
    %7 = arith.mulf %2, %2 : vector<512x1xf32>
    %cst_6 = arith.constant dense<0.000000e+00> : vector<1xf32>
    %8 = vector.multi_reduction <add>, %7, %cst_6 [0] : vector<512x1xf32> to vector<1xf32>
    %9 = vector.shape_cast %8 : vector<1xf32> to vector<1x1xf32>
    %10 = tpu.concatenate %6, %9 in 0 : vector<1x1xf32>, vector<1x1xf32> -> vector<2x1xf32>
    %11 = vector.shape_cast %10 : vector<2x1xf32> to vector<1x2x1xf32>
    %c0_7 = arith.constant 0 : index
    %c0_8 = arith.constant 0 : index
    %c0_9 = arith.constant 0 : index
    %12 = vector.load %arg4[%c0_7, %c0_8, %c0_9] : memref<1x2x1xf32, #tpu.memory_space<vmem>>, vector<1x2x1xf32>
    tpu.vector_store %arg4[%c0_7, %c0_8, %c0_9], %11 {strides = array<i32>} : memref<1x2x1xf32, #tpu.memory_space<vmem>>, vector<1x2x1xf32>,
    return
  }
  func.func @transform_0(%arg0: i32) -> (i32, i32) {
    %c0_i32 = arith.constant 0 : i32
    %c0_i32_0 = arith.constant 0 : i32
    return %arg0, %c0_i32 : i32, i32
  }
  func.func @transform_1(%arg0: i32) -> (i32, i32) {
    %c0_i32 = arith.constant 0 : i32
    %c0_i32_0 = arith.constant 0 : i32
    %c0_i32_1 = arith.constant 0 : i32
    return %c0_i32, %c0_i32_0 : i32, i32
  }
  func.func @transform_2(%arg0: i32) -> (i32, i32) {
    %c0_i32 = arith.constant 0 : i32
    %c0_i32_0 = arith.constant 0 : i32
    return %arg0, %c0_i32 : i32, i32
  }
  func.func @transform_3(%arg0: i32) -> (i32, i32, i32) {
    %c0_i32 = arith.constant 0 : i32
    %c0_i32_0 = arith.constant 0 : i32
    %c0_i32_1 = arith.constant 0 : i32
    return %arg0, %c0_i32, %c0_i32_0 : i32, i32, i32
  }
}

module attributes {stable_mosaic.version = 11 : i64} {
  func.func @bn_relu_kernel(%arg0: i32, %arg1: memref<1x2x1xf32, #tpu.memory_space<vmem>>, %arg2: memref<1x1xf32, #tpu.memory_space<vmem>>, %arg3: memref<1x1xf32, #tpu.memory_space<vmem>>, %arg4: memref<512x1xbf16, #tpu.memory_space<vmem>>, %arg5: memref<512x1xf32, #tpu.memory_space<vmem>>) attributes {dimension_semantics = [#tpu.dimension_semantics<parallel>], iteration_bounds = array<i64: 1>, scalar_prefetch = 0 : i64, scratch_operands = 0 : i64, tpu.core_type = #tpu.core_type<tc>, window_params = [{pipeline_mode = #tpu.pipeline_mode<synchronous>, transform_indices = @transform_0, window_bounds = array<i64: 1, 2, 1>}, {pipeline_mode = #tpu.pipeline_mode<synchronous>, transform_indices = @transform_1, window_bounds = array<i64: 1, 1>}, {pipeline_mode = #tpu.pipeline_mode<synchronous>, transform_indices = @transform_2, window_bounds = array<i64: 1, 1>}, {transform_indices = @transform_3, window_bounds = array<i64: 512, 1>}, {transform_indices = @transform_4, window_bounds = array<i64: 512, 1>}]} {
    %c0 = arith.constant 0 : index
    %c0_0 = arith.constant 0 : index
    %c0_1 = arith.constant 0 : index
    %0 = vector.load %arg1[%c0, %c0_0, %c0_1] : memref<1x2x1xf32, #tpu.memory_space<vmem>>, vector<1x2x1xf32>
    %1 = vector.extract_strided_slice %0 {offsets = [0, 0, 0], sizes = [1, 1, 1], strides = [1, 1, 1]} : vector<1x2x1xf32> to vector<1x1x1xf32>
    %2 = vector.shape_cast %1 : vector<1x1x1xf32> to vector<1x1xf32>
    %cst = arith.constant dense<0.000000e+00> : vector<1xf32>
    %3 = vector.multi_reduction <add>, %2, %cst [0] : vector<1x1xf32> to vector<1xf32>
    %4 = vector.shape_cast %3 : vector<1xf32> to vector<1x1xf32>
    %5 = vector.extract_strided_slice %0 {offsets = [0, 1, 0], sizes = [1, 1, 1], strides = [1, 1, 1]} : vector<1x2x1xf32> to vector<1x1x1xf32>
    %6 = vector.shape_cast %5 : vector<1x1x1xf32> to vector<1x1xf32>
    %cst_2 = arith.constant dense<0.000000e+00> : vector<1xf32>
    %7 = vector.multi_reduction <add>, %6, %cst_2 [0] : vector<1x1xf32> to vector<1xf32>
    %8 = vector.shape_cast %7 : vector<1xf32> to vector<1x1xf32>
    %cst_3 = arith.constant 0.001953125 : f32
    %9 = vector.broadcast %cst_3 : f32 to vector<1x1xf32>
    %10 = arith.mulf %4, %9 : vector<1x1xf32>
    %cst_4 = arith.constant 0.001953125 : f32
    %11 = vector.broadcast %cst_4 : f32 to vector<1x1xf32>
    %12 = arith.mulf %8, %11 : vector<1x1xf32>
    %13 = arith.mulf %10, %10 : vector<1x1xf32>
    %14 = arith.subf %12, %13 : vector<1x1xf32>
    %cst_5 = arith.constant 0.000000e+00 : f32
    %15 = vector.broadcast %cst_5 : f32 to vector<1x1xf32>
    %16 = arith.maximumf %14, %15 : vector<1x1xf32>
    %c0_6 = arith.constant 0 : index
    %c0_7 = arith.constant 0 : index
    %17 = vector.load %arg2[%c0_6, %c0_7] : memref<1x1xf32, #tpu.memory_space<vmem>>, vector<1x1xf32>
    %cst_8 = arith.constant 9.99999974E-6 : f32
    %18 = vector.broadcast %cst_8 : f32 to vector<1x1xf32>
    %19 = arith.addf %16, %18 : vector<1x1xf32>
    %20 = math.rsqrt %19 : vector<1x1xf32>
    %21 = arith.mulf %17, %20 : vector<1x1xf32>
    %c0_9 = arith.constant 0 : index
    %c0_10 = arith.constant 0 : index
    %22 = vector.load %arg3[%c0_9, %c0_10] : memref<1x1xf32, #tpu.memory_space<vmem>>, vector<1x1xf32>
    %23 = arith.mulf %10, %21 : vector<1x1xf32>
    %24 = arith.subf %22, %23 : vector<1x1xf32>
    %c0_11 = arith.constant 0 : index
    %c0_12 = arith.constant 0 : index
    %25 = vector.load %arg4[%c0_11, %c0_12] : memref<512x1xbf16, #tpu.memory_space<vmem>>, vector<512x1xbf16>
    %26 = arith.extf %25 : vector<512x1xbf16> to vector<512x1xf32>
    %27 = vector.broadcast %21 : vector<1x1xf32> to vector<512x1xf32>
    %28 = arith.mulf %26, %27 : vector<512x1xf32>
    %29 = vector.broadcast %24 : vector<1x1xf32> to vector<512x1xf32>
    %30 = arith.addf %28, %29 : vector<512x1xf32>
    %cst_13 = arith.constant 0.000000e+00 : f32
    %31 = vector.broadcast %cst_13 : f32 to vector<512x1xf32>
    %32 = arith.maximumf %30, %31 : vector<512x1xf32>
    %c0_14 = arith.constant 0 : index
    %c0_15 = arith.constant 0 : index
    %33 = vector.load %arg5[%c0_14, %c0_15] : memref<512x1xf32, #tpu.memory_space<vmem>>, vector<512x1xf32>
    tpu.vector_store %arg5[%c0_14, %c0_15], %32 {strides = array<i32>} : memref<512x1xf32, #tpu.memory_space<vmem>>, vector<512x1xf32>,
    return
  }
  func.func @transform_0(%arg0: i32) -> (i32, i32, i32) {
    %c0_i32 = arith.constant 0 : i32
    %c0_i32_0 = arith.constant 0 : i32
    %c0_i32_1 = arith.constant 0 : i32
    %c0_i32_2 = arith.constant 0 : i32
    return %c0_i32, %c0_i32_0, %c0_i32_1 : i32, i32, i32
  }
  func.func @transform_1(%arg0: i32) -> (i32, i32) {
    %c0_i32 = arith.constant 0 : i32
    %c0_i32_0 = arith.constant 0 : i32
    %c0_i32_1 = arith.constant 0 : i32
    return %c0_i32, %c0_i32_0 : i32, i32
  }
  func.func @transform_2(%arg0: i32) -> (i32, i32) {
    %c0_i32 = arith.constant 0 : i32
    %c0_i32_0 = arith.constant 0 : i32
    %c0_i32_1 = arith.constant 0 : i32
    return %c0_i32, %c0_i32_0 : i32, i32
  }
  func.func @transform_3(%arg0: i32) -> (i32, i32) {
    %c0_i32 = arith.constant 0 : i32
    %c0_i32_0 = arith.constant 0 : i32
    return %arg0, %c0_i32 : i32, i32
  }
  func.func @transform_4(%arg0: i32) -> (i32, i32) {
    %c0_i32 = arith.constant 0 : i32
    %c0_i32_0 = arith.constant 0 : i32
    return %arg0, %c0_i32 : i32, i32
  }
}

</mosaic_0001>

<bundles_post_ra>
// kernel: _lambda_.22
= control target key start
LH: loop header
LB: loop body
LE: loop exit
PB: predicated region body
PF: predicated region fallthrough
CT: control target
= control target key end

     0   :  { %vm350_vm0 = vcmask 1044480   ;;  %vm351_vm1 = vcmask 1045504   ;;  %vm253_vm2 = vcmask 220160   ;;  %v1645_v1 = vmov 65535   ;;  %s2411_s1 = inlined_call_operand.vmem [shape: bf16[27,16], index: 1, kind: input, shape index: {}]   ;;  %s2412_s0 = inlined_call_operand.vmem [shape: bf16[512,27], index: 0, kind: input, shape index: {}]   ;;  %s2413_s2 = inlined_call_operand.vmem [shape: bf16[512,16], index: 2, kind: output, shape index: {0}]   ;;  %s2414_s3 = inlined_call_operand.vmem [shape: f32[1,2,16], index: 3, kind: output, shape index: {1}]  }
   0x1   :  { %v1611_v0 = vld [vmem:[%s2411_s1] sm:$0xff]   ;;  %v352_v2 = vsel %vm350_vm0, 4294967295, %v1645_v1  ;;  %v1612_v3 = vld [vmem:[%s2411_s1 + $0x8] sm:$0x3f]   ;;  %v1615_v8 = vld [vmem:[%s2412_s0 + $0x10] sm:$0xff]   ;;  %vm902_vm3 = vcmask 125952  }
   0x2   :  { %1538 = vmatprep.subr.bf16.mxu0 %v1611_v0  ;;  %v353_v4 = vsel %vm351_vm1, %v352_v2, 0  ;;  %v1613_v5 = vld [vmem:[%s2412_s0] sm:$0xff]   ;;  %1606 = vmatprep.subr.bf16.mxu1 %v1611_v0  ;;  %v1614_v7 = vld [vmem:[%s2412_s0 + $0x8] sm:$0xff]   ;;  %v1616_v9 = vld [vmem:[%s2412_s0 + $0x18] sm:$0xff]   ;;  %vm967_vm4 = vcmask 130048   ;;  %vm1298_vm5 = vcmask 1040384  }
   0x3   :  { %1539 = vmatpush3.bf16.msra.mxu0 %v1611_v0  ;;  %v355_v6 = vand.u32 %v1612_v3, %v353_v4  ;;  %1608 = vmatpush3.bf16.msra.mxu1 %v1611_v0  ;;  %v1617_v10 = vld [vmem:[%s2412_s0 + $0x20] sm:$0xff]   ;;  %v1630_v12 = vld [vmem:[%s2412_s0 + $0x88] sm:$0xff]   ;;  %v1631_v13 = vld [vmem:[%s2412_s0 + $0x90] sm:$0xff]   ;;  %vm1300_vm6 = vcmask 123904  }
   0x4   :  { %1542 = vmatprep.mubr.msk.bf16.mxu0 %vm253_vm2, %v1613_v5  ;;  %v1629_v11 = vld [vmem:[%s2412_s0 + $0x80] sm:$0xff]   ;;  %v1618_v14 = vld [vmem:[%s2412_s0 + $0x28] sm:$0xff]   ;;  %v1619_v15 = vld [vmem:[%s2412_s0 + $0x30] sm:$0xff]  }
   0x5   :  { %1540 = vmatprep.subr.bf16.mxu0 %v355_v6  ;;  %1607 = vmatprep.subr.bf16.mxu1 %v355_v6  ;;  %v1632_v16 = vld [vmem:[%s2412_s0 + $0x98] sm:$0xff]   ;;  %v1633_v17 = vld [vmem:[%s2412_s0 + $0xa0] sm:$0xff]   ;;  %v1634_v20 = vld [vmem:[%s2412_s0 + $0xa8] sm:$0xff]  }
   0x6   :  { %1574 = vmatprep.mubr.msk.bf16.mxu1 %vm253_vm2, %v1629_v11  ;;  %v1620_v18 = vld [vmem:[%s2412_s0 + $0x38] sm:$0xff]   ;;  %v1621_v19 = vld [vmem:[%s2412_s0 + $0x40] sm:$0xff]   ;;  %v1635_v21 = vld [vmem:[%s2412_s0 + $0xb0] sm:$0xff]  }
   0x7   :  { %1541 = vmatpush3.bf16.msra.mxu0 %v355_v6  ;;  %1609 = vmatpush3.bf16.msra.mxu1 %v355_v6  ;;  %v1622_v22 = vld [vmem:[%s2412_s0 + $0x48] sm:$0xff]   ;;  %v1623_v23 = vld [vmem:[%s2412_s0 + $0x50] sm:$0xff]   ;;  %v1636_v24 = vld [vmem:[%s2412_s0 + $0xb8] sm:$0xff]  }
   0x8   :  { %v1637_v25 = vld [vmem:[%s2412_s0 + $0xc0] sm:$0xff]   ;;  %v1624_v26 = vld [vmem:[%s2412_s0 + $0x58] sm:$0xff]   ;;  %v1638_v28 = vld [vmem:[%s2412_s0 + $0xc8] sm:$0xff]  }
   0x9   :  { %v1625_v27 = vld [vmem:[%s2412_s0 + $0x60] sm:$0xff]   ;;  %v1639_v29 = vld [vmem:[%s2412_s0 + $0xd0] sm:$0xff]   ;;  %v1626_v30 = vld [vmem:[%s2412_s0 + $0x68] sm:$0xff]  }
   0xa   :  { %1543 = vmatmul.mubr.msk.bf16.vlgmr.msra.gmra.mrb[0].mxu0 %vm253_vm2, %v1614_v7  ;;  %1575 = vmatmul.mubr.msk.bf16.vlgmr.msra.gmra.mrb[0].mxu1 %vm253_vm2, %v1630_v12  ;;  %v1627_v31 = vld [vmem:[%s2412_s0 + $0x70] sm:$0xff]   ;;  %v1640_v32 = vld [vmem:[%s2412_s0 + $0xd8] sm:$0xff]   ;;  %v1641_v33 = vld [vmem:[%s2412_s0 + $0xe0] sm:$0xff]  }
   0xb   :  { %1546 = vmatprep.mubr.msk.bf16.mxu0 %vm253_vm2, %v1615_v8  ;;  %1578 = vmatprep.mubr.msk.bf16.mxu1 %vm253_vm2, %v1631_v13  ;;  %v1628_v34 = vld [vmem:[%s2412_s0 + $0x78] sm:$0xff]   ;;  %v1642_v35 = vld [vmem:[%s2412_s0 + $0xe8] sm:$0xff]   ;;  %v1643_v36 = vld [vmem:[%s2412_s0 + $0xf0] sm:$0xff]  }
   0xc   :  { %v1644_v37 = vld [vmem:[%s2412_s0 + $0xf8] sm:$0xff]  }
  0x12   :  { %1547 = vmatmul.mubr.msk.bf16.gmra.mrb[4].mxu0 %vm253_vm2, %v1616_v9  ;;  %1579 = vmatmul.mubr.msk.bf16.gmra.mrb[4].mxu1 %vm253_vm2, %v1632_v16 }
  0x13   :  { %1550 = vmatprep.mubr.msk.bf16.mxu0 %vm253_vm2, %v1617_v10  ;;  %1582 = vmatprep.mubr.msk.bf16.mxu1 %vm253_vm2, %v1633_v17 }
  0x1a   :  { %1551 = vmatmul.mubr.msk.bf16.gmra.mrb[8].mxu0 %vm253_vm2, %v1618_v14  ;;  %1583 = vmatmul.mubr.msk.bf16.gmra.mrb[8].mxu1 %vm253_vm2, %v1634_v20 }
  0x1b   :  { %1554 = vmatprep.mubr.msk.bf16.mxu0 %vm253_vm2, %v1619_v15  ;;  %1586 = vmatprep.mubr.msk.bf16.mxu1 %vm253_vm2, %v1635_v21 }
  0x22   :  { %1555 = vmatmul.mubr.msk.bf16.gmra.mrb[12].mxu0 %vm253_vm2, %v1620_v18  ;;  %1587 = vmatmul.mubr.msk.bf16.gmra.mrb[12].mxu1 %vm253_vm2, %v1636_v24 }
  0x23   :  { %1558 = vmatprep.mubr.msk.bf16.mxu0 %vm253_vm2, %v1621_v19  ;;  %1590 = vmatprep.mubr.msk.bf16.mxu1 %vm253_vm2, %v1637_v25 }
  0x2a   :  { %1559 = vmatmul.mubr.msk.bf16.gmra.mrb[16].mxu0 %vm253_vm2, %v1622_v22  ;;  %1591 = vmatmul.mubr.msk.bf16.gmra.mrb[16].mxu1 %vm253_vm2, %v1638_v28 }
  0x2b   :  { %1562 = vmatprep.mubr.msk.bf16.mxu0 %vm253_vm2, %v1623_v23  ;;  %1594 = vmatprep.mubr.msk.bf16.mxu1 %vm253_vm2, %v1639_v29 }
  0x32   :  { %1563 = vmatmul.mubr.msk.bf16.gmra.mrb[20].mxu0 %vm253_vm2, %v1624_v26  ;;  %1595 = vmatmul.mubr.msk.bf16.gmra.mrb[20].mxu1 %vm253_vm2, %v1640_v32 }
  0x33   :  { %1566 = vmatprep.mubr.msk.bf16.mxu0 %vm253_vm2, %v1625_v27  ;;  %1598 = vmatprep.mubr.msk.bf16.mxu1 %vm253_vm2, %v1641_v33 }
  0x3a   :  { %1567 = vmatmul.mubr.msk.bf16.gmra.mrb[24].mxu0 %vm253_vm2, %v1626_v30  ;;  %1599 = vmatmul.mubr.msk.bf16.gmra.mrb[24].mxu1 %vm253_vm2, %v1642_v35 }
  0x3b   :  { %1570 = vmatprep.mubr.msk.bf16.mxu0 %vm253_vm2, %v1627_v31  ;;  %1602 = vmatprep.mubr.msk.bf16.mxu1 %vm253_vm2, %v1643_v36 }
  0x42   :  { %1571 = vmatmul.mubr.msk.bf16.gmra.mrb[28].mxu0 %vm253_vm2, %v1628_v34  ;;  %1603 = vmatmul.mubr.msk.bf16.gmra.mrb[28].mxu1 %vm253_vm2, %v1644_v37 }
  0xdd   :  { %v1544_v38 = vpop.f32.mrb[0].mxu0  ;;  %v1829_v9 = vpop.f32.mrb[0].mxu1 }
  0xde   :  { %v1442_v39 = vpack.c.bf16 %v1544_v38, %v1544_v38  ;;  %v391_v40 = vpop.f32.mrb[1].mxu0  ;;  %v1103_v44 = vmul.f32 %v1544_v38, %v1544_v38  ;;  %v971_v53 = vsel %vm967_vm4, %v1544_v38, 0.0  ;;  %v1836_v14 = vpop.f32.mrb[1].mxu1  ;;  %v1474_v18 = vpack.c.bf16 %v1829_v9, %v1829_v9 }
  0xdf   :  { %v1440_v41 = vpack.c.bf16 %v391_v40, %v391_v40  ;;  %v1101_v42 = vmul.f32 %v391_v40, %v391_v40  ;;  %v1545_v43 = vpop.f32.mrb[2].mxu0  ;;  %v968_v47 = vsel %vm967_vm4, %v391_v40, 0.0  ;;  %v1845_v19 = vpop.f32.mrb[2].mxu1  ;;  %v1472_v25 = vpack.c.bf16 %v1836_v14, %v1836_v14 }
  0xe0   :  { %905 = vst.msk [vmem:[%s2413_s2 + $0x8] sm:$0xf] %vm902_vm3, %v1442_v39  ;;  %v1443_v45 = vpack.c.bf16 %v1545_v43, %v1545_v43  ;;  %v394_v46 = vpop.f32.mrb[3].mxu0  ;;  %v1104_v51 = vmul.f32 %v1545_v43, %v1545_v43  ;;  %v1168_v58 = vsel %vm967_vm4, %v1103_v44, 0.0  ;;  %v973_v60 = vsel %vm967_vm4, %v1545_v43, 0.0  ;;  %v1851_v21 = vpop.f32.mrb[3].mxu1 }
  0xe1   :  { %903 = vst.msk [vmem:[%s2413_s2] sm:$0xf] %vm902_vm3, %v1440_v41  ;;  %v1441_v48 = vpack.c.bf16 %v394_v46, %v394_v46  ;;  %v969_v49 = vsel %vm967_vm4, %v394_v46, 0.0  ;;  %v1102_v50 = vmul.f32 %v394_v46, %v394_v46  ;;  %v1165_v54 = vsel %vm967_vm4, %v1101_v42, 0.0  ;;  %937 = vst.msk [vmem:[%s2413_s2 + $0x88] sm:$0xf] %vm902_vm3, %v1474_v18 }
  0xe2   :  { %906 = vst.msk [vmem:[%s2413_s2 + $0xc] sm:$0xf] %vm902_vm3, %v1443_v45  ;;  %v970_v52 = vadd.f32 %v969_v49, %v968_v47  ;;  %v1170_v61 = vsel %vm967_vm4, %v1104_v51, 0.0  ;;  %v1475_v29 = vpack.c.bf16 %v1845_v19, %v1845_v19  ;;  %935 = vst.msk [vmem:[%s2413_s2 + $0x80] sm:$0xf] %vm902_vm3, %v1472_v25 }
  0xe3   :  { %904 = vst.msk [vmem:[%s2413_s2 + $0x4] sm:$0xf] %vm902_vm3, %v1441_v48  ;;  %v1166_v55 = vsel %vm967_vm4, %v1102_v50, 0.0 }
  0xe4   :  { %v972_v56 = vadd.f32 %v971_v53, %v970_v52  ;;  %v1167_v57 = vadd.f32 %v1166_v55, %v1165_v54  ;;  %938 = vst.msk [vmem:[%s2413_s2 + $0x8c] sm:$0xf] %vm902_vm3, %v1475_v29 }
  0xe5   :  { %v1548_v59 = vpop.f32.mrb[4].mxu0  ;;  %v1879_v43 = vpop.f32.mrb[4].mxu1 }
  0xe6   :  { %v1169_v62 = vadd.f32 %v1168_v58, %v1167_v57  ;;  %v1446_v63 = vpack.c.bf16 %v1548_v59, %v1548_v59  ;;  %v407_v0 = vpop.f32.mrb[5].mxu0  ;;  %v974_v2 = vadd.f32 %v973_v60, %v972_v56  ;;  %v1107_v10 = vmul.f32 %v1548_v59, %v1548_v59  ;;  %v1885_v47 = vpop.f32.mrb[5].mxu1 }
  0xe7   :  { %v1444_v1 = vpack.c.bf16 %v407_v0, %v407_v0  ;;  %v975_v3 = vsel %vm967_vm4, %v407_v0, 0.0  ;;  %v1105_v4 = vmul.f32 %v407_v0, %v407_v0  ;;  %v1549_v5 = vpop.f32.mrb[6].mxu0  ;;  %v979_v22 = vsel %vm967_vm4, %v1548_v59, 0.0  ;;  %v1893_v52 = vpop.f32.mrb[6].mxu1 }
  0xe8   :  { %909 = vst.msk [vmem:[%s2413_s2 + $0x18] sm:$0xf] %vm902_vm3, %v1446_v63  ;;  %v1171_v6 = vadd.f32 %v1170_v61, %v1169_v62  ;;  %v1447_v7 = vpack.c.bf16 %v1549_v5, %v1549_v5  ;;  %v410_v8 = vpop.f32.mrb[7].mxu0  ;;  %v976_v11 = vadd.f32 %v975_v3, %v974_v2  ;;  %v1108_v23 = vmul.f32 %v1549_v5, %v1549_v5  ;;  %v1899_v55 = vpop.f32.mrb[7].mxu1 }
  0xe9   :  { %907 = vst.msk [vmem:[%s2413_s2 + $0x10] sm:$0xf] %vm902_vm3, %v1444_v1  ;;  %v1172_v12 = vsel %vm967_vm4, %v1105_v4, 0.0  ;;  %v1445_v13 = vpack.c.bf16 %v410_v8, %v410_v8  ;;  %v977_v16 = vsel %vm967_vm4, %v410_v8, 0.0  ;;  %v1106_v17 = vmul.f32 %v410_v8, %v410_v8 }
  0xea   :  { %v1173_v15 = vadd.f32 %v1172_v12, %v1171_v6  ;;  %910 = vst.msk [vmem:[%s2413_s2 + $0x1c] sm:$0xf] %vm902_vm3, %v1447_v7  ;;  %v978_v20 = vadd.f32 %v977_v16, %v976_v11  ;;  %v1176_v30 = vsel %vm967_vm4, %v1107_v10, 0.0  ;;  %v981_v31 = vsel %vm967_vm4, %v1549_v5, 0.0 }
  0xeb   :  { %908 = vst.msk [vmem:[%s2413_s2 + $0x14] sm:$0xf] %vm902_vm3, %v1445_v13  ;;  %v1174_v24 = vsel %vm967_vm4, %v1106_v17, 0.0  ;;  %v1178_v39 = vsel %vm967_vm4, %v1108_v23, 0.0  ;;  %v1473_v59 = vpack.c.bf16 %v1851_v21, %v1851_v21  ;;  %v1478_v63 = vpack.c.bf16 %v1879_v43, %v1879_v43 }
  0xec   :  { %v980_v26 = vadd.f32 %v979_v22, %v978_v20  ;;  %v1175_v27 = vadd.f32 %v1174_v24, %v1173_v15 }
  0xed   :  { %v1552_v28 = vpop.f32.mrb[8].mxu0  ;;  %936 = vst.msk [vmem:[%s2413_s2 + $0x84] sm:$0xf] %vm902_vm3, %v1473_v59  ;;  %941 = vst.msk [vmem:[%s2413_s2 + $0x98] sm:$0xf] %vm902_vm3, %v1478_v63  ;;  %v1923_v15 = vpop.f32.mrb[8].mxu1 }
  0xee   :  { %v1450_v32 = vpack.c.bf16 %v1552_v28, %v1552_v28  ;;  %v423_v33 = vpop.f32.mrb[9].mxu0  ;;  %v1177_v34 = vadd.f32 %v1176_v30, %v1175_v27  ;;  %v982_v36 = vadd.f32 %v981_v31, %v980_v26  ;;  %v1111_v48 = vmul.f32 %v1552_v28, %v1552_v28  ;;  %v1929_v20 = vpop.f32.mrb[9].mxu1 }
  0xef   :  { %v1448_v35 = vpack.c.bf16 %v423_v33, %v423_v33  ;;  %v983_v37 = vsel %vm967_vm4, %v423_v33, 0.0  ;;  %v1553_v38 = vpop.f32.mrb[10].mxu0  ;;  %v1109_v40 = vmul.f32 %v423_v33, %v423_v33  ;;  %v987_v56 = vsel %vm967_vm4, %v1552_v28, 0.0  ;;  %v1937_v26 = vpop.f32.mrb[10].mxu1 }
  0xf0   :  { %913 = vst.msk [vmem:[%s2413_s2 + $0x28] sm:$0xf] %vm902_vm3, %v1450_v32  ;;  %v1451_v41 = vpack.c.bf16 %v1553_v38, %v1553_v38  ;;  %v426_v42 = vpop.f32.mrb[11].mxu0  ;;  %v984_v44 = vadd.f32 %v983_v37, %v982_v36  ;;  %v1179_v45 = vadd.f32 %v1178_v39, %v1177_v34  ;;  %v1112_v57 = vmul.f32 %v1553_v38, %v1553_v38  ;;  %v1943_v29 = vpop.f32.mrb[11].mxu1 }
  0xf1   :  { %911 = vst.msk [vmem:[%s2413_s2 + $0x20] sm:$0xf] %vm902_vm3, %v1448_v35  ;;  %v1449_v46 = vpack.c.bf16 %v426_v42, %v426_v42  ;;  %v1180_v49 = vsel %vm967_vm4, %v1109_v40, 0.0  ;;  %v985_v50 = vsel %vm967_vm4, %v426_v42, 0.0  ;;  %v1110_v51 = vmul.f32 %v426_v42, %v426_v42 }
  0xf2   :  { %914 = vst.msk [vmem:[%s2413_s2 + $0x2c] sm:$0xf] %vm902_vm3, %v1451_v41  ;;  %v1181_v53 = vadd.f32 %v1180_v49, %v1179_v45  ;;  %v986_v54 = vadd.f32 %v985_v50, %v984_v44  ;;  %v1184_v0 = vsel %vm967_vm4, %v1111_v48, 0.0  ;;  %v989_v1 = vsel %vm967_vm4, %v1553_v38, 0.0 }
  0xf3   :  { %912 = vst.msk [vmem:[%s2413_s2 + $0x24] sm:$0xf] %vm902_vm3, %v1449_v46  ;;  %v1182_v58 = vsel %vm967_vm4, %v1110_v51, 0.0  ;;  %v1186_v10 = vsel %vm967_vm4, %v1112_v57, 0.0  ;;  %v1476_v33 = vpack.c.bf16 %v1885_v47, %v1885_v47  ;;  %v1479_v37 = vpack.c.bf16 %v1893_v52, %v1893_v52 }
  0xf4   :  { %v988_v60 = vadd.f32 %v987_v56, %v986_v54  ;;  %v1183_v61 = vadd.f32 %v1182_v58, %v1181_v53 }
  0xf5   :  { %v1556_v62 = vpop.f32.mrb[12].mxu0  ;;  %939 = vst.msk [vmem:[%s2413_s2 + $0x90] sm:$0xf] %vm902_vm3, %v1476_v33  ;;  %942 = vst.msk [vmem:[%s2413_s2 + $0x9c] sm:$0xf] %vm902_vm3, %v1479_v37  ;;  %v1967_v54 = vpop.f32.mrb[12].mxu1 }
  0xf6   :  { %v1454_v2 = vpack.c.bf16 %v1556_v62, %v1556_v62  ;;  %v439_v3 = vpop.f32.mrb[13].mxu0  ;;  %v1185_v4 = vadd.f32 %v1184_v0, %v1183_v61  ;;  %v990_v6 = vadd.f32 %v989_v1, %v988_v60  ;;  %v1115_v22 = vmul.f32 %v1556_v62, %v1556_v62  ;;  %v1973_v59 = vpop.f32.mrb[13].mxu1 }
  0xf7   :  { %v1452_v5 = vpack.c.bf16 %v439_v3, %v439_v3  ;;  %v991_v7 = vsel %vm967_vm4, %v439_v3, 0.0  ;;  %v1557_v8 = vpop.f32.mrb[14].mxu0  ;;  %v1113_v11 = vmul.f32 %v439_v3, %v439_v3  ;;  %v995_v30 = vsel %vm967_vm4, %v1556_v62, 0.0  ;;  %v1981_v0 = vpop.f32.mrb[14].mxu1 }
  0xf8   :  { %917 = vst.msk [vmem:[%s2413_s2 + $0x38] sm:$0xf] %vm902_vm3, %v1454_v2  ;;  %v1455_v12 = vpack.c.bf16 %v1557_v8, %v1557_v8  ;;  %v442_v13 = vpop.f32.mrb[15].mxu0  ;;  %v992_v16 = vadd.f32 %v991_v7, %v990_v6  ;;  %v1187_v17 = vadd.f32 %v1186_v10, %v1185_v4  ;;  %v1116_v31 = vmul.f32 %v1557_v8, %v1557_v8  ;;  %v1987_v3 = vpop.f32.mrb[15].mxu1 }
  0xf9   :  { %915 = vst.msk [vmem:[%s2413_s2 + $0x30] sm:$0xf] %vm902_vm3, %v1452_v5  ;;  %v1453_v18 = vpack.c.bf16 %v442_v13, %v442_v13  ;;  %v1188_v23 = vsel %vm967_vm4, %v1113_v11, 0.0  ;;  %v993_v24 = vsel %vm967_vm4, %v442_v13, 0.0  ;;  %v1114_v25 = vmul.f32 %v442_v13, %v442_v13 }
  0xfa   :  { %918 = vst.msk [vmem:[%s2413_s2 + $0x3c] sm:$0xf] %vm902_vm3, %v1455_v12  ;;  %v1189_v27 = vadd.f32 %v1188_v23, %v1187_v17  ;;  %v994_v28 = vadd.f32 %v993_v24, %v992_v16  ;;  %v1192_v38 = vsel %vm967_vm4, %v1115_v22, 0.0  ;;  %v997_v39 = vsel %vm967_vm4, %v1557_v8, 0.0 }
  0xfb   :  { %916 = vst.msk [vmem:[%s2413_s2 + $0x34] sm:$0xf] %vm902_vm3, %v1453_v18  ;;  %v1190_v32 = vsel %vm967_vm4, %v1114_v25, 0.0  ;;  %v1194_v49 = vsel %vm967_vm4, %v1116_v31, 0.0  ;;  %v1477_v7 = vpack.c.bf16 %v1899_v55, %v1899_v55  ;;  %v1482_v12 = vpack.c.bf16 %v1923_v15, %v1923_v15 }
  0xfc   :  { %v996_v34 = vadd.f32 %v995_v30, %v994_v28  ;;  %v1191_v35 = vadd.f32 %v1190_v32, %v1189_v27 }
  0xfd   :  { %v1560_v36 = vpop.f32.mrb[16].mxu0  ;;  %940 = vst.msk [vmem:[%s2413_s2 + $0x94] sm:$0xf] %vm902_vm3, %v1477_v7  ;;  %945 = vst.msk [vmem:[%s2413_s2 + $0xa8] sm:$0xf] %vm902_vm3, %v1482_v12  ;;  %v2011_v33 = vpop.f32.mrb[16].mxu1 }
  0xfe   :  { %v1458_v40 = vpack.c.bf16 %v1560_v36, %v1560_v36  ;;  %v455_v41 = vpop.f32.mrb[17].mxu0  ;;  %v1193_v42 = vadd.f32 %v1192_v38, %v1191_v35  ;;  %v998_v45 = vadd.f32 %v997_v39, %v996_v34  ;;  %v1119_v60 = vmul.f32 %v1560_v36, %v1560_v36  ;;  %v2017_v37 = vpop.f32.mrb[17].mxu1 }
  0xff   :  { %v1456_v44 = vpack.c.bf16 %v455_v41, %v455_v41  ;;  %v999_v46 = vsel %vm967_vm4, %v455_v41, 0.0  ;;  %v1561_v48 = vpop.f32.mrb[18].mxu0  ;;  %v1117_v50 = vmul.f32 %v455_v41, %v455_v41  ;;  %v1003_v4 = vsel %vm967_vm4, %v1560_v36, 0.0 }
 0x100   :  { %921 = vst.msk [vmem:[%s2413_s2 + $0x48] sm:$0xf] %vm902_vm3, %v1458_v40  ;;  %v1459_v51 = vpack.c.bf16 %v1561_v48, %v1561_v48  ;;  %v458_v53 = vpop.f32.mrb[19].mxu0  ;;  %v1000_v56 = vadd.f32 %v999_v46, %v998_v45  ;;  %v1195_v57 = vadd.f32 %v1194_v49, %v1193_v42  ;;  %v1120_v5 = vmul.f32 %v1561_v48, %v1561_v48  ;;  %v2025_v42 = vpop.f32.mrb[18].mxu1 }
 0x101   :  { %919 = vst.msk [vmem:[%s2413_s2 + $0x40] sm:$0xf] %vm902_vm3, %v1456_v44  ;;  %v1457_v58 = vpack.c.bf16 %v458_v53, %v458_v53  ;;  %v1196_v61 = vsel %vm967_vm4, %v1117_v50, 0.0  ;;  %v1001_v62 = vsel %vm967_vm4, %v458_v53, 0.0  ;;  %v1118_v63 = vmul.f32 %v458_v53, %v458_v53  ;;  %v2031_v46 = vpop.f32.mrb[19].mxu1 }
 0x102   :  { %922 = vst.msk [vmem:[%s2413_s2 + $0x4c] sm:$0xf] %vm902_vm3, %v1459_v51  ;;  %v1197_v1 = vadd.f32 %v1196_v61, %v1195_v57  ;;  %v1002_v2 = vadd.f32 %v1001_v62, %v1000_v56  ;;  %v1200_v13 = vsel %vm967_vm4, %v1119_v60, 0.0  ;;  %v1005_v16 = vsel %vm967_vm4, %v1561_v48, 0.0 }
 0x103   :  { %920 = vst.msk [vmem:[%s2413_s2 + $0x44] sm:$0xf] %vm902_vm3, %v1457_v58  ;;  %v1198_v6 = vsel %vm967_vm4, %v1118_v63, 0.0  ;;  %v1202_v28 = vsel %vm967_vm4, %v1120_v5, 0.0  ;;  %v1480_v51 = vpack.c.bf16 %v1929_v20, %v1929_v20  ;;  %v1483_v58 = vpack.c.bf16 %v1937_v26, %v1937_v26 }
 0x104   :  { %v1004_v8 = vadd.f32 %v1003_v4, %v1002_v2  ;;  %v1199_v10 = vadd.f32 %v1198_v6, %v1197_v1 }
 0x105   :  { %v1564_v11 = vpop.f32.mrb[20].mxu0  ;;  %943 = vst.msk [vmem:[%s2413_s2 + $0xa0] sm:$0xf] %vm902_vm3, %v1480_v51  ;;  %946 = vst.msk [vmem:[%s2413_s2 + $0xac] sm:$0xf] %vm902_vm3, %v1483_v58  ;;  %v2055_v12 = vpop.f32.mrb[20].mxu1 }
 0x106   :  { %v1462_v17 = vpack.c.bf16 %v1564_v11, %v1564_v11  ;;  %v471_v18 = vpop.f32.mrb[21].mxu0  ;;  %v1201_v22 = vadd.f32 %v1200_v13, %v1199_v10  ;;  %v1006_v24 = vadd.f32 %v1005_v16, %v1004_v8  ;;  %v1123_v38 = vmul.f32 %v1564_v11, %v1564_v11 }
 0x107   :  { %v1460_v23 = vpack.c.bf16 %v471_v18, %v471_v18  ;;  %v1007_v25 = vsel %vm967_vm4, %v471_v18, 0.0  ;;  %v1565_v27 = vpop.f32.mrb[22].mxu0  ;;  %v1121_v30 = vmul.f32 %v471_v18, %v471_v18  ;;  %v1011_v48 = vsel %vm967_vm4, %v1564_v11, 0.0  ;;  %v2061_v18 = vpop.f32.mrb[21].mxu1 }
 0x108   :  { %925 = vst.msk [vmem:[%s2413_s2 + $0x58] sm:$0xf] %vm902_vm3, %v1462_v17  ;;  %v1463_v31 = vpack.c.bf16 %v1565_v27, %v1565_v27  ;;  %v474_v32 = vpop.f32.mrb[23].mxu0  ;;  %v1008_v34 = vadd.f32 %v1007_v25, %v1006_v24  ;;  %v1203_v35 = vadd.f32 %v1202_v28, %v1201_v22  ;;  %v1124_v49 = vmul.f32 %v1565_v27, %v1565_v27 }
 0x109   :  { %923 = vst.msk [vmem:[%s2413_s2 + $0x50] sm:$0xf] %vm902_vm3, %v1460_v23  ;;  %v1461_v36 = vpack.c.bf16 %v474_v32, %v474_v32  ;;  %v1204_v39 = vsel %vm967_vm4, %v1121_v30, 0.0  ;;  %v1009_v40 = vsel %vm967_vm4, %v474_v32, 0.0  ;;  %v1122_v41 = vmul.f32 %v474_v32, %v474_v32 }
 0x10a   :  { %926 = vst.msk [vmem:[%s2413_s2 + $0x5c] sm:$0xf] %vm902_vm3, %v1463_v31  ;;  %v1205_v44 = vadd.f32 %v1204_v39, %v1203_v35  ;;  %v1010_v45 = vadd.f32 %v1009_v40, %v1008_v34  ;;  %v1208_v60 = vsel %vm967_vm4, %v1123_v38, 0.0  ;;  %v1013_v61 = vsel %vm967_vm4, %v1565_v27, 0.0  ;;  %v2069_v27 = vpop.f32.mrb[22].mxu1 }
 0x10b   :  { %924 = vst.msk [vmem:[%s2413_s2 + $0x54] sm:$0xf] %vm902_vm3, %v1461_v36  ;;  %v1206_v50 = vsel %vm967_vm4, %v1122_v41, 0.0  ;;  %v1210_v7 = vsel %vm967_vm4, %v1124_v49, 0.0  ;;  %v2075_v31 = vpop.f32.mrb[23].mxu1  ;;  %v1481_v36 = vpack.c.bf16 %v1943_v29, %v1943_v29  ;;  %v1486_v41 = vpack.c.bf16 %v1967_v54, %v1967_v54 }
 0x10c   :  { %v1012_v53 = vadd.f32 %v1011_v48, %v1010_v45  ;;  %v1207_v56 = vadd.f32 %v1206_v50, %v1205_v44 }
 0x10d   :  { %v1568_v57 = vpop.f32.mrb[24].mxu0  ;;  %944 = vst.msk [vmem:[%s2413_s2 + $0xa4] sm:$0xf] %vm902_vm3, %v1481_v36  ;;  %949 = vst.msk [vmem:[%s2413_s2 + $0xb8] sm:$0xf] %vm902_vm3, %v1486_v41 }
 0x10e   :  { %v1466_v62 = vpack.c.bf16 %v1568_v57, %v1568_v57  ;;  %v487_v63 = vpop.f32.mrb[25].mxu0  ;;  %v1209_v1 = vadd.f32 %v1208_v60, %v1207_v56  ;;  %v1014_v4 = vadd.f32 %v1013_v61, %v1012_v53  ;;  %v1127_v22 = vmul.f32 %v1568_v57, %v1568_v57 }
 0x10f   :  { %v1464_v2 = vpack.c.bf16 %v487_v63, %v487_v63  ;;  %v1015_v5 = vsel %vm967_vm4, %v487_v63, 0.0  ;;  %v1569_v6 = vpop.f32.mrb[26].mxu0  ;;  %v1125_v8 = vmul.f32 %v487_v63, %v487_v63  ;;  %v1019_v32 = vsel %vm967_vm4, %v1568_v57, 0.0  ;;  %v2099_v63 = vpop.f32.mrb[24].mxu1 }
 0x110   :  { %929 = vst.msk [vmem:[%s2413_s2 + $0x68] sm:$0xf] %vm902_vm3, %v1466_v62  ;;  %v1467_v10 = vpack.c.bf16 %v1569_v6, %v1569_v6  ;;  %v490_v11 = vpop.f32.mrb[27].mxu0  ;;  %v1016_v13 = vadd.f32 %v1015_v5, %v1014_v4  ;;  %v1211_v16 = vadd.f32 %v1210_v7, %v1209_v1  ;;  %v1128_v34 = vmul.f32 %v1569_v6, %v1569_v6  ;;  %v2105_v5 = vpop.f32.mrb[25].mxu1 }
 0x111   :  { %927 = vst.msk [vmem:[%s2413_s2 + $0x60] sm:$0xf] %vm902_vm3, %v1464_v2  ;;  %v1465_v17 = vpack.c.bf16 %v490_v11, %v490_v11  ;;  %v1212_v23 = vsel %vm967_vm4, %v1125_v8, 0.0  ;;  %v1017_v24 = vsel %vm967_vm4, %v490_v11, 0.0  ;;  %v1126_v25 = vmul.f32 %v490_v11, %v490_v11  ;;  %v2113_v11 = vpop.f32.mrb[26].mxu1 }
 0x112   :  { %930 = vst.msk [vmem:[%s2413_s2 + $0x6c] sm:$0xf] %vm902_vm3, %v1467_v10  ;;  %v1213_v28 = vadd.f32 %v1212_v23, %v1211_v16  ;;  %v1018_v30 = vadd.f32 %v1017_v24, %v1016_v13  ;;  %v1216_v44 = vsel %vm967_vm4, %v1127_v22, 0.0  ;;  %v1021_v45 = vsel %vm967_vm4, %v1569_v6, 0.0  ;;  %v2121_v22 = vpop.f32.mrb[27].mxu1 }
 0x113   :  { %928 = vst.msk [vmem:[%s2413_s2 + $0x64] sm:$0xf] %vm902_vm3, %v1465_v17  ;;  %v1214_v35 = vsel %vm967_vm4, %v1126_v25, 0.0  ;;  %v1218_v58 = vsel %vm967_vm4, %v1128_v34, 0.0  ;;  %v1133_v17 = vmul.f32 %v1836_v14, %v1836_v14  ;;  %v1487_v34 = vpack.c.bf16 %v1981_v0, %v1981_v0 }
 0x114   :  { %v1020_v38 = vadd.f32 %v1019_v32, %v1018_v30  ;;  %v1215_v39 = vadd.f32 %v1214_v35, %v1213_v28  ;;  %v1484_v28 = vpack.c.bf16 %v1973_v59, %v1973_v59 }
 0x115   :  { %v1572_v40 = vpop.f32.mrb[28].mxu0  ;;  %950 = vst.msk [vmem:[%s2413_s2 + $0xbc] sm:$0xf] %vm902_vm3, %v1487_v34 }
 0x116   :  { %v1470_v48 = vpack.c.bf16 %v1572_v40, %v1572_v40  ;;  %v503_v49 = vpop.f32.mrb[29].mxu0  ;;  %v1217_v50 = vadd.f32 %v1216_v44, %v1215_v39  ;;  %v1022_v53 = vadd.f32 %v1021_v45, %v1020_v38  ;;  %v1131_v6 = vmul.f32 %v1572_v40, %v1572_v40  ;;  %947 = vst.msk [vmem:[%s2413_s2 + $0xb0] sm:$0xf] %vm902_vm3, %v1484_v28 }
 0x117   :  { %v1468_v51 = vpack.c.bf16 %v503_v49, %v503_v49  ;;  %v1023_v56 = vsel %vm967_vm4, %v503_v49, 0.0  ;;  %v1573_v57 = vpop.f32.mrb[30].mxu0  ;;  %v1129_v60 = vmul.f32 %v503_v49, %v503_v49  ;;  %v1027_v23 = vsel %vm967_vm4, %v1572_v40, 0.0  ;;  %v2153_v49 = vpop.f32.mrb[28].mxu1 }
 0x118   :  { %933 = vst.msk [vmem:[%s2413_s2 + $0x78] sm:$0xf] %vm902_vm3, %v1470_v48  ;;  %v1471_v61 = vpack.c.bf16 %v1573_v57, %v1573_v57  ;;  %v506_v62 = vpop.f32.mrb[31].mxu0  ;;  %v1024_v1 = vadd.f32 %v1023_v56, %v1022_v53  ;;  %v1219_v2 = vadd.f32 %v1218_v58, %v1217_v50  ;;  %v1132_v24 = vmul.f32 %v1573_v57, %v1573_v57  ;;  %v2157_v56 = vpop.f32.mrb[29].mxu1 }
 0x119   :  { %931 = vst.msk [vmem:[%s2413_s2 + $0x70] sm:$0xf] %vm902_vm3, %v1468_v51  ;;  %v1469_v4 = vpack.c.bf16 %v506_v62, %v506_v62  ;;  %v1220_v7 = vsel %vm967_vm4, %v1129_v60, 0.0  ;;  %v1025_v8 = vsel %vm967_vm4, %v506_v62, 0.0  ;;  %v1130_v10 = vmul.f32 %v506_v62, %v506_v62 }
 0x11a   :  { %934 = vst.msk [vmem:[%s2413_s2 + $0x7c] sm:$0xf] %vm902_vm3, %v1471_v61  ;;  %v1221_v13 = vadd.f32 %v1220_v7, %v1219_v2  ;;  %v1026_v16 = vadd.f32 %v1025_v8, %v1024_v1  ;;  %v1224_v35 = vsel %vm967_vm4, %v1131_v6, 0.0  ;;  %v1029_v36 = vsel %vm967_vm4, %v1573_v57, 0.0  ;;  %v2169_v61 = vpop.f32.mrb[30].mxu1 }
 0x11b   :  { %932 = vst.msk [vmem:[%s2413_s2 + $0x74] sm:$0xf] %vm902_vm3, %v1469_v4  ;;  %v1222_v25 = vsel %vm967_vm4, %v1130_v10, 0.0  ;;  %v1031_v38 = vsel %vm967_vm4, %v1836_v14, 0.0  ;;  %v1485_v39 = vpack.c.bf16 %v1987_v3, %v1987_v3  ;;  %v1226_v44 = vsel %vm967_vm4, %v1132_v24, 0.0 }
 0x11c   :  { %v1028_v30 = vadd.f32 %v1027_v23, %v1026_v16  ;;  %v1223_v32 = vadd.f32 %v1222_v25, %v1221_v13  ;;  %v1228_v45 = vsel %vm967_vm4, %v1133_v17, 0.0  ;;  %v1134_v14 = vmul.f32 %v1851_v21, %v1851_v21 }
 0x11d   :  { %948 = vst.msk [vmem:[%s2413_s2 + $0xb4] sm:$0xf] %vm902_vm3, %v1485_v39  ;;  %v1490_v48 = vpack.c.bf16 %v2011_v33, %v2011_v33  ;;  %v1488_v53 = vpack.c.bf16 %v2017_v37, %v2017_v37  ;;  %v1135_v57 = vmul.f32 %v1829_v9, %v1829_v9  ;;  %v1033_v58 = vsel %vm967_vm4, %v1851_v21, 0.0  ;;  %v2177_v21 = vpop.f32.mrb[31].mxu1 }
 0x11e   :  { %v1225_v40 = vadd.f32 %v1224_v35, %v1223_v32  ;;  %v1030_v41 = vadd.f32 %v1029_v36, %v1028_v30  ;;  %v1491_v60 = vpack.c.bf16 %v2025_v42, %v2025_v42  ;;  %v1035_v62 = vsel %vm967_vm4, %v1829_v9, 0.0 }
 0x11f   :  { %953 = vst.msk [vmem:[%s2413_s2 + $0xc8] sm:$0xf] %vm902_vm3, %v1490_v48  ;;  %951 = vst.msk [vmem:[%s2413_s2 + $0xc0] sm:$0xf] %vm902_vm3, %v1488_v53  ;;  %v1136_v4 = vmul.f32 %v1845_v19, %v1845_v19  ;;  %v1230_v6 = vsel %vm967_vm4, %v1134_v14, 0.0  ;;  %v1137_v7 = vmul.f32 %v1885_v47, %v1885_v47  ;;  %v1489_v9 = vpack.c.bf16 %v2031_v46, %v2031_v46 }
 0x120   :  { %v1032_v50 = vadd.f32 %v1031_v38, %v1030_v41  ;;  %v1227_v51 = vadd.f32 %v1226_v44, %v1225_v40  ;;  %954 = vst.msk [vmem:[%s2413_s2 + $0xcc] sm:$0xf] %vm902_vm3, %v1491_v60  ;;  %v1494_v13 = vpack.c.bf16 %v2055_v12, %v2055_v12  ;;  %v1232_v16 = vsel %vm967_vm4, %v1135_v57, 0.0 }
 0x121   :  { %v1037_v17 = vsel %vm967_vm4, %v1845_v19, 0.0  ;;  %v1039_v23 = vsel %vm967_vm4, %v1885_v47, 0.0  ;;  %952 = vst.msk [vmem:[%s2413_s2 + $0xc4] sm:$0xf] %vm902_vm3, %v1489_v9  ;;  %v1492_v24 = vpack.c.bf16 %v2061_v18, %v2061_v18  ;;  %v1234_v19 = vsel %vm967_vm4, %v1136_v4, 0.0 }
 0x122   :  { %v1229_v1 = vadd.f32 %v1228_v45, %v1227_v51  ;;  %v1034_v2 = vadd.f32 %v1033_v58, %v1032_v50  ;;  %957 = vst.msk [vmem:[%s2413_s2 + $0xd8] sm:$0xf] %vm902_vm3, %v1494_v13  ;;  %v1236_v30 = vsel %vm967_vm4, %v1137_v7, 0.0  ;;  %v1138_v47 = vmul.f32 %v1899_v55, %v1899_v55 }
 0x123   :  { %955 = vst.msk [vmem:[%s2413_s2 + $0xd0] sm:$0xf] %vm902_vm3, %v1492_v24  ;;  %v1495_v32 = vpack.c.bf16 %v2069_v27, %v2069_v27  ;;  %v1493_v36 = vpack.c.bf16 %v2075_v31, %v2075_v31  ;;  %v1139_v38 = vmul.f32 %v1879_v43, %v1879_v43  ;;  %v1041_v39 = vsel %vm967_vm4, %v1899_v55, 0.0 }
 0x124   :  { %v1036_v8 = vadd.f32 %v1035_v62, %v1034_v2  ;;  %v1231_v10 = vadd.f32 %v1230_v6, %v1229_v1  ;;  %v1498_v40 = vpack.c.bf16 %v2099_v63, %v2099_v63  ;;  %v1043_v41 = vsel %vm967_vm4, %v1879_v43, 0.0 }
 0x125   :  { %958 = vst.msk [vmem:[%s2413_s2 + $0xdc] sm:$0xf] %vm902_vm3, %v1495_v32  ;;  %956 = vst.msk [vmem:[%s2413_s2 + $0xd4] sm:$0xf] %vm902_vm3, %v1493_v36  ;;  %v1140_v55 = vmul.f32 %v1893_v52, %v1893_v52  ;;  %v1238_v14 = vsel %vm967_vm4, %v1138_v47, 0.0  ;;  %v1141_v48 = vmul.f32 %v1929_v20, %v1929_v20  ;;  %v1496_v43 = vpack.c.bf16 %v2105_v5, %v2105_v5 }
 0x126   :  { %v1233_v25 = vadd.f32 %v1232_v16, %v1231_v10  ;;  %v1038_v28 = vadd.f32 %v1037_v17, %v1036_v8  ;;  %961 = vst.msk [vmem:[%s2413_s2 + $0xe8] sm:$0xf] %vm902_vm3, %v1498_v40  ;;  %v1499_v53 = vpack.c.bf16 %v2113_v11, %v2113_v11  ;;  %v1240_v57 = vsel %vm967_vm4, %v1139_v38, 0.0 }
 0x127   :  { %v1045_v58 = vsel %vm967_vm4, %v1893_v52, 0.0  ;;  %v1047_v60 = vsel %vm967_vm4, %v1929_v20, 0.0  ;;  %959 = vst.msk [vmem:[%s2413_s2 + $0xe0] sm:$0xf] %vm902_vm3, %v1496_v43  ;;  %v1497_v62 = vpack.c.bf16 %v2121_v22, %v2121_v22  ;;  %v1242_v52 = vsel %vm967_vm4, %v1140_v55, 0.0 }
 0x128   :  { %v1040_v34 = vadd.f32 %v1039_v23, %v1038_v28  ;;  %v1235_v35 = vadd.f32 %v1234_v19, %v1233_v25  ;;  %962 = vst.msk [vmem:[%s2413_s2 + $0xec] sm:$0xf] %vm902_vm3, %v1499_v53  ;;  %v1244_v4 = vsel %vm967_vm4, %v1141_v48, 0.0  ;;  %v1142_v20 = vmul.f32 %v1943_v29, %v1943_v29 }
 0x129   :  { %960 = vst.msk [vmem:[%s2413_s2 + $0xe4] sm:$0xf] %vm902_vm3, %v1497_v62  ;;  %v1502_v6 = vpack.c.bf16 %v2153_v49, %v2153_v49  ;;  %v1500_v8 = vpack.c.bf16 %v2157_v56, %v2157_v56  ;;  %v1143_v10 = vmul.f32 %v1923_v15, %v1923_v15  ;;  %v1049_v13 = vsel %vm967_vm4, %v1943_v29, 0.0 }
 0x12a   :  { %v1237_v44 = vadd.f32 %v1236_v30, %v1235_v35  ;;  %v1042_v45 = vadd.f32 %v1041_v39, %v1040_v34  ;;  %v1503_v16 = vpack.c.bf16 %v2169_v61, %v2169_v61  ;;  %v1051_v17 = vsel %vm967_vm4, %v1923_v15, 0.0 }
 0x12b   :  { %965 = vst.msk [vmem:[%s2413_s2 + $0xf8] sm:$0xf] %vm902_vm3, %v1502_v6  ;;  %963 = vst.msk [vmem:[%s2413_s2 + $0xf0] sm:$0xf] %vm902_vm3, %v1500_v8  ;;  %v1144_v29 = vmul.f32 %v1937_v26, %v1937_v26  ;;  %v1246_v25 = vsel %vm967_vm4, %v1142_v20, 0.0  ;;  %v1145_v28 = vmul.f32 %v1973_v59, %v1973_v59  ;;  %v1501_v15 = vpack.c.bf16 %v2177_v21, %v2177_v21 }
 0x12c   :  { %v1044_v50 = vadd.f32 %v1043_v41, %v1042_v45  ;;  %v1239_v51 = vadd.f32 %v1238_v14, %v1237_v44  ;;  %966 = vst.msk [vmem:[%s2413_s2 + $0xfc] sm:$0xf] %vm902_vm3, %v1503_v16  ;;  %v1248_v47 = vsel %vm967_vm4, %v1143_v10, 0.0  ;;  %v1053_v32 = vsel %vm967_vm4, %v1937_v26, 0.0 }
 0x12d   :  { %v1055_v34 = vsel %vm967_vm4, %v1973_v59, 0.0  ;;  %964 = vst.msk [vmem:[%s2413_s2 + $0xf4] sm:$0xf] %vm902_vm3, %v1501_v15  ;;  %v1250_v38 = vsel %vm967_vm4, %v1144_v29, 0.0  ;;  %v1252_v39 = vsel %vm967_vm4, %v1145_v28, 0.0  ;;  %v1146_v40 = vmul.f32 %v1987_v3, %v1987_v3 }
 0x12e   :  { %v1241_v1 = vadd.f32 %v1240_v57, %v1239_v51  ;;  %v1046_v2 = vadd.f32 %v1045_v58, %v1044_v50  ;;  %v1147_v26 = vmul.f32 %v1967_v54, %v1967_v54  ;;  %v1057_v59 = vsel %vm967_vm4, %v1987_v3, 0.0 }
 0x12f   :  { %v1059_v14 = vsel %vm967_vm4, %v1967_v54, 0.0  ;;  %v1148_v48 = vmul.f32 %v1981_v0, %v1981_v0  ;;  %v1254_v43 = vsel %vm967_vm4, %v1146_v40, 0.0  ;;  %v1149_v50 = vmul.f32 %v2017_v37, %v2017_v37 }
 0x130   :  { %v1048_v7 = vadd.f32 %v1047_v60, %v1046_v2  ;;  %v1243_v9 = vadd.f32 %v1242_v52, %v1241_v1  ;;  %v1256_v57 = vsel %vm967_vm4, %v1147_v26, 0.0  ;;  %v1061_v3 = vsel %vm967_vm4, %v1981_v0, 0.0 }
 0x131   :  { %v1063_v58 = vsel %vm967_vm4, %v2017_v37, 0.0  ;;  %v1258_v62 = vsel %vm967_vm4, %v1148_v48, 0.0  ;;  %v1260_v1 = vsel %vm967_vm4, %v1149_v50, 0.0  ;;  %v1150_v2 = vmul.f32 %v2031_v46, %v2031_v46 }
 0x132   :  { %v1245_v23 = vadd.f32 %v1244_v4, %v1243_v9  ;;  %v1050_v24 = vadd.f32 %v1049_v13, %v1048_v7  ;;  %v1151_v20 = vmul.f32 %v2011_v33, %v2011_v33  ;;  %v1065_v0 = vsel %vm967_vm4, %v2031_v46, 0.0 }
 0x133   :  { %v1067_v37 = vsel %vm967_vm4, %v2011_v33, 0.0  ;;  %v1152_v9 = vmul.f32 %v2025_v42, %v2025_v42  ;;  %v1262_v8 = vsel %vm967_vm4, %v1150_v2, 0.0  ;;  %v1153_v10 = vmul.f32 %v2061_v18, %v2061_v18 }
 0x134   :  { %v1052_v19 = vadd.f32 %v1051_v17, %v1050_v24  ;;  %v1247_v30 = vadd.f32 %v1246_v25, %v1245_v23  ;;  %v1264_v17 = vsel %vm967_vm4, %v1151_v20, 0.0  ;;  %v1069_v46 = vsel %vm967_vm4, %v2025_v42, 0.0 }
 0x135   :  { %v1071_v23 = vsel %vm967_vm4, %v2061_v18, 0.0  ;;  %v1266_v29 = vsel %vm967_vm4, %v1152_v9, 0.0  ;;  %v1268_v25 = vsel %vm967_vm4, %v1153_v10, 0.0  ;;  %v1154_v28 = vmul.f32 %v2075_v31, %v2075_v31 }
 0x136   :  { %v1249_v35 = vadd.f32 %v1248_v47, %v1247_v30  ;;  %v1054_v36 = vadd.f32 %v1053_v32, %v1052_v19  ;;  %v1155_v30 = vmul.f32 %v2055_v12, %v2055_v12  ;;  %v1073_v42 = vsel %vm967_vm4, %v2075_v31, 0.0 }
 0x137   :  { %v1075_v18 = vsel %vm967_vm4, %v2055_v12, 0.0  ;;  %v1077_v31 = vsel %vm967_vm4, %v2069_v27, 0.0  ;;  %v1159_v48 = vmul.f32 %v2099_v63, %v2099_v63 }
 0x138   :  { %v1056_v41 = vadd.f32 %v1055_v34, %v1054_v36  ;;  %v1251_v44 = vadd.f32 %v1250_v38, %v1249_v35  ;;  %v1156_v34 = vmul.f32 %v2069_v27, %v2069_v27  ;;  %v1270_v35 = vsel %vm967_vm4, %v1154_v28, 0.0 }
 0x139   :  { %v1157_v36 = vmul.f32 %v2105_v5, %v2105_v5  ;;  %v1272_v40 = vsel %vm967_vm4, %v1155_v30, 0.0  ;;  %v1081_v27 = vsel %vm967_vm4, %v2121_v22, 0.0 }
 0x13a   :  { %v1253_v45 = vadd.f32 %v1252_v39, %v1251_v44  ;;  %v1058_v55 = vadd.f32 %v1057_v59, %v1056_v41  ;;  %v1079_v41 = vsel %vm967_vm4, %v2105_v5, 0.0  ;;  %v1274_v26 = vsel %vm967_vm4, %v1156_v34, 0.0 }
 0x13b   :  { %v1276_v59 = vsel %vm967_vm4, %v1157_v36, 0.0  ;;  %v1083_v5 = vsel %vm967_vm4, %v2099_v63, 0.0 }
 0x13c   :  { %v1060_v51 = vadd.f32 %v1059_v14, %v1058_v55  ;;  %v1255_v53 = vadd.f32 %v1254_v43, %v1253_v45  ;;  %v1158_v45 = vmul.f32 %v2121_v22, %v2121_v22  ;;  %v1085_v22 = vsel %vm967_vm4, %v2113_v11, 0.0 }
 0x13e   :  { %v1257_v60 = vadd.f32 %v1256_v57, %v1255_v53  ;;  %v1062_v54 = vadd.f32 %v1061_v3, %v1060_v51  ;;  %v1160_v51 = vmul.f32 %v2113_v11, %v2113_v11  ;;  %v1278_v53 = vsel %vm967_vm4, %v1158_v45, 0.0 }
 0x13f   :  { %v1161_v57 = vmul.f32 %v2157_v56, %v2157_v56  ;;  %v1089_v11 = vsel %vm967_vm4, %v2177_v21, 0.0 }
 0x140   :  { %v1064_v52 = vadd.f32 %v1063_v58, %v1062_v54  ;;  %v1259_v4 = vadd.f32 %v1258_v62, %v1257_v60  ;;  %v1280_v60 = vsel %vm967_vm4, %v1159_v48, 0.0  ;;  %v1087_v54 = vsel %vm967_vm4, %v2157_v56, 0.0 }
 0x141   :  { %v1284_v2 = vsel %vm967_vm4, %v1161_v57, 0.0  ;;  %v1091_v56 = vsel %vm967_vm4, %v2153_v49, 0.0 }
 0x142   :  { %v1261_v6 = vadd.f32 %v1260_v1, %v1259_v4  ;;  %v1066_v7 = vadd.f32 %v1065_v0, %v1064_v52  ;;  %v1282_v1 = vsel %vm967_vm4, %v1160_v51, 0.0  ;;  %v1162_v52 = vmul.f32 %v2177_v21, %v2177_v21 }
 0x143   :  { %v1163_v0 = vmul.f32 %v2153_v49, %v2153_v49 }
 0x144   :  { %v1068_v13 = vadd.f32 %v1067_v37, %v1066_v7  ;;  %v1263_v16 = vadd.f32 %v1262_v8, %v1261_v6  ;;  %v1164_v37 = vmul.f32 %v2169_v61, %v2169_v61  ;;  %v1286_v9 = vsel %vm967_vm4, %v1162_v52, 0.0 }
 0x146   :  { %v1265_v24 = vadd.f32 %v1264_v17, %v1263_v16  ;;  %v1070_v33 = vadd.f32 %v1069_v46, %v1068_v13  ;;  %v1288_v13 = vsel %vm967_vm4, %v1163_v0, 0.0  ;;  %v1093_v16 = vsel %vm967_vm4, %v2169_v61, 0.0 }
 0x147   :  { %v1290_v21 = vsel %vm967_vm4, %v1164_v37, 0.0 }
 0x148   :  { %v1072_v15 = vadd.f32 %v1071_v23, %v1070_v33  ;;  %v1267_v19 = vadd.f32 %v1266_v29, %v1265_v24 }
 0x14a   :  { %v1269_v47 = vadd.f32 %v1268_v25, %v1267_v19  ;;  %v1074_v32 = vadd.f32 %v1073_v42, %v1072_v15 }
 0x14c   :  { %v1076_v38 = vadd.f32 %v1075_v18, %v1074_v32  ;;  %v1271_v39 = vadd.f32 %v1270_v35, %v1269_v47 }
 0x14e   :  { %v1273_v44 = vadd.f32 %v1272_v40, %v1271_v39  ;;  %v1078_v12 = vadd.f32 %v1077_v31, %v1076_v38 }
 0x150   :  { %v1080_v55 = vadd.f32 %v1079_v41, %v1078_v12  ;;  %v1275_v14 = vadd.f32 %v1274_v26, %v1273_v44 }
 0x152   :  { %v1277_v43 = vadd.f32 %v1276_v59, %v1275_v14  ;;  %v1082_v50 = vadd.f32 %v1081_v27, %v1080_v55 }
 0x154   :  { %v1084_v3 = vadd.f32 %v1083_v5, %v1082_v50  ;;  %v1279_v58 = vadd.f32 %v1278_v53, %v1277_v43 }
 0x156   :  { %v1281_v62 = vadd.f32 %v1280_v60, %v1279_v58  ;;  %v1086_v63 = vadd.f32 %v1085_v22, %v1084_v3 }
 0x158   :  { %v1088_v4 = vadd.f32 %v1087_v54, %v1086_v63  ;;  %v1283_v20 = vadd.f32 %v1282_v1, %v1281_v62 }
 0x15a   :  { %v1285_v6 = vadd.f32 %v1284_v2, %v1283_v20  ;;  %v1090_v7 = vadd.f32 %v1089_v11, %v1088_v4 }
 0x15c   :  { %v1092_v8 = vadd.f32 %v1091_v56, %v1090_v7  ;;  %v1287_v10 = vadd.f32 %v1286_v9, %v1285_v6 }
 0x15e   :  { %v1094_v17 = vadd.f32 %v1093_v16, %v1092_v8  ;;  %v1289_v46 = vadd.f32 %v1288_v13, %v1287_v10 }
 0x160   :  { %v1095_v23 = vrot.slane %v1094_v17, 4  ;;  %v1291_v24 = vadd.f32 %v1290_v21, %v1289_v46 }
 0x162   :  { %v1096_v33 = vadd.f32 %v1095_v23, %v1094_v17  ;;  %v1292_v49 = vrot.slane %v1291_v24, 4 }
 0x164   :  { %v1097_v29 = vrot.slane %v1096_v33, 2  ;;  %v1293_v25 = vadd.f32 %v1292_v49, %v1291_v24 }
 0x166   :  { %v1098_v28 = vadd.f32 %v1097_v29, %v1096_v33  ;;  %v1294_v15 = vrot.slane %v1293_v25, 2 }
 0x168   :  { %v1099_v19 = vrot.slane %v1098_v28, 1  ;;  %v1295_v30 = vadd.f32 %v1294_v15, %v1293_v25 }
 0x16a   :  { %v1296_v42 = vrot.slane %v1295_v30, 1  ;;  %v1100_v47 = vadd.f32 %v1099_v19, %v1098_v28 }
 0x16c   :  { %v1297_v32 = vadd.f32 %v1296_v42, %v1295_v30 }
 0x16e   :  { %v1299_v61 = vsel %vm1298_vm5, %v1100_v47, %v1297_v32 }
 0x16f   :  { %1301 = vst.msk [vmem:[%s2414_s3] sm:$0x3] %vm1300_vm6, %v1299_v61 }

// kernel: _lambda_.23
= control target key start
LH: loop header
LB: loop body
LE: loop exit
PB: predicated region body
PF: predicated region fallthrough
CT: control target
= control target key end

     0   :  { %v997_v6 = vmov 1966171168   ;;  %v33_v8 = vlaneseq  ;;  %vm638_vm0 = vcmask 125952   ;;  %s1790_s0 = inlined_call_operand.vmem [shape: f32[1,2,16], index: 0, kind: input, shape index: {}]   ;;  %s1791_s3 = inlined_call_operand.vmem [shape: bf16[512,16], index: 3, kind: input, shape index: {}]   ;;  %s1792_s1 = inlined_call_operand.vmem [shape: f32[1,16], index: 1, kind: input, shape index: {}]   ;;  %s1793_s2 = inlined_call_operand.vmem [shape: f32[1,16], index: 2, kind: input, shape index: {}]   ;;  %s1794_s4 = inlined_call_operand.vmem [shape: bf16[512,16], index: 4, kind: output, shape index: {}]  }
   0x1   :  { %v17_v0 = vld [vmem:[%s1790_s0] sm:$0x3]  ;;  %v31_v7 = vunpack.c.l.s4 %v997_v6  ;;  %v1041_v13 = vld [vmem:[%s1791_s3 + $0x8] sm:$0xff]   ;;  %v1046_v14 = vld [vmem:[%s1791_s3 + $0x10] sm:$0xff]  }
   0x2   :  { %v1026_v1 = vmul.f32 0.001953125, %v17_v0  ;;  %v1031_v11 = vshrl.u32 %v33_v8, 7  ;;  %v1036_v12 = vld [vmem:[%s1791_s3] sm:$0xff]   ;;  %v1051_v15 = vld [vmem:[%s1791_s3 + $0x18] sm:$0xff]   ;;  %v841_v20 = vunpack.c.l.bf16 %v1041_v13  ;;  %v1065_v21 = vld [vmem:[%s1791_s3 + $0x28] sm:$0xff]   ;;  %v842_v24 = vunpack.c.h.bf16 %v1041_v13 }
   0x3   :  { %v32_v10 = vunpack.c.0.s8 %v31_v7  ;;  %v1056_v16 = vld [vmem:[%s1791_s3 + $0x20] sm:$0xff]   ;;  %v837_v17 = vunpack.c.l.bf16 %v1036_v12  ;;  %v838_v19 = vunpack.c.h.bf16 %v1036_v12  ;;  %v1070_v22 = vld [vmem:[%s1791_s3 + $0x30] sm:$0xff]   ;;  %v845_v25 = vunpack.c.l.bf16 %v1046_v14  ;;  %v1081_v27 = vld [vmem:[%s1791_s3 + $0x38] sm:$0xff]  }
   0x4   :  { %v20_v2 = vmul.f32 %v1026_v1, %v1026_v1  ;;  %v181_v18 = vsub.s32 0, %v1031_v11  ;;  %v846_v26 = vunpack.c.h.bf16 %v1046_v14  ;;  %v1086_v28 = vld [vmem:[%s1791_s3 + $0x40] sm:$0xff]   ;;  %v849_v29 = vunpack.c.l.bf16 %v1051_v15  ;;  %v1095_v33 = vld [vmem:[%s1791_s3 + $0x48] sm:$0xff]   ;;  %v1100_v34 = vld [vmem:[%s1791_s3 + $0x50] sm:$0xff]  }
   0x5   :  { %v1073_v23 = vsub.s32 %v32_v10, %v1031_v11  ;;  %v850_v30 = vunpack.c.h.bf16 %v1051_v15  ;;  %v853_v31 = vunpack.c.l.bf16 %v1056_v16  ;;  %v854_v32 = vunpack.c.h.bf16 %v1056_v16  ;;  %v1109_v39 = vld [vmem:[%s1791_s3 + $0x58] sm:$0xff]   ;;  %v1114_v40 = vld [vmem:[%s1791_s3 + $0x60] sm:$0xff]   ;;  %v1123_v45 = vld [vmem:[%s1791_s3 + $0x68] sm:$0xff]  }
   0x6   :  { %v22_v3 = vrot.slane %v20_v2, 7  ;;  %v857_v35 = vunpack.c.l.bf16 %v1065_v21  ;;  %v858_v36 = vunpack.c.h.bf16 %v1065_v21  ;;  %v861_v37 = vunpack.c.l.bf16 %v1070_v22  ;;  %v1128_v46 = vld [vmem:[%s1791_s3 + $0x70] sm:$0xff]   ;;  %v1137_v51 = vld [vmem:[%s1791_s3 + $0x78] sm:$0xff]   ;;  %v1142_v52 = vld [vmem:[%s1791_s3 + $0x80] sm:$0xff]  }
   0x7   :  { %v862_v38 = vunpack.c.h.bf16 %v1070_v22  ;;  %v865_v41 = vunpack.c.l.bf16 %v1081_v27  ;;  %v866_v42 = vunpack.c.h.bf16 %v1081_v27  ;;  %v869_v43 = vunpack.c.l.bf16 %v1086_v28  ;;  %v1151_v57 = vld [vmem:[%s1791_s3 + $0x88] sm:$0xff]   ;;  %v1156_v58 = vld [vmem:[%s1791_s3 + $0x90] sm:$0xff]   ;;  %v1165_v0 = vld [vmem:[%s1791_s3 + $0x98] sm:$0xff]  }
   0x8   :  { %v24_v4 = vsub.f32 %v1026_v1, %v22_v3  ;;  %v870_v44 = vunpack.c.h.bf16 %v1086_v28  ;;  %v1174_v6 = vld [vmem:[%s1791_s3 + $0xa0] sm:$0xff]   ;;  %v1179_v7 = vld [vmem:[%s1791_s3 + $0xa8] sm:$0xff]   ;;  %v1218_v61 = vld [vmem:[%s1791_s3 + $0xd0] sm:$0xff]  }
   0x9   :  { %v1206_v10 = vld [vmem:[%s1791_s3 + $0xc8] sm:$0xff]   ;;  %v1227_v8 = vld [vmem:[%s1791_s3 + $0xd8] sm:$0xff]   ;;  %v1232_v62 = vld [vmem:[%s1791_s3 + $0xe0] sm:$0xff]  }
   0xa   :  { %v25_v5 = vmax.f32 %v24_v4, 0.0  ;;  %v1193_v4 = vld [vmem:[%s1791_s3 + $0xb8] sm:$0xff]   ;;  %v1241_v54 = vld [vmem:[%s1791_s3 + $0xe8] sm:$0xff]  }
   0xb   :  { %v1254_v55 = vld [vmem:[%s1791_s3 + $0xf8] sm:$0xff]   ;;  %v953_v49 = vunpack.c.l.bf16 %v1241_v54 }
   0xc   :  { %v27_v9 = vadd.f32 1e-05, %v25_v5  ;;  %v1188_v5 = vld [vmem:[%s1791_s3 + $0xb0] sm:$0xff]  }
   0xe   :  { %995 = vrsqrt.f32 %v27_v9 }
  0x18   :  { %v996_v59 = vpop.eup %995 }
  0x19   :  { %v36_v2 = vrot.slane %v996_v59, %v1073_v23  ;;  %v1201_v59 = vld [vmem:[%s1791_s3 + $0xc0] sm:$0xff]  }
  0x1b   :  { %v37_v3 = vcombine.high %v36_v2, %v36_v2  ;;  %v26_v2 = vld [vmem:[%s1792_s1] sm:$0x1] }
  0x1d   :  { %v44_v60 = vrot.slane %v37_v3, %v1073_v23  ;;  %v1249_v23 = vld [vmem:[%s1791_s3 + $0xf0] sm:$0xff]  }
  0x1f   :  { %v46_v56 = vmul.f32 %v44_v60, %v26_v2  ;;  %v47_v60 = vld [vmem:[%s1793_s2] sm:$0x1] }
  0x21   :  { %v48_v3 = vmul.f32 %v46_v56, %v1026_v1  ;;  %v1266_v9 = vrot.slane %v46_v56, %v181_v18 }
  0x23   :  { %v49_v63 = vsub.f32 %v47_v60, %v48_v3  ;;  %v184_v1 = vmul.f32 %v837_v17, %v1266_v9  ;;  %v185_v56 = vmul.f32 %v838_v19, %v1266_v9  ;;  %v186_v48 = vmul.f32 %v841_v20, %v1266_v9 }
  0x24   :  { %v187_v2 = vmul.f32 %v842_v24, %v1266_v9  ;;  %v188_v3 = vmul.f32 %v845_v25, %v1266_v9  ;;  %v189_v17 = vmul.f32 %v846_v26, %v1266_v9  ;;  %v190_v12 = vmul.f32 %v849_v29, %v1266_v9 }
  0x25   :  { %v1297_v19 = vrot.slane %v49_v63, %v181_v18  ;;  %v191_v13 = vmul.f32 %v850_v30, %v1266_v9  ;;  %v192_v20 = vmul.f32 %v853_v31, %v1266_v9  ;;  %v193_v14 = vmul.f32 %v854_v32, %v1266_v9 }
  0x26   :  { %v194_v24 = vmul.f32 %v857_v35, %v1266_v9  ;;  %v195_v11 = vmul.f32 %v858_v36, %v1266_v9  ;;  %v196_v15 = vmul.f32 %v861_v37, %v1266_v9  ;;  %v197_v18 = vmul.f32 %v862_v38, %v1266_v9 }
  0x27   :  { %v254_v25 = vadd.f32 %v1297_v19, %v184_v1  ;;  %v255_v16 = vadd.f32 %v1297_v19, %v185_v56  ;;  %v256_v26 = vadd.f32 %v1297_v19, %v186_v48  ;;  %v257_v29 = vadd.f32 %v1297_v19, %v187_v2 }
  0x28   :  { %v258_v30 = vadd.f32 %v1297_v19, %v188_v3  ;;  %v259_v21 = vadd.f32 %v1297_v19, %v189_v17  ;;  %v260_v31 = vadd.f32 %v1297_v19, %v190_v12  ;;  %v261_v32 = vadd.f32 %v1297_v19, %v191_v13 }
  0x29   :  { %v318_v35 = vmax.f32 %v254_v25, 0.0  ;;  %v319_v36 = vmax.f32 %v255_v16, 0.0  ;;  %v320_v22 = vmax.f32 %v256_v26, 0.0  ;;  %v321_v37 = vmax.f32 %v257_v29, 0.0 }
  0x2a   :  { %v322_v38 = vmax.f32 %v258_v30, 0.0  ;;  %v323_v63 = vmax.f32 %v259_v21, 0.0  ;;  %v324_v60 = vmax.f32 %v260_v31, 0.0  ;;  %v325_v1 = vmax.f32 %v261_v32, 0.0 }
  0x2b   :  { %v771_v56 = vpack.c.bf16 %v318_v35, %v318_v35  ;;  %v772_v48 = vpack.c.bf16 %v319_v36, %v319_v36  ;;  %v773_v50 = vpack.c.bf16 %v320_v22, %v320_v22  ;;  %v774_v2 = vpack.c.bf16 %v321_v37, %v321_v37 }
  0x2c   :  { %v775_v53 = vpack.c.bf16 %v322_v38, %v322_v38  ;;  %v776_v3 = vpack.c.bf16 %v323_v63, %v323_v63  ;;  %v777_v47 = vpack.c.bf16 %v324_v60, %v324_v60  ;;  %v778_v17 = vpack.c.bf16 %v325_v1, %v325_v1 }
  0x2d   :  { %639 = vst.msk [vmem:[%s1794_s4] sm:$0xf] %vm638_vm0, %v771_v56  ;;  %640 = vst.msk [vmem:[%s1794_s4 + $0x4] sm:$0xf] %vm638_vm0, %v772_v48  ;;  %v262_v12 = vadd.f32 %v1297_v19, %v192_v20  ;;  %v263_v13 = vadd.f32 %v1297_v19, %v193_v14  ;;  %v264_v25 = vadd.f32 %v1297_v19, %v194_v24  ;;  %v1795_v38 = vunpack.c.l.bf16 %v1095_v33 }
  0x2e   :  { %641 = vst.msk [vmem:[%s1794_s4 + $0x8] sm:$0xf] %vm638_vm0, %v773_v50  ;;  %642 = vst.msk [vmem:[%s1794_s4 + $0xc] sm:$0xf] %vm638_vm0, %v774_v2  ;;  %v265_v16 = vadd.f32 %v1297_v19, %v195_v11  ;;  %v266_v50 = vadd.f32 %v1297_v19, %v196_v15  ;;  %v267_v20 = vadd.f32 %v1297_v19, %v197_v18  ;;  %v1796_v60 = vunpack.c.h.bf16 %v1095_v33 }
  0x2f   :  { %643 = vst.msk [vmem:[%s1794_s4 + $0x10] sm:$0xf] %vm638_vm0, %v775_v53  ;;  %644 = vst.msk [vmem:[%s1794_s4 + $0x14] sm:$0xf] %vm638_vm0, %v776_v3  ;;  %v198_v53 = vmul.f32 %v865_v41, %v1266_v9  ;;  %v199_v14 = vmul.f32 %v866_v42, %v1266_v9  ;;  %v326_v24 = vmax.f32 %v262_v12, 0.0  ;;  %v327_v11 = vmax.f32 %v263_v13, 0.0 }
  0x30   :  { %645 = vst.msk [vmem:[%s1794_s4 + $0x18] sm:$0xf] %vm638_vm0, %v777_v47  ;;  %646 = vst.msk [vmem:[%s1794_s4 + $0x1c] sm:$0xf] %vm638_vm0, %v778_v17  ;;  %v328_v47 = vmax.f32 %v264_v25, 0.0  ;;  %v329_v26 = vmax.f32 %v265_v16, 0.0  ;;  %v200_v27 = vmul.f32 %v869_v43, %v1266_v9  ;;  %v201_v42 = vmul.f32 %v870_v44, %v1266_v9 }
  0x31   :  { %v330_v29 = vmax.f32 %v266_v50, 0.0  ;;  %v331_v30 = vmax.f32 %v267_v20, 0.0  ;;  %v268_v21 = vadd.f32 %v1297_v19, %v198_v53  ;;  %v269_v15 = vadd.f32 %v1297_v19, %v199_v14 }
  0x32   :  { %v779_v31 = vpack.c.bf16 %v326_v24, %v326_v24  ;;  %v780_v18 = vpack.c.bf16 %v327_v11, %v327_v11  ;;  %v781_v32 = vpack.c.bf16 %v328_v47, %v328_v47  ;;  %v782_v35 = vpack.c.bf16 %v329_v26, %v329_v26 }
  0x33   :  { %v783_v36 = vpack.c.bf16 %v330_v29, %v330_v29  ;;  %v784_v41 = vpack.c.bf16 %v331_v30, %v331_v30  ;;  %v332_v22 = vmax.f32 %v268_v21, 0.0  ;;  %v333_v37 = vmax.f32 %v269_v15, 0.0 }
  0x34   :  { %647 = vst.msk [vmem:[%s1794_s4 + $0x20] sm:$0xf] %vm638_vm0, %v779_v31  ;;  %648 = vst.msk [vmem:[%s1794_s4 + $0x24] sm:$0xf] %vm638_vm0, %v780_v18  ;;  %v202_v63 = vmul.f32 %v1795_v38, %v1266_v9  ;;  %v203_v1 = vmul.f32 %v1796_v60, %v1266_v9  ;;  %v1797_v44 = vunpack.c.l.bf16 %v1100_v34  ;;  %v1798_v33 = vunpack.c.h.bf16 %v1100_v34 }
  0x35   :  { %649 = vst.msk [vmem:[%s1794_s4 + $0x28] sm:$0xf] %vm638_vm0, %v781_v32  ;;  %650 = vst.msk [vmem:[%s1794_s4 + $0x2c] sm:$0xf] %vm638_vm0, %v782_v35  ;;  %v785_v28 = vpack.c.bf16 %v332_v22, %v332_v22  ;;  %v786_v43 = vpack.c.bf16 %v333_v37, %v333_v37  ;;  %v270_v2 = vadd.f32 %v1297_v19, %v200_v27  ;;  %v1799_v25 = vunpack.c.l.bf16 %v1109_v39 }
  0x36   :  { %651 = vst.msk [vmem:[%s1794_s4 + $0x30] sm:$0xf] %vm638_vm0, %v783_v36  ;;  %652 = vst.msk [vmem:[%s1794_s4 + $0x34] sm:$0xf] %vm638_vm0, %v784_v41  ;;  %v204_v56 = vmul.f32 %v1797_v44, %v1266_v9  ;;  %v205_v48 = vmul.f32 %v1798_v33, %v1266_v9  ;;  %v271_v3 = vadd.f32 %v1297_v19, %v201_v42  ;;  %v1800_v50 = vunpack.c.h.bf16 %v1109_v39 }
  0x37   :  { %v272_v17 = vadd.f32 %v1297_v19, %v202_v63  ;;  %v273_v12 = vadd.f32 %v1297_v19, %v203_v1  ;;  %653 = vst.msk [vmem:[%s1794_s4 + $0x38] sm:$0xf] %vm638_vm0, %v785_v28  ;;  %654 = vst.msk [vmem:[%s1794_s4 + $0x3c] sm:$0xf] %vm638_vm0, %v786_v43  ;;  %v206_v16 = vmul.f32 %v1799_v25, %v1266_v9  ;;  %v334_v53 = vmax.f32 %v270_v2, 0.0 }
  0x38   :  { %v274_v34 = vadd.f32 %v1297_v19, %v204_v56  ;;  %v275_v13 = vadd.f32 %v1297_v19, %v205_v48  ;;  %v207_v20 = vmul.f32 %v1800_v50, %v1266_v9  ;;  %v335_v14 = vmax.f32 %v271_v3, 0.0 }
  0x39   :  { %v336_v24 = vmax.f32 %v272_v17, 0.0  ;;  %v337_v11 = vmax.f32 %v273_v12, 0.0  ;;  %v276_v29 = vadd.f32 %v1297_v19, %v206_v16  ;;  %v787_v21 = vpack.c.bf16 %v334_v53, %v334_v53 }
  0x3a   :  { %v338_v47 = vmax.f32 %v274_v34, 0.0  ;;  %v339_v26 = vmax.f32 %v275_v13, 0.0  ;;  %v277_v30 = vadd.f32 %v1297_v19, %v207_v20  ;;  %v788_v15 = vpack.c.bf16 %v335_v14, %v335_v14 }
  0x3b   :  { %v789_v31 = vpack.c.bf16 %v336_v24, %v336_v24  ;;  %v790_v18 = vpack.c.bf16 %v337_v11, %v337_v11  ;;  %v340_v36 = vmax.f32 %v276_v29, 0.0  ;;  %655 = vst.msk [vmem:[%s1794_s4 + $0x40] sm:$0xf] %vm638_vm0, %v787_v21  ;;  %v1801_v39 = vunpack.c.l.bf16 %v1114_v40 }
  0x3c   :  { %v791_v32 = vpack.c.bf16 %v338_v47, %v338_v47  ;;  %v792_v35 = vpack.c.bf16 %v339_v26, %v339_v26  ;;  %v341_v41 = vmax.f32 %v277_v30, 0.0  ;;  %656 = vst.msk [vmem:[%s1794_s4 + $0x44] sm:$0xf] %vm638_vm0, %v788_v15  ;;  %v1802_v37 = vunpack.c.h.bf16 %v1114_v40 }
  0x3d   :  { %657 = vst.msk [vmem:[%s1794_s4 + $0x48] sm:$0xf] %vm638_vm0, %v789_v31  ;;  %658 = vst.msk [vmem:[%s1794_s4 + $0x4c] sm:$0xf] %vm638_vm0, %v790_v18  ;;  %v208_v22 = vmul.f32 %v1801_v39, %v1266_v9  ;;  %v1803_v42 = vunpack.c.l.bf16 %v1123_v45  ;;  %v1804_v63 = vunpack.c.h.bf16 %v1123_v45  ;;  %v793_v40 = vpack.c.bf16 %v340_v36, %v340_v36 }
  0x3e   :  { %v209_v27 = vmul.f32 %v1802_v37, %v1266_v9  ;;  %659 = vst.msk [vmem:[%s1794_s4 + $0x50] sm:$0xf] %vm638_vm0, %v791_v32  ;;  %660 = vst.msk [vmem:[%s1794_s4 + $0x54] sm:$0xf] %vm638_vm0, %v792_v35  ;;  %v794_v1 = vpack.c.bf16 %v341_v41, %v341_v41  ;;  %v1805_v28 = vunpack.c.l.bf16 %v1128_v46  ;;  %v1806_v45 = vunpack.c.h.bf16 %v1128_v46 }
  0x3f   :  { %v210_v38 = vmul.f32 %v1803_v42, %v1266_v9  ;;  %v211_v60 = vmul.f32 %v1804_v63, %v1266_v9  ;;  %v278_v56 = vadd.f32 %v1297_v19, %v208_v22  ;;  %661 = vst.msk [vmem:[%s1794_s4 + $0x58] sm:$0xf] %vm638_vm0, %v793_v40  ;;  %v1807_v17 = vunpack.c.l.bf16 %v1137_v51 }
  0x40   :  { %v212_v43 = vmul.f32 %v1805_v28, %v1266_v9  ;;  %v213_v44 = vmul.f32 %v1806_v45, %v1266_v9  ;;  %v279_v33 = vadd.f32 %v1297_v19, %v209_v27  ;;  %662 = vst.msk [vmem:[%s1794_s4 + $0x5c] sm:$0xf] %vm638_vm0, %v794_v1  ;;  %v1808_v34 = vunpack.c.h.bf16 %v1137_v51 }
  0x41   :  { %v280_v48 = vadd.f32 %v1297_v19, %v210_v38  ;;  %v281_v2 = vadd.f32 %v1297_v19, %v211_v60  ;;  %v214_v12 = vmul.f32 %v1807_v17, %v1266_v9  ;;  %v342_v25 = vmax.f32 %v278_v56, 0.0 }
  0x42   :  { %v282_v46 = vadd.f32 %v1297_v19, %v212_v43  ;;  %v283_v3 = vadd.f32 %v1297_v19, %v213_v44  ;;  %v215_v13 = vmul.f32 %v1808_v34, %v1266_v9  ;;  %v343_v16 = vmax.f32 %v279_v33, 0.0 }
  0x43   :  { %v344_v50 = vmax.f32 %v280_v48, 0.0  ;;  %v345_v20 = vmax.f32 %v281_v2, 0.0  ;;  %v284_v24 = vadd.f32 %v1297_v19, %v214_v12  ;;  %v795_v47 = vpack.c.bf16 %v342_v25, %v342_v25 }
  0x44   :  { %v346_v53 = vmax.f32 %v282_v46, 0.0  ;;  %v347_v14 = vmax.f32 %v283_v3, 0.0  ;;  %v285_v11 = vadd.f32 %v1297_v19, %v215_v13  ;;  %v796_v26 = vpack.c.bf16 %v343_v16, %v343_v16 }
  0x45   :  { %v797_v29 = vpack.c.bf16 %v344_v50, %v344_v50  ;;  %v798_v30 = vpack.c.bf16 %v345_v20, %v345_v20  ;;  %v348_v31 = vmax.f32 %v284_v24, 0.0  ;;  %663 = vst.msk [vmem:[%s1794_s4 + $0x60] sm:$0xf] %vm638_vm0, %v795_v47  ;;  %v1809_v51 = vunpack.c.l.bf16 %v1142_v52 }
  0x46   :  { %v799_v21 = vpack.c.bf16 %v346_v53, %v346_v53  ;;  %v800_v15 = vpack.c.bf16 %v347_v14, %v347_v14  ;;  %v349_v18 = vmax.f32 %v285_v11, 0.0  ;;  %664 = vst.msk [vmem:[%s1794_s4 + $0x64] sm:$0xf] %vm638_vm0, %v796_v26  ;;  %v1810_v35 = vunpack.c.h.bf16 %v1142_v52 }
  0x47   :  { %665 = vst.msk [vmem:[%s1794_s4 + $0x68] sm:$0xf] %vm638_vm0, %v797_v29  ;;  %666 = vst.msk [vmem:[%s1794_s4 + $0x6c] sm:$0xf] %vm638_vm0, %v798_v30  ;;  %v216_v32 = vmul.f32 %v1809_v51, %v1266_v9  ;;  %v1811_v41 = vunpack.c.l.bf16 %v1151_v57  ;;  %v1812_v22 = vunpack.c.h.bf16 %v1151_v57  ;;  %v801_v52 = vpack.c.bf16 %v348_v31, %v348_v31 }
  0x48   :  { %v217_v36 = vmul.f32 %v1810_v35, %v1266_v9  ;;  %667 = vst.msk [vmem:[%s1794_s4 + $0x70] sm:$0xf] %vm638_vm0, %v799_v21  ;;  %668 = vst.msk [vmem:[%s1794_s4 + $0x74] sm:$0xf] %vm638_vm0, %v800_v15  ;;  %v802_v27 = vpack.c.bf16 %v349_v18, %v349_v18  ;;  %v1813_v42 = vunpack.c.l.bf16 %v1156_v58  ;;  %v1814_v57 = vunpack.c.h.bf16 %v1156_v58 }
  0x49   :  { %v218_v39 = vmul.f32 %v1811_v41, %v1266_v9  ;;  %v219_v37 = vmul.f32 %v1812_v22, %v1266_v9  ;;  %v286_v60 = vadd.f32 %v1297_v19, %v216_v32  ;;  %669 = vst.msk [vmem:[%s1794_s4 + $0x78] sm:$0xf] %vm638_vm0, %v801_v52  ;;  %v1815_v45 = vunpack.c.l.bf16 %v1165_v0 }
  0x4a   :  { %v220_v38 = vmul.f32 %v1813_v42, %v1266_v9  ;;  %v221_v63 = vmul.f32 %v1814_v57, %v1266_v9  ;;  %v287_v40 = vadd.f32 %v1297_v19, %v217_v36  ;;  %670 = vst.msk [vmem:[%s1794_s4 + $0x7c] sm:$0xf] %vm638_vm0, %v802_v27  ;;  %v1816_v56 = vunpack.c.h.bf16 %v1165_v0 }
  0x4b   :  { %v288_v1 = vadd.f32 %v1297_v19, %v218_v39  ;;  %v289_v28 = vadd.f32 %v1297_v19, %v219_v37  ;;  %v222_v44 = vmul.f32 %v1815_v45, %v1266_v9  ;;  %v350_v48 = vmax.f32 %v286_v60, 0.0 }
  0x4c   :  { %v290_v58 = vadd.f32 %v1297_v19, %v220_v38  ;;  %v291_v43 = vadd.f32 %v1297_v19, %v221_v63  ;;  %v223_v33 = vmul.f32 %v1816_v56, %v1266_v9  ;;  %v351_v2 = vmax.f32 %v287_v40, 0.0 }
  0x4d   :  { %v352_v46 = vmax.f32 %v288_v1, 0.0  ;;  %v353_v3 = vmax.f32 %v289_v28, 0.0  ;;  %v292_v34 = vadd.f32 %v1297_v19, %v222_v44  ;;  %v803_v25 = vpack.c.bf16 %v350_v48, %v350_v48 }
  0x4e   :  { %v354_v17 = vmax.f32 %v290_v58, 0.0  ;;  %v355_v12 = vmax.f32 %v291_v43, 0.0  ;;  %v293_v13 = vadd.f32 %v1297_v19, %v223_v33  ;;  %v804_v16 = vpack.c.bf16 %v351_v2, %v351_v2 }
  0x4f   :  { %v805_v50 = vpack.c.bf16 %v352_v46, %v352_v46  ;;  %v806_v20 = vpack.c.bf16 %v353_v3, %v353_v3  ;;  %v356_v24 = vmax.f32 %v292_v34, 0.0  ;;  %671 = vst.msk [vmem:[%s1794_s4 + $0x80] sm:$0xf] %vm638_vm0, %v803_v25  ;;  %v1817_v0 = vunpack.c.l.bf16 %v1174_v6 }
  0x50   :  { %v807_v53 = vpack.c.bf16 %v354_v17, %v354_v17  ;;  %v808_v14 = vpack.c.bf16 %v355_v12, %v355_v12  ;;  %v357_v11 = vmax.f32 %v293_v13, 0.0  ;;  %672 = vst.msk [vmem:[%s1794_s4 + $0x84] sm:$0xf] %vm638_vm0, %v804_v16  ;;  %v1818_v26 = vunpack.c.h.bf16 %v1174_v6 }
  0x51   :  { %673 = vst.msk [vmem:[%s1794_s4 + $0x88] sm:$0xf] %vm638_vm0, %v805_v50  ;;  %674 = vst.msk [vmem:[%s1794_s4 + $0x8c] sm:$0xf] %vm638_vm0, %v806_v20  ;;  %v224_v47 = vmul.f32 %v1817_v0, %v1266_v9  ;;  %v1819_v30 = vunpack.c.l.bf16 %v1179_v7  ;;  %v1820_v15 = vunpack.c.h.bf16 %v1179_v7  ;;  %v809_v6 = vpack.c.bf16 %v356_v24, %v356_v24 }
  0x52   :  { %v225_v29 = vmul.f32 %v1818_v26, %v1266_v9  ;;  %675 = vst.msk [vmem:[%s1794_s4 + $0x90] sm:$0xf] %vm638_vm0, %v807_v53  ;;  %676 = vst.msk [vmem:[%s1794_s4 + $0x94] sm:$0xf] %vm638_vm0, %v808_v14  ;;  %v810_v18 = vpack.c.bf16 %v357_v11, %v357_v11  ;;  %v1821_v51 = vunpack.c.l.bf16 %v1188_v5  ;;  %v1822_v7 = vunpack.c.h.bf16 %v1188_v5 }
  0x53   :  { %v226_v21 = vmul.f32 %v1819_v30, %v1266_v9  ;;  %v227_v31 = vmul.f32 %v1820_v15, %v1266_v9  ;;  %v294_v36 = vadd.f32 %v1297_v19, %v224_v47  ;;  %677 = vst.msk [vmem:[%s1794_s4 + $0x98] sm:$0xf] %vm638_vm0, %v809_v6  ;;  %v1823_v52 = vunpack.c.l.bf16 %v1193_v4 }
  0x54   :  { %v228_v32 = vmul.f32 %v1821_v51, %v1266_v9  ;;  %v229_v35 = vmul.f32 %v1822_v7, %v1266_v9  ;;  %v295_v41 = vadd.f32 %v1297_v19, %v225_v29  ;;  %678 = vst.msk [vmem:[%s1794_s4 + $0x9c] sm:$0xf] %vm638_vm0, %v810_v18  ;;  %v1824_v42 = vunpack.c.h.bf16 %v1193_v4 }
  0x55   :  { %v296_v39 = vadd.f32 %v1297_v19, %v226_v21  ;;  %v297_v22 = vadd.f32 %v1297_v19, %v227_v31  ;;  %v230_v27 = vmul.f32 %v1823_v52, %v1266_v9  ;;  %v358_v57 = vmax.f32 %v294_v36, 0.0 }
  0x56   :  { %v298_v5 = vadd.f32 %v1297_v19, %v228_v32  ;;  %v299_v37 = vadd.f32 %v1297_v19, %v229_v35  ;;  %v231_v38 = vmul.f32 %v1824_v42, %v1266_v9  ;;  %v359_v63 = vmax.f32 %v295_v41, 0.0 }
  0x57   :  { %v360_v60 = vmax.f32 %v296_v39, 0.0  ;;  %v361_v40 = vmax.f32 %v297_v22, 0.0  ;;  %v300_v58 = vadd.f32 %v1297_v19, %v230_v27  ;;  %v811_v45 = vpack.c.bf16 %v358_v57, %v358_v57 }
  0x58   :  { %v362_v1 = vmax.f32 %v298_v5, 0.0  ;;  %v363_v28 = vmax.f32 %v299_v37, 0.0  ;;  %v301_v43 = vadd.f32 %v1297_v19, %v231_v38  ;;  %v812_v44 = vpack.c.bf16 %v359_v63, %v359_v63 }
  0x59   :  { %v813_v56 = vpack.c.bf16 %v360_v60, %v360_v60  ;;  %v814_v33 = vpack.c.bf16 %v361_v40, %v361_v40  ;;  %v364_v46 = vmax.f32 %v300_v58, 0.0  ;;  %679 = vst.msk [vmem:[%s1794_s4 + $0xa0] sm:$0xf] %vm638_vm0, %v811_v45  ;;  %v1825_v4 = vunpack.c.l.bf16 %v1201_v59 }
  0x5a   :  { %v815_v48 = vpack.c.bf16 %v362_v1, %v362_v1  ;;  %v816_v2 = vpack.c.bf16 %v363_v28, %v363_v28  ;;  %v365_v3 = vmax.f32 %v301_v43, 0.0  ;;  %680 = vst.msk [vmem:[%s1794_s4 + $0xa4] sm:$0xf] %vm638_vm0, %v812_v44  ;;  %v1826_v12 = vunpack.c.h.bf16 %v1201_v59 }
  0x5b   :  { %681 = vst.msk [vmem:[%s1794_s4 + $0xa8] sm:$0xf] %vm638_vm0, %v813_v56  ;;  %682 = vst.msk [vmem:[%s1794_s4 + $0xac] sm:$0xf] %vm638_vm0, %v814_v33  ;;  %v232_v17 = vmul.f32 %v1825_v4, %v1266_v9  ;;  %v1827_v13 = vunpack.c.l.bf16 %v1206_v10  ;;  %v1828_v16 = vunpack.c.h.bf16 %v1206_v10  ;;  %v817_v59 = vpack.c.bf16 %v364_v46, %v364_v46 }
  0x5c   :  { %v233_v34 = vmul.f32 %v1826_v12, %v1266_v9  ;;  %683 = vst.msk [vmem:[%s1794_s4 + $0xb0] sm:$0xf] %vm638_vm0, %v815_v48  ;;  %684 = vst.msk [vmem:[%s1794_s4 + $0xb4] sm:$0xf] %vm638_vm0, %v816_v2  ;;  %v818_v20 = vpack.c.bf16 %v365_v3, %v365_v3  ;;  %v1829_v53 = vunpack.c.l.bf16 %v1218_v61  ;;  %v1830_v10 = vunpack.c.h.bf16 %v1218_v61 }
  0x5d   :  { %v234_v25 = vmul.f32 %v1827_v13, %v1266_v9  ;;  %v235_v50 = vmul.f32 %v1828_v16, %v1266_v9  ;;  %v302_v11 = vadd.f32 %v1297_v19, %v232_v17  ;;  %685 = vst.msk [vmem:[%s1794_s4 + $0xb8] sm:$0xf] %vm638_vm0, %v817_v59  ;;  %v1831_v30 = vunpack.c.l.bf16 %v1227_v8 }
  0x5e   :  { %v236_v14 = vmul.f32 %v1829_v53, %v1266_v9  ;;  %v237_v24 = vmul.f32 %v1830_v10, %v1266_v9  ;;  %v303_v0 = vadd.f32 %v1297_v19, %v233_v34  ;;  %686 = vst.msk [vmem:[%s1794_s4 + $0xbc] sm:$0xf] %vm638_vm0, %v818_v20  ;;  %v1832_v15 = vunpack.c.h.bf16 %v1227_v8 }
  0x5f   :  { %v304_v47 = vadd.f32 %v1297_v19, %v234_v25  ;;  %v305_v26 = vadd.f32 %v1297_v19, %v235_v50  ;;  %v238_v21 = vmul.f32 %v1831_v30, %v1266_v9  ;;  %v366_v6 = vmax.f32 %v302_v11, 0.0 }
  0x60   :  { %v306_v61 = vadd.f32 %v1297_v19, %v236_v14  ;;  %v307_v29 = vadd.f32 %v1297_v19, %v237_v24  ;;  %v239_v31 = vmul.f32 %v1832_v15, %v1266_v9  ;;  %v367_v18 = vmax.f32 %v303_v0, 0.0 }
  0x61   :  { %v368_v51 = vmax.f32 %v304_v47, 0.0  ;;  %v369_v32 = vmax.f32 %v305_v26, 0.0  ;;  %v308_v36 = vadd.f32 %v1297_v19, %v238_v21  ;;  %v819_v39 = vpack.c.bf16 %v366_v6, %v366_v6 }
  0x62   :  { %v370_v7 = vmax.f32 %v306_v61, 0.0  ;;  %v371_v35 = vmax.f32 %v307_v29, 0.0  ;;  %v309_v41 = vadd.f32 %v1297_v19, %v239_v31  ;;  %v820_v22 = vpack.c.bf16 %v367_v18, %v367_v18 }
  0x63   :  { %v821_v5 = vpack.c.bf16 %v368_v51, %v368_v51  ;;  %v822_v37 = vpack.c.bf16 %v369_v32, %v369_v32  ;;  %v372_v42 = vmax.f32 %v308_v36, 0.0  ;;  %687 = vst.msk [vmem:[%s1794_s4 + $0xc0] sm:$0xf] %vm638_vm0, %v819_v39  ;;  %v1833_v8 = vunpack.c.l.bf16 %v1232_v62 }
  0x64   :  { %v823_v52 = vpack.c.bf16 %v370_v7, %v370_v7  ;;  %v824_v27 = vpack.c.bf16 %v371_v35, %v371_v35  ;;  %v373_v38 = vmax.f32 %v309_v41, 0.0  ;;  %688 = vst.msk [vmem:[%s1794_s4 + $0xc4] sm:$0xf] %vm638_vm0, %v820_v22  ;;  %v1834_v63 = vunpack.c.h.bf16 %v1232_v62 }
  0x65   :  { %689 = vst.msk [vmem:[%s1794_s4 + $0xc8] sm:$0xf] %vm638_vm0, %v821_v5  ;;  %690 = vst.msk [vmem:[%s1794_s4 + $0xcc] sm:$0xf] %vm638_vm0, %v822_v37  ;;  %v240_v57 = vmul.f32 %v1833_v8, %v1266_v9  ;;  %v242_v40 = vmul.f32 %v953_v49, %v1266_v9  ;;  %v1835_v1 = vunpack.c.h.bf16 %v1241_v54  ;;  %v825_v62 = vpack.c.bf16 %v372_v42, %v372_v42 }
  0x66   :  { %v241_v60 = vmul.f32 %v1834_v63, %v1266_v9  ;;  %691 = vst.msk [vmem:[%s1794_s4 + $0xd0] sm:$0xf] %vm638_vm0, %v823_v52  ;;  %692 = vst.msk [vmem:[%s1794_s4 + $0xd4] sm:$0xf] %vm638_vm0, %v824_v27  ;;  %v826_v58 = vpack.c.bf16 %v373_v38, %v373_v38  ;;  %v1836_v43 = vunpack.c.l.bf16 %v1249_v23  ;;  %v1837_v54 = vunpack.c.h.bf16 %v1249_v23 }
  0x67   :  { %v243_v28 = vmul.f32 %v1835_v1, %v1266_v9  ;;  %v310_v44 = vadd.f32 %v1297_v19, %v240_v57  ;;  %v312_v33 = vadd.f32 %v1297_v19, %v242_v40  ;;  %693 = vst.msk [vmem:[%s1794_s4 + $0xd8] sm:$0xf] %vm638_vm0, %v825_v62  ;;  %v1838_v46 = vunpack.c.l.bf16 %v1254_v55 }
  0x68   :  { %v244_v49 = vmul.f32 %v1836_v43, %v1266_v9  ;;  %v245_v45 = vmul.f32 %v1837_v54, %v1266_v9  ;;  %v311_v56 = vadd.f32 %v1297_v19, %v241_v60  ;;  %694 = vst.msk [vmem:[%s1794_s4 + $0xdc] sm:$0xf] %vm638_vm0, %v826_v58  ;;  %v1839_v4 = vunpack.c.h.bf16 %v1254_v55 }
  0x69   :  { %v313_v48 = vadd.f32 %v1297_v19, %v243_v28  ;;  %v246_v3 = vmul.f32 %v1838_v46, %v1266_v9  ;;  %v374_v12 = vmax.f32 %v310_v44, 0.0  ;;  %v376_v13 = vmax.f32 %v312_v33, 0.0 }
  0x6a   :  { %v314_v23 = vadd.f32 %v1297_v19, %v244_v49  ;;  %v315_v2 = vadd.f32 %v1297_v19, %v245_v45  ;;  %v247_v17 = vmul.f32 %v1839_v4, %v1266_v9  ;;  %v375_v34 = vmax.f32 %v311_v56, 0.0 }
  0x6b   :  { %v377_v25 = vmax.f32 %v313_v48, 0.0  ;;  %v316_v59 = vadd.f32 %v1297_v19, %v246_v3  ;;  %v827_v53 = vpack.c.bf16 %v374_v12, %v374_v12  ;;  %v829_v10 = vpack.c.bf16 %v376_v13, %v376_v13 }
  0x6c   :  { %v378_v16 = vmax.f32 %v314_v23, 0.0  ;;  %v379_v50 = vmax.f32 %v315_v2, 0.0  ;;  %v317_v20 = vadd.f32 %v1297_v19, %v247_v17  ;;  %v828_v14 = vpack.c.bf16 %v375_v34, %v375_v34 }
  0x6d   :  { %v830_v24 = vpack.c.bf16 %v377_v25, %v377_v25  ;;  %v380_v47 = vmax.f32 %v316_v59, 0.0  ;;  %695 = vst.msk [vmem:[%s1794_s4 + $0xe0] sm:$0xf] %vm638_vm0, %v827_v53  ;;  %697 = vst.msk [vmem:[%s1794_s4 + $0xe8] sm:$0xf] %vm638_vm0, %v829_v10 }
  0x6e   :  { %v831_v11 = vpack.c.bf16 %v378_v16, %v378_v16  ;;  %v832_v0 = vpack.c.bf16 %v379_v50, %v379_v50  ;;  %v381_v26 = vmax.f32 %v317_v20, 0.0  ;;  %696 = vst.msk [vmem:[%s1794_s4 + $0xe4] sm:$0xf] %vm638_vm0, %v828_v14 }
  0x6f   :  { %698 = vst.msk [vmem:[%s1794_s4 + $0xec] sm:$0xf] %vm638_vm0, %v830_v24  ;;  %v833_v55 = vpack.c.bf16 %v380_v47, %v380_v47 }
  0x70   :  { %699 = vst.msk [vmem:[%s1794_s4 + $0xf0] sm:$0xf] %vm638_vm0, %v831_v11  ;;  %700 = vst.msk [vmem:[%s1794_s4 + $0xf4] sm:$0xf] %vm638_vm0, %v832_v0  ;;  %v834_v9 = vpack.c.bf16 %v381_v26, %v381_v26 }
  0x71   :  { %701 = vst.msk [vmem:[%s1794_s4 + $0xf8] sm:$0xf] %vm638_vm0, %v833_v55 }
  0x72   :  { %702 = vst.msk [vmem:[%s1794_s4 + $0xfc] sm:$0xf] %vm638_vm0, %v834_v9 }

// kernel: _lambda_.24
= control target key start
LH: loop header
LB: loop body
LE: loop exit
PB: predicated region body
PF: predicated region fallthrough
CT: control target
= control target key end

     0   :  { %v597_v0 = vmov 0   ;;  %vm174_vm0 = vcmask 130048   ;;  %vm360_vm1 = vcmask 257024   ;;  %vm377_vm2 = vcmask 261120   ;;  %s842_s1 = inlined_call_operand.vmem [shape: bf16[144,32], index: 1, kind: input, shape index: {}]   ;;  %s843_s0 = inlined_call_operand.vmem [shape: bf16[128,144], index: 0, kind: input, shape index: {}]   ;;  %s844_s2 = inlined_call_operand.vmem [shape: bf16[128,32], index: 2, kind: output, shape index: {0}]   ;;  %s845_s3 = inlined_call_operand.vmem [shape: f32[1,2,32], index: 3, kind: output, shape index: {1}]  }
   0x1   :  { %199 = vmatprep.subr.bf16.mxu0 %v597_v0  ;;  %v564_v1 = vld [vmem:[%s842_s1] sm:$0xff]   ;;  %545 = vmatprep.subr.bf16.mxu1 %v597_v0  ;;  %v565_v2 = vld [vmem:[%s842_s1 + $0x8] sm:$0xff]   ;;  %v566_v3 = vld [vmem:[%s842_s1 + $0x10] sm:$0xff]   ;;  %vm468_vm3 = vcmask 1040384   ;;  %vm470_vm4 = vcmask 254976  }
   0x2   :  { %200 = vmatpush1.bf16.msra.mxu0 %v564_v1  ;;  %554 = vmatpush1.bf16.msra.mxu1 %v564_v1  ;;  %v567_v4 = vld [vmem:[%s842_s1 + $0x18] sm:$0xff]   ;;  %v575_v5 = vld [vmem:[%s843_s0 + $0x4] ss:$8 sps:$4 sm:$0xff]   ;;  %v570_v9 = vld [vmem:[%s842_s1 + $0x30] sm:$0xff]  }
   0x3   :  { %201 = vmatprep.subr.bf16.mxu0 %v597_v0  ;;  %546 = vmatprep.subr.bf16.mxu1 %v597_v0  ;;  %v581_v6 = vld [vmem:[%s843_s0 + $0x44] ss:$8 sps:$4 sm:$0xff]   ;;  %v571_v10 = vld [vmem:[%s842_s1 + $0x38] sm:$0xff]   ;;  %v573_v12 = vld [vmem:[%s843_s0] ss:$8 sps:$4 sm:$0xff]  }
   0x4   :  { %505 = vmatprep.mubr.msk.bf16.mxu0 %vm174_vm0, %v575_v5  ;;  %v568_v7 = vld [vmem:[%s842_s1 + $0x20] sm:$0xff]   ;;  %509 = vmatprep.mubr.msk.bf16.mxu1 %vm174_vm0, %v581_v6  ;;  %v569_v8 = vld [vmem:[%s842_s1 + $0x28] sm:$0xff]   ;;  %v576_v14 = vld [vmem:[%s843_s0 + $0x14] ss:$8 sps:$4 sm:$0xff]  }
   0x5   :  { %v572_v11 = vld [vmem:[%s842_s1 + $0x40] sm:$0xff]   ;;  %v585_v15 = vld [vmem:[%s843_s0 + $0x54] ss:$8 sps:$4 sm:$0xff]   ;;  %v578_v16 = vld [vmem:[%s843_s0 + $0x10] ss:$8 sps:$4 sm:$0xff]  }
   0x6   :  { %202 = vmatpush1.bf16.msra.mxu0 %v565_v2  ;;  %555 = vmatpush1.bf16.msra.mxu1 %v565_v2  ;;  %v579_v13 = vld [vmem:[%s843_s0 + $0x40] ss:$8 sps:$4 sm:$0xff]   ;;  %v587_v17 = vld [vmem:[%s843_s0 + $0x50] ss:$8 sps:$4 sm:$0xff]   ;;  %v582_v18 = vld [vmem:[%s843_s0 + $0x24] ss:$8 sps:$4 sm:$0xff]  }
   0x7   :  { %203 = vmatprep.subr.bf16.mxu0 %v597_v0  ;;  %547 = vmatprep.subr.bf16.mxu1 %v597_v0  ;;  %v591_v19 = vld [vmem:[%s843_s0 + $0x64] ss:$8 sps:$4 sm:$0xff]   ;;  %v584_v20 = vld [vmem:[%s843_s0 + $0x20] ss:$8 sps:$4 sm:$0xff]   ;;  %v588_v22 = vld [vmem:[%s843_s0 + $0x34] ss:$8 sps:$4 sm:$0xff]  }
   0x8   :  { %v593_v21 = vld [vmem:[%s843_s0 + $0x60] ss:$8 sps:$4 sm:$0xff]   ;;  %v594_v23 = vld [vmem:[%s843_s0 + $0x74] ss:$8 sps:$4 sm:$0xff]   ;;  %v590_v24 = vld [vmem:[%s843_s0 + $0x30] ss:$8 sps:$4 sm:$0xff]  }
   0x9   :  { %v596_v25 = vld [vmem:[%s843_s0 + $0x70] ss:$8 sps:$4 sm:$0xff]  }
   0xa   :  { %204 = vmatpush1.bf16.msra.mxu0 %v566_v3  ;;  %556 = vmatpush1.bf16.msra.mxu1 %v566_v3 }
   0xb   :  { %205 = vmatprep.subr.bf16.mxu0 %v597_v0  ;;  %548 = vmatprep.subr.bf16.mxu1 %v597_v0 }
   0xe   :  { %206 = vmatpush1.bf16.msra.mxu0 %v567_v4  ;;  %557 = vmatpush1.bf16.msra.mxu1 %v567_v4 }
   0xf   :  { %207 = vmatprep.subr.bf16.mxu0 %v597_v0  ;;  %549 = vmatprep.subr.bf16.mxu1 %v597_v0 }
  0x12   :  { %208 = vmatpush1.bf16.msra.mxu0 %v568_v7  ;;  %558 = vmatpush1.bf16.msra.mxu1 %v568_v7 }
  0x13   :  { %209 = vmatprep.subr.bf16.mxu0 %v597_v0  ;;  %550 = vmatprep.subr.bf16.mxu1 %v597_v0 }
  0x16   :  { %210 = vmatpush1.bf16.msra.mxu0 %v569_v8  ;;  %559 = vmatpush1.bf16.msra.mxu1 %v569_v8 }
  0x17   :  { %211 = vmatprep.subr.bf16.mxu0 %v597_v0  ;;  %551 = vmatprep.subr.bf16.mxu1 %v597_v0 }
  0x1a   :  { %212 = vmatpush1.bf16.msra.mxu0 %v570_v9  ;;  %560 = vmatpush1.bf16.msra.mxu1 %v570_v9 }
  0x1b   :  { %213 = vmatprep.subr.bf16.mxu0 %v597_v0  ;;  %552 = vmatprep.subr.bf16.mxu1 %v597_v0 }
  0x1e   :  { %214 = vmatpush1.bf16.msra.mxu0 %v571_v10  ;;  %561 = vmatpush1.bf16.msra.mxu1 %v571_v10 }
  0x1f   :  { %215 = vmatprep.subr.bf16.mxu0 %v597_v0  ;;  %553 = vmatprep.subr.bf16.mxu1 %v597_v0 }
  0x22   :  { %216 = vmatpush1.bf16.msra.mxu0 %v572_v11  ;;  %562 = vmatpush1.bf16.msra.mxu1 %v572_v11 }
  0x25   :  { %232 = vmatmul.mubr.bf16.vlgmr.msra.gmra.mrb[0].mxu0 %v573_v12  ;;  %264 = vmatmul.mubr.bf16.vlgmr.msra.gmra.mrb[0].mxu1 %v579_v13 }
  0x26   :  { %506 = vmatprep.mubr.msk.bf16.mxu0 %vm174_vm0, %v576_v14  ;;  %510 = vmatprep.mubr.msk.bf16.mxu1 %vm174_vm0, %v585_v15 }
  0x2d   :  { %240 = vmatmul.mubr.bf16.gmra.mrb[4].mxu0 %v578_v16  ;;  %272 = vmatmul.mubr.bf16.gmra.mrb[4].mxu1 %v587_v17 }
  0x2e   :  { %507 = vmatprep.mubr.msk.bf16.mxu0 %vm174_vm0, %v582_v18  ;;  %511 = vmatprep.mubr.msk.bf16.mxu1 %vm174_vm0, %v591_v19 }
  0x35   :  { %248 = vmatmul.mubr.bf16.gmra.mrb[8].mxu0 %v584_v20  ;;  %280 = vmatmul.mubr.bf16.gmra.mrb[8].mxu1 %v593_v21 }
  0x36   :  { %508 = vmatprep.mubr.msk.bf16.mxu0 %vm174_vm0, %v588_v22  ;;  %512 = vmatprep.mubr.msk.bf16.mxu1 %vm174_vm0, %v594_v23 }
  0x3d   :  { %256 = vmatmul.mubr.bf16.gmra.mrb[12].mxu0 %v590_v24  ;;  %288 = vmatmul.mubr.bf16.gmra.mrb[12].mxu1 %v596_v25 }
  0xf8   :  { %v233_v26 = vpop.f32.mrb[0].mxu0  ;;  %v701_v27 = vpop.f32.mrb[0].mxu1 }
  0xf9   :  { %v529_v28 = vpack.c.bf16 %v233_v26, %v233_v26  ;;  %v415_v29 = vmul.f32 %v233_v26, %v233_v26  ;;  %v235_v30 = vpop.f32.mrb[1].mxu0  ;;  %v537_v31 = vpack.c.bf16 %v701_v27, %v701_v27  ;;  %v267_v32 = vpop.f32.mrb[1].mxu1  ;;  %v378_v35 = vsel %vm377_vm2, %v233_v26, 0.0 }
  0xfa   :  { %v236_v33 = vpop.f32.mrb[2].mxu0  ;;  %v705_v34 = vpop.f32.mrb[2].mxu1 }
  0xfb   :  { %361 = vst.msk [vmem:[%s844_s2] sm:$0xf] %vm360_vm1, %v529_v28  ;;  %v530_v36 = vpack.c.bf16 %v236_v33, %v236_v33  ;;  %v379_v37 = vsel %vm377_vm2, %v236_v33, 0.0  ;;  %v416_v38 = vmul.f32 %v236_v33, %v236_v33  ;;  %v238_v39 = vpop.f32.mrb[3].mxu0  ;;  %369 = vst.msk [vmem:[%s844_s2 + $0x20] sm:$0xf] %vm360_vm1, %v537_v31  ;;  %v538_v42 = vpack.c.bf16 %v705_v34, %v705_v34 }
  0xfc   :  { %v270_v40 = vpop.f32.mrb[3].mxu1  ;;  %v380_v41 = vadd.f32 %v379_v37, %v378_v35  ;;  %v431_v43 = vsel %vm377_vm2, %v415_v29, 0.0 }
  0xfd   :  { %362 = vst.msk [vmem:[%s844_s2 + $0x4] sm:$0xf] %vm360_vm1, %v530_v36  ;;  %v432_v44 = vsel %vm377_vm2, %v416_v38, 0.0  ;;  %370 = vst.msk [vmem:[%s844_s2 + $0x24] sm:$0xf] %vm360_vm1, %v538_v42  ;;  %v423_v36 = vmul.f32 %v701_v27, %v701_v27 }
  0xfe   :  { %v433_v45 = vadd.f32 %v432_v44, %v431_v43 }
 0x100   :  { %v241_v46 = vpop.f32.mrb[4].mxu0  ;;  %v729_v47 = vpop.f32.mrb[4].mxu1 }
 0x101   :  { %v531_v48 = vpack.c.bf16 %v241_v46, %v241_v46  ;;  %v381_v49 = vsel %vm377_vm2, %v241_v46, 0.0  ;;  %v417_v50 = vmul.f32 %v241_v46, %v241_v46  ;;  %v243_v51 = vpop.f32.mrb[5].mxu0  ;;  %v539_v52 = vpack.c.bf16 %v729_v47, %v729_v47  ;;  %v275_v53 = vpop.f32.mrb[5].mxu1 }
 0x102   :  { %v382_v54 = vadd.f32 %v381_v49, %v380_v41  ;;  %v244_v55 = vpop.f32.mrb[6].mxu0  ;;  %v734_v56 = vpop.f32.mrb[6].mxu1  ;;  %v424_v51 = vmul.f32 %v705_v34, %v705_v34 }
 0x103   :  { %363 = vst.msk [vmem:[%s844_s2 + $0x8] sm:$0xf] %vm360_vm1, %v531_v48  ;;  %v434_v57 = vsel %vm377_vm2, %v417_v50, 0.0  ;;  %v532_v58 = vpack.c.bf16 %v244_v55, %v244_v55  ;;  %v383_v59 = vsel %vm377_vm2, %v244_v55, 0.0  ;;  %v418_v60 = vmul.f32 %v244_v55, %v244_v55  ;;  %v246_v61 = vpop.f32.mrb[7].mxu0  ;;  %v278_v62 = vpop.f32.mrb[7].mxu1 }
 0x104   :  { %371 = vst.msk [vmem:[%s844_s2 + $0x28] sm:$0xf] %vm360_vm1, %v539_v52  ;;  %v435_v63 = vadd.f32 %v434_v57, %v433_v45  ;;  %v384_v0 = vadd.f32 %v383_v59, %v382_v54  ;;  %v540_v1 = vpack.c.bf16 %v734_v56, %v734_v56  ;;  %v393_v50 = vsel %vm377_vm2, %v701_v27, 0.0 }
 0x105   :  { %364 = vst.msk [vmem:[%s844_s2 + $0xc] sm:$0xf] %vm360_vm1, %v532_v58  ;;  %v436_v2 = vsel %vm377_vm2, %v418_v60, 0.0  ;;  %v446_v55 = vsel %vm377_vm2, %v423_v36, 0.0  ;;  %v395_v27 = vsel %vm377_vm2, %v705_v34, 0.0  ;;  %v425_v57 = vmul.f32 %v729_v47, %v729_v47 }
 0x106   :  { %v437_v3 = vadd.f32 %v436_v2, %v435_v63  ;;  %372 = vst.msk [vmem:[%s844_s2 + $0x2c] sm:$0xf] %vm360_vm1, %v540_v1  ;;  %v448_v60 = vsel %vm377_vm2, %v424_v51, 0.0  ;;  %v397_v61 = vsel %vm377_vm2, %v729_v47, 0.0  ;;  %v426_v62 = vmul.f32 %v734_v56, %v734_v56 }
 0x107   :  { %v450_v1 = vsel %vm377_vm2, %v425_v57, 0.0  ;;  %v399_v34 = vsel %vm377_vm2, %v734_v56, 0.0 }
 0x108   :  { %v249_v4 = vpop.f32.mrb[8].mxu0  ;;  %v757_v5 = vpop.f32.mrb[8].mxu1 }
 0x109   :  { %v533_v6 = vpack.c.bf16 %v249_v4, %v249_v4  ;;  %v385_v7 = vsel %vm377_vm2, %v249_v4, 0.0  ;;  %v419_v8 = vmul.f32 %v249_v4, %v249_v4  ;;  %v251_v9 = vpop.f32.mrb[9].mxu0  ;;  %v541_v10 = vpack.c.bf16 %v757_v5, %v757_v5  ;;  %v283_v11 = vpop.f32.mrb[9].mxu1 }
 0x10a   :  { %v386_v12 = vadd.f32 %v385_v7, %v384_v0  ;;  %v252_v13 = vpop.f32.mrb[10].mxu0  ;;  %v762_v14 = vpop.f32.mrb[10].mxu1  ;;  %v427_v2 = vmul.f32 %v757_v5, %v757_v5  ;;  %v401_v47 = vsel %vm377_vm2, %v757_v5, 0.0 }
 0x10b   :  { %365 = vst.msk [vmem:[%s844_s2 + $0x10] sm:$0xf] %vm360_vm1, %v533_v6  ;;  %v438_v15 = vsel %vm377_vm2, %v419_v8, 0.0  ;;  %v534_v16 = vpack.c.bf16 %v252_v13, %v252_v13  ;;  %v387_v17 = vsel %vm377_vm2, %v252_v13, 0.0  ;;  %v420_v18 = vmul.f32 %v252_v13, %v252_v13  ;;  %v254_v19 = vpop.f32.mrb[11].mxu0  ;;  %v286_v20 = vpop.f32.mrb[11].mxu1 }
 0x10c   :  { %373 = vst.msk [vmem:[%s844_s2 + $0x30] sm:$0xf] %vm360_vm1, %v541_v10  ;;  %v439_v21 = vadd.f32 %v438_v15, %v437_v3  ;;  %v388_v22 = vadd.f32 %v387_v17, %v386_v12  ;;  %v542_v23 = vpack.c.bf16 %v762_v14, %v762_v14  ;;  %v452_v6 = vsel %vm377_vm2, %v426_v62, 0.0 }
 0x10d   :  { %366 = vst.msk [vmem:[%s844_s2 + $0x14] sm:$0xf] %vm360_vm1, %v534_v16  ;;  %v440_v24 = vsel %vm377_vm2, %v420_v18, 0.0  ;;  %v428_v7 = vmul.f32 %v762_v14, %v762_v14  ;;  %v454_v11 = vsel %vm377_vm2, %v427_v2, 0.0  ;;  %v403_v56 = vsel %vm377_vm2, %v762_v14, 0.0 }
 0x10e   :  { %v441_v25 = vadd.f32 %v440_v24, %v439_v21  ;;  %374 = vst.msk [vmem:[%s844_s2 + $0x34] sm:$0xf] %vm360_vm1, %v542_v23 }
 0x10f   :  { %v456_v16 = vsel %vm377_vm2, %v428_v7, 0.0 }
 0x110   :  { %v257_v26 = vpop.f32.mrb[12].mxu0  ;;  %v289_v28 = vpop.f32.mrb[12].mxu1 }
 0x111   :  { %v535_v29 = vpack.c.bf16 %v257_v26, %v257_v26  ;;  %v389_v30 = vsel %vm377_vm2, %v257_v26, 0.0  ;;  %v421_v31 = vmul.f32 %v257_v26, %v257_v26  ;;  %v259_v32 = vpop.f32.mrb[13].mxu0  ;;  %v543_v33 = vpack.c.bf16 %v289_v28, %v289_v28  ;;  %v291_v35 = vpop.f32.mrb[13].mxu1 }
 0x112   :  { %v390_v37 = vadd.f32 %v389_v30, %v388_v22  ;;  %v260_v38 = vpop.f32.mrb[14].mxu0  ;;  %v292_v39 = vpop.f32.mrb[14].mxu1  ;;  %v429_v8 = vmul.f32 %v289_v28, %v289_v28  ;;  %v405_v12 = vsel %vm377_vm2, %v289_v28, 0.0 }
 0x113   :  { %367 = vst.msk [vmem:[%s844_s2 + $0x18] sm:$0xf] %vm360_vm1, %v535_v29  ;;  %v442_v40 = vsel %vm377_vm2, %v421_v31, 0.0  ;;  %v536_v41 = vpack.c.bf16 %v260_v38, %v260_v38  ;;  %v391_v42 = vsel %vm377_vm2, %v260_v38, 0.0  ;;  %v422_v43 = vmul.f32 %v260_v38, %v260_v38  ;;  %v262_v44 = vpop.f32.mrb[15].mxu0  ;;  %v294_v45 = vpop.f32.mrb[15].mxu1 }
 0x114   :  { %375 = vst.msk [vmem:[%s844_s2 + $0x38] sm:$0xf] %vm360_vm1, %v543_v33  ;;  %v443_v46 = vadd.f32 %v442_v40, %v441_v25  ;;  %v392_v48 = vadd.f32 %v391_v42, %v390_v37  ;;  %v544_v49 = vpack.c.bf16 %v292_v39, %v292_v39  ;;  %v458_v17 = vsel %vm377_vm2, %v429_v8, 0.0 }
 0x115   :  { %368 = vst.msk [vmem:[%s844_s2 + $0x1c] sm:$0xf] %vm360_vm1, %v536_v41  ;;  %v444_v52 = vsel %vm377_vm2, %v422_v43, 0.0  ;;  %v430_v5 = vmul.f32 %v292_v39, %v292_v39  ;;  %v407_v20 = vsel %vm377_vm2, %v292_v39, 0.0 }
 0x116   :  { %v394_v53 = vadd.f32 %v393_v50, %v392_v48  ;;  %v445_v54 = vadd.f32 %v444_v52, %v443_v46  ;;  %376 = vst.msk [vmem:[%s844_s2 + $0x3c] sm:$0xf] %vm360_vm1, %v544_v49 }
 0x117   :  { %v460_v23 = vsel %vm377_vm2, %v430_v5, 0.0 }
 0x118   :  { %v396_v58 = vadd.f32 %v395_v27, %v394_v53  ;;  %v447_v59 = vadd.f32 %v446_v55, %v445_v54 }
 0x11a   :  { %v449_v63 = vadd.f32 %v448_v60, %v447_v59  ;;  %v398_v0 = vadd.f32 %v397_v61, %v396_v58 }
 0x11c   :  { %v400_v3 = vadd.f32 %v399_v34, %v398_v0  ;;  %v451_v4 = vadd.f32 %v450_v1, %v449_v63 }
 0x11e   :  { %v402_v9 = vadd.f32 %v401_v47, %v400_v3  ;;  %v453_v10 = vadd.f32 %v452_v6, %v451_v4 }
 0x120   :  { %v455_v13 = vadd.f32 %v454_v11, %v453_v10  ;;  %v404_v15 = vadd.f32 %v403_v56, %v402_v9 }
 0x122   :  { %v457_v18 = vadd.f32 %v456_v16, %v455_v13  ;;  %v406_v19 = vadd.f32 %v405_v12, %v404_v15 }
 0x124   :  { %v459_v21 = vadd.f32 %v458_v17, %v457_v18  ;;  %v408_v22 = vadd.f32 %v407_v20, %v406_v19 }
 0x126   :  { %v409_v24 = vrot.slane %v408_v22, 4  ;;  %v461_v25 = vadd.f32 %v460_v23, %v459_v21 }
 0x128   :  { %v410_v14 = vadd.f32 %v409_v24, %v408_v22  ;;  %v462_v26 = vrot.slane %v461_v25, 4 }
 0x12a   :  { %v411_v28 = vrot.slane %v410_v14, 2  ;;  %v463_v29 = vadd.f32 %v462_v26, %v461_v25 }
 0x12c   :  { %v412_v30 = vadd.f32 %v411_v28, %v410_v14  ;;  %v464_v31 = vrot.slane %v463_v29, 2 }
 0x12e   :  { %v413_v32 = vrot.slane %v412_v30, 1  ;;  %v465_v33 = vadd.f32 %v464_v31, %v463_v29 }
 0x130   :  { %v466_v35 = vrot.slane %v465_v33, 1  ;;  %v414_v36 = vadd.f32 %v413_v32, %v412_v30 }
 0x132   :  { %v467_v37 = vadd.f32 %v466_v35, %v465_v33 }
 0x134   :  { %v469_v38 = vsel %vm468_vm3, %v414_v36, %v467_v37 }
 0x135   :  { %471 = vst.msk [vmem:[%s845_s3] sm:$0x3] %vm470_vm4, %v469_v38 }

// kernel: _lambda_.25
= control target key start
LH: loop header
LB: loop body
LE: loop exit
PB: predicated region body
PF: predicated region fallthrough
CT: control target
= control target key end

     0   :  { %v301_v7 = vmov 1966171168   ;;  %v33_v9 = vlaneseq  ;;  %vm206_vm0 = vcmask 257024   ;;  %s446_s0 = inlined_call_operand.vmem [shape: f32[1,2,32], index: 0, kind: input, shape index: {}]   ;;  %s447_s3 = inlined_call_operand.vmem [shape: bf16[128,32], index: 3, kind: input, shape index: {}]   ;;  %s448_s1 = inlined_call_operand.vmem [shape: f32[1,32], index: 1, kind: input, shape index: {}]   ;;  %s449_s2 = inlined_call_operand.vmem [shape: f32[1,32], index: 2, kind: input, shape index: {}]   ;;  %s450_s4 = inlined_call_operand.vmem [shape: bf16[128,32], index: 4, kind: output, shape index: {}]  }
   0x1   :  { %v17_v0 = vld [vmem:[%s446_s0] sm:$0x3]  ;;  %v31_v8 = vunpack.c.l.s4 %v301_v7  ;;  %v291_v17 = vld [vmem:[%s447_s3 + $0x8] sm:$0xff]   ;;  %v292_v19 = vld [vmem:[%s447_s3 + $0x10] sm:$0xff]  }
   0x2   :  { %v19_v1 = vmul.f32 0.0078125, %v17_v0  ;;  %v34_v11 = vshrl.u32 %v33_v9, 7  ;;  %v260_v16 = vld [vmem:[%s447_s3] sm:$0xff]   ;;  %v293_v22 = vld [vmem:[%s447_s3 + $0x18] sm:$0xff]   ;;  %v265_v26 = vunpack.c.l.bf16 %v291_v17  ;;  %v295_v27 = vld [vmem:[%s447_s3 + $0x28] sm:$0xff]   ;;  %v266_v29 = vunpack.c.h.bf16 %v291_v17 }
   0x3   :  { %v32_v10 = vunpack.c.0.s8 %v31_v8  ;;  %v26_v18 = vld [vmem:[%s448_s1] sm:$0x1]  ;;  %v261_v24 = vunpack.c.l.bf16 %v260_v16  ;;  %v262_v25 = vunpack.c.h.bf16 %v260_v16  ;;  %v269_v30 = vunpack.c.l.bf16 %v292_v19  ;;  %v296_v32 = vld [vmem:[%s447_s3 + $0x30] sm:$0xff]   ;;  %v357_v33 = vld [vmem:[%s447_s3 + $0x38] sm:$0xff]  }
   0x4   :  { %v20_v2 = vmul.f32 %v19_v1, %v19_v1  ;;  %v85_v21 = vsub.s32 0, %v34_v11  ;;  %v294_v23 = vld [vmem:[%s447_s3 + $0x20] sm:$0xff]   ;;  %v270_v31 = vunpack.c.h.bf16 %v292_v19  ;;  %v273_v35 = vunpack.c.l.bf16 %v293_v22 }
   0x5   :  { %v35_v12 = vsub.s32 %v32_v10, %v34_v11  ;;  %v47_v34 = vld [vmem:[%s449_s2] sm:$0x1]  ;;  %v274_v36 = vunpack.c.h.bf16 %v293_v22  ;;  %v277_v37 = vunpack.c.l.bf16 %v294_v23  ;;  %v278_v38 = vunpack.c.h.bf16 %v294_v23 }
   0x6   :  { %v22_v3 = vrot.slane %v20_v2, 7  ;;  %v281_v41 = vunpack.c.l.bf16 %v295_v27  ;;  %v282_v42 = vunpack.c.h.bf16 %v295_v27  ;;  %v285_v43 = vunpack.c.l.bf16 %v296_v32 }
   0x7   :  { %v286_v44 = vunpack.c.h.bf16 %v296_v32  ;;  %v289_v45 = vunpack.c.l.bf16 %v357_v33  ;;  %v290_v46 = vunpack.c.h.bf16 %v357_v33 }
   0x8   :  { %v24_v4 = vsub.f32 %v19_v1, %v22_v3 }
   0xa   :  { %v25_v5 = vmax.f32 %v24_v4, 0.0 }
   0xc   :  { %v27_v6 = vadd.f32 1e-05, %v25_v5 }
   0xe   :  { %299 = vrsqrt.f32 %v27_v6 }
  0x18   :  { %v300_v13 = vpop.eup %299 }
  0x19   :  { %v36_v14 = vrot.slane %v300_v13, %v35_v12 }
  0x1b   :  { %v37_v15 = vcombine.high %v36_v14, %v36_v14 }
  0x1d   :  { %v44_v20 = vrot.slane %v37_v15, %v35_v12 }
  0x1f   :  { %v46_v28 = vmul.f32 %v44_v20, %v26_v18 }
  0x21   :  { %v48_v39 = vmul.f32 %v46_v28, %v19_v1  ;;  %v362_v40 = vrot.slane %v46_v28, %v85_v21 }
  0x23   :  { %v49_v47 = vsub.f32 %v47_v34, %v48_v39  ;;  %v88_v48 = vmul.f32 %v261_v24, %v362_v40  ;;  %v89_v49 = vmul.f32 %v262_v25, %v362_v40  ;;  %v90_v50 = vmul.f32 %v265_v26, %v362_v40 }
  0x24   :  { %v91_v51 = vmul.f32 %v266_v29, %v362_v40  ;;  %v92_v52 = vmul.f32 %v269_v30, %v362_v40  ;;  %v93_v53 = vmul.f32 %v270_v31, %v362_v40  ;;  %v94_v54 = vmul.f32 %v273_v35, %v362_v40 }
  0x25   :  { %v108_v55 = vrot.slane %v49_v47, %v85_v21  ;;  %v95_v56 = vmul.f32 %v274_v36, %v362_v40  ;;  %v96_v57 = vmul.f32 %v277_v37, %v362_v40  ;;  %v97_v58 = vmul.f32 %v278_v38, %v362_v40 }
  0x26   :  { %v98_v59 = vmul.f32 %v281_v41, %v362_v40  ;;  %v99_v60 = vmul.f32 %v282_v42, %v362_v40  ;;  %v100_v61 = vmul.f32 %v285_v43, %v362_v40  ;;  %v101_v62 = vmul.f32 %v286_v44, %v362_v40 }
  0x27   :  { %v110_v63 = vadd.f32 %v108_v55, %v88_v48  ;;  %v111_v0 = vadd.f32 %v108_v55, %v89_v49  ;;  %v112_v1 = vadd.f32 %v108_v55, %v90_v50  ;;  %v113_v2 = vadd.f32 %v108_v55, %v91_v51 }
  0x28   :  { %v114_v3 = vadd.f32 %v108_v55, %v92_v52  ;;  %v115_v4 = vadd.f32 %v108_v55, %v93_v53  ;;  %v116_v5 = vadd.f32 %v108_v55, %v94_v54  ;;  %v117_v6 = vadd.f32 %v108_v55, %v95_v56 }
  0x29   :  { %v126_v7 = vmax.f32 %v110_v63, 0.0  ;;  %v127_v8 = vmax.f32 %v111_v0, 0.0  ;;  %v128_v9 = vmax.f32 %v112_v1, 0.0  ;;  %v129_v10 = vmax.f32 %v113_v2, 0.0 }
  0x2a   :  { %v130_v11 = vmax.f32 %v114_v3, 0.0  ;;  %v131_v12 = vmax.f32 %v115_v4, 0.0  ;;  %v132_v13 = vmax.f32 %v116_v5, 0.0  ;;  %v133_v14 = vmax.f32 %v117_v6, 0.0 }
  0x2b   :  { %v243_v15 = vpack.c.bf16 %v126_v7, %v126_v7  ;;  %v244_v16 = vpack.c.bf16 %v127_v8, %v127_v8  ;;  %v245_v17 = vpack.c.bf16 %v128_v9, %v128_v9  ;;  %v246_v18 = vpack.c.bf16 %v129_v10, %v129_v10 }
  0x2c   :  { %v247_v19 = vpack.c.bf16 %v130_v11, %v130_v11  ;;  %v248_v20 = vpack.c.bf16 %v131_v12, %v131_v12  ;;  %v249_v21 = vpack.c.bf16 %v132_v13, %v132_v13  ;;  %v250_v22 = vpack.c.bf16 %v133_v14, %v133_v14 }
  0x2d   :  { %207 = vst.msk [vmem:[%s450_s4] sm:$0xf] %vm206_vm0, %v243_v15  ;;  %208 = vst.msk [vmem:[%s450_s4 + $0x4] sm:$0xf] %vm206_vm0, %v244_v16  ;;  %v118_v23 = vadd.f32 %v108_v55, %v96_v57  ;;  %v119_v24 = vadd.f32 %v108_v55, %v97_v58  ;;  %v120_v25 = vadd.f32 %v108_v55, %v98_v59 }
  0x2e   :  { %209 = vst.msk [vmem:[%s450_s4 + $0x8] sm:$0xf] %vm206_vm0, %v245_v17  ;;  %210 = vst.msk [vmem:[%s450_s4 + $0xc] sm:$0xf] %vm206_vm0, %v246_v18  ;;  %v121_v26 = vadd.f32 %v108_v55, %v99_v60  ;;  %v122_v27 = vadd.f32 %v108_v55, %v100_v61  ;;  %v123_v28 = vadd.f32 %v108_v55, %v101_v62 }
  0x2f   :  { %211 = vst.msk [vmem:[%s450_s4 + $0x10] sm:$0xf] %vm206_vm0, %v247_v19  ;;  %212 = vst.msk [vmem:[%s450_s4 + $0x14] sm:$0xf] %vm206_vm0, %v248_v20  ;;  %v102_v29 = vmul.f32 %v289_v45, %v362_v40  ;;  %v103_v30 = vmul.f32 %v290_v46, %v362_v40  ;;  %v134_v31 = vmax.f32 %v118_v23, 0.0  ;;  %v135_v32 = vmax.f32 %v119_v24, 0.0 }
  0x30   :  { %213 = vst.msk [vmem:[%s450_s4 + $0x18] sm:$0xf] %vm206_vm0, %v249_v21  ;;  %214 = vst.msk [vmem:[%s450_s4 + $0x1c] sm:$0xf] %vm206_vm0, %v250_v22  ;;  %v136_v33 = vmax.f32 %v120_v25, 0.0  ;;  %v137_v34 = vmax.f32 %v121_v26, 0.0 }
  0x31   :  { %v138_v35 = vmax.f32 %v122_v27, 0.0  ;;  %v139_v36 = vmax.f32 %v123_v28, 0.0  ;;  %v124_v37 = vadd.f32 %v108_v55, %v102_v29  ;;  %v125_v38 = vadd.f32 %v108_v55, %v103_v30 }
  0x32   :  { %v251_v39 = vpack.c.bf16 %v134_v31, %v134_v31  ;;  %v252_v41 = vpack.c.bf16 %v135_v32, %v135_v32  ;;  %v253_v42 = vpack.c.bf16 %v136_v33, %v136_v33  ;;  %v254_v43 = vpack.c.bf16 %v137_v34, %v137_v34 }
  0x33   :  { %v255_v44 = vpack.c.bf16 %v138_v35, %v138_v35  ;;  %v256_v47 = vpack.c.bf16 %v139_v36, %v139_v36  ;;  %v140_v48 = vmax.f32 %v124_v37, 0.0  ;;  %v141_v49 = vmax.f32 %v125_v38, 0.0 }
  0x34   :  { %215 = vst.msk [vmem:[%s450_s4 + $0x20] sm:$0xf] %vm206_vm0, %v251_v39  ;;  %216 = vst.msk [vmem:[%s450_s4 + $0x24] sm:$0xf] %vm206_vm0, %v252_v41 }
  0x35   :  { %217 = vst.msk [vmem:[%s450_s4 + $0x28] sm:$0xf] %vm206_vm0, %v253_v42  ;;  %218 = vst.msk [vmem:[%s450_s4 + $0x2c] sm:$0xf] %vm206_vm0, %v254_v43  ;;  %v257_v40 = vpack.c.bf16 %v140_v48, %v140_v48  ;;  %v258_v45 = vpack.c.bf16 %v141_v49, %v141_v49 }
  0x36   :  { %219 = vst.msk [vmem:[%s450_s4 + $0x30] sm:$0xf] %vm206_vm0, %v255_v44  ;;  %220 = vst.msk [vmem:[%s450_s4 + $0x34] sm:$0xf] %vm206_vm0, %v256_v47 }
  0x37   :  { %221 = vst.msk [vmem:[%s450_s4 + $0x38] sm:$0xf] %vm206_vm0, %v257_v40  ;;  %222 = vst.msk [vmem:[%s450_s4 + $0x3c] sm:$0xf] %vm206_vm0, %v258_v45 }

// kernel: _lambda_.26
= control target key start
LH: loop header
LB: loop body
LE: loop exit
PB: predicated region body
PF: predicated region fallthrough
CT: control target
= control target key end

     0   :  { %vm196_vm0 = vcmask 261120   ;;  %vm317_vm1 = vcmask 519168   ;;  %vm322_vm2 = vcmask 523264   ;;  %vm353_vm3 = vcmask 1040384   ;;  %s584_s1 = inlined_call_operand.vmem [shape: bf16[288,64], index: 1, kind: input, shape index: {}]   ;;  %s585_s0 = inlined_call_operand.vmem [shape: bf16[32,288], index: 0, kind: input, shape index: {}]   ;;  %s586_s2 = inlined_call_operand.vmem [shape: bf16[32,64], index: 2, kind: output, shape index: {0}]   ;;  %s587_s3 = inlined_call_operand.vmem [shape: f32[1,2,64], index: 3, kind: output, shape index: {1}]  }
   0x1   :  { %v439_v0 = vld [vmem:[%s584_s1 + $0x40] sm:$0xff]   ;;  %v441_v2 = vld [vmem:[%s584_s1 + $0x48] sm:$0xff]   ;;  %v443_v4 = vld [vmem:[%s584_s1 + $0x50] sm:$0xff]   ;;  %vm355_vm4 = vcmask 517120  }
   0x2   :  { %v440_v1 = vld [vmem:[%s584_s1] sm:$0xff]   ;;  %399 = vmatprep.subr.bf16.mxu0 %v439_v0  ;;  %v442_v3 = vld [vmem:[%s584_s1 + $0x8] sm:$0xff]   ;;  %v444_v5 = vld [vmem:[%s584_s1 + $0x10] sm:$0xff]  }
   0x3   :  { %400 = vmatpush3.bf16.msra.mxu0 %v440_v1  ;;  %v445_v6 = vld [vmem:[%s584_s1 + $0x58] sm:$0xff]   ;;  %v447_v8 = vld [vmem:[%s584_s1 + $0x60] sm:$0xff]   ;;  %v449_v11 = vld [vmem:[%s584_s1 + $0x68] sm:$0xff]  }
   0x4   :  { %401 = vmatprep.subr.bf16.mxu0 %v441_v2  ;;  %v446_v7 = vld [vmem:[%s584_s1 + $0x18] sm:$0xff]   ;;  %v453_v9 = vld [vmem:[%s584_s1 + $0x80] sm:$0xff]   ;;  %v450_v12 = vld [vmem:[%s584_s1 + $0x28] sm:$0xff]  }
   0x5   :  { %v448_v10 = vld [vmem:[%s584_s1 + $0x20] sm:$0xff]   ;;  %431 = vmatprep.subr.bf16.mxu1 %v453_v9  ;;  %v456_v13 = vld [vmem:[%s584_s1 + $0x88] sm:$0xff]   ;;  %v451_v14 = vld [vmem:[%s584_s1 + $0x70] sm:$0xff]  }
   0x6   :  { %432 = vmatpush3.bf16.msra.mxu1 %v453_v9  ;;  %v459_v15 = vld [vmem:[%s585_s0 + $0x4] ss:$12 sps:$4 sm:$0xff]   ;;  %v460_v16 = vld [vmem:[%s585_s0 + $0x8] ss:$12 sps:$4 sm:$0xff]   ;;  %v461_v17 = vld [vmem:[%s585_s0 + $0x20] ss:$12 sps:$4 sm:$0xff]  }
   0x7   :  { %402 = vmatpush3.bf16.msra.mxu0 %v442_v3  ;;  %433 = vmatprep.subr.bf16.mxu1 %v456_v13  ;;  %v452_v18 = vld [vmem:[%s584_s1 + $0x30] sm:$0xff]   ;;  %v454_v19 = vld [vmem:[%s584_s1 + $0x78] sm:$0xff]   ;;  %v457_v21 = vld [vmem:[%s585_s0] ss:$12 sps:$4 sm:$0xff]  }
   0x8   :  { %403 = vmatprep.subr.bf16.mxu0 %v443_v4  ;;  %235 = vmatprep.mubr.bf16.mxu0 %v459_v15  ;;  %v455_v20 = vld [vmem:[%s584_s1 + $0x38] sm:$0xff]  }
   0x9   :  { %435 = vmatprep.mubr.msk.bf16.mxu1 %vm196_vm0, %v460_v16  ;;  %v462_v22 = vld [vmem:[%s585_s0 + $0x1c] ss:$12 sps:$4 sm:$0xff]   ;;  %v464_v23 = vld [vmem:[%s585_s0 + $0x18] ss:$12 sps:$4 sm:$0xff]  }
   0xa   :  { %434 = vmatpush3.bf16.msra.mxu1 %v456_v13 }
   0xb   :  { %404 = vmatpush3.bf16.msra.mxu0 %v444_v5 }
   0xc   :  { %405 = vmatprep.subr.bf16.mxu0 %v445_v6 }
   0xd   :  { %436 = vmatmul.mubr.msk.bf16.vlgmr.msra.gmra.mrb[0].mxu1 %vm196_vm0, %v461_v17 }
   0xf   :  { %406 = vmatpush3.bf16.msra.mxu0 %v446_v7 }
  0x10   :  { %407 = vmatprep.subr.bf16.mxu0 %v447_v8 }
  0x13   :  { %408 = vmatpush3.bf16.msra.mxu0 %v448_v10 }
  0x14   :  { %409 = vmatprep.subr.bf16.mxu0 %v449_v11 }
  0x17   :  { %410 = vmatpush3.bf16.msra.mxu0 %v450_v12 }
  0x18   :  { %411 = vmatprep.subr.bf16.mxu0 %v451_v14 }
  0x1b   :  { %412 = vmatpush3.bf16.msra.mxu0 %v452_v18 }
  0x1c   :  { %413 = vmatprep.subr.bf16.mxu0 %v454_v19 }
  0x1f   :  { %414 = vmatpush3.bf16.msra.mxu0 %v455_v20 }
  0x22   :  { %236 = vmatmul.mubr.bf16.vlgmr.msra.gmra.mrb[0].mxu0 %v457_v21 }
  0x23   :  { %243 = vmatprep.mubr.bf16.mxu0 %v462_v22 }
  0x2a   :  { %244 = vmatmul.mubr.bf16.gmra.mrb[4].mxu0 %v464_v23 }
  0xe0   :  { %v437_v24 = vpop.f32.mrb[0].mxu1 }
  0xe1   :  { %v286_v25 = vpop.f32.mrb[1].mxu1 }
  0xe2   :  { %v438_v26 = vpop.f32.mrb[2].mxu1 }
  0xe3   :  { %v289_v27 = vpop.f32.mrb[3].mxu1 }
  0xf5   :  { %v415_v28 = vpop.f32.mrb[0].mxu0 }
  0xf6   :  { %v416_v29 = vpop.f32.mrb[1].mxu0 }
  0xf7   :  { %v417_v30 = vadd.f32 %v416_v29, %v415_v28  ;;  %v418_v31 = vpop.f32.mrb[2].mxu0 }
  0xf8   :  { %v419_v32 = vpop.f32.mrb[3].mxu0 }
  0xf9   :  { %v420_v33 = vadd.f32 %v419_v32, %v418_v31  ;;  %v287_v34 = vadd.f32 %v417_v30, %v286_v25 }
  0xfb   :  { %v395_v35 = vpack.c.bf16 %v287_v34, %v287_v34  ;;  %v336_v36 = vmul.f32 %v287_v34, %v287_v34  ;;  %v290_v37 = vadd.f32 %v420_v33, %v289_v27  ;;  %v323_v38 = vsel %vm322_vm2, %v287_v34, 0.0 }
  0xfd   :  { %318 = vst.msk [vmem:[%s586_s2] sm:$0xf] %vm317_vm1, %v395_v35  ;;  %v396_v39 = vpack.c.bf16 %v290_v37, %v290_v37  ;;  %v324_v40 = vsel %vm322_vm2, %v290_v37, 0.0  ;;  %v337_v41 = vmul.f32 %v290_v37, %v290_v37  ;;  %v421_v42 = vpop.f32.mrb[4].mxu0  ;;  %v340_v45 = vsel %vm322_vm2, %v336_v36, 0.0 }
  0xfe   :  { %v325_v43 = vadd.f32 %v324_v40, %v323_v38  ;;  %v422_v44 = vpop.f32.mrb[5].mxu0 }
  0xff   :  { %319 = vst.msk [vmem:[%s586_s2 + $0x4] sm:$0xf] %vm317_vm1, %v396_v39  ;;  %v341_v46 = vsel %vm322_vm2, %v337_v41, 0.0  ;;  %v423_v47 = vadd.f32 %v422_v44, %v421_v42  ;;  %v424_v48 = vpop.f32.mrb[6].mxu0 }
 0x100   :  { %v342_v49 = vadd.f32 %v341_v46, %v340_v45  ;;  %v425_v50 = vpop.f32.mrb[7].mxu0 }
 0x101   :  { %v295_v51 = vadd.f32 %v437_v24, %v423_v47  ;;  %v426_v52 = vadd.f32 %v425_v50, %v424_v48 }
 0x103   :  { %v397_v53 = vpack.c.bf16 %v295_v51, %v295_v51  ;;  %v326_v54 = vsel %vm322_vm2, %v295_v51, 0.0  ;;  %v338_v55 = vmul.f32 %v295_v51, %v295_v51  ;;  %v298_v56 = vadd.f32 %v438_v26, %v426_v52 }
 0x104   :  { %v327_v57 = vadd.f32 %v326_v54, %v325_v43 }
 0x105   :  { %320 = vst.msk [vmem:[%s586_s2 + $0x8] sm:$0xf] %vm317_vm1, %v397_v53  ;;  %v343_v58 = vsel %vm322_vm2, %v338_v55, 0.0  ;;  %v398_v59 = vpack.c.bf16 %v298_v56, %v298_v56  ;;  %v328_v60 = vsel %vm322_vm2, %v298_v56, 0.0  ;;  %v339_v61 = vmul.f32 %v298_v56, %v298_v56 }
 0x106   :  { %v344_v62 = vadd.f32 %v343_v58, %v342_v49  ;;  %v329_v63 = vadd.f32 %v328_v60, %v327_v57 }
 0x107   :  { %321 = vst.msk [vmem:[%s586_s2 + $0xc] sm:$0xf] %vm317_vm1, %v398_v59  ;;  %v345_v0 = vsel %vm322_vm2, %v339_v61, 0.0 }
 0x108   :  { %v330_v1 = vrot.slane %v329_v63, 4  ;;  %v346_v2 = vadd.f32 %v345_v0, %v344_v62 }
 0x10a   :  { %v331_v3 = vadd.f32 %v330_v1, %v329_v63  ;;  %v347_v4 = vrot.slane %v346_v2, 4 }
 0x10c   :  { %v332_v5 = vrot.slane %v331_v3, 2  ;;  %v348_v6 = vadd.f32 %v347_v4, %v346_v2 }
 0x10e   :  { %v333_v7 = vadd.f32 %v332_v5, %v331_v3  ;;  %v349_v8 = vrot.slane %v348_v6, 2 }
 0x110   :  { %v334_v9 = vrot.slane %v333_v7, 1  ;;  %v350_v10 = vadd.f32 %v349_v8, %v348_v6 }
 0x112   :  { %v351_v11 = vrot.slane %v350_v10, 1  ;;  %v335_v12 = vadd.f32 %v334_v9, %v333_v7 }
 0x114   :  { %v352_v13 = vadd.f32 %v351_v11, %v350_v10 }
 0x116   :  { %v354_v14 = vsel %vm353_vm3, %v335_v12, %v352_v13 }
 0x117   :  { %356 = vst.msk [vmem:[%s587_s3] sm:$0x3] %vm355_vm4, %v354_v14 }

// kernel: _lambda_.27
= control target key start
LH: loop header
LB: loop body
LE: loop exit
PB: predicated region body
PF: predicated region fallthrough
CT: control target
= control target key end

     0   :  { %v127_v7 = vmov 1966171168   ;;  %v33_v9 = vlaneseq  ;;  %vm98_vm0 = vcmask 519168   ;;  %s180_s0 = inlined_call_operand.vmem [shape: f32[1,2,64], index: 0, kind: input, shape index: {}]   ;;  %s181_s1 = inlined_call_operand.vmem [shape: f32[1,64], index: 1, kind: input, shape index: {}]   ;;  %s182_s3 = inlined_call_operand.vmem [shape: bf16[32,64], index: 3, kind: input, shape index: {}]   ;;  %s183_s2 = inlined_call_operand.vmem [shape: f32[1,64], index: 2, kind: input, shape index: {}]   ;;  %s184_s4 = inlined_call_operand.vmem [shape: bf16[32,64], index: 4, kind: output, shape index: {}]  }
   0x1   :  { %v17_v0 = vld [vmem:[%s180_s0] sm:$0x3]  ;;  %v31_v8 = vunpack.c.l.s4 %v127_v7  ;;  %v123_v18 = vld [vmem:[%s182_s3 + $0x8] sm:$0xff]  }
   0x2   :  { %v19_v1 = vmul.f32 0.03125, %v17_v0  ;;  %v34_v11 = vshrl.u32 %v33_v9, 7  ;;  %v26_v16 = vld [vmem:[%s181_s1] sm:$0x1]  ;;  %v121_v24 = vunpack.c.l.bf16 %v123_v18  ;;  %v122_v26 = vunpack.c.h.bf16 %v123_v18 }
   0x3   :  { %v32_v10 = vunpack.c.0.s8 %v31_v8  ;;  %v116_v17 = vld [vmem:[%s182_s3] sm:$0xff]  }
   0x4   :  { %v20_v2 = vmul.f32 %v19_v1, %v19_v1  ;;  %v61_v20 = vsub.s32 0, %v34_v11  ;;  %v117_v22 = vunpack.c.l.bf16 %v116_v17  ;;  %v118_v23 = vunpack.c.h.bf16 %v116_v17  ;;  %v47_v25 = vld [vmem:[%s183_s2] sm:$0x1] }
   0x5   :  { %v35_v12 = vsub.s32 %v32_v10, %v34_v11 }
   0x6   :  { %v22_v3 = vrot.slane %v20_v2, 7 }
   0x8   :  { %v24_v4 = vsub.f32 %v19_v1, %v22_v3 }
   0xa   :  { %v25_v5 = vmax.f32 %v24_v4, 0.0 }
   0xc   :  { %v27_v6 = vadd.f32 1e-05, %v25_v5 }
   0xe   :  { %125 = vrsqrt.f32 %v27_v6 }
  0x18   :  { %v126_v13 = vpop.eup %125 }
  0x19   :  { %v36_v14 = vrot.slane %v126_v13, %v35_v12 }
  0x1b   :  { %v37_v15 = vcombine.high %v36_v14, %v36_v14 }
  0x1d   :  { %v44_v19 = vrot.slane %v37_v15, %v35_v12 }
  0x1f   :  { %v46_v21 = vmul.f32 %v44_v19, %v26_v16 }
  0x21   :  { %v48_v27 = vmul.f32 %v46_v21, %v19_v1  ;;  %v62_v28 = vrot.slane %v46_v21, %v61_v20 }
  0x23   :  { %v49_v29 = vsub.f32 %v47_v25, %v48_v27  ;;  %v64_v30 = vmul.f32 %v117_v22, %v62_v28  ;;  %v65_v31 = vmul.f32 %v118_v23, %v62_v28  ;;  %v66_v32 = vmul.f32 %v121_v24, %v62_v28 }
  0x24   :  { %v67_v33 = vmul.f32 %v122_v26, %v62_v28 }
  0x25   :  { %v72_v34 = vrot.slane %v49_v29, %v61_v20 }
  0x27   :  { %v74_v35 = vadd.f32 %v72_v34, %v64_v30  ;;  %v75_v36 = vadd.f32 %v72_v34, %v65_v31  ;;  %v76_v37 = vadd.f32 %v72_v34, %v66_v32  ;;  %v77_v38 = vadd.f32 %v72_v34, %v67_v33 }
  0x29   :  { %v78_v39 = vmax.f32 %v74_v35, 0.0  ;;  %v79_v40 = vmax.f32 %v75_v36, 0.0  ;;  %v80_v41 = vmax.f32 %v76_v37, 0.0  ;;  %v81_v42 = vmax.f32 %v77_v38, 0.0 }
  0x2b   :  { %v111_v43 = vpack.c.bf16 %v78_v39, %v78_v39  ;;  %v112_v44 = vpack.c.bf16 %v79_v40, %v79_v40  ;;  %v113_v45 = vpack.c.bf16 %v80_v41, %v80_v41  ;;  %v114_v46 = vpack.c.bf16 %v81_v42, %v81_v42 }
  0x2d   :  { %99 = vst.msk [vmem:[%s184_s4] sm:$0xf] %vm98_vm0, %v111_v43  ;;  %100 = vst.msk [vmem:[%s184_s4 + $0x4] sm:$0xf] %vm98_vm0, %v112_v44 }
  0x2e   :  { %101 = vst.msk [vmem:[%s184_s4 + $0x8] sm:$0xf] %vm98_vm0, %v113_v45  ;;  %102 = vst.msk [vmem:[%s184_s4 + $0xc] sm:$0xf] %vm98_vm0, %v114_v46 }

// kernel: _lambda_.29
= control target key start
LH: loop header
LB: loop body
LE: loop exit
PB: predicated region body
PF: predicated region fallthrough
CT: control target
= control target key end

     0   :  { %v137_v7 = vmov 1966171168   ;;  %v33_v9 = vlaneseq  ;;  %s184_s0 = inlined_call_operand.vmem [shape: f32[1,2,128], index: 0, kind: input, shape index: {}]   ;;  %s185_s1 = inlined_call_operand.vmem [shape: f32[1,128], index: 1, kind: input, shape index: {}]   ;;  %s186_s3 = inlined_call_operand.vmem [shape: bf16[32,128], index: 3, kind: input, shape index: {}]   ;;  %s187_s2 = inlined_call_operand.vmem [shape: f32[1,128], index: 2, kind: input, shape index: {}]   ;;  %s188_s4 = inlined_call_operand.vmem [shape: bf16[32,128], index: 4, kind: output, shape index: {}]  }
   0x1   :  { %v17_v0 = vld [vmem:[%s184_s0] sm:$0x3]  ;;  %v31_v8 = vunpack.c.l.s4 %v137_v7  ;;  %v132_v18 = vld [vmem:[%s186_s3 + $0x8] sm:$0xff]  }
   0x2   :  { %v19_v1 = vmul.f32 0.03125, %v17_v0  ;;  %v34_v11 = vshrl.u32 %v33_v9, 7  ;;  %v26_v16 = vld [vmem:[%s185_s1] sm:$0x1]  ;;  %v120_v24 = vunpack.c.l.bf16 %v132_v18  ;;  %v121_v26 = vunpack.c.h.bf16 %v132_v18 }
   0x3   :  { %v32_v10 = vunpack.c.0.s8 %v31_v8  ;;  %v115_v17 = vld [vmem:[%s186_s3] sm:$0xff]  }
   0x4   :  { %v20_v2 = vmul.f32 %v19_v1, %v19_v1  ;;  %v61_v20 = vsub.s32 0, %v34_v11  ;;  %v116_v22 = vunpack.c.l.bf16 %v115_v17  ;;  %v117_v23 = vunpack.c.h.bf16 %v115_v17  ;;  %v47_v25 = vld [vmem:[%s187_s2] sm:$0x1] }
   0x5   :  { %v35_v12 = vsub.s32 %v32_v10, %v34_v11 }
   0x6   :  { %v22_v3 = vrot.slane %v20_v2, 7 }
   0x8   :  { %v24_v4 = vsub.f32 %v19_v1, %v22_v3 }
   0xa   :  { %v25_v5 = vmax.f32 %v24_v4, 0.0 }
   0xc   :  { %v27_v6 = vadd.f32 1e-05, %v25_v5 }
   0xe   :  { %135 = vrsqrt.f32 %v27_v6 }
  0x18   :  { %v136_v13 = vpop.eup %135 }
  0x19   :  { %v36_v14 = vrot.slane %v136_v13, %v35_v12 }
  0x1b   :  { %v37_v15 = vcombine.high %v36_v14, %v36_v14 }
  0x1d   :  { %v44_v19 = vrot.slane %v37_v15, %v35_v12 }
  0x1f   :  { %v46_v21 = vmul.f32 %v44_v19, %v26_v16 }
  0x21   :  { %v48_v27 = vmul.f32 %v46_v21, %v19_v1  ;;  %v62_v28 = vrot.slane %v46_v21, %v61_v20 }
  0x23   :  { %v49_v29 = vsub.f32 %v47_v25, %v48_v27  ;;  %v64_v30 = vmul.f32 %v116_v22, %v62_v28  ;;  %v65_v31 = vmul.f32 %v117_v23, %v62_v28  ;;  %v66_v32 = vmul.f32 %v120_v24, %v62_v28 }
  0x24   :  { %v67_v33 = vmul.f32 %v121_v26, %v62_v28 }
  0x25   :  { %v72_v34 = vrot.slane %v49_v29, %v61_v20 }
  0x27   :  { %v74_v35 = vadd.f32 %v72_v34, %v64_v30  ;;  %v75_v36 = vadd.f32 %v72_v34, %v65_v31  ;;  %v76_v37 = vadd.f32 %v72_v34, %v66_v32  ;;  %v77_v38 = vadd.f32 %v72_v34, %v67_v33 }
  0x29   :  { %v78_v39 = vmax.f32 %v74_v35, 0.0  ;;  %v79_v40 = vmax.f32 %v75_v36, 0.0  ;;  %v80_v41 = vmax.f32 %v76_v37, 0.0  ;;  %v81_v42 = vmax.f32 %v77_v38, 0.0 }
  0x2b   :  { %v125_v43 = vpack.c.bf16 %v79_v40, %v78_v39  ;;  %v130_v44 = vpack.c.bf16 %v81_v42, %v80_v41 }
  0x2d   :  { %126 = vst [vmem:[%s188_s4] sm:$0xff] %v125_v43   ;;  %133 = vst [vmem:[%s188_s4 + $0x8] sm:$0xff] %v130_v44  }

// kernel: _lambda_.28
= control target key start
LH: loop header
LB: loop body
LE: loop exit
PB: predicated region body
PF: predicated region fallthrough
CT: control target
= control target key end

     0   :  { %vm364_vm0 = vcmask 523264   ;;  %vm560_vm1 = vcmask 1040384   ;;  %s929_s1 = inlined_call_operand.vmem [shape: bf16[576,128], index: 1, kind: input, shape index: {}]   ;;  %s930_s0 = inlined_call_operand.vmem [shape: bf16[32,576], index: 0, kind: input, shape index: {}]   ;;  %s931_s2 = inlined_call_operand.vmem [shape: bf16[32,128], index: 2, kind: output, shape index: {0}]   ;;  %s932_s3 = inlined_call_operand.vmem [shape: f32[1,2,128], index: 3, kind: output, shape index: {1}]  }
   0x1   :  { %v712_v0 = vld [vmem:[%s929_s1 + $0x40] sm:$0xff]   ;;  %v716_v4 = vld [vmem:[%s929_s1 + $0x48] sm:$0xff]   ;;  %v720_v8 = vld [vmem:[%s929_s1 + $0x50] sm:$0xff]  }
   0x2   :  { %v713_v1 = vld [vmem:[%s929_s1 + $0xc0] sm:$0xff]   ;;  %638 = vmatprep.subr.bf16.mxu0 %v712_v0  ;;  %v717_v5 = vld [vmem:[%s929_s1 + $0xc8] sm:$0xff]   ;;  %v721_v9 = vld [vmem:[%s929_s1 + $0xd0] sm:$0xff]  }
   0x3   :  { %v714_v2 = vld [vmem:[%s929_s1] sm:$0xff]   ;;  %666 = vmatprep.subr.bf16.mxu1 %v713_v1  ;;  %v718_v6 = vld [vmem:[%s929_s1 + $0x8] sm:$0xff]   ;;  %v722_v10 = vld [vmem:[%s929_s1 + $0x10] sm:$0xff]  }
   0x4   :  { %v715_v3 = vld [vmem:[%s929_s1 + $0x80] sm:$0xff]   ;;  %639 = vmatpush3.bf16.msra.mxu0 %v714_v2  ;;  %v719_v7 = vld [vmem:[%s929_s1 + $0x88] sm:$0xff]   ;;  %v723_v11 = vld [vmem:[%s929_s1 + $0x90] sm:$0xff]  }
   0x5   :  { %667 = vmatpush3.bf16.msra.mxu1 %v715_v3  ;;  %640 = vmatprep.subr.bf16.mxu0 %v716_v4  ;;  %v724_v12 = vld [vmem:[%s929_s1 + $0x58] sm:$0xff]   ;;  %v728_v16 = vld [vmem:[%s929_s1 + $0x60] sm:$0xff]   ;;  %v732_v20 = vld [vmem:[%s929_s1 + $0x68] sm:$0xff]  }
   0x6   :  { %668 = vmatprep.subr.bf16.mxu1 %v717_v5  ;;  %v725_v13 = vld [vmem:[%s929_s1 + $0xd8] sm:$0xff]   ;;  %v729_v17 = vld [vmem:[%s929_s1 + $0xe0] sm:$0xff]   ;;  %v733_v21 = vld [vmem:[%s929_s1 + $0xe8] sm:$0xff]  }
   0x7   :  { %v726_v14 = vld [vmem:[%s929_s1 + $0x18] sm:$0xff]   ;;  %v730_v18 = vld [vmem:[%s929_s1 + $0x20] sm:$0xff]   ;;  %v734_v22 = vld [vmem:[%s929_s1 + $0x28] sm:$0xff]  }
   0x8   :  { %641 = vmatpush3.bf16.msra.mxu0 %v718_v6  ;;  %v727_v15 = vld [vmem:[%s929_s1 + $0x98] sm:$0xff]   ;;  %v731_v19 = vld [vmem:[%s929_s1 + $0xa0] sm:$0xff]   ;;  %v735_v23 = vld [vmem:[%s929_s1 + $0xa8] sm:$0xff]  }
   0x9   :  { %669 = vmatpush3.bf16.msra.mxu1 %v719_v7  ;;  %642 = vmatprep.subr.bf16.mxu0 %v720_v8  ;;  %v736_v24 = vld [vmem:[%s929_s1 + $0x70] sm:$0xff]   ;;  %v740_v28 = vld [vmem:[%s929_s1 + $0x78] sm:$0xff]   ;;  %v749_v35 = vld [vmem:[%s930_s0 + $0xc] ss:$20 sps:$4 sm:$0xff]  }
   0xa   :  { %670 = vmatprep.subr.bf16.mxu1 %v721_v9  ;;  %v737_v25 = vld [vmem:[%s929_s1 + $0xf0] sm:$0xff]   ;;  %v741_v29 = vld [vmem:[%s929_s1 + $0xf8] sm:$0xff]   ;;  %v750_v36 = vld [vmem:[%s929_s1 + $0x100] sm:$0xff]   ;;  %452 = vmatprep.mubr.bf16.mxu1 %v749_v35 }
   0xb   :  { %v738_v26 = vld [vmem:[%s929_s1 + $0x30] sm:$0xff]   ;;  %v742_v30 = vld [vmem:[%s929_s1 + $0x38] sm:$0xff]   ;;  %v751_v37 = vld [vmem:[%s929_s1 + $0x108] sm:$0xff]  }
   0xc   :  { %643 = vmatpush3.bf16.msra.mxu0 %v722_v10  ;;  %v739_v27 = vld [vmem:[%s929_s1 + $0xb0] sm:$0xff]   ;;  %v743_v31 = vld [vmem:[%s929_s1 + $0xb8] sm:$0xff]   ;;  %v752_v38 = vld [vmem:[%s930_s0 + $0x2c] ss:$20 sps:$4 sm:$0xff]  }
   0xd   :  { %671 = vmatpush3.bf16.msra.mxu1 %v723_v11  ;;  %644 = vmatprep.subr.bf16.mxu0 %v724_v12  ;;  %v744_v32 = vld [vmem:[%s930_s0] ss:$20 sps:$4 sm:$0xff]   ;;  %v746_v33 = vld [vmem:[%s930_s0 + $0x4] ss:$20 sps:$4 sm:$0xff]   ;;  %v747_v34 = vld [vmem:[%s930_s0 + $0x8] ss:$20 sps:$4 sm:$0xff]  }
   0xe   :  { %672 = vmatprep.subr.bf16.mxu1 %v725_v13  ;;  %403 = vmatprep.mubr.bf16.mxu0 %v746_v33  ;;  %v754_v39 = vld [vmem:[%s930_s0 + $0x34] ss:$20 sps:$4 sm:$0xff]   ;;  %v757_v42 = vld [vmem:[%s930_s0 + $0x30] ss:$20 sps:$4 sm:$0xff]   ;;  %v759_v44 = vld [vmem:[%s929_s1 + $0x118] sm:$0xff]  }
   0xf   :  { %v756_v40 = vld [vmem:[%s930_s0 + $0x28] ss:$20 sps:$4 sm:$0xff]   ;;  %v758_v41 = vld [vmem:[%s929_s1 + $0x110] sm:$0xff]   ;;  %v761_v45 = vld [vmem:[%s930_s0 + $0x38] ss:$20 sps:$4 sm:$0xff]  }
  0x10   :  { %645 = vmatpush3.bf16.msra.mxu0 %v726_v14  ;;  %v760_v43 = vld [vmem:[%s930_s0 + $0x10] ss:$20 sps:$4 sm:$0xff]  }
  0x11   :  { %673 = vmatpush3.bf16.msra.mxu1 %v727_v15  ;;  %646 = vmatprep.subr.bf16.mxu0 %v728_v16 }
  0x12   :  { %674 = vmatprep.subr.bf16.mxu1 %v729_v17 }
  0x14   :  { %647 = vmatpush3.bf16.msra.mxu0 %v730_v18 }
  0x15   :  { %675 = vmatpush3.bf16.msra.mxu1 %v731_v19  ;;  %648 = vmatprep.subr.bf16.mxu0 %v732_v20 }
  0x16   :  { %676 = vmatprep.subr.bf16.mxu1 %v733_v21 }
  0x18   :  { %649 = vmatpush3.bf16.msra.mxu0 %v734_v22 }
  0x19   :  { %677 = vmatpush3.bf16.msra.mxu1 %v735_v23  ;;  %650 = vmatprep.subr.bf16.mxu0 %v736_v24 }
  0x1a   :  { %678 = vmatprep.subr.bf16.mxu1 %v737_v25 }
  0x1c   :  { %651 = vmatpush3.bf16.msra.mxu0 %v738_v26 }
  0x1d   :  { %679 = vmatpush3.bf16.msra.mxu1 %v739_v27  ;;  %652 = vmatprep.subr.bf16.mxu0 %v740_v28 }
  0x1e   :  { %680 = vmatprep.subr.bf16.mxu1 %v741_v29 }
  0x20   :  { %653 = vmatpush3.bf16.msra.mxu0 %v742_v30 }
  0x21   :  { %681 = vmatpush3.bf16.msra.mxu1 %v743_v31  ;;  %700 = vmatprep.subr.bf16.mxu0 %v750_v36 }
  0x23   :  { %404 = vmatmul.mubr.bf16.vlgmr.msra.gmra.mrb[0].mxu0 %v744_v32 }
  0x24   :  { %453 = vmatmul.mubr.bf16.vlgmr.msra.gmra.mrb[0].mxu1 %v747_v34  ;;  %701 = vmatpush3.bf16.msra.mxu0 %v750_v36 }
  0x25   :  { %702 = vmatprep.subr.bf16.mxu0 %v751_v37  ;;  %411 = vmatprep.mubr.bf16.mxu0 %v752_v38 }
  0x26   :  { %460 = vmatprep.mubr.bf16.mxu1 %v754_v39 }
  0x28   :  { %703 = vmatpush3.bf16.msra.mxu0 %v751_v37 }
  0x29   :  { %704 = vmatprep.subr.bf16.mxu0 %v758_v41 }
  0x2b   :  { %412 = vmatmul.mubr.bf16.gmra.mrb[4].mxu0 %v756_v40 }
  0x2c   :  { %461 = vmatmul.mubr.bf16.gmra.mrb[4].mxu1 %v757_v42  ;;  %708 = vmatprep.mubr.msk.bf16.mxu0 %vm364_vm0, %v760_v43 }
  0x2d   :  { %705 = vmatpush3.bf16.msra.mxu0 %v758_v41 }
  0x2e   :  { %706 = vmatprep.subr.bf16.mxu0 %v759_v44 }
  0x31   :  { %707 = vmatpush3.bf16.msra.mxu0 %v759_v44 }
  0x34   :  { %709 = vmatmul.mubr.msk.bf16.vlgmr.msra.gmra.mrb[8].mxu0 %vm364_vm0, %v761_v45 }
  0xf6   :  { %v654_v46 = vpop.f32.mrb[0].mxu0 }
  0xf7   :  { %v682_v47 = vpop.f32.mrb[0].mxu1  ;;  %v655_v48 = vpop.f32.mrb[1].mxu0 }
  0xf8   :  { %v656_v49 = vadd.f32 %v655_v48, %v654_v46  ;;  %v683_v50 = vpop.f32.mrb[1].mxu1  ;;  %v657_v51 = vpop.f32.mrb[2].mxu0 }
  0xf9   :  { %v684_v52 = vadd.f32 %v683_v50, %v682_v47  ;;  %v685_v53 = vpop.f32.mrb[2].mxu1  ;;  %v658_v54 = vpop.f32.mrb[3].mxu0 }
  0xfa   :  { %v659_v55 = vadd.f32 %v658_v54, %v657_v51  ;;  %v686_v56 = vpop.f32.mrb[3].mxu1 }
  0xfb   :  { %v687_v57 = vadd.f32 %v686_v56, %v685_v53  ;;  %v455_v58 = vadd.f32 %v684_v52, %v656_v49 }
  0xfd   :  { %v458_v59 = vadd.f32 %v687_v57, %v659_v55 }
  0xfe   :  { %v660_v60 = vpop.f32.mrb[4].mxu0 }
  0xff   :  { %v688_v61 = vpop.f32.mrb[4].mxu1  ;;  %v661_v62 = vpop.f32.mrb[5].mxu0 }
 0x100   :  { %v662_v63 = vadd.f32 %v661_v62, %v660_v60  ;;  %v689_v0 = vpop.f32.mrb[5].mxu1  ;;  %v663_v1 = vpop.f32.mrb[6].mxu0 }
 0x101   :  { %v690_v2 = vadd.f32 %v689_v0, %v688_v61  ;;  %v691_v3 = vpop.f32.mrb[6].mxu1  ;;  %v664_v4 = vpop.f32.mrb[7].mxu0 }
 0x102   :  { %v665_v5 = vadd.f32 %v664_v4, %v663_v1  ;;  %v692_v6 = vpop.f32.mrb[7].mxu1 }
 0x103   :  { %v693_v7 = vadd.f32 %v692_v6, %v691_v3  ;;  %v463_v8 = vadd.f32 %v690_v2, %v662_v63 }
 0x105   :  { %v466_v9 = vadd.f32 %v693_v7, %v665_v5 }
 0x107   :  { %v710_v10 = vpop.f32.mrb[8].mxu0 }
 0x108   :  { %v512_v11 = vadd.f32 %v710_v10, %v463_v8  ;;  %v503_v12 = vpop.f32.mrb[9].mxu0 }
 0x109   :  { %v504_v13 = vadd.f32 %v503_v12, %v455_v58  ;;  %v711_v14 = vpop.f32.mrb[10].mxu0 }
 0x10a   :  { %v515_v15 = vadd.f32 %v711_v14, %v466_v9  ;;  %v506_v16 = vpop.f32.mrb[11].mxu0  ;;  %v549_v23 = vmul.f32 %v512_v11, %v512_v11 }
 0x10b   :  { %v507_v17 = vadd.f32 %v506_v16, %v458_v59  ;;  %v547_v19 = vmul.f32 %v504_v13, %v504_v13 }
 0x10c   :  { %v635_v18 = vpack.c.bf16 %v515_v15, %v512_v11  ;;  %v550_v26 = vmul.f32 %v515_v15, %v515_v15 }
 0x10d   :  { %v630_v20 = vpack.c.bf16 %v507_v17, %v504_v13  ;;  %v538_v21 = vadd.f32 %v507_v17, %v504_v13  ;;  %v548_v22 = vmul.f32 %v507_v17, %v507_v17 }
 0x10e   :  { %637 = vst [vmem:[%s931_s2 + $0x8] sm:$0xff] %v635_v18  }
 0x10f   :  { %631 = vst [vmem:[%s931_s2] sm:$0xff] %v630_v20   ;;  %v539_v24 = vadd.f32 %v538_v21, %v512_v11  ;;  %v551_v25 = vadd.f32 %v548_v22, %v547_v19 }
 0x111   :  { %v540_v27 = vadd.f32 %v539_v24, %v515_v15  ;;  %v552_v28 = vadd.f32 %v551_v25, %v549_v23 }
 0x113   :  { %v541_v29 = vrot.slane %v540_v27, 4  ;;  %v553_v30 = vadd.f32 %v552_v28, %v550_v26 }
 0x115   :  { %v542_v31 = vadd.f32 %v541_v29, %v540_v27  ;;  %v554_v32 = vrot.slane %v553_v30, 4 }
 0x117   :  { %v543_v33 = vrot.slane %v542_v31, 2  ;;  %v555_v34 = vadd.f32 %v554_v32, %v553_v30 }
 0x119   :  { %v544_v35 = vadd.f32 %v543_v33, %v542_v31  ;;  %v556_v36 = vrot.slane %v555_v34, 2 }
 0x11b   :  { %v545_v37 = vrot.slane %v544_v35, 1  ;;  %v557_v38 = vadd.f32 %v556_v36, %v555_v34 }
 0x11d   :  { %v558_v39 = vrot.slane %v557_v38, 1  ;;  %v546_v40 = vadd.f32 %v545_v37, %v544_v35 }
 0x11f   :  { %v559_v41 = vadd.f32 %v558_v39, %v557_v38 }
 0x121   :  { %v561_v42 = vsel %vm560_vm1, %v546_v40, %v559_v41 }
 0x122   :  { %562 = vst [vmem:[%s932_s3] sm:$0x3] %v561_v42 }

// kernel: _lambda_.30
= control target key start
LH: loop header
LB: loop body
LE: loop exit
PB: predicated region body
PF: predicated region fallthrough
CT: control target
= control target key end

     0   :  { %v192_v0 = vmov 0.0   ;;  %vm193_vm0 = vmmov 0   ;;  %vm134_vm1 = vcmask 1040384   ;;  %s247_s1 = inlined_call_operand.vmem [shape: bf16[128,128], index: 1, kind: input, shape index: {}]   ;;  %s248_s0 = inlined_call_operand.vmem [shape: bf16[8,128], index: 0, kind: input, shape index: {}]   ;;  %s249_s2 = inlined_call_operand.vmem [shape: bf16[8,128], index: 2, kind: output, shape index: {0}]   ;;  %s250_s3 = inlined_call_operand.vmem [shape: f32[1,2,128], index: 3, kind: output, shape index: {1}]  }
   0x1   :  { %162 = vmatprep.subr.bf16.mxu0 %v192_v0  ;;  %v184_v1 = vld [vmem:[%s247_s1] sm:$0xff]   ;;  %178 = vmatprep.mubr.msk.bf16.mxu0 %vm193_vm0, %v192_v0  ;;  %v185_v2 = vld [vmem:[%s247_s1 + $0x8] sm:$0xff]   ;;  %v186_v3 = vld [vmem:[%s247_s1 + $0x10] sm:$0xff]  }
   0x2   :  { %163 = vmatpush3.bf16.msra.mxu0 %v184_v1  ;;  %v187_v4 = vld [vmem:[%s247_s1 + $0x18] sm:$0xff]   ;;  %v188_v5 = vld [vmem:[%s247_s1 + $0x20] sm:$0xff]   ;;  %v189_v6 = vld [vmem:[%s247_s1 + $0x28] sm:$0xff]  }
   0x3   :  { %164 = vmatprep.subr.bf16.mxu0 %v192_v0  ;;  %v190_v7 = vld [vmem:[%s247_s1 + $0x30] sm:$0xff]   ;;  %v191_v8 = vld [vmem:[%s247_s1 + $0x38] sm:$0xff]   ;;  %v14_v9 = vld [vmem:[%s248_s0] sm:$0xf] }
   0x6   :  { %165 = vmatpush3.bf16.msra.mxu0 %v185_v2 }
   0x7   :  { %166 = vmatprep.subr.bf16.mxu0 %v192_v0 }
   0xa   :  { %167 = vmatpush3.bf16.msra.mxu0 %v186_v3 }
   0xb   :  { %168 = vmatprep.subr.bf16.mxu0 %v192_v0 }
   0xe   :  { %169 = vmatpush3.bf16.msra.mxu0 %v187_v4 }
   0xf   :  { %170 = vmatprep.subr.bf16.mxu0 %v192_v0 }
  0x12   :  { %171 = vmatpush3.bf16.msra.mxu0 %v188_v5 }
  0x13   :  { %172 = vmatprep.subr.bf16.mxu0 %v192_v0 }
  0x16   :  { %173 = vmatpush3.bf16.msra.mxu0 %v189_v6 }
  0x17   :  { %174 = vmatprep.subr.bf16.mxu0 %v192_v0 }
  0x1a   :  { %175 = vmatpush3.bf16.msra.mxu0 %v190_v7 }
  0x1b   :  { %176 = vmatprep.subr.bf16.mxu0 %v192_v0 }
  0x1e   :  { %177 = vmatpush3.bf16.msra.mxu0 %v191_v8 }
  0x21   :  { %179 = vmatmul.mubr.bf16.vlgmr.msra.gmra.mrb[0].mxu0 %v14_v9 }
  0xf4   :  { %v113_v10 = vpop.f32.mrb[0].mxu0 }
  0xf5   :  { %v119_v11 = vpack.c.bf16 %v113_v10, %v113_v10  ;;  %v121_v12 = vrot.slane %v113_v10, 4  ;;  %v127_v13 = vmul.f32 %v113_v10, %v113_v10  ;;  %v180_v14 = vpop.f32.mrb[1].mxu0 }
  0xf6   :  { %v116_v15 = vpop.f32.mrb[2].mxu0 }
  0xf7   :  { %120 = vst [vmem:[%s249_s2] sm:$0xf] %v119_v11  ;;  %v122_v16 = vadd.f32 %v121_v12, %v113_v10  ;;  %v128_v17 = vrot.slane %v127_v13, 4  ;;  %v181_v18 = vpop.f32.mrb[3].mxu0 }
  0xf9   :  { %v123_v19 = vrot.slane %v122_v16, 2  ;;  %v129_v20 = vadd.f32 %v128_v17, %v127_v13 }
  0xfb   :  { %v124_v21 = vadd.f32 %v123_v19, %v122_v16  ;;  %v130_v22 = vrot.slane %v129_v20, 2 }
  0xfd   :  { %v125_v23 = vrot.slane %v124_v21, 1  ;;  %v131_v24 = vadd.f32 %v130_v22, %v129_v20 }
  0xff   :  { %v132_v25 = vrot.slane %v131_v24, 1  ;;  %v126_v26 = vadd.f32 %v125_v23, %v124_v21 }
 0x101   :  { %v133_v27 = vadd.f32 %v132_v25, %v131_v24 }
 0x103   :  { %v135_v28 = vsel %vm134_vm1, %v126_v26, %v133_v27 }
 0x104   :  { %136 = vst [vmem:[%s250_s3] sm:$0x3] %v135_v28 }

// kernel: _lambda_.31
= control target key start
LH: loop header
LB: loop body
LE: loop exit
PB: predicated region body
PF: predicated region fallthrough
CT: control target
= control target key end

     0   :  { %v76_v7 = vmov 1966171168   ;;  %v33_v9 = vlaneseq  ;;  %s117_s0 = inlined_call_operand.vmem [shape: f32[1,2,128], index: 0, kind: input, shape index: {}]   ;;  %s118_s1 = inlined_call_operand.vmem [shape: f32[1,128], index: 1, kind: input, shape index: {}]   ;;  %s119_s3 = inlined_call_operand.vmem [shape: bf16[8,128], index: 3, kind: input, shape index: {}]   ;;  %s120_s2 = inlined_call_operand.vmem [shape: f32[1,128], index: 2, kind: input, shape index: {}]   ;;  %s121_s4 = inlined_call_operand.vmem [shape: bf16[8,128], index: 4, kind: output, shape index: {}]  }
   0x1   :  { %v17_v0 = vld [vmem:[%s117_s0] sm:$0x3]  ;;  %v31_v8 = vunpack.c.l.s4 %v76_v7 }
   0x2   :  { %v19_v1 = vmul.f32 0.125, %v17_v0  ;;  %v34_v11 = vshrl.u32 %v33_v9, 7  ;;  %v26_v16 = vld [vmem:[%s118_s1] sm:$0x1] }
   0x3   :  { %v32_v10 = vunpack.c.0.s8 %v31_v8  ;;  %v50_v17 = vld [vmem:[%s119_s3] sm:$0xf] }
   0x4   :  { %v20_v2 = vmul.f32 %v19_v1, %v19_v1  ;;  %v55_v19 = vsub.s32 0, %v34_v11  ;;  %v51_v21 = vunpack.c.l.bf16 %v50_v17  ;;  %v47_v22 = vld [vmem:[%s120_s2] sm:$0x1] }
   0x5   :  { %v35_v12 = vsub.s32 %v32_v10, %v34_v11 }
   0x6   :  { %v22_v3 = vrot.slane %v20_v2, 7 }
   0x8   :  { %v24_v4 = vsub.f32 %v19_v1, %v22_v3 }
   0xa   :  { %v25_v5 = vmax.f32 %v24_v4, 0.0 }
   0xc   :  { %v27_v6 = vadd.f32 1e-05, %v25_v5 }
   0xe   :  { %74 = vrsqrt.f32 %v27_v6 }
  0x18   :  { %v75_v13 = vpop.eup %74 }
  0x19   :  { %v36_v14 = vrot.slane %v75_v13, %v35_v12 }
  0x1b   :  { %v37_v15 = vcombine.high %v36_v14, %v36_v14 }
  0x1d   :  { %v44_v18 = vrot.slane %v37_v15, %v35_v12 }
  0x1f   :  { %v46_v20 = vmul.f32 %v44_v18, %v26_v16 }
  0x21   :  { %v48_v23 = vmul.f32 %v46_v20, %v19_v1  ;;  %v56_v24 = vrot.slane %v46_v20, %v55_v19 }
  0x23   :  { %v49_v25 = vsub.f32 %v47_v22, %v48_v23  ;;  %v58_v26 = vmul.f32 %v56_v24, %v51_v21 }
  0x25   :  { %v63_v27 = vrot.slane %v49_v25, %v55_v19 }
  0x27   :  { %v65_v28 = vadd.f32 %v63_v27, %v58_v26 }
  0x29   :  { %v66_v29 = vmax.f32 %v65_v28, 0.0 }
  0x2b   :  { %v67_v30 = vpack.c.bf16 %v66_v29, %v66_v29 }
  0x2d   :  { %68 = vst [vmem:[%s121_s4] sm:$0xf] %v67_v30 }

// kernel: _lambda_.35
= control target key start
LH: loop header
LB: loop body
LE: loop exit
PB: predicated region body
PF: predicated region fallthrough
CT: control target
= control target key end

     0   :  { %v127_v7 = vmov 1966171168   ;;  %v33_v9 = vlaneseq  ;;  %vm98_vm0 = vcmask 257024   ;;  %s180_s0 = inlined_call_operand.vmem [shape: f32[1,2,32], index: 0, kind: input, shape index: {}]   ;;  %s181_s1 = inlined_call_operand.vmem [shape: f32[1,32], index: 1, kind: input, shape index: {}]   ;;  %s182_s3 = inlined_call_operand.vmem [shape: bf16[32,32], index: 3, kind: input, shape index: {}]   ;;  %s183_s2 = inlined_call_operand.vmem [shape: f32[1,32], index: 2, kind: input, shape index: {}]   ;;  %s184_s4 = inlined_call_operand.vmem [shape: bf16[32,32], index: 4, kind: output, shape index: {}]  }
   0x1   :  { %v17_v0 = vld [vmem:[%s180_s0] sm:$0x3]  ;;  %v31_v8 = vunpack.c.l.s4 %v127_v7  ;;  %v123_v18 = vld [vmem:[%s182_s3 + $0x8] sm:$0xff]  }
   0x2   :  { %v19_v1 = vmul.f32 0.03125, %v17_v0  ;;  %v34_v11 = vshrl.u32 %v33_v9, 7  ;;  %v26_v16 = vld [vmem:[%s181_s1] sm:$0x1]  ;;  %v121_v24 = vunpack.c.l.bf16 %v123_v18  ;;  %v122_v26 = vunpack.c.h.bf16 %v123_v18 }
   0x3   :  { %v32_v10 = vunpack.c.0.s8 %v31_v8  ;;  %v116_v17 = vld [vmem:[%s182_s3] sm:$0xff]  }
   0x4   :  { %v20_v2 = vmul.f32 %v19_v1, %v19_v1  ;;  %v61_v20 = vsub.s32 0, %v34_v11  ;;  %v117_v22 = vunpack.c.l.bf16 %v116_v17  ;;  %v118_v23 = vunpack.c.h.bf16 %v116_v17  ;;  %v47_v25 = vld [vmem:[%s183_s2] sm:$0x1] }
   0x5   :  { %v35_v12 = vsub.s32 %v32_v10, %v34_v11 }
   0x6   :  { %v22_v3 = vrot.slane %v20_v2, 7 }
   0x8   :  { %v24_v4 = vsub.f32 %v19_v1, %v22_v3 }
   0xa   :  { %v25_v5 = vmax.f32 %v24_v4, 0.0 }
   0xc   :  { %v27_v6 = vadd.f32 1e-05, %v25_v5 }
   0xe   :  { %125 = vrsqrt.f32 %v27_v6 }
  0x18   :  { %v126_v13 = vpop.eup %125 }
  0x19   :  { %v36_v14 = vrot.slane %v126_v13, %v35_v12 }
  0x1b   :  { %v37_v15 = vcombine.high %v36_v14, %v36_v14 }
  0x1d   :  { %v44_v19 = vrot.slane %v37_v15, %v35_v12 }
  0x1f   :  { %v46_v21 = vmul.f32 %v44_v19, %v26_v16 }
  0x21   :  { %v48_v27 = vmul.f32 %v46_v21, %v19_v1  ;;  %v62_v28 = vrot.slane %v46_v21, %v61_v20 }
  0x23   :  { %v49_v29 = vsub.f32 %v47_v25, %v48_v27  ;;  %v64_v30 = vmul.f32 %v117_v22, %v62_v28  ;;  %v65_v31 = vmul.f32 %v118_v23, %v62_v28  ;;  %v66_v32 = vmul.f32 %v121_v24, %v62_v28 }
  0x24   :  { %v67_v33 = vmul.f32 %v122_v26, %v62_v28 }
  0x25   :  { %v72_v34 = vrot.slane %v49_v29, %v61_v20 }
  0x27   :  { %v74_v35 = vadd.f32 %v72_v34, %v64_v30  ;;  %v75_v36 = vadd.f32 %v72_v34, %v65_v31  ;;  %v76_v37 = vadd.f32 %v72_v34, %v66_v32  ;;  %v77_v38 = vadd.f32 %v72_v34, %v67_v33 }
  0x29   :  { %v78_v39 = vmax.f32 %v74_v35, 0.0  ;;  %v79_v40 = vmax.f32 %v75_v36, 0.0  ;;  %v80_v41 = vmax.f32 %v76_v37, 0.0  ;;  %v81_v42 = vmax.f32 %v77_v38, 0.0 }
  0x2b   :  { %v111_v43 = vpack.c.bf16 %v78_v39, %v78_v39  ;;  %v112_v44 = vpack.c.bf16 %v79_v40, %v79_v40  ;;  %v113_v45 = vpack.c.bf16 %v80_v41, %v80_v41  ;;  %v114_v46 = vpack.c.bf16 %v81_v42, %v81_v42 }
  0x2d   :  { %99 = vst.msk [vmem:[%s184_s4] sm:$0xf] %vm98_vm0, %v111_v43  ;;  %100 = vst.msk [vmem:[%s184_s4 + $0x4] sm:$0xf] %vm98_vm0, %v112_v44 }
  0x2e   :  { %101 = vst.msk [vmem:[%s184_s4 + $0x8] sm:$0xf] %vm98_vm0, %v113_v45  ;;  %102 = vst.msk [vmem:[%s184_s4 + $0xc] sm:$0xf] %vm98_vm0, %v114_v46 }

// kernel: _lambda_.34
= control target key start
LH: loop header
LB: loop body
LE: loop exit
PB: predicated region body
PF: predicated region fallthrough
CT: control target
= control target key end

     0   :  { %vm963_vm0 = vcmask 257024   ;;  %vm968_vm1 = vcmask 261120   ;;  %vm999_vm2 = vcmask 1040384   ;;  %vm1001_vm3 = vcmask 254976   ;;  %s1666_s1 = inlined_call_operand.vmem [shape: bf16[1152,32], index: 1, kind: input, shape index: {}]   ;;  %s1667_s0 = inlined_call_operand.vmem [shape: bf16[32,1152], index: 0, kind: input, shape index: {}]   ;;  %s1668_s2 = inlined_call_operand.vmem [shape: bf16[32,32], index: 2, kind: output, shape index: {0}]   ;;  %s1669_s3 = inlined_call_operand.vmem [shape: f32[1,2,32], index: 3, kind: output, shape index: {1}]  }
   0x1   :  { %v1251_v0 = vld [vmem:[%s1666_s1 + $0x40] sm:$0xff]   ;;  %v1255_v4 = vld [vmem:[%s1666_s1 + $0x48] sm:$0xff]   ;;  %v1259_v8 = vld [vmem:[%s1666_s1 + $0x50] sm:$0xff]  }
   0x2   :  { %v1252_v1 = vld [vmem:[%s1666_s1 + $0xc0] sm:$0xff]   ;;  %1109 = vmatprep.subr.bf16.mxu0 %v1251_v0  ;;  %v1256_v5 = vld [vmem:[%s1666_s1 + $0xc8] sm:$0xff]   ;;  %v1260_v9 = vld [vmem:[%s1666_s1 + $0xd0] sm:$0xff]  }
   0x3   :  { %v1253_v2 = vld [vmem:[%s1666_s1] sm:$0xff]   ;;  %1137 = vmatprep.subr.bf16.mxu1 %v1252_v1  ;;  %v1257_v6 = vld [vmem:[%s1666_s1 + $0x8] sm:$0xff]   ;;  %v1261_v10 = vld [vmem:[%s1666_s1 + $0x10] sm:$0xff]  }
   0x4   :  { %v1254_v3 = vld [vmem:[%s1666_s1 + $0x80] sm:$0xff]   ;;  %1110 = vmatpush3.bf16.msra.mxu0 %v1253_v2  ;;  %v1258_v7 = vld [vmem:[%s1666_s1 + $0x88] sm:$0xff]   ;;  %v1262_v11 = vld [vmem:[%s1666_s1 + $0x90] sm:$0xff]  }
   0x5   :  { %1138 = vmatpush3.bf16.msra.mxu1 %v1254_v3  ;;  %1111 = vmatprep.subr.bf16.mxu0 %v1255_v4  ;;  %v1263_v12 = vld [vmem:[%s1666_s1 + $0x58] sm:$0xff]   ;;  %v1267_v16 = vld [vmem:[%s1666_s1 + $0x60] sm:$0xff]   ;;  %v1271_v20 = vld [vmem:[%s1666_s1 + $0x68] sm:$0xff]  }
   0x6   :  { %1139 = vmatprep.subr.bf16.mxu1 %v1256_v5  ;;  %v1264_v13 = vld [vmem:[%s1666_s1 + $0xd8] sm:$0xff]   ;;  %v1268_v17 = vld [vmem:[%s1666_s1 + $0xe0] sm:$0xff]   ;;  %v1272_v21 = vld [vmem:[%s1666_s1 + $0xe8] sm:$0xff]  }
   0x7   :  { %v1265_v14 = vld [vmem:[%s1666_s1 + $0x18] sm:$0xff]   ;;  %v1269_v18 = vld [vmem:[%s1666_s1 + $0x20] sm:$0xff]   ;;  %v1273_v22 = vld [vmem:[%s1666_s1 + $0x28] sm:$0xff]  }
   0x8   :  { %1112 = vmatpush3.bf16.msra.mxu0 %v1257_v6  ;;  %v1266_v15 = vld [vmem:[%s1666_s1 + $0x98] sm:$0xff]   ;;  %v1270_v19 = vld [vmem:[%s1666_s1 + $0xa0] sm:$0xff]   ;;  %v1274_v23 = vld [vmem:[%s1666_s1 + $0xa8] sm:$0xff]  }
   0x9   :  { %1140 = vmatpush3.bf16.msra.mxu1 %v1258_v7  ;;  %1113 = vmatprep.subr.bf16.mxu0 %v1259_v8  ;;  %v1275_v24 = vld [vmem:[%s1666_s1 + $0x70] sm:$0xff]   ;;  %v1279_v28 = vld [vmem:[%s1666_s1 + $0x78] sm:$0xff]   ;;  %v1283_v32 = vld [vmem:[%s1667_s0] ss:$36 sps:$4 sm:$0xff]  }
   0xa   :  { %1141 = vmatprep.subr.bf16.mxu1 %v1260_v9  ;;  %v1276_v25 = vld [vmem:[%s1666_s1 + $0xf0] sm:$0xff]   ;;  %v1280_v29 = vld [vmem:[%s1666_s1 + $0xf8] sm:$0xff]   ;;  %v1285_v33 = vld [vmem:[%s1667_s0 + $0x4] ss:$36 sps:$4 sm:$0xff]  }
   0xb   :  { %v1277_v26 = vld [vmem:[%s1666_s1 + $0x30] sm:$0xff]   ;;  %v1281_v30 = vld [vmem:[%s1666_s1 + $0x38] sm:$0xff]   ;;  %v1286_v34 = vld [vmem:[%s1667_s0 + $0x8] ss:$36 sps:$4 sm:$0xff]   ;;  %734 = vmatprep.mubr.bf16.mxu0 %v1285_v33 }
   0xc   :  { %1114 = vmatpush3.bf16.msra.mxu0 %v1261_v10  ;;  %v1278_v27 = vld [vmem:[%s1666_s1 + $0xb0] sm:$0xff]   ;;  %v1282_v31 = vld [vmem:[%s1666_s1 + $0xb8] sm:$0xff]   ;;  %v1289_v36 = vld [vmem:[%s1666_s1 + $0x140] sm:$0xff]  }
   0xd   :  { %1142 = vmatpush3.bf16.msra.mxu1 %v1262_v11  ;;  %1115 = vmatprep.subr.bf16.mxu0 %v1263_v12  ;;  %v1288_v35 = vld [vmem:[%s1667_s0 + $0xc] ss:$36 sps:$4 sm:$0xff]   ;;  %v1290_v37 = vld [vmem:[%s1666_s1 + $0x100] sm:$0xff]   ;;  %v1301_v48 = vld [vmem:[%s1666_s1 + $0x158] sm:$0xff]  }
   0xe   :  { %1143 = vmatprep.subr.bf16.mxu1 %v1264_v13  ;;  %783 = vmatprep.mubr.bf16.mxu1 %v1288_v35  ;;  %v1291_v38 = vld [vmem:[%s1666_s1 + $0x1c0] sm:$0xff]   ;;  %v1293_v40 = vld [vmem:[%s1666_s1 + $0x148] sm:$0xff]   ;;  %v1297_v44 = vld [vmem:[%s1666_s1 + $0x150] sm:$0xff]  }
   0xf   :  { %v1292_v39 = vld [vmem:[%s1666_s1 + $0x180] sm:$0xff]   ;;  %v1294_v41 = vld [vmem:[%s1666_s1 + $0x108] sm:$0xff]   ;;  %v1298_v45 = vld [vmem:[%s1666_s1 + $0x110] sm:$0xff]  }
  0x10   :  { %1116 = vmatpush3.bf16.msra.mxu0 %v1265_v14  ;;  %v1295_v42 = vld [vmem:[%s1666_s1 + $0x1c8] sm:$0xff]   ;;  %v1299_v46 = vld [vmem:[%s1666_s1 + $0x1d0] sm:$0xff]   ;;  %v1302_v49 = vld [vmem:[%s1666_s1 + $0x118] sm:$0xff]  }
  0x11   :  { %1144 = vmatpush3.bf16.msra.mxu1 %v1266_v15  ;;  %1117 = vmatprep.subr.bf16.mxu0 %v1267_v16  ;;  %v1296_v43 = vld [vmem:[%s1666_s1 + $0x188] sm:$0xff]   ;;  %v1300_v47 = vld [vmem:[%s1666_s1 + $0x190] sm:$0xff]   ;;  %v1303_v50 = vld [vmem:[%s1666_s1 + $0x1d8] sm:$0xff]  }
  0x12   :  { %1145 = vmatprep.subr.bf16.mxu1 %v1268_v17  ;;  %v1304_v51 = vld [vmem:[%s1666_s1 + $0x198] sm:$0xff]   ;;  %v1305_v52 = vld [vmem:[%s1666_s1 + $0x160] sm:$0xff]   ;;  %v1309_v56 = vld [vmem:[%s1666_s1 + $0x168] sm:$0xff]  }
  0x13   :  { %v1306_v53 = vld [vmem:[%s1666_s1 + $0x120] sm:$0xff]   ;;  %v1310_v57 = vld [vmem:[%s1667_s0 + $0x4c] ss:$36 sps:$4 sm:$0xff]   ;;  %v1312_v58 = vld [vmem:[%s1667_s0 + $0x54] ss:$36 sps:$4 sm:$0xff]  }
  0x14   :  { %1118 = vmatpush3.bf16.msra.mxu0 %v1269_v18  ;;  %v1307_v54 = vld [vmem:[%s1666_s1 + $0x1e0] sm:$0xff]   ;;  %v1314_v59 = vld [vmem:[%s1666_s1 + $0x128] sm:$0xff]   ;;  %v1316_v61 = vld [vmem:[%s1667_s0 + $0x50] ss:$36 sps:$4 sm:$0xff]  }
  0x15   :  { %1146 = vmatpush3.bf16.msra.mxu1 %v1270_v19  ;;  %1119 = vmatprep.subr.bf16.mxu0 %v1271_v20  ;;  %v1308_v55 = vld [vmem:[%s1666_s1 + $0x1a0] sm:$0xff]   ;;  %v1315_v60 = vld [vmem:[%s1667_s0 + $0x48] ss:$36 sps:$4 sm:$0xff]   ;;  %v1319_v0 = vld [vmem:[%s1666_s1 + $0x170] sm:$0xff]  }
  0x16   :  { %1147 = vmatprep.subr.bf16.mxu1 %v1272_v21  ;;  %v1317_v62 = vld [vmem:[%s1666_s1 + $0x1e8] sm:$0xff]   ;;  %v1320_v1 = vld [vmem:[%s1666_s1 + $0x130] sm:$0xff]   ;;  %v1323_v4 = vld [vmem:[%s1666_s1 + $0x178] sm:$0xff]  }
  0x17   :  { %v1318_v63 = vld [vmem:[%s1666_s1 + $0x1a8] sm:$0xff]   ;;  %v1321_v2 = vld [vmem:[%s1666_s1 + $0x1f0] sm:$0xff]   ;;  %v1324_v5 = vld [vmem:[%s1666_s1 + $0x138] sm:$0xff]  }
  0x18   :  { %1120 = vmatpush3.bf16.msra.mxu0 %v1273_v22  ;;  %v1322_v3 = vld [vmem:[%s1666_s1 + $0x1b0] sm:$0xff]   ;;  %v1325_v6 = vld [vmem:[%s1666_s1 + $0x1f8] sm:$0xff]   ;;  %v1330_v10 = vld [vmem:[%s1666_s1 + $0x200] sm:$0xff]  }
  0x19   :  { %1148 = vmatpush3.bf16.msra.mxu1 %v1274_v23  ;;  %1121 = vmatprep.subr.bf16.mxu0 %v1275_v24  ;;  %v1326_v7 = vld [vmem:[%s1667_s0 + $0x10] ss:$36 sps:$4 sm:$0xff]   ;;  %v1329_v9 = vld [vmem:[%s1666_s1 + $0x1b8] sm:$0xff]   ;;  %v1334_v13 = vld [vmem:[%s1666_s1 + $0x208] sm:$0xff]  }
  0x1a   :  { %1149 = vmatprep.subr.bf16.mxu1 %v1276_v25  ;;  %v1328_v8 = vld [vmem:[%s1667_s0 + $0x14] ss:$36 sps:$4 sm:$0xff]   ;;  %v1333_v12 = vld [vmem:[%s1667_s0 + $0x1c] ss:$36 sps:$4 sm:$0xff]   ;;  %v1339_v17 = vld [vmem:[%s1667_s0 + $0x64] ss:$36 sps:$4 sm:$0xff]  }
  0x1b   :  { %v1331_v11 = vld [vmem:[%s1667_s0 + $0x18] ss:$36 sps:$4 sm:$0xff]   ;;  %v1338_v16 = vld [vmem:[%s1666_s1 + $0x210] sm:$0xff]   ;;  %v1341_v18 = vld [vmem:[%s1667_s0 + $0x60] ss:$36 sps:$4 sm:$0xff]  }
  0x1c   :  { %1122 = vmatpush3.bf16.msra.mxu0 %v1277_v26  ;;  %v1335_v14 = vld [vmem:[%s1667_s0 + $0x5c] ss:$36 sps:$4 sm:$0xff]   ;;  %v1344_v22 = vld [vmem:[%s1666_s1 + $0x228] sm:$0xff]   ;;  %v1345_v23 = vld [vmem:[%s1666_s1 + $0x230] sm:$0xff]  }
  0x1d   :  { %1150 = vmatpush3.bf16.msra.mxu1 %v1278_v27  ;;  %1123 = vmatprep.subr.bf16.mxu0 %v1279_v28  ;;  %v1337_v15 = vld [vmem:[%s1667_s0 + $0x58] ss:$36 sps:$4 sm:$0xff]   ;;  %v1343_v20 = vld [vmem:[%s1666_s1 + $0x220] sm:$0xff]   ;;  %v1348_v25 = vld [vmem:[%s1667_s0 + $0x68] ss:$36 sps:$4 sm:$0xff]  }
  0x1e   :  { %1151 = vmatprep.subr.bf16.mxu1 %v1280_v29  ;;  %v1342_v19 = vld [vmem:[%s1666_s1 + $0x218] sm:$0xff]   ;;  %v1347_v21 = vld [vmem:[%s1667_s0 + $0x20] ss:$36 sps:$4 sm:$0xff]  }
  0x1f   :  { %v1346_v24 = vld [vmem:[%s1666_s1 + $0x238] sm:$0xff]  }
  0x20   :  { %1124 = vmatpush3.bf16.msra.mxu0 %v1281_v30 }
  0x21   :  { %1152 = vmatpush3.bf16.msra.mxu1 %v1282_v31  ;;  %1165 = vmatprep.subr.bf16.mxu0 %v1289_v36 }
  0x22   :  { %1193 = vmatprep.subr.bf16.mxu1 %v1291_v38 }
  0x23   :  { %735 = vmatmul.mubr.bf16.vlgmr.msra.gmra.mrb[0].mxu0 %v1283_v32 }
  0x24   :  { %784 = vmatmul.mubr.bf16.vlgmr.msra.gmra.mrb[0].mxu1 %v1286_v34  ;;  %1166 = vmatpush3.bf16.msra.mxu0 %v1290_v37 }
  0x25   :  { %1194 = vmatpush3.bf16.msra.mxu1 %v1292_v39  ;;  %1167 = vmatprep.subr.bf16.mxu0 %v1293_v40 }
  0x26   :  { %1195 = vmatprep.subr.bf16.mxu1 %v1295_v42  ;;  %742 = vmatprep.mubr.bf16.mxu0 %v1310_v57 }
  0x27   :  { %791 = vmatprep.mubr.bf16.mxu1 %v1312_v58 }
  0x28   :  { %1168 = vmatpush3.bf16.msra.mxu0 %v1294_v41 }
  0x29   :  { %1196 = vmatpush3.bf16.msra.mxu1 %v1296_v43  ;;  %1169 = vmatprep.subr.bf16.mxu0 %v1297_v44 }
  0x2a   :  { %1197 = vmatprep.subr.bf16.mxu1 %v1299_v46 }
  0x2b   :  { %743 = vmatmul.mubr.bf16.gmra.mrb[4].mxu0 %v1315_v60 }
  0x2c   :  { %1170 = vmatpush3.bf16.msra.mxu0 %v1298_v45  ;;  %792 = vmatmul.mubr.bf16.gmra.mrb[4].mxu1 %v1316_v61 }
  0x2d   :  { %1198 = vmatpush3.bf16.msra.mxu1 %v1300_v47  ;;  %1171 = vmatprep.subr.bf16.mxu0 %v1301_v48 }
  0x2e   :  { %1199 = vmatprep.subr.bf16.mxu1 %v1303_v50  ;;  %832 = vmatprep.mubr.bf16.mxu0 %v1328_v8 }
  0x2f   :  { %881 = vmatprep.mubr.bf16.mxu1 %v1333_v12 }
  0x30   :  { %1172 = vmatpush3.bf16.msra.mxu0 %v1302_v49 }
  0x31   :  { %1200 = vmatpush3.bf16.msra.mxu1 %v1304_v51  ;;  %1173 = vmatprep.subr.bf16.mxu0 %v1305_v52 }
  0x32   :  { %1201 = vmatprep.subr.bf16.mxu1 %v1307_v54 }
  0x34   :  { %1174 = vmatpush3.bf16.msra.mxu0 %v1306_v53 }
  0x35   :  { %1202 = vmatpush3.bf16.msra.mxu1 %v1308_v55  ;;  %1175 = vmatprep.subr.bf16.mxu0 %v1309_v56 }
  0x36   :  { %1203 = vmatprep.subr.bf16.mxu1 %v1317_v62 }
  0x38   :  { %1176 = vmatpush3.bf16.msra.mxu0 %v1314_v59 }
  0x39   :  { %1204 = vmatpush3.bf16.msra.mxu1 %v1318_v63  ;;  %1177 = vmatprep.subr.bf16.mxu0 %v1319_v0 }
  0x3a   :  { %1205 = vmatprep.subr.bf16.mxu1 %v1321_v2 }
  0x3c   :  { %1178 = vmatpush3.bf16.msra.mxu0 %v1320_v1 }
  0x3d   :  { %1206 = vmatpush3.bf16.msra.mxu1 %v1322_v3  ;;  %1179 = vmatprep.subr.bf16.mxu0 %v1323_v4 }
  0x3e   :  { %1207 = vmatprep.subr.bf16.mxu1 %v1325_v6 }
  0x40   :  { %1180 = vmatpush3.bf16.msra.mxu0 %v1324_v5 }
  0x41   :  { %1208 = vmatpush3.bf16.msra.mxu1 %v1329_v9  ;;  %1231 = vmatprep.subr.bf16.mxu0 %v1330_v10 }
  0x43   :  { %833 = vmatmul.mubr.bf16.vlgmr.msra.gmra.mrb[8].mxu0 %v1326_v7 }
  0x44   :  { %1232 = vmatpush3.bf16.msra.mxu0 %v1330_v10  ;;  %882 = vmatmul.mubr.bf16.vlgmr.msra.gmra.mrb[8].mxu1 %v1331_v11 }
  0x45   :  { %1233 = vmatprep.subr.bf16.mxu0 %v1334_v13  ;;  %840 = vmatprep.mubr.bf16.mxu0 %v1335_v14 }
  0x46   :  { %889 = vmatprep.mubr.bf16.mxu1 %v1339_v17 }
  0x48   :  { %1234 = vmatpush3.bf16.msra.mxu0 %v1334_v13 }
  0x49   :  { %1235 = vmatprep.subr.bf16.mxu0 %v1338_v16 }
  0x4b   :  { %841 = vmatmul.mubr.bf16.gmra.mrb[12].mxu0 %v1337_v15 }
  0x4c   :  { %1236 = vmatpush3.bf16.msra.mxu0 %v1338_v16  ;;  %890 = vmatmul.mubr.bf16.gmra.mrb[12].mxu1 %v1341_v18 }
  0x4d   :  { %1237 = vmatprep.subr.bf16.mxu0 %v1342_v19  ;;  %1247 = vmatprep.mubr.bf16.mxu0 %v1347_v21 }
  0x50   :  { %1238 = vmatpush3.bf16.msra.mxu0 %v1342_v19 }
  0x51   :  { %1239 = vmatprep.subr.bf16.mxu0 %v1343_v20 }
  0x54   :  { %1240 = vmatpush3.bf16.msra.mxu0 %v1343_v20 }
  0x55   :  { %1241 = vmatprep.subr.bf16.mxu0 %v1344_v22 }
  0x58   :  { %1242 = vmatpush3.bf16.msra.mxu0 %v1344_v22 }
  0x59   :  { %1243 = vmatprep.subr.bf16.mxu0 %v1345_v23 }
  0x5c   :  { %1244 = vmatpush3.bf16.msra.mxu0 %v1345_v23 }
  0x5d   :  { %1245 = vmatprep.subr.bf16.mxu0 %v1346_v24 }
  0x60   :  { %1246 = vmatpush3.bf16.msra.mxu0 %v1346_v24 }
  0x63   :  { %1248 = vmatmul.mubr.bf16.vlgmr.msra.gmra.mrb[16].mxu0 %v1348_v25 }
  0xf6   :  { %v1125_v26 = vpop.f32.mrb[0].mxu0 }
  0xf7   :  { %v1153_v27 = vpop.f32.mrb[0].mxu1  ;;  %v1126_v28 = vpop.f32.mrb[1].mxu0 }
  0xf8   :  { %v1127_v29 = vadd.f32 %v1126_v28, %v1125_v26  ;;  %v1154_v30 = vpop.f32.mrb[1].mxu1  ;;  %v1128_v31 = vpop.f32.mrb[2].mxu0 }
  0xf9   :  { %v1155_v32 = vadd.f32 %v1154_v30, %v1153_v27  ;;  %v1156_v33 = vpop.f32.mrb[2].mxu1  ;;  %v1129_v34 = vpop.f32.mrb[3].mxu0 }
  0xfa   :  { %v1130_v35 = vadd.f32 %v1129_v34, %v1128_v31  ;;  %v1157_v36 = vpop.f32.mrb[3].mxu1 }
  0xfb   :  { %v786_v37 = vadd.f32 %v1155_v32, %v1127_v29  ;;  %v1158_v38 = vadd.f32 %v1157_v36, %v1156_v33 }
  0xfd   :  { %v789_v39 = vadd.f32 %v1158_v38, %v1130_v35 }
  0xfe   :  { %v1131_v40 = vpop.f32.mrb[4].mxu0 }
  0xff   :  { %v1159_v41 = vpop.f32.mrb[4].mxu1  ;;  %v1132_v42 = vpop.f32.mrb[5].mxu0 }
 0x100   :  { %v1160_v43 = vpop.f32.mrb[5].mxu1  ;;  %v1133_v44 = vadd.f32 %v1132_v42, %v1131_v40  ;;  %v1134_v46 = vpop.f32.mrb[6].mxu0 }
 0x101   :  { %v1161_v45 = vadd.f32 %v1160_v43, %v1159_v41  ;;  %v1162_v47 = vpop.f32.mrb[6].mxu1  ;;  %v1135_v48 = vpop.f32.mrb[7].mxu0 }
 0x102   :  { %v1163_v49 = vpop.f32.mrb[7].mxu1  ;;  %v1136_v51 = vadd.f32 %v1135_v48, %v1134_v46 }
 0x103   :  { %v794_v50 = vadd.f32 %v1161_v45, %v1133_v44  ;;  %v1164_v52 = vadd.f32 %v1163_v49, %v1162_v47 }
 0x105   :  { %v797_v53 = vadd.f32 %v1164_v52, %v1136_v51 }
 0x116   :  { %v1181_v54 = vpop.f32.mrb[8].mxu0 }
 0x117   :  { %v1182_v55 = vpop.f32.mrb[9].mxu0  ;;  %v1209_v58 = vpop.f32.mrb[8].mxu1 }
 0x118   :  { %v1183_v56 = vadd.f32 %v1182_v55, %v1181_v54  ;;  %v1184_v57 = vpop.f32.mrb[10].mxu0  ;;  %v1210_v62 = vpop.f32.mrb[9].mxu1 }
 0x119   :  { %v1185_v59 = vpop.f32.mrb[11].mxu0  ;;  %v1211_v63 = vadd.f32 %v1210_v62, %v1209_v58  ;;  %v1212_v0 = vpop.f32.mrb[10].mxu1 }
 0x11a   :  { %v835_v60 = vadd.f32 %v1183_v56, %v786_v37  ;;  %v1186_v61 = vadd.f32 %v1185_v59, %v1184_v57  ;;  %v1213_v2 = vpop.f32.mrb[11].mxu1 }
 0x11b   :  { %v1214_v3 = vadd.f32 %v1213_v2, %v1212_v0 }
 0x11c   :  { %v838_v1 = vadd.f32 %v1186_v61, %v789_v39  ;;  %v884_v4 = vadd.f32 %v1211_v63, %v835_v60 }
 0x11e   :  { %v1187_v5 = vpop.f32.mrb[12].mxu0  ;;  %v887_v7 = vadd.f32 %v1214_v3, %v838_v1 }
 0x11f   :  { %v1188_v6 = vpop.f32.mrb[13].mxu0  ;;  %v1215_v10 = vpop.f32.mrb[12].mxu1 }
 0x120   :  { %v1189_v8 = vadd.f32 %v1188_v6, %v1187_v5  ;;  %v1190_v9 = vpop.f32.mrb[14].mxu0  ;;  %v1216_v14 = vpop.f32.mrb[13].mxu1 }
 0x121   :  { %v1191_v11 = vpop.f32.mrb[15].mxu0  ;;  %v1217_v15 = vadd.f32 %v1216_v14, %v1215_v10  ;;  %v1218_v16 = vpop.f32.mrb[14].mxu1 }
 0x122   :  { %v843_v12 = vadd.f32 %v1189_v8, %v794_v50  ;;  %v1192_v13 = vadd.f32 %v1191_v11, %v1190_v9  ;;  %v1219_v18 = vpop.f32.mrb[15].mxu1 }
 0x123   :  { %v1220_v19 = vadd.f32 %v1219_v18, %v1218_v16 }
 0x124   :  { %v846_v17 = vadd.f32 %v1192_v13, %v797_v53  ;;  %v892_v20 = vadd.f32 %v1217_v15, %v843_v12 }
 0x126   :  { %v895_v21 = vadd.f32 %v1220_v19, %v846_v17 }
 0x136   :  { %v1249_v22 = vpop.f32.mrb[16].mxu0 }
 0x137   :  { %v941_v23 = vadd.f32 %v1249_v22, %v892_v20  ;;  %v932_v24 = vpop.f32.mrb[17].mxu0 }
 0x138   :  { %v933_v25 = vadd.f32 %v932_v24, %v884_v4  ;;  %v1250_v26 = vpop.f32.mrb[18].mxu0 }
 0x139   :  { %v1107_v27 = vpack.c.bf16 %v941_v23, %v941_v23  ;;  %v944_v28 = vadd.f32 %v1250_v26, %v895_v21  ;;  %v935_v29 = vpop.f32.mrb[19].mxu0  ;;  %v984_v33 = vmul.f32 %v941_v23, %v941_v23  ;;  %v972_v40 = vsel %vm968_vm1, %v941_v23, 0.0 }
 0x13a   :  { %v1105_v30 = vpack.c.bf16 %v933_v25, %v933_v25  ;;  %v982_v31 = vmul.f32 %v933_v25, %v933_v25  ;;  %v936_v32 = vadd.f32 %v935_v29, %v887_v7  ;;  %v969_v35 = vsel %vm968_vm1, %v933_v25, 0.0 }
 0x13b   :  { %966 = vst.msk [vmem:[%s1668_s2 + $0x8] sm:$0xf] %vm963_vm0, %v1107_v27  ;;  %v1108_v34 = vpack.c.bf16 %v944_v28, %v944_v28  ;;  %v985_v42 = vmul.f32 %v944_v28, %v944_v28  ;;  %v989_v46 = vsel %vm968_vm1, %v984_v33, 0.0  ;;  %v974_v47 = vsel %vm968_vm1, %v944_v28, 0.0 }
 0x13c   :  { %964 = vst.msk [vmem:[%s1668_s2] sm:$0xf] %vm963_vm0, %v1105_v30  ;;  %v1106_v36 = vpack.c.bf16 %v936_v32, %v936_v32  ;;  %v970_v37 = vsel %vm968_vm1, %v936_v32, 0.0  ;;  %v983_v38 = vmul.f32 %v936_v32, %v936_v32  ;;  %v986_v41 = vsel %vm968_vm1, %v982_v31, 0.0 }
 0x13d   :  { %967 = vst.msk [vmem:[%s1668_s2 + $0xc] sm:$0xf] %vm963_vm0, %v1108_v34  ;;  %v971_v39 = vadd.f32 %v970_v37, %v969_v35  ;;  %v991_v50 = vsel %vm968_vm1, %v985_v42, 0.0 }
 0x13e   :  { %965 = vst.msk [vmem:[%s1668_s2 + $0x4] sm:$0xf] %vm963_vm0, %v1106_v36  ;;  %v987_v43 = vsel %vm968_vm1, %v983_v38, 0.0 }
 0x13f   :  { %v973_v44 = vadd.f32 %v972_v40, %v971_v39  ;;  %v988_v45 = vadd.f32 %v987_v43, %v986_v41 }
 0x141   :  { %v975_v48 = vadd.f32 %v974_v47, %v973_v44  ;;  %v990_v49 = vadd.f32 %v989_v46, %v988_v45 }
 0x143   :  { %v976_v51 = vrot.slane %v975_v48, 4  ;;  %v992_v52 = vadd.f32 %v991_v50, %v990_v49 }
 0x145   :  { %v977_v53 = vadd.f32 %v976_v51, %v975_v48  ;;  %v993_v54 = vrot.slane %v992_v52, 4 }
 0x147   :  { %v978_v55 = vrot.slane %v977_v53, 2  ;;  %v994_v56 = vadd.f32 %v993_v54, %v992_v52 }
 0x149   :  { %v979_v57 = vadd.f32 %v978_v55, %v977_v53  ;;  %v995_v58 = vrot.slane %v994_v56, 2 }
 0x14b   :  { %v980_v59 = vrot.slane %v979_v57, 1  ;;  %v996_v60 = vadd.f32 %v995_v58, %v994_v56 }
 0x14d   :  { %v997_v61 = vrot.slane %v996_v60, 1  ;;  %v981_v62 = vadd.f32 %v980_v59, %v979_v57 }
 0x14f   :  { %v998_v63 = vadd.f32 %v997_v61, %v996_v60 }
 0x151   :  { %v1000_v0 = vsel %vm999_vm2, %v981_v62, %v998_v63 }
 0x152   :  { %1002 = vst.msk [vmem:[%s1669_s3] sm:$0x3] %vm1001_vm3, %v1000_v0 }

// kernel: _lambda_.32
= control target key start
LH: loop header
LB: loop body
LE: loop exit
PB: predicated region body
PF: predicated region fallthrough
CT: control target
= control target key end

     0   :  { %vm1865_vm0 = vcmask 1040384   ;;  %s3110_s1 = inlined_call_operand.vmem [shape: bf16[2304,128], index: 1, kind: input, shape index: {}]   ;;  %s3111_s0 = inlined_call_operand.vmem [shape: bf16[32,2304], index: 0, kind: input, shape index: {}]   ;;  %s3112_s2 = inlined_call_operand.vmem [shape: bf16[32,128], index: 2, kind: output, shape index: {0}]   ;;  %s3113_s3 = inlined_call_operand.vmem [shape: f32[1,2,128], index: 3, kind: output, shape index: {1}]  }
   0x1   :  { %v2343_v0 = vld [vmem:[%s3110_s1 + $0x40] sm:$0xff]   ;;  %v2347_v4 = vld [vmem:[%s3110_s1 + $0x48] sm:$0xff]   ;;  %v2351_v8 = vld [vmem:[%s3110_s1 + $0x50] sm:$0xff]  }
   0x2   :  { %v2344_v1 = vld [vmem:[%s3110_s1 + $0xc0] sm:$0xff]   ;;  %2075 = vmatprep.subr.bf16.mxu0 %v2343_v0  ;;  %v2348_v5 = vld [vmem:[%s3110_s1 + $0xc8] sm:$0xff]   ;;  %v2352_v9 = vld [vmem:[%s3110_s1 + $0xd0] sm:$0xff]  }
   0x3   :  { %v2345_v2 = vld [vmem:[%s3110_s1] sm:$0xff]   ;;  %2103 = vmatprep.subr.bf16.mxu1 %v2344_v1  ;;  %v2349_v6 = vld [vmem:[%s3110_s1 + $0x8] sm:$0xff]   ;;  %v2353_v10 = vld [vmem:[%s3110_s1 + $0x10] sm:$0xff]  }
   0x4   :  { %v2346_v3 = vld [vmem:[%s3110_s1 + $0x80] sm:$0xff]   ;;  %2076 = vmatpush3.bf16.msra.mxu0 %v2345_v2  ;;  %v2350_v7 = vld [vmem:[%s3110_s1 + $0x88] sm:$0xff]   ;;  %v2354_v11 = vld [vmem:[%s3110_s1 + $0x90] sm:$0xff]  }
   0x5   :  { %2104 = vmatpush3.bf16.msra.mxu1 %v2346_v3  ;;  %2077 = vmatprep.subr.bf16.mxu0 %v2347_v4  ;;  %v2355_v12 = vld [vmem:[%s3110_s1 + $0x58] sm:$0xff]   ;;  %v2359_v16 = vld [vmem:[%s3110_s1 + $0x60] sm:$0xff]   ;;  %v2363_v20 = vld [vmem:[%s3110_s1 + $0x68] sm:$0xff]  }
   0x6   :  { %2105 = vmatprep.subr.bf16.mxu1 %v2348_v5  ;;  %v2356_v13 = vld [vmem:[%s3110_s1 + $0xd8] sm:$0xff]   ;;  %v2360_v17 = vld [vmem:[%s3110_s1 + $0xe0] sm:$0xff]   ;;  %v2364_v21 = vld [vmem:[%s3110_s1 + $0xe8] sm:$0xff]  }
   0x7   :  { %v2357_v14 = vld [vmem:[%s3110_s1 + $0x18] sm:$0xff]   ;;  %v2361_v18 = vld [vmem:[%s3110_s1 + $0x20] sm:$0xff]   ;;  %v2365_v22 = vld [vmem:[%s3110_s1 + $0x28] sm:$0xff]  }
   0x8   :  { %2078 = vmatpush3.bf16.msra.mxu0 %v2349_v6  ;;  %v2358_v15 = vld [vmem:[%s3110_s1 + $0x98] sm:$0xff]   ;;  %v2362_v19 = vld [vmem:[%s3110_s1 + $0xa0] sm:$0xff]   ;;  %v2366_v23 = vld [vmem:[%s3110_s1 + $0xa8] sm:$0xff]  }
   0x9   :  { %2106 = vmatpush3.bf16.msra.mxu1 %v2350_v7  ;;  %2079 = vmatprep.subr.bf16.mxu0 %v2351_v8  ;;  %v2367_v24 = vld [vmem:[%s3110_s1 + $0x70] sm:$0xff]   ;;  %v2371_v28 = vld [vmem:[%s3110_s1 + $0x78] sm:$0xff]   ;;  %v2375_v32 = vld [vmem:[%s3111_s0] ss:$72 sps:$4 sm:$0xff]  }
   0xa   :  { %2107 = vmatprep.subr.bf16.mxu1 %v2352_v9  ;;  %v2368_v25 = vld [vmem:[%s3110_s1 + $0xf0] sm:$0xff]   ;;  %v2372_v29 = vld [vmem:[%s3110_s1 + $0xf8] sm:$0xff]   ;;  %v2377_v33 = vld [vmem:[%s3111_s0 + $0x4] ss:$72 sps:$4 sm:$0xff]  }
   0xb   :  { %v2369_v26 = vld [vmem:[%s3110_s1 + $0x30] sm:$0xff]   ;;  %v2373_v30 = vld [vmem:[%s3110_s1 + $0x38] sm:$0xff]   ;;  %1414 = vmatprep.mubr.bf16.mxu0 %v2377_v33  ;;  %v2381_v36 = vld [vmem:[%s3110_s1 + $0x140] sm:$0xff]  }
   0xc   :  { %2080 = vmatpush3.bf16.msra.mxu0 %v2353_v10  ;;  %v2370_v27 = vld [vmem:[%s3110_s1 + $0xb0] sm:$0xff]   ;;  %v2374_v31 = vld [vmem:[%s3110_s1 + $0xb8] sm:$0xff]   ;;  %v2382_v37 = vld [vmem:[%s3110_s1 + $0x1c0] sm:$0xff]  }
   0xd   :  { %2108 = vmatpush3.bf16.msra.mxu1 %v2354_v11  ;;  %2081 = vmatprep.subr.bf16.mxu0 %v2355_v12  ;;  %v2378_v34 = vld [vmem:[%s3111_s0 + $0x8] ss:$72 sps:$4 sm:$0xff]   ;;  %v2380_v35 = vld [vmem:[%s3111_s0 + $0xc] ss:$72 sps:$4 sm:$0xff]   ;;  %v2383_v38 = vld [vmem:[%s3110_s1 + $0x100] sm:$0xff]  }
   0xe   :  { %2109 = vmatprep.subr.bf16.mxu1 %v2356_v13  ;;  %1463 = vmatprep.mubr.bf16.mxu1 %v2380_v35  ;;  %v2384_v39 = vld [vmem:[%s3110_s1 + $0x180] sm:$0xff]   ;;  %v2385_v40 = vld [vmem:[%s3110_s1 + $0x148] sm:$0xff]   ;;  %v2389_v44 = vld [vmem:[%s3110_s1 + $0x150] sm:$0xff]  }
   0xf   :  { %v2386_v41 = vld [vmem:[%s3110_s1 + $0x1c8] sm:$0xff]   ;;  %v2390_v45 = vld [vmem:[%s3110_s1 + $0x1d0] sm:$0xff]   ;;  %v2393_v48 = vld [vmem:[%s3110_s1 + $0x158] sm:$0xff]  }
  0x10   :  { %2082 = vmatpush3.bf16.msra.mxu0 %v2357_v14  ;;  %v2387_v42 = vld [vmem:[%s3110_s1 + $0x108] sm:$0xff]   ;;  %v2391_v46 = vld [vmem:[%s3110_s1 + $0x110] sm:$0xff]   ;;  %v2394_v49 = vld [vmem:[%s3110_s1 + $0x1d8] sm:$0xff]  }
  0x11   :  { %2110 = vmatpush3.bf16.msra.mxu1 %v2358_v15  ;;  %2083 = vmatprep.subr.bf16.mxu0 %v2359_v16  ;;  %v2388_v43 = vld [vmem:[%s3110_s1 + $0x188] sm:$0xff]   ;;  %v2392_v47 = vld [vmem:[%s3110_s1 + $0x190] sm:$0xff]   ;;  %v2395_v50 = vld [vmem:[%s3110_s1 + $0x118] sm:$0xff]  }
  0x12   :  { %2111 = vmatprep.subr.bf16.mxu1 %v2360_v17  ;;  %v2396_v51 = vld [vmem:[%s3110_s1 + $0x198] sm:$0xff]   ;;  %v2397_v52 = vld [vmem:[%s3110_s1 + $0x160] sm:$0xff]   ;;  %v2401_v56 = vld [vmem:[%s3110_s1 + $0x168] sm:$0xff]  }
  0x13   :  { %v2398_v53 = vld [vmem:[%s3110_s1 + $0x1e0] sm:$0xff]   ;;  %v2402_v57 = vld [vmem:[%s3110_s1 + $0x1e8] sm:$0xff]   ;;  %v2403_v58 = vld [vmem:[%s3111_s0 + $0x94] ss:$72 sps:$4 sm:$0xff]  }
  0x14   :  { %2084 = vmatpush3.bf16.msra.mxu0 %v2361_v18  ;;  %v2399_v54 = vld [vmem:[%s3110_s1 + $0x120] sm:$0xff]   ;;  %v2407_v60 = vld [vmem:[%s3110_s1 + $0x128] sm:$0xff]   ;;  %v2409_v62 = vld [vmem:[%s3111_s0 + $0x90] ss:$72 sps:$4 sm:$0xff]  }
  0x15   :  { %2112 = vmatpush3.bf16.msra.mxu1 %v2362_v19  ;;  %2085 = vmatprep.subr.bf16.mxu0 %v2363_v20  ;;  %v2400_v55 = vld [vmem:[%s3110_s1 + $0x1a0] sm:$0xff]   ;;  %v2408_v61 = vld [vmem:[%s3110_s1 + $0x1a8] sm:$0xff]   ;;  %v2411_v0 = vld [vmem:[%s3110_s1 + $0x170] sm:$0xff]  }
  0x16   :  { %2113 = vmatprep.subr.bf16.mxu1 %v2364_v21  ;;  %v2405_v59 = vld [vmem:[%s3111_s0 + $0x9c] ss:$72 sps:$4 sm:$0xff]   ;;  %v2410_v63 = vld [vmem:[%s3111_s0 + $0x98] ss:$72 sps:$4 sm:$0xff]   ;;  %v2412_v1 = vld [vmem:[%s3110_s1 + $0x1f0] sm:$0xff]  }
  0x17   :  { %v2413_v2 = vld [vmem:[%s3110_s1 + $0x130] sm:$0xff]   ;;  %v2415_v4 = vld [vmem:[%s3110_s1 + $0x178] sm:$0xff]   ;;  %v2425_v12 = vld [vmem:[%s3110_s1 + $0x240] sm:$0xff]  }
  0x18   :  { %2086 = vmatpush3.bf16.msra.mxu0 %v2365_v22  ;;  %v2414_v3 = vld [vmem:[%s3110_s1 + $0x1b0] sm:$0xff]   ;;  %v2416_v5 = vld [vmem:[%s3110_s1 + $0x1f8] sm:$0xff]   ;;  %v2426_v13 = vld [vmem:[%s3110_s1 + $0x2c0] sm:$0xff]  }
  0x19   :  { %2114 = vmatpush3.bf16.msra.mxu1 %v2366_v23  ;;  %2087 = vmatprep.subr.bf16.mxu0 %v2367_v24  ;;  %v2417_v6 = vld [vmem:[%s3110_s1 + $0x138] sm:$0xff]   ;;  %v2427_v14 = vld [vmem:[%s3110_s1 + $0x200] sm:$0xff]   ;;  %v2429_v16 = vld [vmem:[%s3110_s1 + $0x248] sm:$0xff]  }
  0x1a   :  { %2115 = vmatprep.subr.bf16.mxu1 %v2368_v25  ;;  %v2418_v7 = vld [vmem:[%s3110_s1 + $0x1b8] sm:$0xff]   ;;  %v2428_v15 = vld [vmem:[%s3110_s1 + $0x280] sm:$0xff]   ;;  %v2430_v17 = vld [vmem:[%s3110_s1 + $0x2c8] sm:$0xff]  }
  0x1b   :  { %v2419_v8 = vld [vmem:[%s3111_s0 + $0x10] ss:$72 sps:$4 sm:$0xff]   ;;  %v2421_v9 = vld [vmem:[%s3111_s0 + $0x14] ss:$72 sps:$4 sm:$0xff]   ;;  %v2431_v18 = vld [vmem:[%s3110_s1 + $0x208] sm:$0xff]  }
  0x1c   :  { %2088 = vmatpush3.bf16.msra.mxu0 %v2369_v26  ;;  %v2422_v10 = vld [vmem:[%s3111_s0 + $0x18] ss:$72 sps:$4 sm:$0xff]   ;;  %v2424_v11 = vld [vmem:[%s3111_s0 + $0x1c] ss:$72 sps:$4 sm:$0xff]   ;;  %v2432_v19 = vld [vmem:[%s3110_s1 + $0x288] sm:$0xff]  }
  0x1d   :  { %2116 = vmatpush3.bf16.msra.mxu1 %v2370_v27  ;;  %2089 = vmatprep.subr.bf16.mxu0 %v2371_v28  ;;  %v2433_v20 = vld [vmem:[%s3111_s0 + $0xa4] ss:$72 sps:$4 sm:$0xff]   ;;  %v2435_v21 = vld [vmem:[%s3111_s0 + $0xa0] ss:$72 sps:$4 sm:$0xff]   ;;  %v2436_v22 = vld [vmem:[%s3110_s1 + $0x250] sm:$0xff]  }
  0x1e   :  { %2117 = vmatprep.subr.bf16.mxu1 %v2372_v29  ;;  %v2437_v23 = vld [vmem:[%s3110_s1 + $0x2d0] sm:$0xff]   ;;  %v2443_v28 = vld [vmem:[%s3110_s1 + $0x258] sm:$0xff]   ;;  %v2448_v33 = vld [vmem:[%s3110_s1 + $0x2e0] sm:$0xff]  }
  0x1f   :  { %v2438_v24 = vld [vmem:[%s3111_s0 + $0xac] ss:$72 sps:$4 sm:$0xff]   ;;  %v2442_v27 = vld [vmem:[%s3111_s0 + $0xa8] ss:$72 sps:$4 sm:$0xff]   ;;  %v2444_v29 = vld [vmem:[%s3110_s1 + $0x2d8] sm:$0xff]  }
  0x20   :  { %2090 = vmatpush3.bf16.msra.mxu0 %v2373_v30  ;;  %v2440_v25 = vld [vmem:[%s3110_s1 + $0x210] sm:$0xff]   ;;  %v2445_v30 = vld [vmem:[%s3110_s1 + $0x218] sm:$0xff]   ;;  %v2450_v35 = vld [vmem:[%s3110_s1 + $0x2a0] sm:$0xff]  }
  0x21   :  { %2118 = vmatpush3.bf16.msra.mxu1 %v2374_v31  ;;  %2131 = vmatprep.subr.bf16.mxu0 %v2381_v36  ;;  %v2441_v26 = vld [vmem:[%s3110_s1 + $0x290] sm:$0xff]   ;;  %v2446_v31 = vld [vmem:[%s3110_s1 + $0x298] sm:$0xff]   ;;  %v2451_v36 = vld [vmem:[%s3110_s1 + $0x268] sm:$0xff]  }
  0x22   :  { %2159 = vmatprep.subr.bf16.mxu1 %v2382_v37  ;;  %v2452_v37 = vld [vmem:[%s3110_s1 + $0x2e8] sm:$0xff]  }
  0x23   :  { %1415 = vmatmul.mubr.bf16.vlgmr.msra.gmra.mrb[0].mxu0 %v2375_v32  ;;  %v2447_v32 = vld [vmem:[%s3110_s1 + $0x260] sm:$0xff]  }
  0x24   :  { %1464 = vmatmul.mubr.bf16.vlgmr.msra.gmra.mrb[0].mxu1 %v2378_v34  ;;  %2132 = vmatpush3.bf16.msra.mxu0 %v2383_v38  ;;  %v2449_v34 = vld [vmem:[%s3110_s1 + $0x220] sm:$0xff]   ;;  %v2453_v38 = vld [vmem:[%s3110_s1 + $0x228] sm:$0xff]  }
  0x25   :  { %2160 = vmatpush3.bf16.msra.mxu1 %v2384_v39  ;;  %2133 = vmatprep.subr.bf16.mxu0 %v2385_v40  ;;  %v2454_v39 = vld [vmem:[%s3110_s1 + $0x2a8] sm:$0xff]   ;;  %v2455_v40 = vld [vmem:[%s3110_s1 + $0x270] sm:$0xff]  }
  0x26   :  { %2161 = vmatprep.subr.bf16.mxu1 %v2386_v41  ;;  %1422 = vmatprep.mubr.bf16.mxu0 %v2403_v58  ;;  %v2456_v41 = vld [vmem:[%s3110_s1 + $0x2f0] sm:$0xff]   ;;  %v2475_v58 = vld [vmem:[%s3110_s1 + $0x308] sm:$0xff]  }
  0x27   :  { %1471 = vmatprep.mubr.bf16.mxu1 %v2405_v59  ;;  %v2476_v59 = vld [vmem:[%s3110_s1 + $0x388] sm:$0xff]  }
  0x28   :  { %2134 = vmatpush3.bf16.msra.mxu0 %v2387_v42  ;;  %v2457_v42 = vld [vmem:[%s3110_s1 + $0x230] sm:$0xff]  }
  0x29   :  { %2162 = vmatpush3.bf16.msra.mxu1 %v2388_v43  ;;  %2135 = vmatprep.subr.bf16.mxu0 %v2389_v44  ;;  %v2458_v43 = vld [vmem:[%s3110_s1 + $0x2b0] sm:$0xff]   ;;  %v2459_v44 = vld [vmem:[%s3110_s1 + $0x278] sm:$0xff]  }
  0x2a   :  { %2163 = vmatprep.subr.bf16.mxu1 %v2390_v45  ;;  %v2460_v45 = vld [vmem:[%s3110_s1 + $0x2f8] sm:$0xff]  }
  0x2b   :  { %1423 = vmatmul.mubr.bf16.gmra.mrb[4].mxu0 %v2409_v62  ;;  %v2480_v62 = vld [vmem:[%s3110_s1 + $0x350] sm:$0xff]  }
  0x2c   :  { %2136 = vmatpush3.bf16.msra.mxu0 %v2391_v46  ;;  %1472 = vmatmul.mubr.bf16.gmra.mrb[4].mxu1 %v2410_v63  ;;  %v2461_v46 = vld [vmem:[%s3110_s1 + $0x238] sm:$0xff]   ;;  %v2481_v63 = vld [vmem:[%s3110_s1 + $0x3d0] sm:$0xff]  }
  0x2d   :  { %2164 = vmatpush3.bf16.msra.mxu1 %v2392_v47  ;;  %2137 = vmatprep.subr.bf16.mxu0 %v2393_v48  ;;  %v2462_v47 = vld [vmem:[%s3110_s1 + $0x2b8] sm:$0xff]   ;;  %v2463_v48 = vld [vmem:[%s3111_s0 + $0x20] ss:$72 sps:$4 sm:$0xff]  }
  0x2e   :  { %2165 = vmatprep.subr.bf16.mxu1 %v2394_v49  ;;  %1512 = vmatprep.mubr.bf16.mxu0 %v2421_v9  ;;  %v2465_v49 = vld [vmem:[%s3111_s0 + $0x24] ss:$72 sps:$4 sm:$0xff]  }
  0x2f   :  { %1561 = vmatprep.mubr.bf16.mxu1 %v2424_v11  ;;  %v2492_v9 = vld [vmem:[%s3110_s1 + $0x3e0] sm:$0xff]  }
  0x30   :  { %2138 = vmatpush3.bf16.msra.mxu0 %v2395_v50  ;;  %v2466_v50 = vld [vmem:[%s3111_s0 + $0x28] ss:$72 sps:$4 sm:$0xff]   ;;  %v2494_v11 = vld [vmem:[%s3110_s1 + $0x3a0] sm:$0xff]  }
  0x31   :  { %2166 = vmatpush3.bf16.msra.mxu1 %v2396_v51  ;;  %2139 = vmatprep.subr.bf16.mxu0 %v2397_v52  ;;  %v2468_v51 = vld [vmem:[%s3111_s0 + $0x2c] ss:$72 sps:$4 sm:$0xff]   ;;  %v2469_v52 = vld [vmem:[%s3110_s1 + $0x340] sm:$0xff]  }
  0x32   :  { %2167 = vmatprep.subr.bf16.mxu1 %v2398_v53  ;;  %v2470_v53 = vld [vmem:[%s3110_s1 + $0x3c0] sm:$0xff]  }
  0x34   :  { %2140 = vmatpush3.bf16.msra.mxu0 %v2399_v54  ;;  %v2471_v54 = vld [vmem:[%s3110_s1 + $0x300] sm:$0xff]  }
  0x35   :  { %2168 = vmatpush3.bf16.msra.mxu1 %v2400_v55  ;;  %2141 = vmatprep.subr.bf16.mxu0 %v2401_v56  ;;  %v2472_v55 = vld [vmem:[%s3110_s1 + $0x380] sm:$0xff]   ;;  %v2473_v56 = vld [vmem:[%s3110_s1 + $0x348] sm:$0xff]  }
  0x36   :  { %2169 = vmatprep.subr.bf16.mxu1 %v2402_v57  ;;  %v2474_v57 = vld [vmem:[%s3110_s1 + $0x3c8] sm:$0xff]  }
  0x38   :  { %2142 = vmatpush3.bf16.msra.mxu0 %v2407_v60  ;;  %v2477_v60 = vld [vmem:[%s3111_s0 + $0xb4] ss:$72 sps:$4 sm:$0xff]  }
  0x39   :  { %2170 = vmatpush3.bf16.msra.mxu1 %v2408_v61  ;;  %2143 = vmatprep.subr.bf16.mxu0 %v2411_v0  ;;  %v2479_v61 = vld [vmem:[%s3111_s0 + $0xb0] ss:$72 sps:$4 sm:$0xff]   ;;  %v2482_v0 = vld [vmem:[%s3111_s0 + $0xbc] ss:$72 sps:$4 sm:$0xff]  }
  0x3a   :  { %2171 = vmatprep.subr.bf16.mxu1 %v2412_v1  ;;  %v2484_v1 = vld [vmem:[%s3110_s1 + $0x310] sm:$0xff]  }
  0x3c   :  { %2144 = vmatpush3.bf16.msra.mxu0 %v2413_v2  ;;  %v2485_v2 = vld [vmem:[%s3110_s1 + $0x390] sm:$0xff]  }
  0x3d   :  { %2172 = vmatpush3.bf16.msra.mxu1 %v2414_v3  ;;  %2145 = vmatprep.subr.bf16.mxu0 %v2415_v4  ;;  %v2486_v3 = vld [vmem:[%s3111_s0 + $0xb8] ss:$72 sps:$4 sm:$0xff]  }
  0x3e   :  { %2173 = vmatprep.subr.bf16.mxu1 %v2416_v5  ;;  %v2487_v4 = vld [vmem:[%s3110_s1 + $0x358] sm:$0xff]  }
  0x3f   :  { %v2488_v5 = vld [vmem:[%s3110_s1 + $0x3d8] sm:$0xff]  }
  0x40   :  { %2146 = vmatpush3.bf16.msra.mxu0 %v2417_v6  ;;  %v2489_v6 = vld [vmem:[%s3110_s1 + $0x318] sm:$0xff]  }
  0x41   :  { %2174 = vmatpush3.bf16.msra.mxu1 %v2418_v7  ;;  %2187 = vmatprep.subr.bf16.mxu0 %v2425_v12  ;;  %v2490_v7 = vld [vmem:[%s3110_s1 + $0x398] sm:$0xff]   ;;  %v2495_v12 = vld [vmem:[%s3110_s1 + $0x368] sm:$0xff]  }
  0x42   :  { %2215 = vmatprep.subr.bf16.mxu1 %v2426_v13  ;;  %v2496_v13 = vld [vmem:[%s3110_s1 + $0x3e8] sm:$0xff]  }
  0x43   :  { %1513 = vmatmul.mubr.bf16.vlgmr.msra.gmra.mrb[8].mxu0 %v2419_v8  ;;  %v2491_v8 = vld [vmem:[%s3110_s1 + $0x360] sm:$0xff]  }
  0x44   :  { %1562 = vmatmul.mubr.bf16.vlgmr.msra.gmra.mrb[8].mxu1 %v2422_v10  ;;  %2188 = vmatpush3.bf16.msra.mxu0 %v2427_v14  ;;  %v2493_v10 = vld [vmem:[%s3110_s1 + $0x320] sm:$0xff]   ;;  %v2497_v14 = vld [vmem:[%s3110_s1 + $0x328] sm:$0xff]  }
  0x45   :  { %2216 = vmatpush3.bf16.msra.mxu1 %v2428_v15  ;;  %2189 = vmatprep.subr.bf16.mxu0 %v2429_v16  ;;  %v2498_v15 = vld [vmem:[%s3110_s1 + $0x3a8] sm:$0xff]   ;;  %v2499_v16 = vld [vmem:[%s3110_s1 + $0x370] sm:$0xff]  }
  0x46   :  { %2217 = vmatprep.subr.bf16.mxu1 %v2430_v17  ;;  %1520 = vmatprep.mubr.bf16.mxu0 %v2433_v20  ;;  %v2500_v17 = vld [vmem:[%s3110_s1 + $0x3f0] sm:$0xff]   ;;  %v2503_v20 = vld [vmem:[%s3110_s1 + $0x378] sm:$0xff]  }
  0x47   :  { %1569 = vmatprep.mubr.bf16.mxu1 %v2438_v24  ;;  %v2507_v24 = vld [vmem:[%s3111_s0 + $0x30] ss:$72 sps:$4 sm:$0xff]  }
  0x48   :  { %2190 = vmatpush3.bf16.msra.mxu0 %v2431_v18  ;;  %v2501_v18 = vld [vmem:[%s3110_s1 + $0x330] sm:$0xff]  }
  0x49   :  { %2218 = vmatpush3.bf16.msra.mxu1 %v2432_v19  ;;  %2191 = vmatprep.subr.bf16.mxu0 %v2436_v22  ;;  %v2502_v19 = vld [vmem:[%s3110_s1 + $0x3b0] sm:$0xff]   ;;  %v2505_v22 = vld [vmem:[%s3110_s1 + $0x338] sm:$0xff]  }
  0x4a   :  { %2219 = vmatprep.subr.bf16.mxu1 %v2437_v23  ;;  %v2506_v23 = vld [vmem:[%s3110_s1 + $0x3b8] sm:$0xff]  }
  0x4b   :  { %1521 = vmatmul.mubr.bf16.gmra.mrb[12].mxu0 %v2435_v21  ;;  %v2504_v21 = vld [vmem:[%s3110_s1 + $0x3f8] sm:$0xff]  }
  0x4c   :  { %2192 = vmatpush3.bf16.msra.mxu0 %v2440_v25  ;;  %1570 = vmatmul.mubr.bf16.gmra.mrb[12].mxu1 %v2442_v27  ;;  %v2509_v25 = vld [vmem:[%s3111_s0 + $0x34] ss:$72 sps:$4 sm:$0xff]  }
  0x4d   :  { %2220 = vmatpush3.bf16.msra.mxu1 %v2441_v26  ;;  %2193 = vmatprep.subr.bf16.mxu0 %v2443_v28  ;;  %v2510_v26 = vld [vmem:[%s3111_s0 + $0x38] ss:$72 sps:$4 sm:$0xff]   ;;  %v2512_v27 = vld [vmem:[%s3111_s0 + $0x3c] ss:$72 sps:$4 sm:$0xff]  }
  0x4e   :  { %2221 = vmatprep.subr.bf16.mxu1 %v2444_v29  ;;  %1610 = vmatprep.mubr.bf16.mxu0 %v2465_v49  ;;  %v2513_v28 = vld [vmem:[%s3110_s1 + $0x440] sm:$0xff]   ;;  %v2534_v49 = vld [vmem:[%s3110_s1 + $0x438] sm:$0xff]  }
  0x4f   :  { %1659 = vmatprep.mubr.bf16.mxu1 %v2468_v51  ;;  %v2514_v29 = vld [vmem:[%s3110_s1 + $0x400] sm:$0xff]   ;;  %v2538_v51 = vld [vmem:[%s3111_s0 + $0xd0] ss:$72 sps:$4 sm:$0xff]  }
  0x50   :  { %2194 = vmatpush3.bf16.msra.mxu0 %v2445_v30  ;;  %v2515_v30 = vld [vmem:[%s3110_s1 + $0x448] sm:$0xff]  }
  0x51   :  { %2222 = vmatpush3.bf16.msra.mxu1 %v2446_v31  ;;  %2195 = vmatprep.subr.bf16.mxu0 %v2447_v32  ;;  %v2516_v31 = vld [vmem:[%s3110_s1 + $0x408] sm:$0xff]  }
  0x52   :  { %2223 = vmatprep.subr.bf16.mxu1 %v2448_v33  ;;  %v2517_v32 = vld [vmem:[%s3111_s0 + $0xc4] ss:$72 sps:$4 sm:$0xff]   ;;  %v2519_v33 = vld [vmem:[%s3111_s0 + $0xc0] ss:$72 sps:$4 sm:$0xff]  }
  0x54   :  { %2196 = vmatpush3.bf16.msra.mxu0 %v2449_v34  ;;  %v2520_v34 = vld [vmem:[%s3110_s1 + $0x450] sm:$0xff]  }
  0x55   :  { %2224 = vmatpush3.bf16.msra.mxu1 %v2450_v35  ;;  %2197 = vmatprep.subr.bf16.mxu0 %v2451_v36  ;;  %v2521_v35 = vld [vmem:[%s3111_s0 + $0xcc] ss:$72 sps:$4 sm:$0xff]  }
  0x56   :  { %2225 = vmatprep.subr.bf16.mxu1 %v2452_v37  ;;  %v2523_v36 = vld [vmem:[%s3110_s1 + $0x410] sm:$0xff]  }
  0x57   :  { %v2524_v37 = vld [vmem:[%s3111_s0 + $0xc8] ss:$72 sps:$4 sm:$0xff]  }
  0x58   :  { %2198 = vmatpush3.bf16.msra.mxu0 %v2453_v38  ;;  %v2525_v38 = vld [vmem:[%s3110_s1 + $0x458] sm:$0xff]  }
  0x59   :  { %2226 = vmatpush3.bf16.msra.mxu1 %v2454_v39  ;;  %2199 = vmatprep.subr.bf16.mxu0 %v2455_v40  ;;  %v2526_v39 = vld [vmem:[%s3110_s1 + $0x418] sm:$0xff]   ;;  %v2527_v40 = vld [vmem:[%s3110_s1 + $0x460] sm:$0xff]  }
  0x5a   :  { %2227 = vmatprep.subr.bf16.mxu1 %v2456_v41  ;;  %v2528_v41 = vld [vmem:[%s3110_s1 + $0x420] sm:$0xff]  }
  0x5c   :  { %2200 = vmatpush3.bf16.msra.mxu0 %v2457_v42  ;;  %v2529_v42 = vld [vmem:[%s3110_s1 + $0x468] sm:$0xff]  }
  0x5d   :  { %2228 = vmatpush3.bf16.msra.mxu1 %v2458_v43  ;;  %2201 = vmatprep.subr.bf16.mxu0 %v2459_v44  ;;  %v2530_v43 = vld [vmem:[%s3110_s1 + $0x428] sm:$0xff]  }
  0x5e   :  { %2229 = vmatprep.subr.bf16.mxu1 %v2460_v45  ;;  %v2537_v44 = vld [vmem:[%s3111_s0 + $0x44] ss:$72 sps:$4 sm:$0xff]   ;;  %v2531_v45 = vld [vmem:[%s3110_s1 + $0x470] sm:$0xff]  }
  0x60   :  { %2202 = vmatpush3.bf16.msra.mxu0 %v2461_v46  ;;  %v2540_v46 = vld [vmem:[%s3111_s0 + $0xd4] ss:$72 sps:$4 sm:$0xff]  }
  0x61   :  { %2230 = vmatpush3.bf16.msra.mxu1 %v2462_v47  ;;  %2243 = vmatprep.subr.bf16.mxu0 %v2469_v52  ;;  %v2532_v47 = vld [vmem:[%s3110_s1 + $0x430] sm:$0xff]  }
  0x62   :  { %2271 = vmatprep.subr.bf16.mxu1 %v2470_v53 }
  0x63   :  { %1611 = vmatmul.mubr.bf16.vlgmr.msra.gmra.mrb[16].mxu0 %v2463_v48  ;;  %v2533_v48 = vld [vmem:[%s3110_s1 + $0x478] sm:$0xff]  }
  0x64   :  { %1660 = vmatmul.mubr.bf16.vlgmr.msra.gmra.mrb[16].mxu1 %v2466_v50  ;;  %2244 = vmatpush3.bf16.msra.mxu0 %v2471_v54  ;;  %v2535_v50 = vld [vmem:[%s3111_s0 + $0x40] ss:$72 sps:$4 sm:$0xff]  }
  0x65   :  { %2272 = vmatpush3.bf16.msra.mxu1 %v2472_v55  ;;  %2245 = vmatprep.subr.bf16.mxu0 %v2473_v56 }
  0x66   :  { %2273 = vmatprep.subr.bf16.mxu1 %v2474_v57  ;;  %1618 = vmatprep.mubr.bf16.mxu0 %v2477_v60 }
  0x67   :  { %1667 = vmatprep.mubr.bf16.mxu1 %v2482_v0 }
  0x68   :  { %2246 = vmatpush3.bf16.msra.mxu0 %v2475_v58 }
  0x69   :  { %2274 = vmatpush3.bf16.msra.mxu1 %v2476_v59  ;;  %2247 = vmatprep.subr.bf16.mxu0 %v2480_v62 }
  0x6a   :  { %2275 = vmatprep.subr.bf16.mxu1 %v2481_v63 }
  0x6b   :  { %1619 = vmatmul.mubr.bf16.gmra.mrb[20].mxu0 %v2479_v61 }
  0x6c   :  { %2248 = vmatpush3.bf16.msra.mxu0 %v2484_v1  ;;  %1668 = vmatmul.mubr.bf16.gmra.mrb[20].mxu1 %v2486_v3 }
  0x6d   :  { %2276 = vmatpush3.bf16.msra.mxu1 %v2485_v2  ;;  %2249 = vmatprep.subr.bf16.mxu0 %v2487_v4 }
  0x6e   :  { %2277 = vmatprep.subr.bf16.mxu1 %v2488_v5  ;;  %1708 = vmatprep.mubr.bf16.mxu0 %v2509_v25 }
  0x6f   :  { %1757 = vmatprep.mubr.bf16.mxu1 %v2512_v27 }
  0x70   :  { %2250 = vmatpush3.bf16.msra.mxu0 %v2489_v6 }
  0x71   :  { %2278 = vmatpush3.bf16.msra.mxu1 %v2490_v7  ;;  %2251 = vmatprep.subr.bf16.mxu0 %v2491_v8 }
  0x72   :  { %2279 = vmatprep.subr.bf16.mxu1 %v2492_v9 }
  0x74   :  { %2252 = vmatpush3.bf16.msra.mxu0 %v2493_v10 }
  0x75   :  { %2280 = vmatpush3.bf16.msra.mxu1 %v2494_v11  ;;  %2253 = vmatprep.subr.bf16.mxu0 %v2495_v12 }
  0x76   :  { %2281 = vmatprep.subr.bf16.mxu1 %v2496_v13 }
  0x78   :  { %2254 = vmatpush3.bf16.msra.mxu0 %v2497_v14 }
  0x79   :  { %2282 = vmatpush3.bf16.msra.mxu1 %v2498_v15  ;;  %2255 = vmatprep.subr.bf16.mxu0 %v2499_v16 }
  0x7a   :  { %2283 = vmatprep.subr.bf16.mxu1 %v2500_v17 }
  0x7c   :  { %2256 = vmatpush3.bf16.msra.mxu0 %v2501_v18 }
  0x7d   :  { %2284 = vmatpush3.bf16.msra.mxu1 %v2502_v19  ;;  %2257 = vmatprep.subr.bf16.mxu0 %v2503_v20 }
  0x7e   :  { %2285 = vmatprep.subr.bf16.mxu1 %v2504_v21 }
  0x80   :  { %2258 = vmatpush3.bf16.msra.mxu0 %v2505_v22 }
  0x81   :  { %2286 = vmatpush3.bf16.msra.mxu1 %v2506_v23  ;;  %2299 = vmatprep.subr.bf16.mxu0 %v2513_v28 }
  0x82   :  { %2327 = vmatprep.subr.bf16.mxu1 %v2513_v28 }
  0x83   :  { %1709 = vmatmul.mubr.bf16.vlgmr.msra.gmra.mrb[24].mxu0 %v2507_v24 }
  0x84   :  { %1758 = vmatmul.mubr.bf16.vlgmr.msra.gmra.mrb[24].mxu1 %v2510_v26  ;;  %2300 = vmatpush3.bf16.msra.mxu0 %v2514_v29 }
  0x85   :  { %2335 = vmatpush3.bf16.msra.mxu1 %v2514_v29  ;;  %2301 = vmatprep.subr.bf16.mxu0 %v2515_v30 }
  0x86   :  { %2328 = vmatprep.subr.bf16.mxu1 %v2515_v30  ;;  %1716 = vmatprep.mubr.bf16.mxu0 %v2517_v32 }
  0x87   :  { %1765 = vmatprep.mubr.bf16.mxu1 %v2521_v35 }
  0x88   :  { %2302 = vmatpush3.bf16.msra.mxu0 %v2516_v31 }
  0x89   :  { %2336 = vmatpush3.bf16.msra.mxu1 %v2516_v31  ;;  %2303 = vmatprep.subr.bf16.mxu0 %v2520_v34 }
  0x8a   :  { %2329 = vmatprep.subr.bf16.mxu1 %v2520_v34 }
  0x8b   :  { %1717 = vmatmul.mubr.bf16.gmra.mrb[28].mxu0 %v2519_v33 }
  0x8c   :  { %2304 = vmatpush3.bf16.msra.mxu0 %v2523_v36  ;;  %1766 = vmatmul.mubr.bf16.gmra.mrb[28].mxu1 %v2524_v37 }
  0x8d   :  { %2337 = vmatpush3.bf16.msra.mxu1 %v2523_v36  ;;  %2305 = vmatprep.subr.bf16.mxu0 %v2525_v38 }
  0x8e   :  { %2330 = vmatprep.subr.bf16.mxu1 %v2525_v38  ;;  %1806 = vmatprep.mubr.bf16.mxu0 %v2537_v44 }
  0x8f   :  { %1814 = vmatprep.mubr.bf16.mxu1 %v2540_v46 }
  0x90   :  { %2306 = vmatpush3.bf16.msra.mxu0 %v2526_v39 }
  0x91   :  { %2338 = vmatpush3.bf16.msra.mxu1 %v2526_v39  ;;  %2307 = vmatprep.subr.bf16.mxu0 %v2527_v40 }
  0x92   :  { %2331 = vmatprep.subr.bf16.mxu1 %v2527_v40 }
  0x94   :  { %2308 = vmatpush3.bf16.msra.mxu0 %v2528_v41 }
  0x95   :  { %2339 = vmatpush3.bf16.msra.mxu1 %v2528_v41  ;;  %2309 = vmatprep.subr.bf16.mxu0 %v2529_v42 }
  0x96   :  { %2332 = vmatprep.subr.bf16.mxu1 %v2529_v42 }
  0x98   :  { %2310 = vmatpush3.bf16.msra.mxu0 %v2530_v43 }
  0x99   :  { %2340 = vmatpush3.bf16.msra.mxu1 %v2530_v43  ;;  %2311 = vmatprep.subr.bf16.mxu0 %v2531_v45 }
  0x9a   :  { %2333 = vmatprep.subr.bf16.mxu1 %v2531_v45 }
  0x9c   :  { %2312 = vmatpush3.bf16.msra.mxu0 %v2532_v47 }
  0x9d   :  { %2341 = vmatpush3.bf16.msra.mxu1 %v2532_v47  ;;  %2313 = vmatprep.subr.bf16.mxu0 %v2533_v48 }
  0x9e   :  { %2334 = vmatprep.subr.bf16.mxu1 %v2533_v48 }
  0xa0   :  { %2314 = vmatpush3.bf16.msra.mxu0 %v2534_v49 }
  0xa1   :  { %2342 = vmatpush3.bf16.msra.mxu1 %v2534_v49 }
  0xa3   :  { %1807 = vmatmul.mubr.bf16.vlgmr.msra.gmra.mrb[32].mxu0 %v2535_v50 }
  0xa4   :  { %1815 = vmatmul.mubr.bf16.vlgmr.msra.gmra.mrb[32].mxu1 %v2538_v51 }
  0xf6   :  { %v2091_v52 = vpop.f32.mrb[0].mxu0 }
  0xf7   :  { %v2119_v53 = vpop.f32.mrb[0].mxu1  ;;  %v2092_v54 = vpop.f32.mrb[1].mxu0 }
  0xf8   :  { %v2093_v55 = vadd.f32 %v2092_v54, %v2091_v52  ;;  %v2120_v56 = vpop.f32.mrb[1].mxu1  ;;  %v2094_v57 = vpop.f32.mrb[2].mxu0 }
  0xf9   :  { %v2121_v58 = vadd.f32 %v2120_v56, %v2119_v53  ;;  %v2122_v59 = vpop.f32.mrb[2].mxu1  ;;  %v2095_v60 = vpop.f32.mrb[3].mxu0 }
  0xfa   :  { %v2096_v61 = vadd.f32 %v2095_v60, %v2094_v57  ;;  %v2123_v62 = vpop.f32.mrb[3].mxu1 }
  0xfb   :  { %v1466_v63 = vadd.f32 %v2121_v58, %v2093_v55  ;;  %v2124_v0 = vadd.f32 %v2123_v62, %v2122_v59 }
  0xfd   :  { %v1469_v1 = vadd.f32 %v2124_v0, %v2096_v61 }
  0xfe   :  { %v2097_v2 = vpop.f32.mrb[4].mxu0 }
  0xff   :  { %v2125_v3 = vpop.f32.mrb[4].mxu1  ;;  %v2098_v4 = vpop.f32.mrb[5].mxu0 }
 0x100   :  { %v2099_v5 = vadd.f32 %v2098_v4, %v2097_v2  ;;  %v2126_v6 = vpop.f32.mrb[5].mxu1  ;;  %v2100_v7 = vpop.f32.mrb[6].mxu0 }
 0x101   :  { %v2127_v8 = vadd.f32 %v2126_v6, %v2125_v3  ;;  %v2128_v9 = vpop.f32.mrb[6].mxu1  ;;  %v2101_v10 = vpop.f32.mrb[7].mxu0 }
 0x102   :  { %v2102_v11 = vadd.f32 %v2101_v10, %v2100_v7  ;;  %v2129_v12 = vpop.f32.mrb[7].mxu1 }
 0x103   :  { %v1474_v13 = vadd.f32 %v2127_v8, %v2099_v5  ;;  %v2130_v14 = vadd.f32 %v2129_v12, %v2128_v9 }
 0x105   :  { %v1477_v15 = vadd.f32 %v2130_v14, %v2102_v11 }
 0x116   :  { %v2147_v16 = vpop.f32.mrb[8].mxu0 }
 0x117   :  { %v2148_v17 = vpop.f32.mrb[9].mxu0  ;;  %v2175_v18 = vpop.f32.mrb[8].mxu1 }
 0x118   :  { %v2149_v19 = vadd.f32 %v2148_v17, %v2147_v16  ;;  %v2150_v20 = vpop.f32.mrb[10].mxu0  ;;  %v2176_v21 = vpop.f32.mrb[9].mxu1 }
 0x119   :  { %v2151_v22 = vpop.f32.mrb[11].mxu0  ;;  %v2177_v23 = vadd.f32 %v2176_v21, %v2175_v18  ;;  %v2178_v24 = vpop.f32.mrb[10].mxu1 }
 0x11a   :  { %v1515_v25 = vadd.f32 %v2149_v19, %v1466_v63  ;;  %v2152_v26 = vadd.f32 %v2151_v22, %v2150_v20  ;;  %v2179_v27 = vpop.f32.mrb[11].mxu1 }
 0x11b   :  { %v2180_v28 = vadd.f32 %v2179_v27, %v2178_v24 }
 0x11c   :  { %v1518_v29 = vadd.f32 %v2152_v26, %v1469_v1  ;;  %v1564_v30 = vadd.f32 %v2177_v23, %v1515_v25 }
 0x11e   :  { %v1567_v31 = vadd.f32 %v2180_v28, %v1518_v29  ;;  %v2153_v32 = vpop.f32.mrb[12].mxu0 }
 0x11f   :  { %v2154_v33 = vpop.f32.mrb[13].mxu0  ;;  %v2181_v39 = vpop.f32.mrb[12].mxu1 }
 0x120   :  { %v2155_v34 = vadd.f32 %v2154_v33, %v2153_v32  ;;  %v2156_v35 = vpop.f32.mrb[14].mxu0  ;;  %v2182_v41 = vpop.f32.mrb[13].mxu1 }
 0x121   :  { %v2157_v36 = vpop.f32.mrb[15].mxu0  ;;  %v2183_v42 = vadd.f32 %v2182_v41, %v2181_v39  ;;  %v2184_v43 = vpop.f32.mrb[14].mxu1 }
 0x122   :  { %v1523_v37 = vadd.f32 %v2155_v34, %v1474_v13  ;;  %v2158_v38 = vadd.f32 %v2157_v36, %v2156_v35  ;;  %v2185_v44 = vpop.f32.mrb[15].mxu1 }
 0x123   :  { %v2186_v46 = vadd.f32 %v2185_v44, %v2184_v43 }
 0x124   :  { %v1526_v40 = vadd.f32 %v2158_v38, %v1477_v15  ;;  %v1572_v45 = vadd.f32 %v2183_v42, %v1523_v37 }
 0x126   :  { %v1575_v47 = vadd.f32 %v2186_v46, %v1526_v40 }
 0x136   :  { %v2203_v48 = vpop.f32.mrb[16].mxu0 }
 0x137   :  { %v2204_v49 = vpop.f32.mrb[17].mxu0  ;;  %v2231_v52 = vpop.f32.mrb[16].mxu1 }
 0x138   :  { %v2205_v50 = vadd.f32 %v2204_v49, %v2203_v48  ;;  %v2206_v51 = vpop.f32.mrb[18].mxu0  ;;  %v2232_v54 = vpop.f32.mrb[17].mxu1 }
 0x139   :  { %v2207_v53 = vpop.f32.mrb[19].mxu0  ;;  %v2233_v57 = vadd.f32 %v2232_v54, %v2231_v52  ;;  %v2234_v58 = vpop.f32.mrb[18].mxu1 }
 0x13a   :  { %v1613_v55 = vadd.f32 %v2205_v50, %v1564_v30  ;;  %v2208_v56 = vadd.f32 %v2207_v53, %v2206_v51  ;;  %v2235_v59 = vpop.f32.mrb[19].mxu1 }
 0x13b   :  { %v2236_v62 = vadd.f32 %v2235_v59, %v2234_v58 }
 0x13c   :  { %v1616_v60 = vadd.f32 %v2208_v56, %v1567_v31  ;;  %v1662_v61 = vadd.f32 %v2233_v57, %v1613_v55 }
 0x13e   :  { %v1665_v63 = vadd.f32 %v2236_v62, %v1616_v60  ;;  %v2209_v0 = vpop.f32.mrb[20].mxu0 }
 0x13f   :  { %v2210_v1 = vpop.f32.mrb[21].mxu0  ;;  %v2237_v7 = vpop.f32.mrb[20].mxu1 }
 0x140   :  { %v2211_v2 = vadd.f32 %v2210_v1, %v2209_v0  ;;  %v2212_v3 = vpop.f32.mrb[22].mxu0  ;;  %v2238_v9 = vpop.f32.mrb[21].mxu1 }
 0x141   :  { %v2213_v4 = vpop.f32.mrb[23].mxu0  ;;  %v2239_v10 = vadd.f32 %v2238_v9, %v2237_v7  ;;  %v2240_v11 = vpop.f32.mrb[22].mxu1 }
 0x142   :  { %v1621_v5 = vadd.f32 %v2211_v2, %v1572_v45  ;;  %v2214_v6 = vadd.f32 %v2213_v4, %v2212_v3  ;;  %v2241_v12 = vpop.f32.mrb[23].mxu1 }
 0x143   :  { %v2242_v14 = vadd.f32 %v2241_v12, %v2240_v11 }
 0x144   :  { %v1624_v8 = vadd.f32 %v2214_v6, %v1575_v47  ;;  %v1670_v13 = vadd.f32 %v2239_v10, %v1621_v5 }
 0x146   :  { %v1673_v15 = vadd.f32 %v2242_v14, %v1624_v8 }
 0x156   :  { %v2259_v16 = vpop.f32.mrb[24].mxu0 }
 0x157   :  { %v2260_v17 = vpop.f32.mrb[25].mxu0  ;;  %v2287_v20 = vpop.f32.mrb[24].mxu1 }
 0x158   :  { %v2261_v18 = vadd.f32 %v2260_v17, %v2259_v16  ;;  %v2262_v19 = vpop.f32.mrb[26].mxu0  ;;  %v2288_v22 = vpop.f32.mrb[25].mxu1 }
 0x159   :  { %v2263_v21 = vpop.f32.mrb[27].mxu0  ;;  %v2289_v25 = vadd.f32 %v2288_v22, %v2287_v20  ;;  %v2290_v26 = vpop.f32.mrb[26].mxu1 }
 0x15a   :  { %v1711_v23 = vadd.f32 %v2261_v18, %v1662_v61  ;;  %v2264_v24 = vadd.f32 %v2263_v21, %v2262_v19  ;;  %v2291_v27 = vpop.f32.mrb[27].mxu1 }
 0x15b   :  { %v2292_v30 = vadd.f32 %v2291_v27, %v2290_v26 }
 0x15c   :  { %v1714_v28 = vadd.f32 %v2264_v24, %v1665_v63  ;;  %v1760_v29 = vadd.f32 %v2289_v25, %v1711_v23 }
 0x15e   :  { %v1763_v31 = vadd.f32 %v2292_v30, %v1714_v28  ;;  %v2265_v32 = vpop.f32.mrb[28].mxu0 }
 0x15f   :  { %v2266_v33 = vpop.f32.mrb[29].mxu0  ;;  %v2293_v36 = vpop.f32.mrb[28].mxu1 }
 0x160   :  { %v2267_v34 = vadd.f32 %v2266_v33, %v2265_v32  ;;  %v2268_v35 = vpop.f32.mrb[30].mxu0  ;;  %v2294_v38 = vpop.f32.mrb[29].mxu1 }
 0x161   :  { %v2269_v37 = vpop.f32.mrb[31].mxu0  ;;  %v2295_v41 = vadd.f32 %v2294_v38, %v2293_v36  ;;  %v2296_v42 = vpop.f32.mrb[30].mxu1 }
 0x162   :  { %v1719_v39 = vadd.f32 %v2267_v34, %v1670_v13  ;;  %v2270_v40 = vadd.f32 %v2269_v37, %v2268_v35  ;;  %v2297_v43 = vpop.f32.mrb[31].mxu1 }
 0x163   :  { %v2298_v46 = vadd.f32 %v2297_v43, %v2296_v42 }
 0x164   :  { %v1722_v44 = vadd.f32 %v2270_v40, %v1673_v15  ;;  %v1768_v45 = vadd.f32 %v2295_v41, %v1719_v39 }
 0x166   :  { %v1771_v47 = vadd.f32 %v2298_v46, %v1722_v44 }
 0x176   :  { %v2315_v48 = vpop.f32.mrb[32].mxu0 }
 0x177   :  { %v2321_v49 = vpop.f32.mrb[32].mxu1  ;;  %v2316_v50 = vpop.f32.mrb[33].mxu0 }
 0x178   :  { %v2317_v51 = vadd.f32 %v2316_v50, %v2315_v48  ;;  %v2322_v52 = vpop.f32.mrb[33].mxu1  ;;  %v2318_v53 = vpop.f32.mrb[34].mxu0 }
 0x179   :  { %v2323_v54 = vadd.f32 %v2322_v52, %v2321_v49  ;;  %v2324_v55 = vpop.f32.mrb[34].mxu1  ;;  %v2319_v56 = vpop.f32.mrb[35].mxu0 }
 0x17a   :  { %v1809_v57 = vadd.f32 %v2317_v51, %v1760_v29  ;;  %v2320_v58 = vadd.f32 %v2319_v56, %v2318_v53  ;;  %v2325_v59 = vpop.f32.mrb[35].mxu1 }
 0x17b   :  { %v1817_v60 = vadd.f32 %v2323_v54, %v1768_v45  ;;  %v2326_v61 = vadd.f32 %v2325_v59, %v2324_v55 }
 0x17c   :  { %v1812_v62 = vadd.f32 %v2320_v58, %v1763_v31  ;;  %v1852_v0 = vmul.f32 %v1809_v57, %v1809_v57 }
 0x17d   :  { %v1820_v63 = vadd.f32 %v2326_v61, %v1771_v47  ;;  %v1854_v5 = vmul.f32 %v1817_v60, %v1817_v60 }
 0x17e   :  { %v2067_v1 = vpack.c.bf16 %v1812_v62, %v1809_v57  ;;  %v1843_v2 = vadd.f32 %v1812_v62, %v1809_v57  ;;  %v1853_v3 = vmul.f32 %v1812_v62, %v1812_v62 }
 0x17f   :  { %v2072_v4 = vpack.c.bf16 %v1820_v63, %v1817_v60  ;;  %v1855_v9 = vmul.f32 %v1820_v63, %v1820_v63 }
 0x180   :  { %2068 = vst [vmem:[%s3112_s2] sm:$0xff] %v2067_v1   ;;  %v1856_v6 = vadd.f32 %v1853_v3, %v1852_v0  ;;  %v1844_v7 = vadd.f32 %v1843_v2, %v1817_v60 }
 0x181   :  { %2074 = vst [vmem:[%s3112_s2 + $0x8] sm:$0xff] %v2072_v4  }
 0x182   :  { %v1845_v8 = vadd.f32 %v1844_v7, %v1820_v63  ;;  %v1857_v10 = vadd.f32 %v1856_v6, %v1854_v5 }
 0x184   :  { %v1846_v11 = vrot.slane %v1845_v8, 4  ;;  %v1858_v12 = vadd.f32 %v1857_v10, %v1855_v9 }
 0x186   :  { %v1847_v13 = vadd.f32 %v1846_v11, %v1845_v8  ;;  %v1859_v14 = vrot.slane %v1858_v12, 4 }
 0x188   :  { %v1848_v15 = vrot.slane %v1847_v13, 2  ;;  %v1860_v16 = vadd.f32 %v1859_v14, %v1858_v12 }
 0x18a   :  { %v1849_v17 = vadd.f32 %v1848_v15, %v1847_v13  ;;  %v1861_v18 = vrot.slane %v1860_v16, 2 }
 0x18c   :  { %v1850_v19 = vrot.slane %v1849_v17, 1  ;;  %v1862_v20 = vadd.f32 %v1861_v18, %v1860_v16 }
 0x18e   :  { %v1863_v21 = vrot.slane %v1862_v20, 1  ;;  %v1851_v22 = vadd.f32 %v1850_v19, %v1849_v17 }
 0x190   :  { %v1864_v23 = vadd.f32 %v1863_v21, %v1862_v20 }
 0x192   :  { %v1866_v24 = vsel %vm1865_vm0, %v1851_v22, %v1864_v23 }
 0x193   :  { %1867 = vst [vmem:[%s3113_s3] sm:$0x3] %v1866_v24 }

// kernel: _lambda_.36
= control target key start
LH: loop header
LB: loop body
LE: loop exit
PB: predicated region body
PF: predicated region fallthrough
CT: control target
= control target key end

     0   :  { %vm550_vm0 = vcmask 523264   ;;  %vm930_vm1 = vcmask 519168   ;;  %vm1037_vm2 = vcmask 1040384   ;;  %vm1039_vm3 = vcmask 517120   ;;  %s1862_s1 = inlined_call_operand.vmem [shape: bf16[576,64], index: 1, kind: input, shape index: {}]   ;;  %s1863_s0 = inlined_call_operand.vmem [shape: bf16[128,576], index: 0, kind: input, shape index: {}]   ;;  %s1864_s2 = inlined_call_operand.vmem [shape: bf16[128,64], index: 2, kind: output, shape index: {0}]   ;;  %s1865_s3 = inlined_call_operand.vmem [shape: f32[1,2,64], index: 3, kind: output, shape index: {1}]  }
   0x1   :  { %v1337_v0 = vld [vmem:[%s1862_s1 + $0x40] sm:$0xff]   ;;  %v1341_v4 = vld [vmem:[%s1862_s1 + $0x48] sm:$0xff]   ;;  %v1345_v8 = vld [vmem:[%s1862_s1 + $0x50] sm:$0xff]  }
   0x2   :  { %v1338_v1 = vld [vmem:[%s1862_s1 + $0xc0] sm:$0xff]   ;;  %1165 = vmatprep.subr.bf16.mxu0 %v1337_v0  ;;  %v1342_v5 = vld [vmem:[%s1862_s1 + $0xc8] sm:$0xff]   ;;  %v1346_v9 = vld [vmem:[%s1862_s1 + $0xd0] sm:$0xff]  }
   0x3   :  { %v1339_v2 = vld [vmem:[%s1862_s1] sm:$0xff]   ;;  %1229 = vmatprep.subr.bf16.mxu1 %v1338_v1  ;;  %v1343_v6 = vld [vmem:[%s1862_s1 + $0x8] sm:$0xff]   ;;  %v1347_v10 = vld [vmem:[%s1862_s1 + $0x10] sm:$0xff]  }
   0x4   :  { %v1340_v3 = vld [vmem:[%s1862_s1 + $0x80] sm:$0xff]   ;;  %1166 = vmatpush3.bf16.msra.mxu0 %v1339_v2  ;;  %v1344_v7 = vld [vmem:[%s1862_s1 + $0x88] sm:$0xff]   ;;  %v1348_v11 = vld [vmem:[%s1862_s1 + $0x90] sm:$0xff]  }
   0x5   :  { %1230 = vmatpush3.bf16.msra.mxu1 %v1340_v3  ;;  %1167 = vmatprep.subr.bf16.mxu0 %v1341_v4  ;;  %v1349_v12 = vld [vmem:[%s1862_s1 + $0x58] sm:$0xff]   ;;  %v1353_v16 = vld [vmem:[%s1862_s1 + $0x60] sm:$0xff]   ;;  %v1357_v20 = vld [vmem:[%s1862_s1 + $0x68] sm:$0xff]  }
   0x6   :  { %1231 = vmatprep.subr.bf16.mxu1 %v1342_v5  ;;  %v1350_v13 = vld [vmem:[%s1862_s1 + $0xd8] sm:$0xff]   ;;  %v1354_v17 = vld [vmem:[%s1862_s1 + $0xe0] sm:$0xff]   ;;  %v1358_v21 = vld [vmem:[%s1862_s1 + $0xe8] sm:$0xff]  }
   0x7   :  { %v1351_v14 = vld [vmem:[%s1862_s1 + $0x18] sm:$0xff]   ;;  %v1355_v18 = vld [vmem:[%s1862_s1 + $0x20] sm:$0xff]   ;;  %v1359_v22 = vld [vmem:[%s1862_s1 + $0x28] sm:$0xff]  }
   0x8   :  { %1168 = vmatpush3.bf16.msra.mxu0 %v1343_v6  ;;  %v1352_v15 = vld [vmem:[%s1862_s1 + $0x98] sm:$0xff]   ;;  %v1356_v19 = vld [vmem:[%s1862_s1 + $0xa0] sm:$0xff]   ;;  %v1360_v23 = vld [vmem:[%s1862_s1 + $0xa8] sm:$0xff]  }
   0x9   :  { %1232 = vmatpush3.bf16.msra.mxu1 %v1344_v7  ;;  %1169 = vmatprep.subr.bf16.mxu0 %v1345_v8  ;;  %v1361_v24 = vld [vmem:[%s1862_s1 + $0x70] sm:$0xff]   ;;  %v1365_v28 = vld [vmem:[%s1862_s1 + $0x78] sm:$0xff]   ;;  %v1374_v35 = vld [vmem:[%s1863_s0 + $0xc] ss:$20 sps:$4 sm:$0xff]  }
   0xa   :  { %1233 = vmatprep.subr.bf16.mxu1 %v1346_v9  ;;  %v1362_v25 = vld [vmem:[%s1862_s1 + $0xf0] sm:$0xff]   ;;  %v1366_v29 = vld [vmem:[%s1862_s1 + $0xf8] sm:$0xff]   ;;  %v1375_v36 = vld [vmem:[%s1862_s1 + $0x100] sm:$0xff]   ;;  %704 = vmatprep.mubr.bf16.mxu1 %v1374_v35 }
   0xb   :  { %v1363_v26 = vld [vmem:[%s1862_s1 + $0x30] sm:$0xff]   ;;  %v1367_v30 = vld [vmem:[%s1862_s1 + $0x38] sm:$0xff]   ;;  %v1376_v37 = vld [vmem:[%s1863_s0 + $0x2c] ss:$20 sps:$4 sm:$0xff]  }
   0xc   :  { %1170 = vmatpush3.bf16.msra.mxu0 %v1347_v10  ;;  %v1364_v27 = vld [vmem:[%s1862_s1 + $0xb0] sm:$0xff]   ;;  %v1368_v31 = vld [vmem:[%s1862_s1 + $0xb8] sm:$0xff]   ;;  %v1388_v42 = vld [vmem:[%s1862_s1 + $0x108] sm:$0xff]  }
   0xd   :  { %1234 = vmatpush3.bf16.msra.mxu1 %v1348_v11  ;;  %1171 = vmatprep.subr.bf16.mxu0 %v1349_v12  ;;  %v1369_v32 = vld [vmem:[%s1863_s0] ss:$20 sps:$4 sm:$0xff]   ;;  %v1371_v33 = vld [vmem:[%s1863_s0 + $0x4] ss:$20 sps:$4 sm:$0xff]   ;;  %v1372_v34 = vld [vmem:[%s1863_s0 + $0x8] ss:$20 sps:$4 sm:$0xff]  }
   0xe   :  { %1235 = vmatprep.subr.bf16.mxu1 %v1350_v13  ;;  %607 = vmatprep.mubr.bf16.mxu0 %v1371_v33  ;;  %v1378_v38 = vld [vmem:[%s1863_s0 + $0x34] ss:$20 sps:$4 sm:$0xff]   ;;  %v1381_v40 = vld [vmem:[%s1863_s0 + $0x30] ss:$20 sps:$4 sm:$0xff]   ;;  %v1387_v45 = vld [vmem:[%s1863_s0 + $0x58] ss:$20 sps:$4 sm:$0xff]  }
   0xf   :  { %v1380_v39 = vld [vmem:[%s1863_s0 + $0x28] ss:$20 sps:$4 sm:$0xff]   ;;  %v1386_v44 = vld [vmem:[%s1863_s0 + $0x50] ss:$20 sps:$4 sm:$0xff]   ;;  %v1393_v50 = vld [vmem:[%s1863_s0 + $0x78] ss:$20 sps:$4 sm:$0xff]  }
  0x10   :  { %1172 = vmatpush3.bf16.msra.mxu0 %v1351_v14  ;;  %v1382_v41 = vld [vmem:[%s1863_s0 + $0x54] ss:$20 sps:$4 sm:$0xff]   ;;  %v1384_v43 = vld [vmem:[%s1863_s0 + $0x5c] ss:$20 sps:$4 sm:$0xff]   ;;  %v1391_v48 = vld [vmem:[%s1863_s0 + $0x84] ss:$20 sps:$4 sm:$0xff]  }
  0x11   :  { %1236 = vmatpush3.bf16.msra.mxu1 %v1352_v15  ;;  %1173 = vmatprep.subr.bf16.mxu0 %v1353_v16  ;;  %v1401_v46 = vld [vmem:[%s1862_s1 + $0x110] sm:$0xff]   ;;  %v1414_v49 = vld [vmem:[%s1862_s1 + $0x118] sm:$0xff]   ;;  %v1397_v53 = vld [vmem:[%s1863_s0 + $0xac] ss:$20 sps:$4 sm:$0xff]  }
  0x12   :  { %1237 = vmatprep.subr.bf16.mxu1 %v1354_v17  ;;  %v1389_v47 = vld [vmem:[%s1863_s0 + $0x7c] ss:$20 sps:$4 sm:$0xff]   ;;  %v1394_v51 = vld [vmem:[%s1863_s0 + $0x80] ss:$20 sps:$4 sm:$0xff]   ;;  %v1395_v52 = vld [vmem:[%s1863_s0 + $0xa4] ss:$20 sps:$4 sm:$0xff]  }
  0x13   :  { %v1399_v54 = vld [vmem:[%s1863_s0 + $0xa0] ss:$20 sps:$4 sm:$0xff]   ;;  %v1400_v55 = vld [vmem:[%s1863_s0 + $0xa8] ss:$20 sps:$4 sm:$0xff]   ;;  %v1407_v59 = vld [vmem:[%s1863_s0 + $0xd0] ss:$20 sps:$4 sm:$0xff]  }
  0x14   :  { %1174 = vmatpush3.bf16.msra.mxu0 %v1355_v18  ;;  %v1402_v56 = vld [vmem:[%s1863_s0 + $0xcc] ss:$20 sps:$4 sm:$0xff]   ;;  %v1404_v57 = vld [vmem:[%s1863_s0 + $0xd4] ss:$20 sps:$4 sm:$0xff]   ;;  %v1410_v61 = vld [vmem:[%s1863_s0 + $0xfc] ss:$20 sps:$4 sm:$0xff]  }
  0x15   :  { %1238 = vmatpush3.bf16.msra.mxu1 %v1356_v19  ;;  %1175 = vmatprep.subr.bf16.mxu0 %v1357_v20  ;;  %v1406_v58 = vld [vmem:[%s1863_s0 + $0xc8] ss:$20 sps:$4 sm:$0xff]   ;;  %v1412_v62 = vld [vmem:[%s1863_s0 + $0xf0] ss:$20 sps:$4 sm:$0xff]   ;;  %v1413_v63 = vld [vmem:[%s1863_s0 + $0xf8] ss:$20 sps:$4 sm:$0xff]  }
  0x16   :  { %1239 = vmatprep.subr.bf16.mxu1 %v1358_v21  ;;  %v1408_v60 = vld [vmem:[%s1863_s0 + $0xf4] ss:$20 sps:$4 sm:$0xff]   ;;  %v1415_v0 = vld [vmem:[%s1863_s0 + $0x11c] ss:$20 sps:$4 sm:$0xff]   ;;  %v1417_v1 = vld [vmem:[%s1863_s0 + $0x124] ss:$20 sps:$4 sm:$0xff]  }
  0x17   :  { %v1419_v2 = vld [vmem:[%s1863_s0 + $0x118] ss:$20 sps:$4 sm:$0xff]   ;;  %v1420_v3 = vld [vmem:[%s1863_s0 + $0x120] ss:$20 sps:$4 sm:$0xff]   ;;  %v1421_v4 = vld [vmem:[%s1863_s0 + $0x10] ss:$20 sps:$4 sm:$0xff]  }
  0x18   :  { %1176 = vmatpush3.bf16.msra.mxu0 %v1359_v22  ;;  %v1422_v5 = vld [vmem:[%s1863_s0 + $0xb0] ss:$20 sps:$4 sm:$0xff]   ;;  %v1423_v6 = vld [vmem:[%s1863_s0 + $0x38] ss:$20 sps:$4 sm:$0xff]   ;;  %v1425_v8 = vld [vmem:[%s1863_s0 + $0x60] ss:$20 sps:$4 sm:$0xff]  }
  0x19   :  { %1240 = vmatpush3.bf16.msra.mxu1 %v1360_v23  ;;  %1177 = vmatprep.subr.bf16.mxu0 %v1361_v24  ;;  %v1424_v7 = vld [vmem:[%s1863_s0 + $0xd8] ss:$20 sps:$4 sm:$0xff]   ;;  %v1426_v9 = vld [vmem:[%s1863_s0 + $0x100] ss:$20 sps:$4 sm:$0xff]   ;;  %v1427_v10 = vld [vmem:[%s1863_s0 + $0x88] ss:$20 sps:$4 sm:$0xff]  }
  0x1a   :  { %1241 = vmatprep.subr.bf16.mxu1 %v1362_v25  ;;  %v1428_v11 = vld [vmem:[%s1863_s0 + $0x128] ss:$20 sps:$4 sm:$0xff]  }
  0x1c   :  { %1178 = vmatpush3.bf16.msra.mxu0 %v1363_v26 }
  0x1d   :  { %1242 = vmatpush3.bf16.msra.mxu1 %v1364_v27  ;;  %1179 = vmatprep.subr.bf16.mxu0 %v1365_v28 }
  0x1e   :  { %1243 = vmatprep.subr.bf16.mxu1 %v1366_v29 }
  0x20   :  { %1180 = vmatpush3.bf16.msra.mxu0 %v1367_v30 }
  0x21   :  { %1244 = vmatpush3.bf16.msra.mxu1 %v1368_v31  ;;  %1305 = vmatprep.subr.bf16.mxu0 %v1375_v36 }
  0x22   :  { %1329 = vmatprep.subr.bf16.mxu1 %v1375_v36 }
  0x23   :  { %608 = vmatmul.mubr.bf16.vlgmr.msra.gmra.mrb[0].mxu0 %v1369_v32 }
  0x24   :  { %705 = vmatmul.mubr.bf16.vlgmr.msra.gmra.mrb[0].mxu1 %v1372_v34  ;;  %1306 = vmatpush3.bf16.msra.mxu0 %v1375_v36 }
  0x25   :  { %615 = vmatprep.mubr.bf16.mxu0 %v1376_v37  ;;  %712 = vmatprep.mubr.bf16.mxu1 %v1378_v38 }
  0x26   :  { %1333 = vmatpush3.bf16.msra.mxu1 %v1375_v36  ;;  %1307 = vmatprep.subr.bf16.mxu0 %v1388_v42 }
  0x27   :  { %1330 = vmatprep.subr.bf16.mxu1 %v1388_v42 }
  0x28   :  { %1308 = vmatpush3.bf16.msra.mxu0 %v1388_v42 }
  0x29   :  { %1309 = vmatprep.subr.bf16.mxu0 %v1401_v46 }
  0x2a   :  { %1334 = vmatpush3.bf16.msra.mxu1 %v1388_v42 }
  0x2b   :  { %616 = vmatmul.mubr.bf16.gmra.mrb[4].mxu0 %v1380_v39  ;;  %1331 = vmatprep.subr.bf16.mxu1 %v1401_v46 }
  0x2c   :  { %713 = vmatmul.mubr.bf16.gmra.mrb[4].mxu1 %v1381_v40  ;;  %623 = vmatprep.mubr.bf16.mxu0 %v1382_v41 }
  0x2d   :  { %720 = vmatprep.mubr.bf16.mxu1 %v1384_v43  ;;  %1310 = vmatpush3.bf16.msra.mxu0 %v1401_v46 }
  0x2e   :  { %1335 = vmatpush3.bf16.msra.mxu1 %v1401_v46  ;;  %1311 = vmatprep.subr.bf16.mxu0 %v1414_v49 }
  0x2f   :  { %1332 = vmatprep.subr.bf16.mxu1 %v1414_v49 }
  0x31   :  { %1312 = vmatpush3.bf16.msra.mxu0 %v1414_v49 }
  0x32   :  { %1336 = vmatpush3.bf16.msra.mxu1 %v1414_v49 }
  0x33   :  { %624 = vmatmul.mubr.bf16.gmra.mrb[8].mxu0 %v1386_v44 }
  0x34   :  { %721 = vmatmul.mubr.bf16.gmra.mrb[8].mxu1 %v1387_v45  ;;  %631 = vmatprep.mubr.bf16.mxu0 %v1389_v47 }
  0x35   :  { %728 = vmatprep.mubr.bf16.mxu1 %v1391_v48 }
  0x3b   :  { %632 = vmatmul.mubr.bf16.gmra.mrb[12].mxu0 %v1393_v50 }
  0x3c   :  { %729 = vmatmul.mubr.bf16.gmra.mrb[12].mxu1 %v1394_v51  ;;  %639 = vmatprep.mubr.bf16.mxu0 %v1395_v52 }
  0x3d   :  { %736 = vmatprep.mubr.bf16.mxu1 %v1397_v53 }
  0x43   :  { %640 = vmatmul.mubr.bf16.gmra.mrb[16].mxu0 %v1399_v54 }
  0x44   :  { %737 = vmatmul.mubr.bf16.gmra.mrb[16].mxu1 %v1400_v55  ;;  %647 = vmatprep.mubr.bf16.mxu0 %v1402_v56 }
  0x45   :  { %744 = vmatprep.mubr.bf16.mxu1 %v1404_v57 }
  0x4b   :  { %648 = vmatmul.mubr.bf16.gmra.mrb[20].mxu0 %v1406_v58 }
  0x4c   :  { %745 = vmatmul.mubr.bf16.gmra.mrb[20].mxu1 %v1407_v59  ;;  %655 = vmatprep.mubr.bf16.mxu0 %v1408_v60 }
  0x4d   :  { %752 = vmatprep.mubr.bf16.mxu1 %v1410_v61 }
  0x53   :  { %656 = vmatmul.mubr.bf16.gmra.mrb[24].mxu0 %v1412_v62 }
  0x54   :  { %753 = vmatmul.mubr.bf16.gmra.mrb[24].mxu1 %v1413_v63  ;;  %663 = vmatprep.mubr.bf16.mxu0 %v1415_v0 }
  0x55   :  { %760 = vmatprep.mubr.bf16.mxu1 %v1417_v1 }
  0x5b   :  { %664 = vmatmul.mubr.bf16.gmra.mrb[28].mxu0 %v1419_v2 }
  0x5c   :  { %761 = vmatmul.mubr.bf16.gmra.mrb[28].mxu1 %v1420_v3  ;;  %1313 = vmatprep.mubr.msk.bf16.mxu0 %vm550_vm0, %v1421_v4 }
  0x5d   :  { %1321 = vmatprep.mubr.msk.bf16.mxu1 %vm550_vm0, %v1422_v5 }
  0x63   :  { %1314 = vmatmul.mubr.msk.bf16.vlgmr.msra.gmra.mrb[32].mxu0 %vm550_vm0, %v1423_v6 }
  0x64   :  { %1322 = vmatmul.mubr.msk.bf16.vlgmr.msra.gmra.mrb[32].mxu1 %vm550_vm0, %v1424_v7  ;;  %1317 = vmatprep.mubr.msk.bf16.mxu0 %vm550_vm0, %v1425_v8 }
  0x65   :  { %1325 = vmatprep.mubr.msk.bf16.mxu1 %vm550_vm0, %v1426_v9 }
  0x6b   :  { %1318 = vmatmul.mubr.msk.bf16.gmra.mrb[36].mxu0 %vm550_vm0, %v1427_v10 }
  0x6c   :  { %1326 = vmatmul.mubr.msk.bf16.gmra.mrb[36].mxu1 %vm550_vm0, %v1428_v11 }
  0xf6   :  { %v1181_v12 = vpop.f32.mrb[0].mxu0 }
  0xf7   :  { %v1245_v13 = vpop.f32.mrb[0].mxu1  ;;  %v1182_v14 = vpop.f32.mrb[1].mxu0 }
  0xf8   :  { %v1183_v15 = vadd.f32 %v1182_v14, %v1181_v12  ;;  %v1246_v16 = vpop.f32.mrb[1].mxu1  ;;  %v1184_v17 = vpop.f32.mrb[2].mxu0 }
  0xf9   :  { %v1247_v18 = vadd.f32 %v1246_v16, %v1245_v13  ;;  %v1248_v19 = vpop.f32.mrb[2].mxu1  ;;  %v1185_v20 = vpop.f32.mrb[3].mxu0 }
  0xfa   :  { %v1186_v21 = vadd.f32 %v1185_v20, %v1184_v17  ;;  %v1249_v22 = vpop.f32.mrb[3].mxu1 }
  0xfb   :  { %v1250_v23 = vadd.f32 %v1249_v22, %v1248_v19  ;;  %v1685_v24 = vadd.f32 %v1247_v18, %v1183_v15 }
  0xfd   :  { %v1687_v25 = vadd.f32 %v1250_v23, %v1186_v21 }
  0xfe   :  { %v1187_v26 = vpop.f32.mrb[4].mxu0 }
  0xff   :  { %v1251_v27 = vpop.f32.mrb[4].mxu1  ;;  %v1188_v28 = vpop.f32.mrb[5].mxu0 }
 0x100   :  { %v1189_v29 = vadd.f32 %v1188_v28, %v1187_v26  ;;  %v1252_v30 = vpop.f32.mrb[5].mxu1  ;;  %v1190_v31 = vpop.f32.mrb[6].mxu0 }
 0x101   :  { %v1253_v32 = vadd.f32 %v1252_v30, %v1251_v27  ;;  %v1254_v33 = vpop.f32.mrb[6].mxu1  ;;  %v1191_v34 = vpop.f32.mrb[7].mxu0 }
 0x102   :  { %v1192_v35 = vadd.f32 %v1191_v34, %v1190_v31  ;;  %v1255_v36 = vpop.f32.mrb[7].mxu1 }
 0x103   :  { %v1256_v37 = vadd.f32 %v1255_v36, %v1254_v33  ;;  %v1689_v38 = vadd.f32 %v1253_v32, %v1189_v29 }
 0x105   :  { %v1691_v39 = vadd.f32 %v1256_v37, %v1192_v35 }
 0x106   :  { %v1193_v40 = vpop.f32.mrb[8].mxu0 }
 0x107   :  { %v1257_v41 = vpop.f32.mrb[8].mxu1  ;;  %v1194_v42 = vpop.f32.mrb[9].mxu0 }
 0x108   :  { %v1195_v43 = vadd.f32 %v1194_v42, %v1193_v40  ;;  %v1258_v44 = vpop.f32.mrb[9].mxu1  ;;  %v1196_v45 = vpop.f32.mrb[10].mxu0 }
 0x109   :  { %v1259_v46 = vadd.f32 %v1258_v44, %v1257_v41  ;;  %v1260_v47 = vpop.f32.mrb[10].mxu1  ;;  %v1197_v48 = vpop.f32.mrb[11].mxu0 }
 0x10a   :  { %v1198_v49 = vadd.f32 %v1197_v48, %v1196_v45  ;;  %v1261_v50 = vpop.f32.mrb[11].mxu1 }
 0x10b   :  { %v1262_v51 = vadd.f32 %v1261_v50, %v1260_v47  ;;  %v1693_v52 = vadd.f32 %v1259_v46, %v1195_v43 }
 0x10d   :  { %v1695_v53 = vadd.f32 %v1262_v51, %v1198_v49 }
 0x10e   :  { %v1199_v54 = vpop.f32.mrb[12].mxu0 }
 0x10f   :  { %v1263_v55 = vpop.f32.mrb[12].mxu1  ;;  %v1200_v56 = vpop.f32.mrb[13].mxu0 }
 0x110   :  { %v1201_v57 = vadd.f32 %v1200_v56, %v1199_v54  ;;  %v1264_v58 = vpop.f32.mrb[13].mxu1  ;;  %v1202_v59 = vpop.f32.mrb[14].mxu0 }
 0x111   :  { %v1265_v60 = vadd.f32 %v1264_v58, %v1263_v55  ;;  %v1266_v61 = vpop.f32.mrb[14].mxu1  ;;  %v1203_v62 = vpop.f32.mrb[15].mxu0 }
 0x112   :  { %v1204_v63 = vadd.f32 %v1203_v62, %v1202_v59  ;;  %v1267_v0 = vpop.f32.mrb[15].mxu1 }
 0x113   :  { %v1268_v1 = vadd.f32 %v1267_v0, %v1266_v61  ;;  %v1697_v2 = vadd.f32 %v1265_v60, %v1201_v57 }
 0x115   :  { %v1699_v3 = vadd.f32 %v1268_v1, %v1204_v63 }
 0x116   :  { %v1205_v4 = vpop.f32.mrb[16].mxu0 }
 0x117   :  { %v1269_v5 = vpop.f32.mrb[16].mxu1  ;;  %v1206_v6 = vpop.f32.mrb[17].mxu0 }
 0x118   :  { %v1207_v7 = vadd.f32 %v1206_v6, %v1205_v4  ;;  %v1270_v8 = vpop.f32.mrb[17].mxu1  ;;  %v1208_v9 = vpop.f32.mrb[18].mxu0 }
 0x119   :  { %v1271_v10 = vadd.f32 %v1270_v8, %v1269_v5  ;;  %v1272_v11 = vpop.f32.mrb[18].mxu1  ;;  %v1209_v12 = vpop.f32.mrb[19].mxu0 }
 0x11a   :  { %v1210_v13 = vadd.f32 %v1209_v12, %v1208_v9  ;;  %v1273_v14 = vpop.f32.mrb[19].mxu1 }
 0x11b   :  { %v1274_v15 = vadd.f32 %v1273_v14, %v1272_v11  ;;  %v739_v16 = vadd.f32 %v1271_v10, %v1207_v7 }
 0x11d   :  { %v1701_v17 = vadd.f32 %v1274_v15, %v1210_v13 }
 0x11e   :  { %v1211_v18 = vpop.f32.mrb[20].mxu0 }
 0x11f   :  { %v1275_v19 = vpop.f32.mrb[20].mxu1  ;;  %v1212_v20 = vpop.f32.mrb[21].mxu0 }
 0x120   :  { %v1213_v21 = vadd.f32 %v1212_v20, %v1211_v18  ;;  %v1276_v22 = vpop.f32.mrb[21].mxu1  ;;  %v1214_v23 = vpop.f32.mrb[22].mxu0 }
 0x121   :  { %v1277_v26 = vadd.f32 %v1276_v22, %v1275_v19  ;;  %v1278_v27 = vpop.f32.mrb[22].mxu1  ;;  %v1215_v28 = vpop.f32.mrb[23].mxu0 }
 0x122   :  { %v1216_v29 = vadd.f32 %v1215_v28, %v1214_v23  ;;  %v1279_v30 = vpop.f32.mrb[23].mxu1 }
 0x123   :  { %v1280_v31 = vadd.f32 %v1279_v30, %v1278_v27  ;;  %v747_v32 = vadd.f32 %v1277_v26, %v1213_v21 }
 0x125   :  { %v750_v33 = vadd.f32 %v1280_v31, %v1216_v29 }
 0x126   :  { %v1217_v34 = vpop.f32.mrb[24].mxu0 }
 0x127   :  { %v1281_v35 = vpop.f32.mrb[24].mxu1  ;;  %v1218_v36 = vpop.f32.mrb[25].mxu0 }
 0x128   :  { %v1219_v37 = vadd.f32 %v1218_v36, %v1217_v34  ;;  %v1282_v40 = vpop.f32.mrb[25].mxu1  ;;  %v1220_v41 = vpop.f32.mrb[26].mxu0 }
 0x129   :  { %v1283_v42 = vadd.f32 %v1282_v40, %v1281_v35  ;;  %v1284_v43 = vpop.f32.mrb[26].mxu1  ;;  %v1221_v44 = vpop.f32.mrb[27].mxu0 }
 0x12a   :  { %v1222_v45 = vadd.f32 %v1221_v44, %v1220_v41  ;;  %v1285_v46 = vpop.f32.mrb[27].mxu1 }
 0x12b   :  { %v1286_v47 = vadd.f32 %v1285_v46, %v1284_v43  ;;  %v1703_v48 = vadd.f32 %v1283_v42, %v1219_v37 }
 0x12d   :  { %v1705_v49 = vadd.f32 %v1286_v47, %v1222_v45 }
 0x12e   :  { %v1223_v50 = vpop.f32.mrb[28].mxu0 }
 0x12f   :  { %v1287_v51 = vpop.f32.mrb[28].mxu1  ;;  %v1224_v54 = vpop.f32.mrb[29].mxu0 }
 0x130   :  { %v1225_v55 = vadd.f32 %v1224_v54, %v1223_v50  ;;  %v1288_v56 = vpop.f32.mrb[29].mxu1  ;;  %v1226_v57 = vpop.f32.mrb[30].mxu0 }
 0x131   :  { %v1289_v58 = vadd.f32 %v1288_v56, %v1287_v51  ;;  %v1290_v59 = vpop.f32.mrb[30].mxu1  ;;  %v1227_v60 = vpop.f32.mrb[31].mxu0 }
 0x132   :  { %v1228_v61 = vadd.f32 %v1227_v60, %v1226_v57  ;;  %v1291_v62 = vpop.f32.mrb[31].mxu1 }
 0x133   :  { %v1292_v63 = vadd.f32 %v1291_v62, %v1290_v59  ;;  %v763_v0 = vadd.f32 %v1289_v58, %v1225_v55 }
 0x135   :  { %v1707_v1 = vadd.f32 %v1292_v63, %v1228_v61 }
 0x136   :  { %v1315_v4 = vpop.f32.mrb[32].mxu0 }
 0x137   :  { %v812_v5 = vadd.f32 %v1315_v4, %v1689_v38  ;;  %v1323_v6 = vpop.f32.mrb[32].mxu1  ;;  %v803_v7 = vpop.f32.mrb[33].mxu0 }
 0x138   :  { %v1710_v8 = vadd.f32 %v1323_v6, %v747_v32  ;;  %v804_v9 = vadd.f32 %v803_v7, %v1685_v24  ;;  %v835_v10 = vpop.f32.mrb[33].mxu1  ;;  %v1316_v11 = vpop.f32.mrb[34].mxu0 }
 0x139   :  { %v1151_v12 = vpack.c.bf16 %v812_v5, %v812_v5  ;;  %v1713_v13 = vadd.f32 %v835_v10, %v739_v16  ;;  %v1324_v14 = vpop.f32.mrb[34].mxu1  ;;  %v806_v15 = vpop.f32.mrb[35].mxu0  ;;  %v815_v38 = vadd.f32 %v1316_v11, %v1691_v39  ;;  %v986_v28 = vmul.f32 %v812_v5, %v812_v5 }
 0x13a   :  { %v1159_v18 = vpack.c.bf16 %v1710_v8, %v1710_v8  ;;  %v1149_v19 = vpack.c.bf16 %v804_v9, %v804_v9  ;;  %v838_v20 = vpop.f32.mrb[35].mxu1  ;;  %v984_v16 = vmul.f32 %v804_v9, %v804_v9  ;;  %v1736_v21 = vadd.f32 %v1324_v14, %v750_v33 }
 0x13b   :  { %933 = vst.msk [vmem:[%s1864_s2 + $0x8] sm:$0xf] %vm930_vm1, %v1151_v12  ;;  %v1157_v24 = vpack.c.bf16 %v1713_v13, %v1713_v13  ;;  %v807_v22 = vadd.f32 %v806_v15, %v1687_v25  ;;  %v1740_v23 = vadd.f32 %v838_v20, %v1701_v17  ;;  %v1152_v26 = vpack.c.bf16 %v815_v38, %v815_v38 }
 0x13c   :  { %941 = vst.msk [vmem:[%s1864_s2 + $0x28] sm:$0xf] %vm930_vm1, %v1159_v18  ;;  %931 = vst.msk [vmem:[%s1864_s2] sm:$0xf] %vm930_vm1, %v1149_v19  ;;  %v1160_v29 = vpack.c.bf16 %v1736_v21, %v1736_v21  ;;  %v947_v32 = vsel %vm550_vm0, %v804_v9, 0.0  ;;  %v950_v36 = vsel %vm550_vm0, %v812_v5, 0.0  ;;  %v987_v40 = vmul.f32 %v815_v38, %v815_v38 }
 0x13d   :  { %939 = vst.msk [vmem:[%s1864_s2 + $0x20] sm:$0xf] %vm930_vm1, %v1157_v24  ;;  %v1150_v39 = vpack.c.bf16 %v807_v22, %v807_v22  ;;  %934 = vst.msk [vmem:[%s1864_s2 + $0xc] sm:$0xf] %vm930_vm1, %v1152_v26  ;;  %v948_v25 = vsel %vm550_vm0, %v807_v22, 0.0  ;;  %v985_v17 = vmul.f32 %v807_v22, %v807_v22  ;;  %v1158_v33 = vpack.c.bf16 %v1740_v23, %v1740_v23 }
 0x13e   :  { %v1319_v27 = vpop.f32.mrb[36].mxu0  ;;  %v1000_v37 = vsel %vm550_vm0, %v984_v16, 0.0  ;;  %942 = vst.msk [vmem:[%s1864_s2 + $0x2c] sm:$0xf] %vm930_vm1, %v1160_v29  ;;  %v949_v41 = vadd.f32 %v948_v25, %v947_v32  ;;  %v1003_v56 = vsel %vm550_vm0, %v986_v28, 0.0  ;;  %v952_v59 = vsel %vm550_vm0, %v815_v38, 0.0 }
 0x13f   :  { %v1327_v30 = vpop.f32.mrb[36].mxu1  ;;  %v819_v31 = vpop.f32.mrb[37].mxu0  ;;  %932 = vst.msk [vmem:[%s1864_s2 + $0x4] sm:$0xf] %vm930_vm1, %v1150_v39  ;;  %v1001_v44 = vsel %vm550_vm0, %v985_v17, 0.0  ;;  %v828_v45 = vadd.f32 %v1319_v27, %v1697_v2  ;;  %v1005_v61 = vsel %vm550_vm0, %v987_v40, 0.0  ;;  %v992_v22 = vmul.f32 %v1713_v13, %v1713_v13 }
 0x140   :  { %v851_v34 = vpop.f32.mrb[37].mxu1  ;;  %v1320_v35 = vpop.f32.mrb[38].mxu0  ;;  %940 = vst.msk [vmem:[%s1864_s2 + $0x24] sm:$0xf] %vm930_vm1, %v1158_v33  ;;  %v1768_v46 = vadd.f32 %v1327_v30, %v763_v0  ;;  %v820_v47 = vadd.f32 %v819_v31, %v1693_v52  ;;  %v951_v51 = vadd.f32 %v950_v36, %v949_v41  ;;  %v1002_v54 = vadd.f32 %v1001_v44, %v1000_v37 }
 0x141   :  { %v1328_v42 = vpop.f32.mrb[38].mxu1  ;;  %v822_v43 = vpop.f32.mrb[39].mxu0  ;;  %v1772_v55 = vadd.f32 %v851_v34, %v1703_v48  ;;  %v1155_v57 = vpack.c.bf16 %v828_v45, %v828_v45  ;;  %v831_v6 = vadd.f32 %v1320_v35, %v1699_v3  ;;  %v990_v18 = vmul.f32 %v828_v45, %v828_v45 }
 0x142   :  { %v854_v50 = vpop.f32.mrb[39].mxu1  ;;  %v1163_v58 = vpack.c.bf16 %v1768_v46, %v1768_v46  ;;  %v1004_v60 = vadd.f32 %v1003_v56, %v1002_v54  ;;  %v1153_v2 = vpack.c.bf16 %v820_v47, %v820_v47  ;;  %v953_v52 = vadd.f32 %v952_v59, %v951_v51 }
 0x143   :  { %937 = vst.msk [vmem:[%s1864_s2 + $0x18] sm:$0xf] %vm930_vm1, %v1155_v57  ;;  %v954_v48 = vsel %vm550_vm0, %v820_v47, 0.0  ;;  %v988_v62 = vmul.f32 %v820_v47, %v820_v47  ;;  %v1161_v0 = vpack.c.bf16 %v1772_v55, %v1772_v55  ;;  %v863_v9 = vadd.f32 %v1328_v42, %v1707_v1 }
 0x144   :  { %945 = vst.msk [vmem:[%s1864_s2 + $0x38] sm:$0xf] %vm930_vm1, %v1163_v58  ;;  %935 = vst.msk [vmem:[%s1864_s2 + $0x10] sm:$0xf] %vm930_vm1, %v1153_v2  ;;  %v1006_v63 = vadd.f32 %v1005_v61, %v1004_v60  ;;  %v955_v4 = vadd.f32 %v954_v48, %v953_v52  ;;  %v823_v10 = vadd.f32 %v822_v43, %v1695_v53  ;;  %v1011_v26 = vsel %vm550_vm0, %v990_v18, 0.0 }
 0x145   :  { %v1007_v5 = vsel %vm550_vm0, %v988_v62, 0.0  ;;  %943 = vst.msk [vmem:[%s1864_s2 + $0x30] sm:$0xf] %vm930_vm1, %v1161_v0  ;;  %v855_v11 = vadd.f32 %v854_v50, %v1705_v49  ;;  %v1156_v12 = vpack.c.bf16 %v831_v6, %v831_v6  ;;  %v1164_v14 = vpack.c.bf16 %v863_v9, %v863_v9 }
 0x146   :  { %v1008_v7 = vadd.f32 %v1007_v5, %v1006_v63  ;;  %v1154_v15 = vpack.c.bf16 %v823_v10, %v823_v10  ;;  %v956_v3 = vsel %vm550_vm0, %v823_v10, 0.0  ;;  %v989_v19 = vmul.f32 %v823_v10, %v823_v10 }
 0x147   :  { %938 = vst.msk [vmem:[%s1864_s2 + $0x1c] sm:$0xf] %vm930_vm1, %v1156_v12  ;;  %v1162_v20 = vpack.c.bf16 %v855_v11, %v855_v11  ;;  %946 = vst.msk [vmem:[%s1864_s2 + $0x3c] sm:$0xf] %vm930_vm1, %v1164_v14  ;;  %v957_v53 = vadd.f32 %v956_v3, %v955_v4  ;;  %v958_v49 = vsel %vm550_vm0, %v828_v45, 0.0  ;;  %v991_v1 = vmul.f32 %v831_v6, %v831_v6 }
 0x148   :  { %936 = vst.msk [vmem:[%s1864_s2 + $0x14] sm:$0xf] %vm930_vm1, %v1154_v15  ;;  %v1009_v24 = vsel %vm550_vm0, %v989_v19, 0.0  ;;  %v960_v27 = vsel %vm550_vm0, %v831_v6, 0.0  ;;  %v962_v39 = vsel %vm550_vm0, %v1713_v13, 0.0  ;;  %v993_v30 = vmul.f32 %v1740_v23, %v1740_v23 }
 0x149   :  { %944 = vst.msk [vmem:[%s1864_s2 + $0x34] sm:$0xf] %vm930_vm1, %v1162_v20  ;;  %v959_v38 = vadd.f32 %v958_v49, %v957_v53  ;;  %v1010_v16 = vadd.f32 %v1009_v24, %v1008_v7  ;;  %v1013_v31 = vsel %vm550_vm0, %v991_v1, 0.0  ;;  %v994_v17 = vmul.f32 %v1710_v8, %v1710_v8 }
 0x14a   :  { %v1015_v33 = vsel %vm550_vm0, %v992_v22, 0.0  ;;  %v964_v34 = vsel %vm550_vm0, %v1740_v23, 0.0  ;;  %v966_v13 = vsel %vm550_vm0, %v1710_v8, 0.0  ;;  %v995_v37 = vmul.f32 %v1736_v21, %v1736_v21 }
 0x14b   :  { %v961_v28 = vadd.f32 %v960_v27, %v959_v38  ;;  %v1012_v29 = vadd.f32 %v1011_v26, %v1010_v16  ;;  %v1017_v40 = vsel %vm550_vm0, %v993_v30, 0.0  ;;  %v1019_v43 = vsel %vm550_vm0, %v994_v17, 0.0 }
 0x14c   :  { %v968_v44 = vsel %vm550_vm0, %v1736_v21, 0.0  ;;  %v996_v23 = vmul.f32 %v1772_v55, %v1772_v55  ;;  %v1021_v50 = vsel %vm550_vm0, %v995_v37, 0.0  ;;  %v970_v8 = vsel %vm550_vm0, %v1772_v55, 0.0 }
 0x14d   :  { %v963_v32 = vadd.f32 %v962_v39, %v961_v28  ;;  %v1014_v25 = vadd.f32 %v1013_v31, %v1012_v29  ;;  %v997_v51 = vmul.f32 %v855_v11, %v855_v11  ;;  %v998_v57 = vmul.f32 %v1768_v46, %v1768_v46 }
 0x14e   :  { %v1023_v58 = vsel %vm550_vm0, %v996_v23, 0.0  ;;  %v972_v21 = vsel %vm550_vm0, %v855_v11, 0.0  ;;  %v974_v2 = vsel %vm550_vm0, %v1768_v46, 0.0  ;;  %v999_v61 = vmul.f32 %v863_v9, %v863_v9 }
 0x14f   :  { %v1016_v35 = vadd.f32 %v1015_v33, %v1014_v25  ;;  %v965_v36 = vadd.f32 %v964_v34, %v963_v32  ;;  %v1025_v52 = vsel %vm550_vm0, %v997_v51, 0.0  ;;  %v1027_v62 = vsel %vm550_vm0, %v998_v57, 0.0 }
 0x150   :  { %v976_v63 = vsel %vm550_vm0, %v863_v9, 0.0  ;;  %v1029_v5 = vsel %vm550_vm0, %v999_v61, 0.0 }
 0x151   :  { %v967_v41 = vadd.f32 %v966_v13, %v965_v36  ;;  %v1018_v42 = vadd.f32 %v1017_v40, %v1016_v35 }
 0x153   :  { %v969_v45 = vadd.f32 %v968_v44, %v967_v41  ;;  %v1020_v47 = vadd.f32 %v1019_v43, %v1018_v42 }
 0x155   :  { %v971_v54 = vadd.f32 %v970_v8, %v969_v45  ;;  %v1022_v56 = vadd.f32 %v1021_v50, %v1020_v47 }
 0x157   :  { %v973_v59 = vadd.f32 %v972_v21, %v971_v54  ;;  %v1024_v60 = vadd.f32 %v1023_v58, %v1022_v56 }
 0x159   :  { %v975_v48 = vadd.f32 %v974_v2, %v973_v59  ;;  %v1026_v55 = vadd.f32 %v1025_v52, %v1024_v60 }
 0x15b   :  { %v977_v0 = vadd.f32 %v976_v63, %v975_v48  ;;  %v1028_v4 = vadd.f32 %v1027_v62, %v1026_v55 }
 0x15d   :  { %v978_v6 = vrot.slane %v977_v0, 4  ;;  %v1030_v7 = vadd.f32 %v1029_v5, %v1028_v4 }
 0x15f   :  { %v979_v10 = vadd.f32 %v978_v6, %v977_v0  ;;  %v1031_v11 = vrot.slane %v1030_v7, 4 }
 0x161   :  { %v980_v12 = vrot.slane %v979_v10, 2  ;;  %v1032_v14 = vadd.f32 %v1031_v11, %v1030_v7 }
 0x163   :  { %v981_v46 = vadd.f32 %v980_v12, %v979_v10  ;;  %v1033_v15 = vrot.slane %v1032_v14, 2 }
 0x165   :  { %v982_v18 = vrot.slane %v981_v46, 1  ;;  %v1034_v3 = vadd.f32 %v1033_v15, %v1032_v14 }
 0x167   :  { %v1035_v19 = vrot.slane %v1034_v3, 1  ;;  %v983_v20 = vadd.f32 %v982_v18, %v981_v46 }
 0x169   :  { %v1036_v53 = vadd.f32 %v1035_v19, %v1034_v3 }
 0x16b   :  { %v1038_v9 = vsel %vm1037_vm2, %v983_v20, %v1036_v53 }
 0x16c   :  { %1040 = vst.msk [vmem:[%s1865_s3] sm:$0x3] %vm1039_vm3, %v1038_v9 }

// kernel: _lambda_.37
= control target key start
LH: loop header
LB: loop body
LE: loop exit
PB: predicated region body
PF: predicated region fallthrough
CT: control target
= control target key end

     0   :  { %v301_v7 = vmov 1966171168   ;;  %v33_v9 = vlaneseq  ;;  %vm206_vm0 = vcmask 519168   ;;  %s446_s0 = inlined_call_operand.vmem [shape: f32[1,2,64], index: 0, kind: input, shape index: {}]   ;;  %s447_s3 = inlined_call_operand.vmem [shape: bf16[128,64], index: 3, kind: input, shape index: {}]   ;;  %s448_s1 = inlined_call_operand.vmem [shape: f32[1,64], index: 1, kind: input, shape index: {}]   ;;  %s449_s2 = inlined_call_operand.vmem [shape: f32[1,64], index: 2, kind: input, shape index: {}]   ;;  %s450_s4 = inlined_call_operand.vmem [shape: bf16[128,64], index: 4, kind: output, shape index: {}]  }
   0x1   :  { %v17_v0 = vld [vmem:[%s446_s0] sm:$0x3]  ;;  %v31_v8 = vunpack.c.l.s4 %v301_v7  ;;  %v291_v17 = vld [vmem:[%s447_s3 + $0x8] sm:$0xff]   ;;  %v292_v19 = vld [vmem:[%s447_s3 + $0x10] sm:$0xff]  }
   0x2   :  { %v19_v1 = vmul.f32 0.0078125, %v17_v0  ;;  %v34_v11 = vshrl.u32 %v33_v9, 7  ;;  %v260_v16 = vld [vmem:[%s447_s3] sm:$0xff]   ;;  %v293_v22 = vld [vmem:[%s447_s3 + $0x18] sm:$0xff]   ;;  %v265_v26 = vunpack.c.l.bf16 %v291_v17  ;;  %v295_v27 = vld [vmem:[%s447_s3 + $0x28] sm:$0xff]   ;;  %v266_v29 = vunpack.c.h.bf16 %v291_v17 }
   0x3   :  { %v32_v10 = vunpack.c.0.s8 %v31_v8  ;;  %v26_v18 = vld [vmem:[%s448_s1] sm:$0x1]  ;;  %v261_v24 = vunpack.c.l.bf16 %v260_v16  ;;  %v262_v25 = vunpack.c.h.bf16 %v260_v16  ;;  %v269_v30 = vunpack.c.l.bf16 %v292_v19  ;;  %v296_v32 = vld [vmem:[%s447_s3 + $0x30] sm:$0xff]   ;;  %v357_v33 = vld [vmem:[%s447_s3 + $0x38] sm:$0xff]  }
   0x4   :  { %v20_v2 = vmul.f32 %v19_v1, %v19_v1  ;;  %v85_v21 = vsub.s32 0, %v34_v11  ;;  %v294_v23 = vld [vmem:[%s447_s3 + $0x20] sm:$0xff]   ;;  %v270_v31 = vunpack.c.h.bf16 %v292_v19  ;;  %v273_v35 = vunpack.c.l.bf16 %v293_v22 }
   0x5   :  { %v35_v12 = vsub.s32 %v32_v10, %v34_v11  ;;  %v47_v34 = vld [vmem:[%s449_s2] sm:$0x1]  ;;  %v274_v36 = vunpack.c.h.bf16 %v293_v22  ;;  %v277_v37 = vunpack.c.l.bf16 %v294_v23  ;;  %v278_v38 = vunpack.c.h.bf16 %v294_v23 }
   0x6   :  { %v22_v3 = vrot.slane %v20_v2, 7  ;;  %v281_v41 = vunpack.c.l.bf16 %v295_v27  ;;  %v282_v42 = vunpack.c.h.bf16 %v295_v27  ;;  %v285_v43 = vunpack.c.l.bf16 %v296_v32 }
   0x7   :  { %v286_v44 = vunpack.c.h.bf16 %v296_v32  ;;  %v289_v45 = vunpack.c.l.bf16 %v357_v33  ;;  %v290_v46 = vunpack.c.h.bf16 %v357_v33 }
   0x8   :  { %v24_v4 = vsub.f32 %v19_v1, %v22_v3 }
   0xa   :  { %v25_v5 = vmax.f32 %v24_v4, 0.0 }
   0xc   :  { %v27_v6 = vadd.f32 1e-05, %v25_v5 }
   0xe   :  { %299 = vrsqrt.f32 %v27_v6 }
  0x18   :  { %v300_v13 = vpop.eup %299 }
  0x19   :  { %v36_v14 = vrot.slane %v300_v13, %v35_v12 }
  0x1b   :  { %v37_v15 = vcombine.high %v36_v14, %v36_v14 }
  0x1d   :  { %v44_v20 = vrot.slane %v37_v15, %v35_v12 }
  0x1f   :  { %v46_v28 = vmul.f32 %v44_v20, %v26_v18 }
  0x21   :  { %v48_v39 = vmul.f32 %v46_v28, %v19_v1  ;;  %v362_v40 = vrot.slane %v46_v28, %v85_v21 }
  0x23   :  { %v49_v47 = vsub.f32 %v47_v34, %v48_v39  ;;  %v88_v48 = vmul.f32 %v261_v24, %v362_v40  ;;  %v89_v49 = vmul.f32 %v262_v25, %v362_v40  ;;  %v90_v50 = vmul.f32 %v265_v26, %v362_v40 }
  0x24   :  { %v91_v51 = vmul.f32 %v266_v29, %v362_v40  ;;  %v92_v52 = vmul.f32 %v269_v30, %v362_v40  ;;  %v93_v53 = vmul.f32 %v270_v31, %v362_v40  ;;  %v94_v54 = vmul.f32 %v273_v35, %v362_v40 }
  0x25   :  { %v108_v55 = vrot.slane %v49_v47, %v85_v21  ;;  %v95_v56 = vmul.f32 %v274_v36, %v362_v40  ;;  %v96_v57 = vmul.f32 %v277_v37, %v362_v40  ;;  %v97_v58 = vmul.f32 %v278_v38, %v362_v40 }
  0x26   :  { %v98_v59 = vmul.f32 %v281_v41, %v362_v40  ;;  %v99_v60 = vmul.f32 %v282_v42, %v362_v40  ;;  %v100_v61 = vmul.f32 %v285_v43, %v362_v40  ;;  %v101_v62 = vmul.f32 %v286_v44, %v362_v40 }
  0x27   :  { %v110_v63 = vadd.f32 %v108_v55, %v88_v48  ;;  %v111_v0 = vadd.f32 %v108_v55, %v89_v49  ;;  %v112_v1 = vadd.f32 %v108_v55, %v90_v50  ;;  %v113_v2 = vadd.f32 %v108_v55, %v91_v51 }
  0x28   :  { %v114_v3 = vadd.f32 %v108_v55, %v92_v52  ;;  %v115_v4 = vadd.f32 %v108_v55, %v93_v53  ;;  %v116_v5 = vadd.f32 %v108_v55, %v94_v54  ;;  %v117_v6 = vadd.f32 %v108_v55, %v95_v56 }
  0x29   :  { %v126_v7 = vmax.f32 %v110_v63, 0.0  ;;  %v127_v8 = vmax.f32 %v111_v0, 0.0  ;;  %v128_v9 = vmax.f32 %v112_v1, 0.0  ;;  %v129_v10 = vmax.f32 %v113_v2, 0.0 }
  0x2a   :  { %v130_v11 = vmax.f32 %v114_v3, 0.0  ;;  %v131_v12 = vmax.f32 %v115_v4, 0.0  ;;  %v132_v13 = vmax.f32 %v116_v5, 0.0  ;;  %v133_v14 = vmax.f32 %v117_v6, 0.0 }
  0x2b   :  { %v243_v15 = vpack.c.bf16 %v126_v7, %v126_v7  ;;  %v244_v16 = vpack.c.bf16 %v127_v8, %v127_v8  ;;  %v245_v17 = vpack.c.bf16 %v128_v9, %v128_v9  ;;  %v246_v18 = vpack.c.bf16 %v129_v10, %v129_v10 }
  0x2c   :  { %v247_v19 = vpack.c.bf16 %v130_v11, %v130_v11  ;;  %v248_v20 = vpack.c.bf16 %v131_v12, %v131_v12  ;;  %v249_v21 = vpack.c.bf16 %v132_v13, %v132_v13  ;;  %v250_v22 = vpack.c.bf16 %v133_v14, %v133_v14 }
  0x2d   :  { %207 = vst.msk [vmem:[%s450_s4] sm:$0xf] %vm206_vm0, %v243_v15  ;;  %208 = vst.msk [vmem:[%s450_s4 + $0x4] sm:$0xf] %vm206_vm0, %v244_v16  ;;  %v118_v23 = vadd.f32 %v108_v55, %v96_v57  ;;  %v119_v24 = vadd.f32 %v108_v55, %v97_v58  ;;  %v120_v25 = vadd.f32 %v108_v55, %v98_v59 }
  0x2e   :  { %209 = vst.msk [vmem:[%s450_s4 + $0x8] sm:$0xf] %vm206_vm0, %v245_v17  ;;  %210 = vst.msk [vmem:[%s450_s4 + $0xc] sm:$0xf] %vm206_vm0, %v246_v18  ;;  %v121_v26 = vadd.f32 %v108_v55, %v99_v60  ;;  %v122_v27 = vadd.f32 %v108_v55, %v100_v61  ;;  %v123_v28 = vadd.f32 %v108_v55, %v101_v62 }
  0x2f   :  { %211 = vst.msk [vmem:[%s450_s4 + $0x10] sm:$0xf] %vm206_vm0, %v247_v19  ;;  %212 = vst.msk [vmem:[%s450_s4 + $0x14] sm:$0xf] %vm206_vm0, %v248_v20  ;;  %v102_v29 = vmul.f32 %v289_v45, %v362_v40  ;;  %v103_v30 = vmul.f32 %v290_v46, %v362_v40  ;;  %v134_v31 = vmax.f32 %v118_v23, 0.0  ;;  %v135_v32 = vmax.f32 %v119_v24, 0.0 }
  0x30   :  { %213 = vst.msk [vmem:[%s450_s4 + $0x18] sm:$0xf] %vm206_vm0, %v249_v21  ;;  %214 = vst.msk [vmem:[%s450_s4 + $0x1c] sm:$0xf] %vm206_vm0, %v250_v22  ;;  %v136_v33 = vmax.f32 %v120_v25, 0.0  ;;  %v137_v34 = vmax.f32 %v121_v26, 0.0 }
  0x31   :  { %v138_v35 = vmax.f32 %v122_v27, 0.0  ;;  %v139_v36 = vmax.f32 %v123_v28, 0.0  ;;  %v124_v37 = vadd.f32 %v108_v55, %v102_v29  ;;  %v125_v38 = vadd.f32 %v108_v55, %v103_v30 }
  0x32   :  { %v251_v39 = vpack.c.bf16 %v134_v31, %v134_v31  ;;  %v252_v41 = vpack.c.bf16 %v135_v32, %v135_v32  ;;  %v253_v42 = vpack.c.bf16 %v136_v33, %v136_v33  ;;  %v254_v43 = vpack.c.bf16 %v137_v34, %v137_v34 }
  0x33   :  { %v255_v44 = vpack.c.bf16 %v138_v35, %v138_v35  ;;  %v256_v47 = vpack.c.bf16 %v139_v36, %v139_v36  ;;  %v140_v48 = vmax.f32 %v124_v37, 0.0  ;;  %v141_v49 = vmax.f32 %v125_v38, 0.0 }
  0x34   :  { %215 = vst.msk [vmem:[%s450_s4 + $0x20] sm:$0xf] %vm206_vm0, %v251_v39  ;;  %216 = vst.msk [vmem:[%s450_s4 + $0x24] sm:$0xf] %vm206_vm0, %v252_v41 }
  0x35   :  { %217 = vst.msk [vmem:[%s450_s4 + $0x28] sm:$0xf] %vm206_vm0, %v253_v42  ;;  %218 = vst.msk [vmem:[%s450_s4 + $0x2c] sm:$0xf] %vm206_vm0, %v254_v43  ;;  %v257_v40 = vpack.c.bf16 %v140_v48, %v140_v48  ;;  %v258_v45 = vpack.c.bf16 %v141_v49, %v141_v49 }
  0x36   :  { %219 = vst.msk [vmem:[%s450_s4 + $0x30] sm:$0xf] %vm206_vm0, %v255_v44  ;;  %220 = vst.msk [vmem:[%s450_s4 + $0x34] sm:$0xf] %vm206_vm0, %v256_v47 }
  0x37   :  { %221 = vst.msk [vmem:[%s450_s4 + $0x38] sm:$0xf] %vm206_vm0, %v257_v40  ;;  %222 = vst.msk [vmem:[%s450_s4 + $0x3c] sm:$0xf] %vm206_vm0, %v258_v45 }

// kernel: _lambda_.38
= control target key start
LH: loop header
LB: loop body
LE: loop exit
PB: predicated region body
PF: predicated region fallthrough
CT: control target
= control target key end

     0   :  { %vm550_vm0 = vcmask 523264   ;;  %vm930_vm1 = vcmask 257024   ;;  %vm947_vm2 = vcmask 261120   ;;  %vm1038_vm3 = vcmask 1040384   ;;  %s1863_s1 = inlined_call_operand.vmem [shape: bf16[576,32], index: 1, kind: input, shape index: {}]   ;;  %s1864_s0 = inlined_call_operand.vmem [shape: bf16[128,576], index: 0, kind: input, shape index: {}]   ;;  %s1865_s2 = inlined_call_operand.vmem [shape: bf16[128,32], index: 2, kind: output, shape index: {0}]   ;;  %s1866_s3 = inlined_call_operand.vmem [shape: f32[1,2,32], index: 3, kind: output, shape index: {1}]  }
   0x1   :  { %v1338_v0 = vld [vmem:[%s1863_s1 + $0x40] sm:$0xff]   ;;  %v1342_v4 = vld [vmem:[%s1863_s1 + $0x48] sm:$0xff]   ;;  %v1346_v8 = vld [vmem:[%s1863_s1 + $0x50] sm:$0xff]   ;;  %vm1040_vm4 = vcmask 254976  }
   0x2   :  { %v1339_v1 = vld [vmem:[%s1863_s1 + $0xc0] sm:$0xff]   ;;  %1166 = vmatprep.subr.bf16.mxu0 %v1338_v0  ;;  %v1343_v5 = vld [vmem:[%s1863_s1 + $0xc8] sm:$0xff]   ;;  %v1347_v9 = vld [vmem:[%s1863_s1 + $0xd0] sm:$0xff]  }
   0x3   :  { %v1340_v2 = vld [vmem:[%s1863_s1] sm:$0xff]   ;;  %1230 = vmatprep.subr.bf16.mxu1 %v1339_v1  ;;  %v1344_v6 = vld [vmem:[%s1863_s1 + $0x8] sm:$0xff]   ;;  %v1348_v10 = vld [vmem:[%s1863_s1 + $0x10] sm:$0xff]  }
   0x4   :  { %v1341_v3 = vld [vmem:[%s1863_s1 + $0x80] sm:$0xff]   ;;  %1167 = vmatpush3.bf16.msra.mxu0 %v1340_v2  ;;  %v1345_v7 = vld [vmem:[%s1863_s1 + $0x88] sm:$0xff]   ;;  %v1349_v11 = vld [vmem:[%s1863_s1 + $0x90] sm:$0xff]  }
   0x5   :  { %1231 = vmatpush3.bf16.msra.mxu1 %v1341_v3  ;;  %1168 = vmatprep.subr.bf16.mxu0 %v1342_v4  ;;  %v1350_v12 = vld [vmem:[%s1863_s1 + $0x58] sm:$0xff]   ;;  %v1354_v16 = vld [vmem:[%s1863_s1 + $0x60] sm:$0xff]   ;;  %v1358_v20 = vld [vmem:[%s1863_s1 + $0x68] sm:$0xff]  }
   0x6   :  { %1232 = vmatprep.subr.bf16.mxu1 %v1343_v5  ;;  %v1351_v13 = vld [vmem:[%s1863_s1 + $0xd8] sm:$0xff]   ;;  %v1355_v17 = vld [vmem:[%s1863_s1 + $0xe0] sm:$0xff]   ;;  %v1359_v21 = vld [vmem:[%s1863_s1 + $0xe8] sm:$0xff]  }
   0x7   :  { %v1352_v14 = vld [vmem:[%s1863_s1 + $0x18] sm:$0xff]   ;;  %v1356_v18 = vld [vmem:[%s1863_s1 + $0x20] sm:$0xff]   ;;  %v1360_v22 = vld [vmem:[%s1863_s1 + $0x28] sm:$0xff]  }
   0x8   :  { %1169 = vmatpush3.bf16.msra.mxu0 %v1344_v6  ;;  %v1353_v15 = vld [vmem:[%s1863_s1 + $0x98] sm:$0xff]   ;;  %v1357_v19 = vld [vmem:[%s1863_s1 + $0xa0] sm:$0xff]   ;;  %v1361_v23 = vld [vmem:[%s1863_s1 + $0xa8] sm:$0xff]  }
   0x9   :  { %1233 = vmatpush3.bf16.msra.mxu1 %v1345_v7  ;;  %1170 = vmatprep.subr.bf16.mxu0 %v1346_v8  ;;  %v1362_v24 = vld [vmem:[%s1863_s1 + $0x70] sm:$0xff]   ;;  %v1366_v28 = vld [vmem:[%s1863_s1 + $0x78] sm:$0xff]   ;;  %v1375_v35 = vld [vmem:[%s1864_s0 + $0xc] ss:$20 sps:$4 sm:$0xff]  }
   0xa   :  { %1234 = vmatprep.subr.bf16.mxu1 %v1347_v9  ;;  %v1363_v25 = vld [vmem:[%s1863_s1 + $0xf0] sm:$0xff]   ;;  %v1367_v29 = vld [vmem:[%s1863_s1 + $0xf8] sm:$0xff]   ;;  %v1376_v36 = vld [vmem:[%s1863_s1 + $0x100] sm:$0xff]   ;;  %704 = vmatprep.mubr.bf16.mxu1 %v1375_v35 }
   0xb   :  { %v1364_v26 = vld [vmem:[%s1863_s1 + $0x30] sm:$0xff]   ;;  %v1368_v30 = vld [vmem:[%s1863_s1 + $0x38] sm:$0xff]   ;;  %v1377_v37 = vld [vmem:[%s1864_s0 + $0x2c] ss:$20 sps:$4 sm:$0xff]  }
   0xc   :  { %1171 = vmatpush3.bf16.msra.mxu0 %v1348_v10  ;;  %v1365_v27 = vld [vmem:[%s1863_s1 + $0xb0] sm:$0xff]   ;;  %v1369_v31 = vld [vmem:[%s1863_s1 + $0xb8] sm:$0xff]   ;;  %v1389_v42 = vld [vmem:[%s1863_s1 + $0x108] sm:$0xff]  }
   0xd   :  { %1235 = vmatpush3.bf16.msra.mxu1 %v1349_v11  ;;  %1172 = vmatprep.subr.bf16.mxu0 %v1350_v12  ;;  %v1370_v32 = vld [vmem:[%s1864_s0] ss:$20 sps:$4 sm:$0xff]   ;;  %v1372_v33 = vld [vmem:[%s1864_s0 + $0x4] ss:$20 sps:$4 sm:$0xff]   ;;  %v1373_v34 = vld [vmem:[%s1864_s0 + $0x8] ss:$20 sps:$4 sm:$0xff]  }
   0xe   :  { %1236 = vmatprep.subr.bf16.mxu1 %v1351_v13  ;;  %607 = vmatprep.mubr.bf16.mxu0 %v1372_v33  ;;  %v1379_v38 = vld [vmem:[%s1864_s0 + $0x34] ss:$20 sps:$4 sm:$0xff]   ;;  %v1382_v40 = vld [vmem:[%s1864_s0 + $0x30] ss:$20 sps:$4 sm:$0xff]   ;;  %v1388_v45 = vld [vmem:[%s1864_s0 + $0x58] ss:$20 sps:$4 sm:$0xff]  }
   0xf   :  { %v1381_v39 = vld [vmem:[%s1864_s0 + $0x28] ss:$20 sps:$4 sm:$0xff]   ;;  %v1387_v44 = vld [vmem:[%s1864_s0 + $0x50] ss:$20 sps:$4 sm:$0xff]   ;;  %v1394_v50 = vld [vmem:[%s1864_s0 + $0x78] ss:$20 sps:$4 sm:$0xff]  }
  0x10   :  { %1173 = vmatpush3.bf16.msra.mxu0 %v1352_v14  ;;  %v1383_v41 = vld [vmem:[%s1864_s0 + $0x54] ss:$20 sps:$4 sm:$0xff]   ;;  %v1385_v43 = vld [vmem:[%s1864_s0 + $0x5c] ss:$20 sps:$4 sm:$0xff]   ;;  %v1392_v48 = vld [vmem:[%s1864_s0 + $0x84] ss:$20 sps:$4 sm:$0xff]  }
  0x11   :  { %1237 = vmatpush3.bf16.msra.mxu1 %v1353_v15  ;;  %1174 = vmatprep.subr.bf16.mxu0 %v1354_v16  ;;  %v1402_v46 = vld [vmem:[%s1863_s1 + $0x110] sm:$0xff]   ;;  %v1415_v49 = vld [vmem:[%s1863_s1 + $0x118] sm:$0xff]   ;;  %v1398_v53 = vld [vmem:[%s1864_s0 + $0xac] ss:$20 sps:$4 sm:$0xff]  }
  0x12   :  { %1238 = vmatprep.subr.bf16.mxu1 %v1355_v17  ;;  %v1390_v47 = vld [vmem:[%s1864_s0 + $0x7c] ss:$20 sps:$4 sm:$0xff]   ;;  %v1395_v51 = vld [vmem:[%s1864_s0 + $0x80] ss:$20 sps:$4 sm:$0xff]   ;;  %v1396_v52 = vld [vmem:[%s1864_s0 + $0xa4] ss:$20 sps:$4 sm:$0xff]  }
  0x13   :  { %v1400_v54 = vld [vmem:[%s1864_s0 + $0xa0] ss:$20 sps:$4 sm:$0xff]   ;;  %v1401_v55 = vld [vmem:[%s1864_s0 + $0xa8] ss:$20 sps:$4 sm:$0xff]   ;;  %v1408_v59 = vld [vmem:[%s1864_s0 + $0xd0] ss:$20 sps:$4 sm:$0xff]  }
  0x14   :  { %1175 = vmatpush3.bf16.msra.mxu0 %v1356_v18  ;;  %v1403_v56 = vld [vmem:[%s1864_s0 + $0xcc] ss:$20 sps:$4 sm:$0xff]   ;;  %v1405_v57 = vld [vmem:[%s1864_s0 + $0xd4] ss:$20 sps:$4 sm:$0xff]   ;;  %v1411_v61 = vld [vmem:[%s1864_s0 + $0xfc] ss:$20 sps:$4 sm:$0xff]  }
  0x15   :  { %1239 = vmatpush3.bf16.msra.mxu1 %v1357_v19  ;;  %1176 = vmatprep.subr.bf16.mxu0 %v1358_v20  ;;  %v1407_v58 = vld [vmem:[%s1864_s0 + $0xc8] ss:$20 sps:$4 sm:$0xff]   ;;  %v1413_v62 = vld [vmem:[%s1864_s0 + $0xf0] ss:$20 sps:$4 sm:$0xff]   ;;  %v1414_v63 = vld [vmem:[%s1864_s0 + $0xf8] ss:$20 sps:$4 sm:$0xff]  }
  0x16   :  { %1240 = vmatprep.subr.bf16.mxu1 %v1359_v21  ;;  %v1409_v60 = vld [vmem:[%s1864_s0 + $0xf4] ss:$20 sps:$4 sm:$0xff]   ;;  %v1416_v0 = vld [vmem:[%s1864_s0 + $0x11c] ss:$20 sps:$4 sm:$0xff]   ;;  %v1418_v1 = vld [vmem:[%s1864_s0 + $0x124] ss:$20 sps:$4 sm:$0xff]  }
  0x17   :  { %v1420_v2 = vld [vmem:[%s1864_s0 + $0x118] ss:$20 sps:$4 sm:$0xff]   ;;  %v1421_v3 = vld [vmem:[%s1864_s0 + $0x120] ss:$20 sps:$4 sm:$0xff]   ;;  %v1422_v4 = vld [vmem:[%s1864_s0 + $0x10] ss:$20 sps:$4 sm:$0xff]  }
  0x18   :  { %1177 = vmatpush3.bf16.msra.mxu0 %v1360_v22  ;;  %v1423_v5 = vld [vmem:[%s1864_s0 + $0xb0] ss:$20 sps:$4 sm:$0xff]   ;;  %v1424_v6 = vld [vmem:[%s1864_s0 + $0x38] ss:$20 sps:$4 sm:$0xff]   ;;  %v1426_v8 = vld [vmem:[%s1864_s0 + $0x60] ss:$20 sps:$4 sm:$0xff]  }
  0x19   :  { %1241 = vmatpush3.bf16.msra.mxu1 %v1361_v23  ;;  %1178 = vmatprep.subr.bf16.mxu0 %v1362_v24  ;;  %v1425_v7 = vld [vmem:[%s1864_s0 + $0xd8] ss:$20 sps:$4 sm:$0xff]   ;;  %v1427_v9 = vld [vmem:[%s1864_s0 + $0x100] ss:$20 sps:$4 sm:$0xff]   ;;  %v1428_v10 = vld [vmem:[%s1864_s0 + $0x88] ss:$20 sps:$4 sm:$0xff]  }
  0x1a   :  { %1242 = vmatprep.subr.bf16.mxu1 %v1363_v25  ;;  %v1429_v11 = vld [vmem:[%s1864_s0 + $0x128] ss:$20 sps:$4 sm:$0xff]  }
  0x1c   :  { %1179 = vmatpush3.bf16.msra.mxu0 %v1364_v26 }
  0x1d   :  { %1243 = vmatpush3.bf16.msra.mxu1 %v1365_v27  ;;  %1180 = vmatprep.subr.bf16.mxu0 %v1366_v28 }
  0x1e   :  { %1244 = vmatprep.subr.bf16.mxu1 %v1367_v29 }
  0x20   :  { %1181 = vmatpush3.bf16.msra.mxu0 %v1368_v30 }
  0x21   :  { %1245 = vmatpush3.bf16.msra.mxu1 %v1369_v31  ;;  %1306 = vmatprep.subr.bf16.mxu0 %v1376_v36 }
  0x22   :  { %1330 = vmatprep.subr.bf16.mxu1 %v1376_v36 }
  0x23   :  { %608 = vmatmul.mubr.bf16.vlgmr.msra.gmra.mrb[0].mxu0 %v1370_v32 }
  0x24   :  { %705 = vmatmul.mubr.bf16.vlgmr.msra.gmra.mrb[0].mxu1 %v1373_v34  ;;  %1307 = vmatpush3.bf16.msra.mxu0 %v1376_v36 }
  0x25   :  { %615 = vmatprep.mubr.bf16.mxu0 %v1377_v37  ;;  %712 = vmatprep.mubr.bf16.mxu1 %v1379_v38 }
  0x26   :  { %1334 = vmatpush3.bf16.msra.mxu1 %v1376_v36  ;;  %1308 = vmatprep.subr.bf16.mxu0 %v1389_v42 }
  0x27   :  { %1331 = vmatprep.subr.bf16.mxu1 %v1389_v42 }
  0x28   :  { %1309 = vmatpush3.bf16.msra.mxu0 %v1389_v42 }
  0x29   :  { %1310 = vmatprep.subr.bf16.mxu0 %v1402_v46 }
  0x2a   :  { %1335 = vmatpush3.bf16.msra.mxu1 %v1389_v42 }
  0x2b   :  { %616 = vmatmul.mubr.bf16.gmra.mrb[4].mxu0 %v1381_v39  ;;  %1332 = vmatprep.subr.bf16.mxu1 %v1402_v46 }
  0x2c   :  { %713 = vmatmul.mubr.bf16.gmra.mrb[4].mxu1 %v1382_v40  ;;  %623 = vmatprep.mubr.bf16.mxu0 %v1383_v41 }
  0x2d   :  { %720 = vmatprep.mubr.bf16.mxu1 %v1385_v43  ;;  %1311 = vmatpush3.bf16.msra.mxu0 %v1402_v46 }
  0x2e   :  { %1336 = vmatpush3.bf16.msra.mxu1 %v1402_v46  ;;  %1312 = vmatprep.subr.bf16.mxu0 %v1415_v49 }
  0x2f   :  { %1333 = vmatprep.subr.bf16.mxu1 %v1415_v49 }
  0x31   :  { %1313 = vmatpush3.bf16.msra.mxu0 %v1415_v49 }
  0x32   :  { %1337 = vmatpush3.bf16.msra.mxu1 %v1415_v49 }
  0x33   :  { %624 = vmatmul.mubr.bf16.gmra.mrb[8].mxu0 %v1387_v44 }
  0x34   :  { %721 = vmatmul.mubr.bf16.gmra.mrb[8].mxu1 %v1388_v45  ;;  %631 = vmatprep.mubr.bf16.mxu0 %v1390_v47 }
  0x35   :  { %728 = vmatprep.mubr.bf16.mxu1 %v1392_v48 }
  0x3b   :  { %632 = vmatmul.mubr.bf16.gmra.mrb[12].mxu0 %v1394_v50 }
  0x3c   :  { %729 = vmatmul.mubr.bf16.gmra.mrb[12].mxu1 %v1395_v51  ;;  %639 = vmatprep.mubr.bf16.mxu0 %v1396_v52 }
  0x3d   :  { %736 = vmatprep.mubr.bf16.mxu1 %v1398_v53 }
  0x43   :  { %640 = vmatmul.mubr.bf16.gmra.mrb[16].mxu0 %v1400_v54 }
  0x44   :  { %737 = vmatmul.mubr.bf16.gmra.mrb[16].mxu1 %v1401_v55  ;;  %647 = vmatprep.mubr.bf16.mxu0 %v1403_v56 }
  0x45   :  { %744 = vmatprep.mubr.bf16.mxu1 %v1405_v57 }
  0x4b   :  { %648 = vmatmul.mubr.bf16.gmra.mrb[20].mxu0 %v1407_v58 }
  0x4c   :  { %745 = vmatmul.mubr.bf16.gmra.mrb[20].mxu1 %v1408_v59  ;;  %655 = vmatprep.mubr.bf16.mxu0 %v1409_v60 }
  0x4d   :  { %752 = vmatprep.mubr.bf16.mxu1 %v1411_v61 }
  0x53   :  { %656 = vmatmul.mubr.bf16.gmra.mrb[24].mxu0 %v1413_v62 }
  0x54   :  { %753 = vmatmul.mubr.bf16.gmra.mrb[24].mxu1 %v1414_v63  ;;  %663 = vmatprep.mubr.bf16.mxu0 %v1416_v0 }
  0x55   :  { %760 = vmatprep.mubr.bf16.mxu1 %v1418_v1 }
  0x5b   :  { %664 = vmatmul.mubr.bf16.gmra.mrb[28].mxu0 %v1420_v2 }
  0x5c   :  { %761 = vmatmul.mubr.bf16.gmra.mrb[28].mxu1 %v1421_v3  ;;  %1314 = vmatprep.mubr.msk.bf16.mxu0 %vm550_vm0, %v1422_v4 }
  0x5d   :  { %1322 = vmatprep.mubr.msk.bf16.mxu1 %vm550_vm0, %v1423_v5 }
  0x63   :  { %1315 = vmatmul.mubr.msk.bf16.vlgmr.msra.gmra.mrb[32].mxu0 %vm550_vm0, %v1424_v6 }
  0x64   :  { %1323 = vmatmul.mubr.msk.bf16.vlgmr.msra.gmra.mrb[32].mxu1 %vm550_vm0, %v1425_v7  ;;  %1318 = vmatprep.mubr.msk.bf16.mxu0 %vm550_vm0, %v1426_v8 }
  0x65   :  { %1326 = vmatprep.mubr.msk.bf16.mxu1 %vm550_vm0, %v1427_v9 }
  0x6b   :  { %1319 = vmatmul.mubr.msk.bf16.gmra.mrb[36].mxu0 %vm550_vm0, %v1428_v10 }
  0x6c   :  { %1327 = vmatmul.mubr.msk.bf16.gmra.mrb[36].mxu1 %vm550_vm0, %v1429_v11 }
  0xf6   :  { %v1182_v12 = vpop.f32.mrb[0].mxu0 }
  0xf7   :  { %v1246_v13 = vpop.f32.mrb[0].mxu1  ;;  %v1183_v14 = vpop.f32.mrb[1].mxu0 }
  0xf8   :  { %v1184_v15 = vadd.f32 %v1183_v14, %v1182_v12  ;;  %v1247_v16 = vpop.f32.mrb[1].mxu1  ;;  %v1185_v17 = vpop.f32.mrb[2].mxu0 }
  0xf9   :  { %v1248_v18 = vadd.f32 %v1247_v16, %v1246_v13  ;;  %v1249_v19 = vpop.f32.mrb[2].mxu1  ;;  %v1186_v20 = vpop.f32.mrb[3].mxu0 }
  0xfa   :  { %v1187_v21 = vadd.f32 %v1186_v20, %v1185_v17  ;;  %v1250_v22 = vpop.f32.mrb[3].mxu1 }
  0xfb   :  { %v1251_v23 = vadd.f32 %v1250_v22, %v1249_v19  ;;  %v1686_v24 = vadd.f32 %v1248_v18, %v1184_v15 }
  0xfd   :  { %v1688_v25 = vadd.f32 %v1251_v23, %v1187_v21 }
  0xfe   :  { %v1188_v26 = vpop.f32.mrb[4].mxu0 }
  0xff   :  { %v1252_v27 = vpop.f32.mrb[4].mxu1  ;;  %v1189_v28 = vpop.f32.mrb[5].mxu0 }
 0x100   :  { %v1190_v29 = vadd.f32 %v1189_v28, %v1188_v26  ;;  %v1253_v30 = vpop.f32.mrb[5].mxu1  ;;  %v1191_v31 = vpop.f32.mrb[6].mxu0 }
 0x101   :  { %v1254_v32 = vadd.f32 %v1253_v30, %v1252_v27  ;;  %v1255_v33 = vpop.f32.mrb[6].mxu1  ;;  %v1192_v34 = vpop.f32.mrb[7].mxu0 }
 0x102   :  { %v1193_v35 = vadd.f32 %v1192_v34, %v1191_v31  ;;  %v1256_v36 = vpop.f32.mrb[7].mxu1 }
 0x103   :  { %v1257_v37 = vadd.f32 %v1256_v36, %v1255_v33  ;;  %v1690_v38 = vadd.f32 %v1254_v32, %v1190_v29 }
 0x105   :  { %v1692_v39 = vadd.f32 %v1257_v37, %v1193_v35 }
 0x106   :  { %v1194_v40 = vpop.f32.mrb[8].mxu0 }
 0x107   :  { %v1258_v41 = vpop.f32.mrb[8].mxu1  ;;  %v1195_v42 = vpop.f32.mrb[9].mxu0 }
 0x108   :  { %v1196_v43 = vadd.f32 %v1195_v42, %v1194_v40  ;;  %v1259_v44 = vpop.f32.mrb[9].mxu1  ;;  %v1197_v45 = vpop.f32.mrb[10].mxu0 }
 0x109   :  { %v1260_v46 = vadd.f32 %v1259_v44, %v1258_v41  ;;  %v1261_v47 = vpop.f32.mrb[10].mxu1  ;;  %v1198_v48 = vpop.f32.mrb[11].mxu0 }
 0x10a   :  { %v1199_v49 = vadd.f32 %v1198_v48, %v1197_v45  ;;  %v1262_v50 = vpop.f32.mrb[11].mxu1 }
 0x10b   :  { %v1263_v51 = vadd.f32 %v1262_v50, %v1261_v47  ;;  %v1694_v52 = vadd.f32 %v1260_v46, %v1196_v43 }
 0x10d   :  { %v1696_v53 = vadd.f32 %v1263_v51, %v1199_v49 }
 0x10e   :  { %v1200_v54 = vpop.f32.mrb[12].mxu0 }
 0x10f   :  { %v1264_v55 = vpop.f32.mrb[12].mxu1  ;;  %v1201_v56 = vpop.f32.mrb[13].mxu0 }
 0x110   :  { %v1202_v57 = vadd.f32 %v1201_v56, %v1200_v54  ;;  %v1265_v58 = vpop.f32.mrb[13].mxu1  ;;  %v1203_v59 = vpop.f32.mrb[14].mxu0 }
 0x111   :  { %v1266_v60 = vadd.f32 %v1265_v58, %v1264_v55  ;;  %v1267_v61 = vpop.f32.mrb[14].mxu1  ;;  %v1204_v62 = vpop.f32.mrb[15].mxu0 }
 0x112   :  { %v1205_v63 = vadd.f32 %v1204_v62, %v1203_v59  ;;  %v1268_v0 = vpop.f32.mrb[15].mxu1 }
 0x113   :  { %v1269_v1 = vadd.f32 %v1268_v0, %v1267_v61  ;;  %v1698_v2 = vadd.f32 %v1266_v60, %v1202_v57 }
 0x115   :  { %v1700_v3 = vadd.f32 %v1269_v1, %v1205_v63 }
 0x116   :  { %v1206_v4 = vpop.f32.mrb[16].mxu0 }
 0x117   :  { %v1270_v5 = vpop.f32.mrb[16].mxu1  ;;  %v1207_v6 = vpop.f32.mrb[17].mxu0 }
 0x118   :  { %v1208_v7 = vadd.f32 %v1207_v6, %v1206_v4  ;;  %v1271_v8 = vpop.f32.mrb[17].mxu1  ;;  %v1209_v9 = vpop.f32.mrb[18].mxu0 }
 0x119   :  { %v1272_v10 = vadd.f32 %v1271_v8, %v1270_v5  ;;  %v1273_v11 = vpop.f32.mrb[18].mxu1  ;;  %v1210_v12 = vpop.f32.mrb[19].mxu0 }
 0x11a   :  { %v1211_v13 = vadd.f32 %v1210_v12, %v1209_v9  ;;  %v1274_v14 = vpop.f32.mrb[19].mxu1 }
 0x11b   :  { %v1275_v15 = vadd.f32 %v1274_v14, %v1273_v11  ;;  %v739_v16 = vadd.f32 %v1272_v10, %v1208_v7 }
 0x11d   :  { %v1702_v17 = vadd.f32 %v1275_v15, %v1211_v13 }
 0x11e   :  { %v1212_v18 = vpop.f32.mrb[20].mxu0 }
 0x11f   :  { %v1276_v19 = vpop.f32.mrb[20].mxu1  ;;  %v1213_v20 = vpop.f32.mrb[21].mxu0 }
 0x120   :  { %v1214_v21 = vadd.f32 %v1213_v20, %v1212_v18  ;;  %v1277_v22 = vpop.f32.mrb[21].mxu1  ;;  %v1215_v23 = vpop.f32.mrb[22].mxu0 }
 0x121   :  { %v1278_v26 = vadd.f32 %v1277_v22, %v1276_v19  ;;  %v1279_v27 = vpop.f32.mrb[22].mxu1  ;;  %v1216_v28 = vpop.f32.mrb[23].mxu0 }
 0x122   :  { %v1217_v29 = vadd.f32 %v1216_v28, %v1215_v23  ;;  %v1280_v30 = vpop.f32.mrb[23].mxu1 }
 0x123   :  { %v1281_v31 = vadd.f32 %v1280_v30, %v1279_v27  ;;  %v747_v32 = vadd.f32 %v1278_v26, %v1214_v21 }
 0x125   :  { %v750_v33 = vadd.f32 %v1281_v31, %v1217_v29 }
 0x126   :  { %v1218_v34 = vpop.f32.mrb[24].mxu0 }
 0x127   :  { %v1282_v35 = vpop.f32.mrb[24].mxu1  ;;  %v1219_v36 = vpop.f32.mrb[25].mxu0 }
 0x128   :  { %v1220_v37 = vadd.f32 %v1219_v36, %v1218_v34  ;;  %v1283_v40 = vpop.f32.mrb[25].mxu1  ;;  %v1221_v41 = vpop.f32.mrb[26].mxu0 }
 0x129   :  { %v1284_v42 = vadd.f32 %v1283_v40, %v1282_v35  ;;  %v1285_v43 = vpop.f32.mrb[26].mxu1  ;;  %v1222_v44 = vpop.f32.mrb[27].mxu0 }
 0x12a   :  { %v1223_v45 = vadd.f32 %v1222_v44, %v1221_v41  ;;  %v1286_v46 = vpop.f32.mrb[27].mxu1 }
 0x12b   :  { %v1287_v47 = vadd.f32 %v1286_v46, %v1285_v43  ;;  %v1704_v48 = vadd.f32 %v1284_v42, %v1220_v37 }
 0x12d   :  { %v1706_v49 = vadd.f32 %v1287_v47, %v1223_v45 }
 0x12e   :  { %v1224_v50 = vpop.f32.mrb[28].mxu0 }
 0x12f   :  { %v1288_v51 = vpop.f32.mrb[28].mxu1  ;;  %v1225_v54 = vpop.f32.mrb[29].mxu0 }
 0x130   :  { %v1226_v55 = vadd.f32 %v1225_v54, %v1224_v50  ;;  %v1289_v56 = vpop.f32.mrb[29].mxu1  ;;  %v1227_v57 = vpop.f32.mrb[30].mxu0 }
 0x131   :  { %v1290_v58 = vadd.f32 %v1289_v56, %v1288_v51  ;;  %v1291_v59 = vpop.f32.mrb[30].mxu1  ;;  %v1228_v60 = vpop.f32.mrb[31].mxu0 }
 0x132   :  { %v1229_v61 = vadd.f32 %v1228_v60, %v1227_v57  ;;  %v1292_v62 = vpop.f32.mrb[31].mxu1 }
 0x133   :  { %v1293_v63 = vadd.f32 %v1292_v62, %v1291_v59  ;;  %v763_v0 = vadd.f32 %v1290_v58, %v1226_v55 }
 0x135   :  { %v1708_v1 = vadd.f32 %v1293_v63, %v1229_v61 }
 0x136   :  { %v1316_v4 = vpop.f32.mrb[32].mxu0 }
 0x137   :  { %v812_v5 = vadd.f32 %v1316_v4, %v1690_v38  ;;  %v1324_v6 = vpop.f32.mrb[32].mxu1  ;;  %v803_v7 = vpop.f32.mrb[33].mxu0 }
 0x138   :  { %v1711_v8 = vadd.f32 %v1324_v6, %v747_v32  ;;  %v804_v9 = vadd.f32 %v803_v7, %v1686_v24  ;;  %v835_v10 = vpop.f32.mrb[33].mxu1  ;;  %v1317_v11 = vpop.f32.mrb[34].mxu0 }
 0x139   :  { %v1152_v12 = vpack.c.bf16 %v812_v5, %v812_v5  ;;  %v1714_v13 = vadd.f32 %v835_v10, %v739_v16  ;;  %v1325_v14 = vpop.f32.mrb[34].mxu1  ;;  %v806_v15 = vpop.f32.mrb[35].mxu0  ;;  %v815_v38 = vadd.f32 %v1317_v11, %v1692_v39  ;;  %v987_v28 = vmul.f32 %v812_v5, %v812_v5 }
 0x13a   :  { %v1160_v18 = vpack.c.bf16 %v1711_v8, %v1711_v8  ;;  %v1150_v19 = vpack.c.bf16 %v804_v9, %v804_v9  ;;  %v838_v20 = vpop.f32.mrb[35].mxu1  ;;  %v985_v16 = vmul.f32 %v804_v9, %v804_v9  ;;  %v1737_v21 = vadd.f32 %v1325_v14, %v750_v33 }
 0x13b   :  { %933 = vst.msk [vmem:[%s1865_s2 + $0x8] sm:$0xf] %vm930_vm1, %v1152_v12  ;;  %v1158_v24 = vpack.c.bf16 %v1714_v13, %v1714_v13  ;;  %v807_v22 = vadd.f32 %v806_v15, %v1688_v25  ;;  %v1741_v23 = vadd.f32 %v838_v20, %v1702_v17  ;;  %v1153_v26 = vpack.c.bf16 %v815_v38, %v815_v38 }
 0x13c   :  { %941 = vst.msk [vmem:[%s1865_s2 + $0x28] sm:$0xf] %vm930_vm1, %v1160_v18  ;;  %931 = vst.msk [vmem:[%s1865_s2] sm:$0xf] %vm930_vm1, %v1150_v19  ;;  %v1161_v29 = vpack.c.bf16 %v1737_v21, %v1737_v21  ;;  %v948_v32 = vsel %vm947_vm2, %v804_v9, 0.0  ;;  %v951_v36 = vsel %vm947_vm2, %v812_v5, 0.0  ;;  %v988_v40 = vmul.f32 %v815_v38, %v815_v38 }
 0x13d   :  { %939 = vst.msk [vmem:[%s1865_s2 + $0x20] sm:$0xf] %vm930_vm1, %v1158_v24  ;;  %v1151_v39 = vpack.c.bf16 %v807_v22, %v807_v22  ;;  %934 = vst.msk [vmem:[%s1865_s2 + $0xc] sm:$0xf] %vm930_vm1, %v1153_v26  ;;  %v949_v25 = vsel %vm947_vm2, %v807_v22, 0.0  ;;  %v986_v17 = vmul.f32 %v807_v22, %v807_v22  ;;  %v1159_v33 = vpack.c.bf16 %v1741_v23, %v1741_v23 }
 0x13e   :  { %v1320_v27 = vpop.f32.mrb[36].mxu0  ;;  %v1001_v37 = vsel %vm947_vm2, %v985_v16, 0.0  ;;  %942 = vst.msk [vmem:[%s1865_s2 + $0x2c] sm:$0xf] %vm930_vm1, %v1161_v29  ;;  %v950_v41 = vadd.f32 %v949_v25, %v948_v32  ;;  %v1004_v56 = vsel %vm947_vm2, %v987_v28, 0.0  ;;  %v953_v59 = vsel %vm947_vm2, %v815_v38, 0.0 }
 0x13f   :  { %v1328_v30 = vpop.f32.mrb[36].mxu1  ;;  %v819_v31 = vpop.f32.mrb[37].mxu0  ;;  %932 = vst.msk [vmem:[%s1865_s2 + $0x4] sm:$0xf] %vm930_vm1, %v1151_v39  ;;  %v1002_v44 = vsel %vm947_vm2, %v986_v17, 0.0  ;;  %v828_v45 = vadd.f32 %v1320_v27, %v1698_v2  ;;  %v1006_v61 = vsel %vm947_vm2, %v988_v40, 0.0  ;;  %v993_v22 = vmul.f32 %v1714_v13, %v1714_v13 }
 0x140   :  { %v851_v34 = vpop.f32.mrb[37].mxu1  ;;  %v1321_v35 = vpop.f32.mrb[38].mxu0  ;;  %940 = vst.msk [vmem:[%s1865_s2 + $0x24] sm:$0xf] %vm930_vm1, %v1159_v33  ;;  %v1769_v46 = vadd.f32 %v1328_v30, %v763_v0  ;;  %v820_v47 = vadd.f32 %v819_v31, %v1694_v52  ;;  %v952_v51 = vadd.f32 %v951_v36, %v950_v41  ;;  %v1003_v54 = vadd.f32 %v1002_v44, %v1001_v37 }
 0x141   :  { %v1329_v42 = vpop.f32.mrb[38].mxu1  ;;  %v822_v43 = vpop.f32.mrb[39].mxu0  ;;  %v1773_v55 = vadd.f32 %v851_v34, %v1704_v48  ;;  %v1156_v57 = vpack.c.bf16 %v828_v45, %v828_v45  ;;  %v831_v6 = vadd.f32 %v1321_v35, %v1700_v3  ;;  %v991_v18 = vmul.f32 %v828_v45, %v828_v45 }
 0x142   :  { %v854_v50 = vpop.f32.mrb[39].mxu1  ;;  %v1164_v58 = vpack.c.bf16 %v1769_v46, %v1769_v46  ;;  %v1005_v60 = vadd.f32 %v1004_v56, %v1003_v54  ;;  %v1154_v2 = vpack.c.bf16 %v820_v47, %v820_v47  ;;  %v954_v52 = vadd.f32 %v953_v59, %v952_v51 }
 0x143   :  { %937 = vst.msk [vmem:[%s1865_s2 + $0x18] sm:$0xf] %vm930_vm1, %v1156_v57  ;;  %v955_v48 = vsel %vm947_vm2, %v820_v47, 0.0  ;;  %v989_v62 = vmul.f32 %v820_v47, %v820_v47  ;;  %v1162_v0 = vpack.c.bf16 %v1773_v55, %v1773_v55  ;;  %v863_v9 = vadd.f32 %v1329_v42, %v1708_v1 }
 0x144   :  { %945 = vst.msk [vmem:[%s1865_s2 + $0x38] sm:$0xf] %vm930_vm1, %v1164_v58  ;;  %935 = vst.msk [vmem:[%s1865_s2 + $0x10] sm:$0xf] %vm930_vm1, %v1154_v2  ;;  %v1007_v63 = vadd.f32 %v1006_v61, %v1005_v60  ;;  %v956_v4 = vadd.f32 %v955_v48, %v954_v52  ;;  %v823_v10 = vadd.f32 %v822_v43, %v1696_v53  ;;  %v1012_v26 = vsel %vm947_vm2, %v991_v18, 0.0 }
 0x145   :  { %v1008_v5 = vsel %vm947_vm2, %v989_v62, 0.0  ;;  %943 = vst.msk [vmem:[%s1865_s2 + $0x30] sm:$0xf] %vm930_vm1, %v1162_v0  ;;  %v855_v11 = vadd.f32 %v854_v50, %v1706_v49  ;;  %v1157_v12 = vpack.c.bf16 %v831_v6, %v831_v6  ;;  %v1165_v14 = vpack.c.bf16 %v863_v9, %v863_v9 }
 0x146   :  { %v1009_v7 = vadd.f32 %v1008_v5, %v1007_v63  ;;  %v1155_v15 = vpack.c.bf16 %v823_v10, %v823_v10  ;;  %v957_v3 = vsel %vm947_vm2, %v823_v10, 0.0  ;;  %v990_v19 = vmul.f32 %v823_v10, %v823_v10 }
 0x147   :  { %938 = vst.msk [vmem:[%s1865_s2 + $0x1c] sm:$0xf] %vm930_vm1, %v1157_v12  ;;  %v1163_v20 = vpack.c.bf16 %v855_v11, %v855_v11  ;;  %946 = vst.msk [vmem:[%s1865_s2 + $0x3c] sm:$0xf] %vm930_vm1, %v1165_v14  ;;  %v958_v53 = vadd.f32 %v957_v3, %v956_v4  ;;  %v959_v49 = vsel %vm947_vm2, %v828_v45, 0.0  ;;  %v992_v1 = vmul.f32 %v831_v6, %v831_v6 }
 0x148   :  { %936 = vst.msk [vmem:[%s1865_s2 + $0x14] sm:$0xf] %vm930_vm1, %v1155_v15  ;;  %v1010_v24 = vsel %vm947_vm2, %v990_v19, 0.0  ;;  %v961_v27 = vsel %vm947_vm2, %v831_v6, 0.0  ;;  %v963_v39 = vsel %vm947_vm2, %v1714_v13, 0.0  ;;  %v994_v30 = vmul.f32 %v1741_v23, %v1741_v23 }
 0x149   :  { %944 = vst.msk [vmem:[%s1865_s2 + $0x34] sm:$0xf] %vm930_vm1, %v1163_v20  ;;  %v960_v38 = vadd.f32 %v959_v49, %v958_v53  ;;  %v1011_v16 = vadd.f32 %v1010_v24, %v1009_v7  ;;  %v1014_v31 = vsel %vm947_vm2, %v992_v1, 0.0  ;;  %v995_v17 = vmul.f32 %v1711_v8, %v1711_v8 }
 0x14a   :  { %v1016_v33 = vsel %vm947_vm2, %v993_v22, 0.0  ;;  %v965_v34 = vsel %vm947_vm2, %v1741_v23, 0.0  ;;  %v967_v13 = vsel %vm947_vm2, %v1711_v8, 0.0  ;;  %v996_v37 = vmul.f32 %v1737_v21, %v1737_v21 }
 0x14b   :  { %v962_v28 = vadd.f32 %v961_v27, %v960_v38  ;;  %v1013_v29 = vadd.f32 %v1012_v26, %v1011_v16  ;;  %v1018_v40 = vsel %vm947_vm2, %v994_v30, 0.0  ;;  %v1020_v43 = vsel %vm947_vm2, %v995_v17, 0.0 }
 0x14c   :  { %v969_v44 = vsel %vm947_vm2, %v1737_v21, 0.0  ;;  %v997_v23 = vmul.f32 %v1773_v55, %v1773_v55  ;;  %v1022_v50 = vsel %vm947_vm2, %v996_v37, 0.0  ;;  %v971_v8 = vsel %vm947_vm2, %v1773_v55, 0.0 }
 0x14d   :  { %v964_v32 = vadd.f32 %v963_v39, %v962_v28  ;;  %v1015_v25 = vadd.f32 %v1014_v31, %v1013_v29  ;;  %v998_v51 = vmul.f32 %v855_v11, %v855_v11  ;;  %v999_v57 = vmul.f32 %v1769_v46, %v1769_v46 }
 0x14e   :  { %v1024_v58 = vsel %vm947_vm2, %v997_v23, 0.0  ;;  %v973_v21 = vsel %vm947_vm2, %v855_v11, 0.0  ;;  %v975_v2 = vsel %vm947_vm2, %v1769_v46, 0.0  ;;  %v1000_v61 = vmul.f32 %v863_v9, %v863_v9 }
 0x14f   :  { %v1017_v35 = vadd.f32 %v1016_v33, %v1015_v25  ;;  %v966_v36 = vadd.f32 %v965_v34, %v964_v32  ;;  %v1026_v52 = vsel %vm947_vm2, %v998_v51, 0.0  ;;  %v1028_v62 = vsel %vm947_vm2, %v999_v57, 0.0 }
 0x150   :  { %v977_v63 = vsel %vm947_vm2, %v863_v9, 0.0  ;;  %v1030_v5 = vsel %vm947_vm2, %v1000_v61, 0.0 }
 0x151   :  { %v968_v41 = vadd.f32 %v967_v13, %v966_v36  ;;  %v1019_v42 = vadd.f32 %v1018_v40, %v1017_v35 }
 0x153   :  { %v970_v45 = vadd.f32 %v969_v44, %v968_v41  ;;  %v1021_v47 = vadd.f32 %v1020_v43, %v1019_v42 }
 0x155   :  { %v972_v54 = vadd.f32 %v971_v8, %v970_v45  ;;  %v1023_v56 = vadd.f32 %v1022_v50, %v1021_v47 }
 0x157   :  { %v974_v59 = vadd.f32 %v973_v21, %v972_v54  ;;  %v1025_v60 = vadd.f32 %v1024_v58, %v1023_v56 }
 0x159   :  { %v976_v48 = vadd.f32 %v975_v2, %v974_v59  ;;  %v1027_v55 = vadd.f32 %v1026_v52, %v1025_v60 }
 0x15b   :  { %v978_v0 = vadd.f32 %v977_v63, %v976_v48  ;;  %v1029_v4 = vadd.f32 %v1028_v62, %v1027_v55 }
 0x15d   :  { %v979_v6 = vrot.slane %v978_v0, 4  ;;  %v1031_v7 = vadd.f32 %v1030_v5, %v1029_v4 }
 0x15f   :  { %v980_v10 = vadd.f32 %v979_v6, %v978_v0  ;;  %v1032_v11 = vrot.slane %v1031_v7, 4 }
 0x161   :  { %v981_v12 = vrot.slane %v980_v10, 2  ;;  %v1033_v14 = vadd.f32 %v1032_v11, %v1031_v7 }
 0x163   :  { %v982_v46 = vadd.f32 %v981_v12, %v980_v10  ;;  %v1034_v15 = vrot.slane %v1033_v14, 2 }
 0x165   :  { %v983_v18 = vrot.slane %v982_v46, 1  ;;  %v1035_v3 = vadd.f32 %v1034_v15, %v1033_v14 }
 0x167   :  { %v1036_v19 = vrot.slane %v1035_v3, 1  ;;  %v984_v20 = vadd.f32 %v983_v18, %v982_v46 }
 0x169   :  { %v1037_v53 = vadd.f32 %v1036_v19, %v1035_v3 }
 0x16b   :  { %v1039_v9 = vsel %vm1038_vm3, %v984_v20, %v1037_v53 }
 0x16c   :  { %1041 = vst.msk [vmem:[%s1866_s3] sm:$0x3] %vm1040_vm4, %v1039_v9 }

// kernel: _lambda_.40
= control target key start
LH: loop header
LB: loop body
LE: loop exit
PB: predicated region body
PF: predicated region fallthrough
CT: control target
= control target key end

     0   :  { %v2660_v0 = vmov 0   ;;  %vm766_vm0 = vcmask 261120   ;;  %vm1697_vm1 = vcmask 125952   ;;  %vm1762_vm2 = vcmask 130048   ;;  %s3727_s1 = inlined_call_operand.vmem [shape: bf16[288,16], index: 1, kind: input, shape index: {}]   ;;  %s3728_s0 = inlined_call_operand.vmem [shape: bf16[512,288], index: 0, kind: input, shape index: {}]   ;;  %s3729_s2 = inlined_call_operand.vmem [shape: bf16[512,16], index: 2, kind: output, shape index: {0}]   ;;  %s3730_s3 = inlined_call_operand.vmem [shape: f32[1,2,16], index: 3, kind: output, shape index: {1}]  }
   0x1   :  { %863 = vmatprep.subr.bf16.mxu0 %v2660_v0  ;;  %2481 = vmatprep.subr.bf16.mxu1 %v2660_v0  ;;  %v2514_v1 = vld [vmem:[%s3727_s1] sm:$0xff]   ;;  %v2515_v2 = vld [vmem:[%s3727_s1 + $0x8] sm:$0xff]   ;;  %v2516_v3 = vld [vmem:[%s3727_s1 + $0x10] sm:$0xff]   ;;  %vm2093_vm3 = vcmask 1040384   ;;  %vm2095_vm4 = vcmask 123904  }
   0x2   :  { %864 = vmatpush1.bf16.msra.mxu0 %v2514_v1  ;;  %2497 = vmatpush1.bf16.msra.mxu1 %v2514_v1  ;;  %v2517_v4 = vld [vmem:[%s3727_s1 + $0x18] sm:$0xff]   ;;  %v2518_v5 = vld [vmem:[%s3727_s1 + $0x20] sm:$0xff]   ;;  %v2519_v7 = vld [vmem:[%s3727_s1 + $0x28] sm:$0xff]  }
   0x3   :  { %865 = vmatprep.subr.bf16.mxu0 %v2660_v0  ;;  %2482 = vmatprep.subr.bf16.mxu1 %v2660_v0  ;;  %v2532_v6 = vld [vmem:[%s3728_s0 + $0x4] ss:$12 sps:$4 sm:$0xff]   ;;  %v2521_v10 = vld [vmem:[%s3727_s1 + $0x38] sm:$0xff]   ;;  %v2523_v12 = vld [vmem:[%s3727_s1 + $0x48] sm:$0xff]  }
   0x4   :  { %v2535_v8 = vld [vmem:[%s3728_s0 + $0x244] ss:$12 sps:$4 sm:$0xff]   ;;  %895 = vmatprep.mubr.bf16.mxu0 %v2532_v6  ;;  %v2525_v14 = vld [vmem:[%s3727_s1 + $0x58] sm:$0xff]   ;;  %v2527_v16 = vld [vmem:[%s3727_s1 + $0x68] sm:$0xff]  }
   0x5   :  { %1087 = vmatprep.mubr.bf16.mxu1 %v2535_v8  ;;  %v2520_v9 = vld [vmem:[%s3727_s1 + $0x30] sm:$0xff]   ;;  %v2522_v11 = vld [vmem:[%s3727_s1 + $0x40] sm:$0xff]   ;;  %v2529_v18 = vld [vmem:[%s3727_s1 + $0x78] sm:$0xff]  }
   0x6   :  { %866 = vmatpush1.bf16.msra.mxu0 %v2515_v2  ;;  %2498 = vmatpush1.bf16.msra.mxu1 %v2515_v2  ;;  %v2524_v13 = vld [vmem:[%s3727_s1 + $0x50] sm:$0xff]   ;;  %v2526_v15 = vld [vmem:[%s3727_s1 + $0x60] sm:$0xff]   ;;  %v2536_v22 = vld [vmem:[%s3728_s0 + $0x1c] ss:$12 sps:$4 sm:$0xff]  }
   0x7   :  { %867 = vmatprep.subr.bf16.mxu0 %v2660_v0  ;;  %2483 = vmatprep.subr.bf16.mxu1 %v2660_v0  ;;  %v2528_v17 = vld [vmem:[%s3727_s1 + $0x70] sm:$0xff]   ;;  %v2554_v19 = vld [vmem:[%s3727_s1 + $0x80] sm:$0xff]   ;;  %v2538_v23 = vld [vmem:[%s3728_s0 + $0x25c] ss:$12 sps:$4 sm:$0xff]  }
   0x8   :  { %v2530_v20 = vld [vmem:[%s3728_s0] ss:$12 sps:$4 sm:$0xff]   ;;  %v2540_v25 = vld [vmem:[%s3728_s0 + $0x18] ss:$12 sps:$4 sm:$0xff]   ;;  %v2546_v29 = vld [vmem:[%s3728_s0 + $0x30] ss:$12 sps:$4 sm:$0xff]  }
   0x9   :  { %v2533_v21 = vld [vmem:[%s3728_s0 + $0x240] ss:$12 sps:$4 sm:$0xff]   ;;  %v2541_v26 = vld [vmem:[%s3728_s0 + $0x258] ss:$12 sps:$4 sm:$0xff]   ;;  %v2547_v30 = vld [vmem:[%s3728_s0 + $0x270] ss:$12 sps:$4 sm:$0xff]  }
   0xa   :  { %868 = vmatpush1.bf16.msra.mxu0 %v2516_v3  ;;  %2499 = vmatpush1.bf16.msra.mxu1 %v2516_v3  ;;  %v2579_v24 = vld [vmem:[%s3727_s1 + $0x88] sm:$0xff]   ;;  %v2542_v27 = vld [vmem:[%s3728_s0 + $0x34] ss:$12 sps:$4 sm:$0xff]   ;;  %v2555_v35 = vld [vmem:[%s3728_s0 + $0x64] ss:$12 sps:$4 sm:$0xff]  }
   0xb   :  { %869 = vmatprep.subr.bf16.mxu0 %v2660_v0  ;;  %2484 = vmatprep.subr.bf16.mxu1 %v2660_v0  ;;  %v2544_v28 = vld [vmem:[%s3728_s0 + $0x274] ss:$12 sps:$4 sm:$0xff]   ;;  %v2548_v31 = vld [vmem:[%s3728_s0 + $0x4c] ss:$12 sps:$4 sm:$0xff]   ;;  %v2557_v36 = vld [vmem:[%s3728_s0 + $0x2a4] ss:$12 sps:$4 sm:$0xff]  }
   0xc   :  { %v2550_v32 = vld [vmem:[%s3728_s0 + $0x28c] ss:$12 sps:$4 sm:$0xff]   ;;  %v2552_v33 = vld [vmem:[%s3728_s0 + $0x48] ss:$12 sps:$4 sm:$0xff]   ;;  %v2571_v45 = vld [vmem:[%s3728_s0 + $0x90] ss:$12 sps:$4 sm:$0xff]  }
   0xd   :  { %v2553_v34 = vld [vmem:[%s3728_s0 + $0x288] ss:$12 sps:$4 sm:$0xff]   ;;  %v2559_v37 = vld [vmem:[%s3728_s0 + $0x60] ss:$12 sps:$4 sm:$0xff]   ;;  %v2565_v41 = vld [vmem:[%s3728_s0 + $0x78] ss:$12 sps:$4 sm:$0xff]  }
   0xe   :  { %870 = vmatpush1.bf16.msra.mxu0 %v2517_v4  ;;  %2500 = vmatpush1.bf16.msra.mxu1 %v2517_v4  ;;  %v2560_v38 = vld [vmem:[%s3728_s0 + $0x2a0] ss:$12 sps:$4 sm:$0xff]   ;;  %v2561_v39 = vld [vmem:[%s3728_s0 + $0x7c] ss:$12 sps:$4 sm:$0xff]   ;;  %v2566_v42 = vld [vmem:[%s3728_s0 + $0x2b8] ss:$12 sps:$4 sm:$0xff]  }
   0xf   :  { %871 = vmatprep.subr.bf16.mxu0 %v2660_v0  ;;  %2485 = vmatprep.subr.bf16.mxu1 %v2660_v0  ;;  %v2563_v40 = vld [vmem:[%s3728_s0 + $0x2bc] ss:$12 sps:$4 sm:$0xff]   ;;  %v2567_v43 = vld [vmem:[%s3728_s0 + $0x94] ss:$12 sps:$4 sm:$0xff]   ;;  %v2573_v47 = vld [vmem:[%s3728_s0 + $0xac] ss:$12 sps:$4 sm:$0xff]  }
  0x10   :  { %v2569_v44 = vld [vmem:[%s3728_s0 + $0x2d4] ss:$12 sps:$4 sm:$0xff]   ;;  %v2572_v46 = vld [vmem:[%s3728_s0 + $0x2d0] ss:$12 sps:$4 sm:$0xff]   ;;  %v2575_v48 = vld [vmem:[%s3728_s0 + $0x2ec] ss:$12 sps:$4 sm:$0xff]  }
  0x11   :  { %v2577_v49 = vld [vmem:[%s3728_s0 + $0xa8] ss:$12 sps:$4 sm:$0xff]   ;;  %v2580_v51 = vld [vmem:[%s3728_s0 + $0xc4] ss:$12 sps:$4 sm:$0xff]   ;;  %v2583_v53 = vld [vmem:[%s3728_s0 + $0xc0] ss:$12 sps:$4 sm:$0xff]  }
  0x12   :  { %872 = vmatpush1.bf16.msra.mxu0 %v2518_v5  ;;  %2501 = vmatpush1.bf16.msra.mxu1 %v2518_v5  ;;  %v2578_v50 = vld [vmem:[%s3728_s0 + $0x2e8] ss:$12 sps:$4 sm:$0xff]   ;;  %v2584_v54 = vld [vmem:[%s3728_s0 + $0x20] ss:$12 sps:$4 sm:$0xff]   ;;  %v2587_v56 = vld [vmem:[%s3728_s0 + $0x38] ss:$12 sps:$4 sm:$0xff]  }
  0x13   :  { %873 = vmatprep.subr.bf16.mxu0 %v2660_v0  ;;  %2486 = vmatprep.subr.bf16.mxu1 %v2660_v0  ;;  %v2582_v52 = vld [vmem:[%s3728_s0 + $0x8] ss:$12 sps:$4 sm:$0xff]   ;;  %v2588_v57 = vld [vmem:[%s3728_s0 + $0xd8] ss:$12 sps:$4 sm:$0xff]   ;;  %v2589_v58 = vld [vmem:[%s3728_s0 + $0x50] ss:$12 sps:$4 sm:$0xff]  }
  0x14   :  { %v2585_v55 = vld [vmem:[%s3728_s0 + $0xdc] ss:$12 sps:$4 sm:$0xff]   ;;  %v2590_v59 = vld [vmem:[%s3728_s0 + $0xf4] ss:$12 sps:$4 sm:$0xff]   ;;  %v2595_v63 = vld [vmem:[%s3728_s0 + $0x10c] ss:$12 sps:$4 sm:$0xff]  }
  0x15   :  { %v2592_v60 = vld [vmem:[%s3728_s0 + $0x68] ss:$12 sps:$4 sm:$0xff]   ;;  %v2593_v61 = vld [vmem:[%s3728_s0 + $0xf0] ss:$12 sps:$4 sm:$0xff]   ;;  %v2594_v62 = vld [vmem:[%s3728_s0 + $0x80] ss:$12 sps:$4 sm:$0xff]  }
  0x16   :  { %874 = vmatpush1.bf16.msra.mxu0 %v2519_v7  ;;  %2502 = vmatpush1.bf16.msra.mxu1 %v2519_v7  ;;  %v2598_v1 = vld [vmem:[%s3728_s0 + $0x108] ss:$12 sps:$4 sm:$0xff]   ;;  %v2599_v2 = vld [vmem:[%s3728_s0 + $0xb0] ss:$12 sps:$4 sm:$0xff]   ;;  %v2603_v5 = vld [vmem:[%s3728_s0 + $0x120] ss:$12 sps:$4 sm:$0xff]  }
  0x17   :  { %875 = vmatprep.subr.bf16.mxu0 %v2660_v0  ;;  %2487 = vmatprep.subr.bf16.mxu1 %v2660_v0  ;;  %v2600_v3 = vld [vmem:[%s3728_s0 + $0x124] ss:$12 sps:$4 sm:$0xff]   ;;  %v2602_v4 = vld [vmem:[%s3728_s0 + $0xc8] ss:$12 sps:$4 sm:$0xff]   ;;  %v2604_v6 = vld [vmem:[%s3728_s0 + $0xe0] ss:$12 sps:$4 sm:$0xff]  }
  0x18   :  { %v2605_v7 = vld [vmem:[%s3728_s0 + $0x13c] ss:$12 sps:$4 sm:$0xff]   ;;  %v2607_v8 = vld [vmem:[%s3728_s0 + $0xf8] ss:$12 sps:$4 sm:$0xff]  }
  0x1a   :  { %876 = vmatpush1.bf16.msra.mxu0 %v2520_v9  ;;  %2503 = vmatpush1.bf16.msra.mxu1 %v2520_v9  ;;  %v2608_v9 = vld [vmem:[%s3728_s0 + $0x138] ss:$12 sps:$4 sm:$0xff]  }
  0x1b   :  { %877 = vmatprep.subr.bf16.mxu0 %v2660_v0  ;;  %2488 = vmatprep.subr.bf16.mxu1 %v2660_v0 }
  0x1e   :  { %878 = vmatpush1.bf16.msra.mxu0 %v2521_v10  ;;  %2504 = vmatpush1.bf16.msra.mxu1 %v2521_v10  ;;  %v2609_v10 = vld [vmem:[%s3728_s0 + $0x110] ss:$12 sps:$4 sm:$0xff]  }
  0x1f   :  { %879 = vmatprep.subr.bf16.mxu0 %v2660_v0  ;;  %2489 = vmatprep.subr.bf16.mxu1 %v2660_v0 }
  0x22   :  { %880 = vmatpush1.bf16.msra.mxu0 %v2522_v11  ;;  %2505 = vmatpush1.bf16.msra.mxu1 %v2522_v11  ;;  %v2610_v11 = vld [vmem:[%s3728_s0 + $0x154] ss:$12 sps:$4 sm:$0xff]  }
  0x23   :  { %881 = vmatprep.subr.bf16.mxu0 %v2660_v0  ;;  %2490 = vmatprep.subr.bf16.mxu1 %v2660_v0 }
  0x26   :  { %882 = vmatpush1.bf16.msra.mxu0 %v2523_v12  ;;  %2506 = vmatpush1.bf16.msra.mxu1 %v2523_v12  ;;  %v2612_v12 = vld [vmem:[%s3728_s0 + $0x128] ss:$12 sps:$4 sm:$0xff]  }
  0x27   :  { %883 = vmatprep.subr.bf16.mxu0 %v2660_v0  ;;  %2491 = vmatprep.subr.bf16.mxu1 %v2660_v0 }
  0x2a   :  { %884 = vmatpush1.bf16.msra.mxu0 %v2524_v13  ;;  %2507 = vmatpush1.bf16.msra.mxu1 %v2524_v13  ;;  %v2613_v13 = vld [vmem:[%s3728_s0 + $0x150] ss:$12 sps:$4 sm:$0xff]  }
  0x2b   :  { %885 = vmatprep.subr.bf16.mxu0 %v2660_v0  ;;  %2492 = vmatprep.subr.bf16.mxu1 %v2660_v0 }
  0x2e   :  { %886 = vmatpush1.bf16.msra.mxu0 %v2525_v14  ;;  %2508 = vmatpush1.bf16.msra.mxu1 %v2525_v14  ;;  %v2614_v14 = vld [vmem:[%s3728_s0 + $0x140] ss:$12 sps:$4 sm:$0xff]  }
  0x2f   :  { %887 = vmatprep.subr.bf16.mxu0 %v2660_v0  ;;  %2493 = vmatprep.subr.bf16.mxu1 %v2660_v0 }
  0x32   :  { %888 = vmatpush1.bf16.msra.mxu0 %v2526_v15  ;;  %2509 = vmatpush1.bf16.msra.mxu1 %v2526_v15  ;;  %v2615_v15 = vld [vmem:[%s3728_s0 + $0x16c] ss:$12 sps:$4 sm:$0xff]  }
  0x33   :  { %889 = vmatprep.subr.bf16.mxu0 %v2660_v0  ;;  %2494 = vmatprep.subr.bf16.mxu1 %v2660_v0 }
  0x36   :  { %890 = vmatpush1.bf16.msra.mxu0 %v2527_v16  ;;  %2510 = vmatpush1.bf16.msra.mxu1 %v2527_v16  ;;  %v2617_v16 = vld [vmem:[%s3728_s0 + $0x158] ss:$12 sps:$4 sm:$0xff]  }
  0x37   :  { %891 = vmatprep.subr.bf16.mxu0 %v2660_v0  ;;  %2495 = vmatprep.subr.bf16.mxu1 %v2660_v0 }
  0x3a   :  { %892 = vmatpush1.bf16.msra.mxu0 %v2528_v17  ;;  %2511 = vmatpush1.bf16.msra.mxu1 %v2528_v17  ;;  %v2618_v17 = vld [vmem:[%s3728_s0 + $0x168] ss:$12 sps:$4 sm:$0xff]  }
  0x3b   :  { %893 = vmatprep.subr.bf16.mxu0 %v2660_v0  ;;  %2496 = vmatprep.subr.bf16.mxu1 %v2660_v0  ;;  %v2597_v0 = vld [vmem:[%s3728_s0 + $0x98] ss:$12 sps:$4 sm:$0xff]  }
  0x3e   :  { %894 = vmatpush1.bf16.msra.mxu0 %v2529_v18  ;;  %2512 = vmatpush1.bf16.msra.mxu1 %v2529_v18  ;;  %v2619_v18 = vld [vmem:[%s3728_s0 + $0x170] ss:$12 sps:$4 sm:$0xff]  }
  0x3f   :  { %2413 = vmatprep.subr.bf16.mxu1 %v2554_v19 }
  0x41   :  { %896 = vmatmul.mubr.bf16.vlgmr.msra.gmra.mrb[0].mxu0 %v2530_v20  ;;  %1088 = vmatmul.mubr.bf16.vlgmr.msra.gmra.mrb[0].mxu1 %v2533_v21  ;;  %v2622_v20 = vld [vmem:[%s3728_s0 + $0x188] ss:$12 sps:$4 sm:$0xff]   ;;  %v2623_v21 = vld [vmem:[%s3728_s0 + $0x180] ss:$12 sps:$4 sm:$0xff]  }
  0x42   :  { %903 = vmatprep.mubr.bf16.mxu0 %v2536_v22  ;;  %1095 = vmatprep.mubr.bf16.mxu1 %v2538_v23  ;;  %v2624_v22 = vld [vmem:[%s3728_s0 + $0x1a0] ss:$12 sps:$4 sm:$0xff]   ;;  %v2625_v23 = vld [vmem:[%s3728_s0 + $0x19c] ss:$12 sps:$4 sm:$0xff]  }
  0x43   :  { %2414 = vmatpush3.bf16.msra.mxu1 %v2554_v19  ;;  %v2620_v19 = vld [vmem:[%s3728_s0 + $0x184] ss:$12 sps:$4 sm:$0xff]  }
  0x44   :  { %2415 = vmatprep.subr.bf16.mxu1 %v2579_v24 }
  0x47   :  { %2416 = vmatpush3.bf16.msra.mxu1 %v2579_v24  ;;  %v2627_v24 = vld [vmem:[%s3728_s0 + $0x1b8] ss:$12 sps:$4 sm:$0xff]  }
  0x49   :  { %904 = vmatmul.mubr.bf16.gmra.mrb[4].mxu0 %v2540_v25  ;;  %1096 = vmatmul.mubr.bf16.gmra.mrb[4].mxu1 %v2541_v26  ;;  %v2628_v25 = vld [vmem:[%s3728_s0 + $0x198] ss:$12 sps:$4 sm:$0xff]   ;;  %v2629_v26 = vld [vmem:[%s3728_s0 + $0x1d0] ss:$12 sps:$4 sm:$0xff]  }
  0x4a   :  { %911 = vmatprep.mubr.bf16.mxu0 %v2542_v27  ;;  %1103 = vmatprep.mubr.bf16.mxu1 %v2544_v28  ;;  %v2630_v27 = vld [vmem:[%s3728_s0 + $0x1b4] ss:$12 sps:$4 sm:$0xff]  }
  0x4b   :  { %v2632_v28 = vld [vmem:[%s3728_s0 + $0x1e8] ss:$12 sps:$4 sm:$0xff]  }
  0x51   :  { %912 = vmatmul.mubr.bf16.gmra.mrb[8].mxu0 %v2546_v29  ;;  %1104 = vmatmul.mubr.bf16.gmra.mrb[8].mxu1 %v2547_v30  ;;  %v2633_v29 = vld [vmem:[%s3728_s0 + $0x1b0] ss:$12 sps:$4 sm:$0xff]   ;;  %v2634_v30 = vld [vmem:[%s3728_s0 + $0x200] ss:$12 sps:$4 sm:$0xff]  }
  0x52   :  { %919 = vmatprep.mubr.bf16.mxu0 %v2548_v31  ;;  %1111 = vmatprep.mubr.bf16.mxu1 %v2550_v32  ;;  %v2635_v31 = vld [vmem:[%s3728_s0 + $0x1cc] ss:$12 sps:$4 sm:$0xff]  }
  0x53   :  { %v2637_v32 = vld [vmem:[%s3728_s0 + $0x218] ss:$12 sps:$4 sm:$0xff]  }
  0x59   :  { %920 = vmatmul.mubr.bf16.gmra.mrb[12].mxu0 %v2552_v33  ;;  %1112 = vmatmul.mubr.bf16.gmra.mrb[12].mxu1 %v2553_v34  ;;  %v2638_v33 = vld [vmem:[%s3728_s0 + $0x1c8] ss:$12 sps:$4 sm:$0xff]   ;;  %v2639_v34 = vld [vmem:[%s3728_s0 + $0x230] ss:$12 sps:$4 sm:$0xff]  }
  0x5a   :  { %927 = vmatprep.mubr.bf16.mxu0 %v2555_v35  ;;  %1119 = vmatprep.mubr.bf16.mxu1 %v2557_v36  ;;  %v2640_v35 = vld [vmem:[%s3728_s0 + $0x1e4] ss:$12 sps:$4 sm:$0xff]   ;;  %v2642_v36 = vld [vmem:[%s3728_s0 + $0x248] ss:$12 sps:$4 sm:$0xff]  }
  0x61   :  { %928 = vmatmul.mubr.bf16.gmra.mrb[16].mxu0 %v2559_v37  ;;  %1120 = vmatmul.mubr.bf16.gmra.mrb[16].mxu1 %v2560_v38  ;;  %v2643_v37 = vld [vmem:[%s3728_s0 + $0x1e0] ss:$12 sps:$4 sm:$0xff]  }
  0x62   :  { %935 = vmatprep.mubr.bf16.mxu0 %v2561_v39  ;;  %1127 = vmatprep.mubr.bf16.mxu1 %v2563_v40  ;;  %v2644_v38 = vld [vmem:[%s3728_s0 + $0x260] ss:$12 sps:$4 sm:$0xff]   ;;  %v2645_v39 = vld [vmem:[%s3728_s0 + $0x1fc] ss:$12 sps:$4 sm:$0xff]   ;;  %v2647_v40 = vld [vmem:[%s3728_s0 + $0x278] ss:$12 sps:$4 sm:$0xff]  }
  0x69   :  { %936 = vmatmul.mubr.bf16.gmra.mrb[20].mxu0 %v2565_v41  ;;  %1128 = vmatmul.mubr.bf16.gmra.mrb[20].mxu1 %v2566_v42  ;;  %v2648_v41 = vld [vmem:[%s3728_s0 + $0x1f8] ss:$12 sps:$4 sm:$0xff]   ;;  %v2649_v42 = vld [vmem:[%s3728_s0 + $0x290] ss:$12 sps:$4 sm:$0xff]  }
  0x6a   :  { %943 = vmatprep.mubr.bf16.mxu0 %v2567_v43  ;;  %1135 = vmatprep.mubr.bf16.mxu1 %v2569_v44  ;;  %v2650_v43 = vld [vmem:[%s3728_s0 + $0x214] ss:$12 sps:$4 sm:$0xff]  }
  0x6b   :  { %v2652_v44 = vld [vmem:[%s3728_s0 + $0x2a8] ss:$12 sps:$4 sm:$0xff]  }
  0x71   :  { %944 = vmatmul.mubr.bf16.gmra.mrb[24].mxu0 %v2571_v45  ;;  %1136 = vmatmul.mubr.bf16.gmra.mrb[24].mxu1 %v2572_v46  ;;  %v2653_v45 = vld [vmem:[%s3728_s0 + $0x210] ss:$12 sps:$4 sm:$0xff]   ;;  %v2654_v46 = vld [vmem:[%s3728_s0 + $0x2c0] ss:$12 sps:$4 sm:$0xff]  }
  0x72   :  { %951 = vmatprep.mubr.bf16.mxu0 %v2573_v47  ;;  %1143 = vmatprep.mubr.bf16.mxu1 %v2575_v48  ;;  %v2655_v47 = vld [vmem:[%s3728_s0 + $0x22c] ss:$12 sps:$4 sm:$0xff]  }
  0x73   :  { %v2657_v48 = vld [vmem:[%s3728_s0 + $0x2d8] ss:$12 sps:$4 sm:$0xff]  }
  0x79   :  { %952 = vmatmul.mubr.bf16.gmra.mrb[28].mxu0 %v2577_v49  ;;  %1144 = vmatmul.mubr.bf16.gmra.mrb[28].mxu1 %v2578_v50  ;;  %v2658_v49 = vld [vmem:[%s3728_s0 + $0x228] ss:$12 sps:$4 sm:$0xff]   ;;  %v2659_v50 = vld [vmem:[%s3728_s0 + $0x2f0] ss:$12 sps:$4 sm:$0xff]  }
  0x7a   :  { %959 = vmatprep.mubr.bf16.mxu0 %v2580_v51  ;;  %2417 = vmatprep.mubr.msk.bf16.mxu1 %vm766_vm0, %v2582_v52 }
  0x81   :  { %960 = vmatmul.mubr.bf16.gmra.mrb[32].mxu0 %v2583_v53  ;;  %2418 = vmatmul.mubr.msk.bf16.vlgmr.msra.gmra.mrb[32].mxu1 %vm766_vm0, %v2584_v54 }
  0x82   :  { %967 = vmatprep.mubr.bf16.mxu0 %v2585_v55  ;;  %2421 = vmatprep.mubr.msk.bf16.mxu1 %vm766_vm0, %v2587_v56 }
  0x89   :  { %968 = vmatmul.mubr.bf16.gmra.mrb[36].mxu0 %v2588_v57  ;;  %2422 = vmatmul.mubr.msk.bf16.gmra.mrb[36].mxu1 %vm766_vm0, %v2589_v58 }
  0x8a   :  { %975 = vmatprep.mubr.bf16.mxu0 %v2590_v59  ;;  %2425 = vmatprep.mubr.msk.bf16.mxu1 %vm766_vm0, %v2592_v60 }
  0x91   :  { %976 = vmatmul.mubr.bf16.gmra.mrb[40].mxu0 %v2593_v61  ;;  %2426 = vmatmul.mubr.msk.bf16.gmra.mrb[40].mxu1 %vm766_vm0, %v2594_v62 }
  0x92   :  { %983 = vmatprep.mubr.bf16.mxu0 %v2595_v63  ;;  %2429 = vmatprep.mubr.msk.bf16.mxu1 %vm766_vm0, %v2597_v0 }
  0x99   :  { %984 = vmatmul.mubr.bf16.gmra.mrb[44].mxu0 %v2598_v1  ;;  %2430 = vmatmul.mubr.msk.bf16.gmra.mrb[44].mxu1 %vm766_vm0, %v2599_v2 }
  0x9a   :  { %991 = vmatprep.mubr.bf16.mxu0 %v2600_v3  ;;  %2433 = vmatprep.mubr.msk.bf16.mxu1 %vm766_vm0, %v2602_v4 }
  0xa1   :  { %992 = vmatmul.mubr.bf16.gmra.mrb[48].mxu0 %v2603_v5  ;;  %2434 = vmatmul.mubr.msk.bf16.gmra.mrb[48].mxu1 %vm766_vm0, %v2604_v6 }
  0xa2   :  { %999 = vmatprep.mubr.bf16.mxu0 %v2605_v7  ;;  %2437 = vmatprep.mubr.msk.bf16.mxu1 %vm766_vm0, %v2607_v8 }
  0xa9   :  { %1000 = vmatmul.mubr.bf16.gmra.mrb[52].mxu0 %v2608_v9  ;;  %2438 = vmatmul.mubr.msk.bf16.gmra.mrb[52].mxu1 %vm766_vm0, %v2609_v10 }
  0xaa   :  { %1007 = vmatprep.mubr.bf16.mxu0 %v2610_v11  ;;  %2441 = vmatprep.mubr.msk.bf16.mxu1 %vm766_vm0, %v2612_v12 }
  0xb1   :  { %1008 = vmatmul.mubr.bf16.gmra.mrb[56].mxu0 %v2613_v13  ;;  %2442 = vmatmul.mubr.msk.bf16.gmra.mrb[56].mxu1 %vm766_vm0, %v2614_v14 }
  0xb2   :  { %1015 = vmatprep.mubr.bf16.mxu0 %v2615_v15  ;;  %2445 = vmatprep.mubr.msk.bf16.mxu1 %vm766_vm0, %v2617_v16 }
  0xb9   :  { %1016 = vmatmul.mubr.bf16.gmra.mrb[60].mxu0 %v2618_v17  ;;  %2446 = vmatmul.mubr.msk.bf16.gmra.mrb[60].mxu1 %vm766_vm0, %v2619_v18 }
  0xba   :  { %1023 = vmatprep.mubr.bf16.mxu0 %v2620_v19  ;;  %2449 = vmatprep.mubr.msk.bf16.mxu1 %vm766_vm0, %v2622_v20 }
  0xc1   :  { %1024 = vmatmul.mubr.bf16.gmra.mrb[64].mxu0 %v2623_v21  ;;  %2450 = vmatmul.mubr.msk.bf16.gmra.mrb[64].mxu1 %vm766_vm0, %v2624_v22 }
  0xc2   :  { %1031 = vmatprep.mubr.bf16.mxu0 %v2625_v23  ;;  %2453 = vmatprep.mubr.msk.bf16.mxu1 %vm766_vm0, %v2627_v24 }
  0xc9   :  { %1032 = vmatmul.mubr.bf16.gmra.mrb[68].mxu0 %v2628_v25  ;;  %2454 = vmatmul.mubr.msk.bf16.gmra.mrb[68].mxu1 %vm766_vm0, %v2629_v26 }
  0xca   :  { %1039 = vmatprep.mubr.bf16.mxu0 %v2630_v27  ;;  %2457 = vmatprep.mubr.msk.bf16.mxu1 %vm766_vm0, %v2632_v28 }
  0xd1   :  { %1040 = vmatmul.mubr.bf16.gmra.mrb[72].mxu0 %v2633_v29  ;;  %2458 = vmatmul.mubr.msk.bf16.gmra.mrb[72].mxu1 %vm766_vm0, %v2634_v30 }
  0xd2   :  { %1047 = vmatprep.mubr.bf16.mxu0 %v2635_v31  ;;  %2461 = vmatprep.mubr.msk.bf16.mxu1 %vm766_vm0, %v2637_v32 }
  0xd9   :  { %1048 = vmatmul.mubr.bf16.gmra.mrb[76].mxu0 %v2638_v33  ;;  %2462 = vmatmul.mubr.msk.bf16.gmra.mrb[76].mxu1 %vm766_vm0, %v2639_v34 }
  0xda   :  { %1055 = vmatprep.mubr.bf16.mxu0 %v2640_v35  ;;  %2465 = vmatprep.mubr.msk.bf16.mxu1 %vm766_vm0, %v2642_v36 }
  0xe1   :  { %1056 = vmatmul.mubr.bf16.gmra.mrb[80].mxu0 %v2643_v37  ;;  %2466 = vmatmul.mubr.msk.bf16.gmra.mrb[80].mxu1 %vm766_vm0, %v2644_v38 }
  0xe2   :  { %1063 = vmatprep.mubr.bf16.mxu0 %v2645_v39  ;;  %2469 = vmatprep.mubr.msk.bf16.mxu1 %vm766_vm0, %v2647_v40 }
  0xe9   :  { %1064 = vmatmul.mubr.bf16.gmra.mrb[84].mxu0 %v2648_v41  ;;  %2470 = vmatmul.mubr.msk.bf16.gmra.mrb[84].mxu1 %vm766_vm0, %v2649_v42 }
  0xea   :  { %1071 = vmatprep.mubr.bf16.mxu0 %v2650_v43  ;;  %2473 = vmatprep.mubr.msk.bf16.mxu1 %vm766_vm0, %v2652_v44 }
  0xf1   :  { %1072 = vmatmul.mubr.bf16.gmra.mrb[88].mxu0 %v2653_v45  ;;  %2474 = vmatmul.mubr.msk.bf16.gmra.mrb[88].mxu1 %vm766_vm0, %v2654_v46 }
  0xf2   :  { %1079 = vmatprep.mubr.bf16.mxu0 %v2655_v47  ;;  %2477 = vmatprep.mubr.msk.bf16.mxu1 %vm766_vm0, %v2657_v48 }
  0xf9   :  { %1080 = vmatmul.mubr.bf16.gmra.mrb[92].mxu0 %v2658_v49  ;;  %2478 = vmatmul.mubr.msk.bf16.gmra.mrb[92].mxu1 %vm766_vm0, %v2659_v50 }
 0x114   :  { %v3087_v51 = vpop.f32.mrb[0].mxu0  ;;  %v3089_v52 = vpop.f32.mrb[0].mxu1 }
 0x115   :  { %v899_v53 = vpop.f32.mrb[1].mxu0  ;;  %v1091_v54 = vpop.f32.mrb[1].mxu1 }
 0x116   :  { %v3091_v55 = vpop.f32.mrb[2].mxu0  ;;  %v3093_v56 = vpop.f32.mrb[2].mxu1 }
 0x117   :  { %v902_v57 = vpop.f32.mrb[3].mxu0  ;;  %v1094_v58 = vpop.f32.mrb[3].mxu1 }
 0x11c   :  { %v905_v59 = vpop.f32.mrb[4].mxu0  ;;  %v3095_v60 = vpop.f32.mrb[4].mxu1 }
 0x11d   :  { %v907_v61 = vpop.f32.mrb[5].mxu0  ;;  %v1099_v62 = vpop.f32.mrb[5].mxu1 }
 0x11e   :  { %v3097_v63 = vpop.f32.mrb[6].mxu0  ;;  %v3099_v0 = vpop.f32.mrb[6].mxu1 }
 0x11f   :  { %v910_v1 = vpop.f32.mrb[7].mxu0  ;;  %v1102_v2 = vpop.f32.mrb[7].mxu1 }
 0x124   :  { %v3101_v3 = vpop.f32.mrb[8].mxu0  ;;  %v3103_v4 = vpop.f32.mrb[8].mxu1 }
 0x125   :  { %v915_v5 = vpop.f32.mrb[9].mxu0  ;;  %v1107_v6 = vpop.f32.mrb[9].mxu1 }
 0x126   :  { %v3105_v7 = vpop.f32.mrb[10].mxu0  ;;  %v3107_v8 = vpop.f32.mrb[10].mxu1 }
 0x127   :  { %v918_v9 = vpop.f32.mrb[11].mxu0  ;;  %v1110_v10 = vpop.f32.mrb[11].mxu1 }
 0x12c   :  { %v3109_v11 = vpop.f32.mrb[12].mxu0  ;;  %v3111_v12 = vpop.f32.mrb[12].mxu1 }
 0x12d   :  { %v923_v13 = vpop.f32.mrb[13].mxu0  ;;  %v1115_v14 = vpop.f32.mrb[13].mxu1 }
 0x12e   :  { %v3113_v15 = vpop.f32.mrb[14].mxu0  ;;  %v3115_v16 = vpop.f32.mrb[14].mxu1 }
 0x12f   :  { %v926_v17 = vpop.f32.mrb[15].mxu0  ;;  %v1118_v18 = vpop.f32.mrb[15].mxu1 }
 0x134   :  { %v3117_v19 = vpop.f32.mrb[16].mxu0  ;;  %v3119_v20 = vpop.f32.mrb[16].mxu1 }
 0x135   :  { %v931_v21 = vpop.f32.mrb[17].mxu0  ;;  %v1123_v22 = vpop.f32.mrb[17].mxu1 }
 0x136   :  { %v3121_v23 = vpop.f32.mrb[18].mxu0  ;;  %v3123_v24 = vpop.f32.mrb[18].mxu1 }
 0x137   :  { %v934_v25 = vpop.f32.mrb[19].mxu0  ;;  %v1126_v26 = vpop.f32.mrb[19].mxu1 }
 0x13c   :  { %v3125_v27 = vpop.f32.mrb[20].mxu0  ;;  %v3127_v28 = vpop.f32.mrb[20].mxu1 }
 0x13d   :  { %v939_v29 = vpop.f32.mrb[21].mxu0  ;;  %v1131_v30 = vpop.f32.mrb[21].mxu1 }
 0x13e   :  { %v3129_v31 = vpop.f32.mrb[22].mxu0  ;;  %v3131_v32 = vpop.f32.mrb[22].mxu1 }
 0x13f   :  { %v942_v33 = vpop.f32.mrb[23].mxu0  ;;  %v1134_v34 = vpop.f32.mrb[23].mxu1 }
 0x144   :  { %v3133_v35 = vpop.f32.mrb[24].mxu0  ;;  %v3135_v36 = vpop.f32.mrb[24].mxu1 }
 0x145   :  { %v947_v37 = vpop.f32.mrb[25].mxu0  ;;  %v1139_v38 = vpop.f32.mrb[25].mxu1 }
 0x146   :  { %v3137_v39 = vpop.f32.mrb[26].mxu0  ;;  %v3139_v40 = vpop.f32.mrb[26].mxu1 }
 0x147   :  { %v950_v41 = vpop.f32.mrb[27].mxu0  ;;  %v1142_v42 = vpop.f32.mrb[27].mxu1 }
 0x14c   :  { %v3141_v43 = vpop.f32.mrb[28].mxu0  ;;  %v3143_v44 = vpop.f32.mrb[28].mxu1 }
 0x14d   :  { %v955_v45 = vpop.f32.mrb[29].mxu0  ;;  %v1147_v46 = vpop.f32.mrb[29].mxu1 }
 0x14e   :  { %v3145_v47 = vpop.f32.mrb[30].mxu0  ;;  %v3147_v48 = vpop.f32.mrb[30].mxu1 }
 0x14f   :  { %v958_v49 = vpop.f32.mrb[31].mxu0  ;;  %v1150_v50 = vpop.f32.mrb[31].mxu1 }
 0x154   :  { %v3149_v53 = vpop.f32.mrb[32].mxu0  ;;  %v2419_v54 = vpop.f32.mrb[32].mxu1 }
 0x155   :  { %v1195_v57 = vadd.f32 %v2419_v54, %v905_v59  ;;  %v963_v58 = vpop.f32.mrb[33].mxu0  ;;  %v1186_v61 = vpop.f32.mrb[33].mxu1 }
 0x156   :  { %v1187_v62 = vadd.f32 %v1186_v61, %v3087_v51  ;;  %v3152_v1 = vpop.f32.mrb[34].mxu0  ;;  %v2420_v2 = vpop.f32.mrb[34].mxu1 }
 0x157   :  { %v2317_v5 = vpack.c.bf16 %v1195_v57, %v1195_v57  ;;  %v1198_v6 = vadd.f32 %v2420_v2, %v3097_v63  ;;  %v966_v9 = vpop.f32.mrb[35].mxu0  ;;  %v1189_v10 = vpop.f32.mrb[35].mxu1  ;;  %v1898_v59 = vmul.f32 %v1195_v57, %v1195_v57  ;;  %v1766_v26 = vsel %vm1762_vm2, %v1195_v57, 0.0 }
 0x158   :  { %v2315_v13 = vpack.c.bf16 %v1187_v62, %v1187_v62  ;;  %v1896_v14 = vmul.f32 %v1187_v62, %v1187_v62  ;;  %v1190_v17 = vadd.f32 %v1189_v10, %v3091_v55  ;;  %v1763_v63 = vsel %vm1762_vm2, %v1187_v62, 0.0 }
 0x159   :  { %1700 = vst.msk [vmem:[%s3729_s2 + $0x8] sm:$0xf] %vm1697_vm1, %v2317_v5  ;;  %v2318_v51 = vpack.c.bf16 %v1198_v6, %v1198_v6  ;;  %v1899_v55 = vmul.f32 %v1198_v6, %v1198_v6  ;;  %v1963_v46 = vsel %vm1762_vm2, %v1898_v59, 0.0  ;;  %v1768_v57 = vsel %vm1762_vm2, %v1198_v6, 0.0 }
 0x15a   :  { %1698 = vst.msk [vmem:[%s3729_s2] sm:$0xf] %vm1697_vm1, %v2315_v13  ;;  %v2316_v18 = vpack.c.bf16 %v1190_v17, %v1190_v17  ;;  %v1764_v21 = vsel %vm1762_vm2, %v1190_v17, 0.0  ;;  %v1897_v22 = vmul.f32 %v1190_v17, %v1190_v17  ;;  %v1960_v29 = vsel %vm1762_vm2, %v1896_v14, 0.0 }
 0x15b   :  { %1701 = vst.msk [vmem:[%s3729_s2 + $0xc] sm:$0xf] %vm1697_vm1, %v2318_v51  ;;  %v1765_v25 = vadd.f32 %v1764_v21, %v1763_v63  ;;  %v1965_v58 = vsel %vm1762_vm2, %v1899_v55, 0.0 }
 0x15c   :  { %1699 = vst.msk [vmem:[%s3729_s2 + $0x4] sm:$0xf] %vm1697_vm1, %v2316_v18  ;;  %v1961_v30 = vsel %vm1762_vm2, %v1897_v22, 0.0  ;;  %v3177_v33 = vpop.f32.mrb[36].mxu0  ;;  %v2423_v34 = vpop.f32.mrb[36].mxu1 }
 0x15d   :  { %v1767_v37 = vadd.f32 %v1766_v26, %v1765_v25  ;;  %v1962_v38 = vadd.f32 %v1961_v30, %v1960_v29  ;;  %v1211_v41 = vadd.f32 %v2423_v34, %v3109_v11  ;;  %v971_v42 = vpop.f32.mrb[37].mxu0  ;;  %v1202_v45 = vpop.f32.mrb[37].mxu1 }
 0x15e   :  { %v1203_v49 = vadd.f32 %v1202_v45, %v3101_v3  ;;  %v3182_v50 = vpop.f32.mrb[38].mxu0  ;;  %v2424_v54 = vpop.f32.mrb[38].mxu1 }
 0x15f   :  { %v1964_v61 = vadd.f32 %v1963_v46, %v1962_v38  ;;  %v2321_v62 = vpack.c.bf16 %v1211_v41, %v1211_v41  ;;  %v974_v2 = vpop.f32.mrb[39].mxu0  ;;  %v1205_v5 = vpop.f32.mrb[39].mxu1  ;;  %v1769_v10 = vadd.f32 %v1768_v57, %v1767_v37  ;;  %v1214_v14 = vadd.f32 %v2424_v54, %v3113_v15 }
 0x160   :  { %v2319_v9 = vpack.c.bf16 %v1203_v49, %v1203_v49  ;;  %v1770_v11 = vsel %vm1762_vm2, %v1203_v49, 0.0  ;;  %v1900_v13 = vmul.f32 %v1203_v49, %v1203_v49  ;;  %v1206_v6 = vadd.f32 %v1205_v5, %v3105_v7 }
 0x161   :  { %1704 = vst.msk [vmem:[%s3729_s2 + $0x18] sm:$0xf] %vm1697_vm1, %v2321_v62  ;;  %v1966_v3 = vadd.f32 %v1965_v58, %v1964_v61  ;;  %v1771_v17 = vadd.f32 %v1770_v11, %v1769_v10  ;;  %v1902_v51 = vmul.f32 %v1211_v41, %v1211_v41  ;;  %v2322_v18 = vpack.c.bf16 %v1214_v14, %v1214_v14 }
 0x162   :  { %1702 = vst.msk [vmem:[%s3729_s2 + $0x10] sm:$0xf] %vm1697_vm1, %v2319_v9  ;;  %v1967_v59 = vsel %vm1762_vm2, %v1900_v13, 0.0  ;;  %v2320_v21 = vpack.c.bf16 %v1206_v6, %v1206_v6  ;;  %v1772_v22 = vsel %vm1762_vm2, %v1206_v6, 0.0  ;;  %v1901_v55 = vmul.f32 %v1206_v6, %v1206_v6 }
 0x163   :  { %v1968_v63 = vadd.f32 %v1967_v59, %v1966_v3  ;;  %1705 = vst.msk [vmem:[%s3729_s2 + $0x1c] sm:$0xf] %vm1697_vm1, %v2322_v18  ;;  %v1773_v7 = vadd.f32 %v1772_v22, %v1771_v17  ;;  %v1774_v34 = vsel %vm1762_vm2, %v1211_v41, 0.0  ;;  %v1903_v37 = vmul.f32 %v1214_v14, %v1214_v14 }
 0x164   :  { %v3199_v25 = vpop.f32.mrb[40].mxu0  ;;  %v2427_v15 = vpop.f32.mrb[40].mxu1  ;;  %1703 = vst.msk [vmem:[%s3729_s2 + $0x14] sm:$0xf] %vm1697_vm1, %v2320_v21  ;;  %v1969_v38 = vsel %vm1762_vm2, %v1901_v55, 0.0  ;;  %v1971_v49 = vsel %vm1762_vm2, %v1902_v51, 0.0 }
 0x165   :  { %v1227_v26 = vadd.f32 %v2427_v15, %v3125_v27  ;;  %v979_v29 = vpop.f32.mrb[41].mxu0  ;;  %v1218_v30 = vpop.f32.mrb[41].mxu1  ;;  %v1775_v27 = vadd.f32 %v1774_v34, %v1773_v7  ;;  %v1970_v54 = vadd.f32 %v1969_v38, %v1968_v63  ;;  %v1776_v61 = vsel %vm1762_vm2, %v1214_v14, 0.0 }
 0x166   :  { %v1219_v42 = vadd.f32 %v1218_v30, %v3117_v19  ;;  %v3213_v45 = vpop.f32.mrb[42].mxu0  ;;  %v2428_v46 = vpop.f32.mrb[42].mxu1  ;;  %v1973_v13 = vsel %vm1762_vm2, %v1903_v37, 0.0 }
 0x167   :  { %v2325_v57 = vpack.c.bf16 %v1227_v26, %v1227_v26  ;;  %v982_v58 = vpop.f32.mrb[43].mxu0  ;;  %v1221_v41 = vpop.f32.mrb[43].mxu1  ;;  %v1972_v9 = vadd.f32 %v1971_v49, %v1970_v54  ;;  %v1777_v19 = vadd.f32 %v1776_v61, %v1775_v27  ;;  %v1230_v10 = vadd.f32 %v2428_v46, %v3129_v31 }
 0x168   :  { %v2323_v62 = vpack.c.bf16 %v1219_v42, %v1219_v42  ;;  %v1778_v2 = vsel %vm1762_vm2, %v1219_v42, 0.0  ;;  %v1904_v5 = vmul.f32 %v1219_v42, %v1219_v42  ;;  %v1222_v11 = vadd.f32 %v1221_v41, %v3121_v23 }
 0x169   :  { %1708 = vst.msk [vmem:[%s3729_s2 + $0x28] sm:$0xf] %vm1697_vm1, %v2325_v57  ;;  %v1906_v14 = vmul.f32 %v1227_v26, %v1227_v26  ;;  %v1779_v6 = vadd.f32 %v1778_v2, %v1777_v19  ;;  %v1974_v17 = vadd.f32 %v1973_v13, %v1972_v9  ;;  %v2326_v59 = vpack.c.bf16 %v1230_v10, %v1230_v10 }
 0x16a   :  { %1706 = vst.msk [vmem:[%s3729_s2 + $0x20] sm:$0xf] %vm1697_vm1, %v2323_v62  ;;  %v1975_v3 = vsel %vm1762_vm2, %v1904_v5, 0.0  ;;  %v2324_v51 = vpack.c.bf16 %v1222_v11, %v1222_v11  ;;  %v1780_v63 = vsel %vm1762_vm2, %v1222_v11, 0.0  ;;  %v1905_v18 = vmul.f32 %v1222_v11, %v1222_v11 }
 0x16b   :  { %v1976_v21 = vadd.f32 %v1975_v3, %v1974_v17  ;;  %1709 = vst.msk [vmem:[%s3729_s2 + $0x2c] sm:$0xf] %vm1697_vm1, %v2326_v59  ;;  %v1781_v22 = vadd.f32 %v1780_v63, %v1779_v6  ;;  %v1782_v29 = vsel %vm1762_vm2, %v1227_v26, 0.0  ;;  %v1907_v30 = vmul.f32 %v1230_v10, %v1230_v10 }
 0x16c   :  { %v3231_v31 = vpop.f32.mrb[44].mxu0  ;;  %v2431_v23 = vpop.f32.mrb[44].mxu1  ;;  %1707 = vst.msk [vmem:[%s3729_s2 + $0x24] sm:$0xf] %vm1697_vm1, %v2324_v51  ;;  %v1977_v34 = vsel %vm1762_vm2, %v1905_v18, 0.0  ;;  %v1979_v46 = vsel %vm1762_vm2, %v1906_v14, 0.0 }
 0x16d   :  { %v1243_v55 = vadd.f32 %v2431_v23, %v3141_v43  ;;  %v987_v15 = vpop.f32.mrb[45].mxu0  ;;  %v1234_v7 = vpop.f32.mrb[45].mxu1  ;;  %v1783_v43 = vadd.f32 %v1782_v29, %v1781_v22  ;;  %v1978_v49 = vadd.f32 %v1977_v34, %v1976_v21  ;;  %v1784_v57 = vsel %vm1762_vm2, %v1230_v10, 0.0 }
 0x16e   :  { %v1235_v37 = vadd.f32 %v1234_v7, %v3133_v35  ;;  %v3245_v38 = vpop.f32.mrb[46].mxu0  ;;  %v2432_v42 = vpop.f32.mrb[46].mxu1  ;;  %v1981_v9 = vsel %vm1762_vm2, %v1907_v30, 0.0 }
 0x16f   :  { %v2329_v27 = vpack.c.bf16 %v1243_v55, %v1243_v55  ;;  %v990_v54 = vpop.f32.mrb[47].mxu0  ;;  %v1237_v26 = vpop.f32.mrb[47].mxu1  ;;  %v1980_v62 = vadd.f32 %v1979_v46, %v1978_v49  ;;  %v1785_v35 = vadd.f32 %v1784_v57, %v1783_v43  ;;  %v1246_v2 = vadd.f32 %v2432_v42, %v3145_v47 }
 0x170   :  { %v2327_v58 = vpack.c.bf16 %v1235_v37, %v1235_v37  ;;  %v1786_v41 = vsel %vm1762_vm2, %v1235_v37, 0.0  ;;  %v1908_v61 = vmul.f32 %v1235_v37, %v1235_v37  ;;  %v1238_v5 = vadd.f32 %v1237_v26, %v3137_v39 }
 0x171   :  { %1712 = vst.msk [vmem:[%s3729_s2 + $0x38] sm:$0xf] %vm1697_vm1, %v2329_v27  ;;  %v1910_v10 = vmul.f32 %v1243_v55, %v1243_v55  ;;  %v1787_v11 = vadd.f32 %v1786_v41, %v1785_v35  ;;  %v1982_v13 = vadd.f32 %v1981_v9, %v1980_v62  ;;  %v2330_v3 = vpack.c.bf16 %v1246_v2, %v1246_v2 }
 0x172   :  { %1710 = vst.msk [vmem:[%s3729_s2 + $0x30] sm:$0xf] %vm1697_vm1, %v2327_v58  ;;  %v1983_v19 = vsel %vm1762_vm2, %v1908_v61, 0.0  ;;  %v2328_v14 = vpack.c.bf16 %v1238_v5, %v1238_v5  ;;  %v1788_v6 = vsel %vm1762_vm2, %v1238_v5, 0.0  ;;  %v1909_v17 = vmul.f32 %v1238_v5, %v1238_v5 }
 0x173   :  { %v1984_v59 = vadd.f32 %v1983_v19, %v1982_v13  ;;  %1713 = vst.msk [vmem:[%s3729_s2 + $0x3c] sm:$0xf] %vm1697_vm1, %v2330_v3  ;;  %v1789_v51 = vadd.f32 %v1788_v6, %v1787_v11  ;;  %v1790_v21 = vsel %vm1762_vm2, %v1243_v55, 0.0  ;;  %v1911_v22 = vmul.f32 %v1246_v2, %v1246_v2 }
 0x174   :  { %v3263_v47 = vpop.f32.mrb[48].mxu0  ;;  %v2435_v39 = vpop.f32.mrb[48].mxu1  ;;  %1711 = vst.msk [vmem:[%s3729_s2 + $0x34] sm:$0xf] %vm1697_vm1, %v2328_v14  ;;  %v1985_v15 = vsel %vm1762_vm2, %v1909_v17, 0.0  ;;  %v1987_v34 = vsel %vm1762_vm2, %v1910_v10, 0.0 }
 0x175   :  { %v1259_v63 = vadd.f32 %v2435_v39, %v3177_v33  ;;  %v995_v18 = vpop.f32.mrb[49].mxu0  ;;  %v1250_v23 = vpop.f32.mrb[49].mxu1  ;;  %v1791_v33 = vadd.f32 %v1790_v21, %v1789_v51  ;;  %v1986_v37 = vadd.f32 %v1985_v15, %v1984_v59  ;;  %v1792_v43 = vsel %vm1762_vm2, %v1246_v2, 0.0 }
 0x176   :  { %v1251_v7 = vadd.f32 %v1250_v23, %v3149_v53  ;;  %v3277_v29 = vpop.f32.mrb[50].mxu0  ;;  %v2436_v30 = vpop.f32.mrb[50].mxu1  ;;  %v1989_v41 = vsel %vm1762_vm2, %v1911_v22, 0.0 }
 0x177   :  { %v2333_v42 = vpack.c.bf16 %v1259_v63, %v1259_v63  ;;  %v998_v46 = vpop.f32.mrb[51].mxu0  ;;  %v1253_v55 = vpop.f32.mrb[51].mxu1  ;;  %v1988_v26 = vadd.f32 %v1987_v34, %v1986_v37  ;;  %v1793_v53 = vadd.f32 %v1792_v43, %v1791_v33  ;;  %v1262_v57 = vadd.f32 %v2436_v30, %v3182_v50 }
 0x178   :  { %v2331_v49 = vpack.c.bf16 %v1251_v7, %v1251_v7  ;;  %v1794_v27 = vsel %vm1762_vm2, %v1251_v7, 0.0  ;;  %v1912_v54 = vmul.f32 %v1251_v7, %v1251_v7  ;;  %v1254_v58 = vadd.f32 %v1253_v55, %v3152_v1 }
 0x179   :  { %1716 = vst.msk [vmem:[%s3729_s2 + $0x48] sm:$0xf] %vm1697_vm1, %v2333_v42  ;;  %v1914_v62 = vmul.f32 %v1259_v63, %v1259_v63  ;;  %v1795_v35 = vadd.f32 %v1794_v27, %v1793_v53  ;;  %v1990_v2 = vadd.f32 %v1989_v41, %v1988_v26  ;;  %v2334_v5 = vpack.c.bf16 %v1262_v57, %v1262_v57 }
 0x17a   :  { %1714 = vst.msk [vmem:[%s3729_s2 + $0x40] sm:$0xf] %vm1697_vm1, %v2331_v49  ;;  %v1991_v61 = vsel %vm1762_vm2, %v1912_v54, 0.0  ;;  %v2332_v9 = vpack.c.bf16 %v1254_v58, %v1254_v58  ;;  %v1796_v19 = vsel %vm1762_vm2, %v1254_v58, 0.0  ;;  %v1913_v10 = vmul.f32 %v1254_v58, %v1254_v58 }
 0x17b   :  { %v1992_v1 = vadd.f32 %v1991_v61, %v1990_v2  ;;  %1717 = vst.msk [vmem:[%s3729_s2 + $0x4c] sm:$0xf] %vm1697_vm1, %v2334_v5  ;;  %v1797_v13 = vadd.f32 %v1796_v19, %v1795_v35  ;;  %v1798_v17 = vsel %vm1762_vm2, %v1259_v63, 0.0  ;;  %v1915_v39 = vmul.f32 %v1262_v57, %v1262_v57 }
 0x17c   :  { %v1001_v50 = vpop.f32.mrb[52].mxu0  ;;  %v2439_v11 = vpop.f32.mrb[52].mxu1  ;;  %1715 = vst.msk [vmem:[%s3729_s2 + $0x44] sm:$0xf] %vm1697_vm1, %v2332_v9  ;;  %v1993_v59 = vsel %vm1762_vm2, %v1913_v10, 0.0  ;;  %v1995_v21 = vsel %vm1762_vm2, %v1914_v62, 0.0 }
 0x17d   :  { %v1275_v3 = vadd.f32 %v2439_v11, %v3231_v31  ;;  %v1003_v14 = vpop.f32.mrb[53].mxu0  ;;  %v1266_v6 = vpop.f32.mrb[53].mxu1  ;;  %v1799_v22 = vadd.f32 %v1798_v17, %v1797_v13  ;;  %v1994_v31 = vadd.f32 %v1993_v59, %v1992_v1  ;;  %v1800_v63 = vsel %vm1762_vm2, %v1262_v57, 0.0 }
 0x17e   :  { %v1267_v51 = vadd.f32 %v1266_v6, %v3199_v25  ;;  %v1004_v18 = vpop.f32.mrb[54].mxu0  ;;  %v2440_v23 = vpop.f32.mrb[54].mxu1  ;;  %v1997_v43 = vsel %vm1762_vm2, %v1915_v39, 0.0 }
 0x17f   :  { %v2337_v15 = vpack.c.bf16 %v1275_v3, %v1275_v3  ;;  %v1006_v7 = vpop.f32.mrb[55].mxu0  ;;  %v1269_v30 = vpop.f32.mrb[55].mxu1  ;;  %v1996_v42 = vadd.f32 %v1995_v21, %v1994_v31  ;;  %v1801_v25 = vadd.f32 %v1800_v63, %v1799_v22  ;;  %v1278_v46 = vadd.f32 %v2440_v23, %v3245_v38 }
 0x180   :  { %v2335_v34 = vpack.c.bf16 %v1267_v51, %v1267_v51  ;;  %v1802_v33 = vsel %vm1762_vm2, %v1267_v51, 0.0  ;;  %v1916_v37 = vmul.f32 %v1267_v51, %v1267_v51  ;;  %v1270_v55 = vadd.f32 %v1269_v30, %v3213_v45 }
 0x181   :  { %1720 = vst.msk [vmem:[%s3729_s2 + $0x58] sm:$0xf] %vm1697_vm1, %v2337_v15  ;;  %v1918_v27 = vmul.f32 %v1275_v3, %v1275_v3  ;;  %v1803_v54 = vadd.f32 %v1802_v33, %v1801_v25  ;;  %v1998_v26 = vadd.f32 %v1997_v43, %v1996_v42  ;;  %v2338_v53 = vpack.c.bf16 %v1278_v46, %v1278_v46 }
 0x182   :  { %1718 = vst.msk [vmem:[%s3729_s2 + $0x50] sm:$0xf] %vm1697_vm1, %v2335_v34  ;;  %v1999_v49 = vsel %vm1762_vm2, %v1916_v37, 0.0  ;;  %v2336_v57 = vpack.c.bf16 %v1270_v55, %v1270_v55  ;;  %v1804_v58 = vsel %vm1762_vm2, %v1270_v55, 0.0  ;;  %v1917_v41 = vmul.f32 %v1270_v55, %v1270_v55 }
 0x183   :  { %v2000_v45 = vadd.f32 %v1999_v49, %v1998_v26  ;;  %1721 = vst.msk [vmem:[%s3729_s2 + $0x5c] sm:$0xf] %vm1697_vm1, %v2338_v53  ;;  %v1805_v62 = vadd.f32 %v1804_v58, %v1803_v54  ;;  %v1806_v9 = vsel %vm1762_vm2, %v1275_v3, 0.0  ;;  %v1919_v19 = vmul.f32 %v1278_v46, %v1278_v46 }
 0x184   :  { %v1009_v38 = vpop.f32.mrb[56].mxu0  ;;  %v2443_v61 = vpop.f32.mrb[56].mxu1  ;;  %1719 = vst.msk [vmem:[%s3729_s2 + $0x54] sm:$0xf] %vm1697_vm1, %v2336_v57  ;;  %v2001_v10 = vsel %vm1762_vm2, %v1917_v41, 0.0  ;;  %v2003_v14 = vsel %vm1762_vm2, %v1918_v27, 0.0 }
 0x185   :  { %v1291_v35 = vadd.f32 %v2443_v61, %v1001_v50  ;;  %v1011_v2 = vpop.f32.mrb[57].mxu0  ;;  %v1282_v5 = vpop.f32.mrb[57].mxu1  ;;  %v1807_v6 = vadd.f32 %v1806_v9, %v1805_v62  ;;  %v2002_v50 = vadd.f32 %v2001_v10, %v2000_v45  ;;  %v1808_v3 = vsel %vm1762_vm2, %v1278_v46, 0.0 }
 0x186   :  { %v1283_v11 = vadd.f32 %v1282_v5, %v3263_v47  ;;  %v1012_v1 = vpop.f32.mrb[58].mxu0  ;;  %v2444_v13 = vpop.f32.mrb[58].mxu1  ;;  %v2005_v7 = vsel %vm1762_vm2, %v1919_v19, 0.0 }
 0x187   :  { %v2341_v17 = vpack.c.bf16 %v1291_v35, %v1291_v35  ;;  %v1014_v39 = vpop.f32.mrb[59].mxu0  ;;  %v1285_v59 = vpop.f32.mrb[59].mxu1  ;;  %v2004_v22 = vadd.f32 %v2003_v14, %v2002_v50  ;;  %v1809_v47 = vadd.f32 %v1808_v3, %v1807_v6  ;;  %v1294_v31 = vadd.f32 %v2444_v13, %v1004_v18 }
 0x188   :  { %v2339_v51 = vpack.c.bf16 %v1283_v11, %v1283_v11  ;;  %v1810_v23 = vsel %vm1762_vm2, %v1283_v11, 0.0  ;;  %v1920_v21 = vmul.f32 %v1283_v11, %v1283_v11  ;;  %v1286_v15 = vadd.f32 %v1285_v59, %v3277_v29 }
 0x189   :  { %1724 = vst.msk [vmem:[%s3729_s2 + $0x68] sm:$0xf] %vm1697_vm1, %v2341_v17  ;;  %v1922_v63 = vmul.f32 %v1291_v35, %v1291_v35  ;;  %v1811_v34 = vadd.f32 %v1810_v23, %v1809_v47  ;;  %v2006_v33 = vadd.f32 %v2005_v7, %v2004_v22  ;;  %v2342_v37 = vpack.c.bf16 %v1294_v31, %v1294_v31 }
 0x18a   :  { %1722 = vst.msk [vmem:[%s3729_s2 + $0x60] sm:$0xf] %vm1697_vm1, %v2339_v51  ;;  %v2007_v30 = vsel %vm1762_vm2, %v1920_v21, 0.0  ;;  %v2340_v42 = vpack.c.bf16 %v1286_v15, %v1286_v15  ;;  %v1812_v25 = vsel %vm1762_vm2, %v1286_v15, 0.0  ;;  %v1921_v46 = vmul.f32 %v1286_v15, %v1286_v15 }
 0x18b   :  { %v2008_v29 = vadd.f32 %v2007_v30, %v2006_v33  ;;  %1725 = vst.msk [vmem:[%s3729_s2 + $0x6c] sm:$0xf] %vm1697_vm1, %v2342_v37  ;;  %v1813_v43 = vadd.f32 %v1812_v25, %v1811_v34  ;;  %v1814_v26 = vsel %vm1762_vm2, %v1291_v35, 0.0  ;;  %v1923_v53 = vmul.f32 %v1294_v31, %v1294_v31 }
 0x18c   :  { %v1017_v18 = vpop.f32.mrb[60].mxu0  ;;  %v2447_v55 = vpop.f32.mrb[60].mxu1  ;;  %1723 = vst.msk [vmem:[%s3729_s2 + $0x64] sm:$0xf] %vm1697_vm1, %v2340_v42  ;;  %v2009_v57 = vsel %vm1762_vm2, %v1921_v46, 0.0  ;;  %v2011_v45 = vsel %vm1762_vm2, %v1922_v63, 0.0 }
 0x18d   :  { %v1307_v49 = vadd.f32 %v2447_v55, %v1017_v18  ;;  %v1019_v27 = vpop.f32.mrb[61].mxu0  ;;  %v1298_v54 = vpop.f32.mrb[61].mxu1  ;;  %v1815_v62 = vadd.f32 %v1814_v26, %v1813_v43  ;;  %v2010_v2 = vadd.f32 %v2009_v57, %v2008_v29  ;;  %v1816_v35 = vsel %vm1762_vm2, %v1294_v31, 0.0 }
 0x18e   :  { %v1299_v58 = vadd.f32 %v1298_v54, %v1009_v38  ;;  %v1020_v41 = vpop.f32.mrb[62].mxu0  ;;  %v2448_v61 = vpop.f32.mrb[62].mxu1  ;;  %v2013_v17 = vsel %vm1762_vm2, %v1923_v53, 0.0 }
 0x18f   :  { %v2345_v5 = vpack.c.bf16 %v1307_v49, %v1307_v49  ;;  %v1022_v9 = vpop.f32.mrb[63].mxu0  ;;  %v1301_v19 = vpop.f32.mrb[63].mxu1  ;;  %v2012_v14 = vadd.f32 %v2011_v45, %v2010_v2  ;;  %v1817_v38 = vadd.f32 %v1816_v35, %v1815_v62  ;;  %v1310_v6 = vadd.f32 %v2448_v61, %v1020_v41 }
 0x190   :  { %v2343_v10 = vpack.c.bf16 %v1299_v58, %v1299_v58  ;;  %v1818_v11 = vsel %vm1762_vm2, %v1299_v58, 0.0  ;;  %v1924_v13 = vmul.f32 %v1299_v58, %v1299_v58  ;;  %v1302_v50 = vadd.f32 %v1301_v19, %v1012_v1 }
 0x191   :  { %1728 = vst.msk [vmem:[%s3729_s2 + $0x78] sm:$0xf] %vm1697_vm1, %v2345_v5  ;;  %v1926_v59 = vmul.f32 %v1307_v49, %v1307_v49  ;;  %v1819_v3 = vadd.f32 %v1818_v11, %v1817_v38  ;;  %v2014_v51 = vadd.f32 %v2013_v17, %v2012_v14  ;;  %v2346_v23 = vpack.c.bf16 %v1310_v6, %v1310_v6 }
 0x192   :  { %1726 = vst.msk [vmem:[%s3729_s2 + $0x70] sm:$0xf] %vm1697_vm1, %v2343_v10  ;;  %v2015_v39 = vsel %vm1762_vm2, %v1924_v13, 0.0  ;;  %v2344_v21 = vpack.c.bf16 %v1302_v50, %v1302_v50  ;;  %v1820_v22 = vsel %vm1762_vm2, %v1302_v50, 0.0  ;;  %v1925_v47 = vmul.f32 %v1302_v50, %v1302_v50 }
 0x193   :  { %v2016_v1 = vadd.f32 %v2015_v39, %v2014_v51  ;;  %1729 = vst.msk [vmem:[%s3729_s2 + $0x7c] sm:$0xf] %vm1697_vm1, %v2346_v23  ;;  %v1927_v7 = vmul.f32 %v1310_v6, %v1310_v6  ;;  %v1821_v30 = vadd.f32 %v1820_v22, %v1819_v3  ;;  %v1822_v33 = vsel %vm1762_vm2, %v1307_v49, 0.0 }
 0x194   :  { %v1025_v31 = vpop.f32.mrb[64].mxu0  ;;  %v2451_v15 = vpop.f32.mrb[64].mxu1  ;;  %1727 = vst.msk [vmem:[%s3729_s2 + $0x74] sm:$0xf] %vm1697_vm1, %v2344_v21  ;;  %v2017_v37 = vsel %vm1762_vm2, %v1925_v47, 0.0  ;;  %v2019_v18 = vsel %vm1762_vm2, %v1926_v59, 0.0 }
 0x195   :  { %v1027_v63 = vpop.f32.mrb[65].mxu0  ;;  %v1314_v34 = vpop.f32.mrb[65].mxu1  ;;  %v1824_v55 = vsel %vm1762_vm2, %v1310_v6, 0.0  ;;  %v1823_v29 = vadd.f32 %v1822_v33, %v1821_v30  ;;  %v2018_v43 = vadd.f32 %v2017_v37, %v2016_v1  ;;  %v2021_v58 = vsel %vm1762_vm2, %v1927_v7, 0.0 }
 0x196   :  { %v1315_v42 = vadd.f32 %v1314_v34, %v1025_v31  ;;  %v1028_v25 = vpop.f32.mrb[66].mxu0  ;;  %v2452_v46 = vpop.f32.mrb[66].mxu1 }
 0x197   :  { %v1030_v27 = vpop.f32.mrb[67].mxu0  ;;  %v1317_v54 = vpop.f32.mrb[67].mxu1  ;;  %v2020_v41 = vadd.f32 %v2019_v18, %v2018_v43  ;;  %v1825_v61 = vadd.f32 %v1824_v55, %v1823_v29 }
 0x198   :  { %v2347_v26 = vpack.c.bf16 %v1315_v42, %v1315_v42  ;;  %v1826_v49 = vsel %vm1762_vm2, %v1315_v42, 0.0  ;;  %v1928_v53 = vmul.f32 %v1315_v42, %v1315_v42  ;;  %v1318_v57 = vadd.f32 %v1317_v54, %v1028_v25 }
 0x199   :  { %v1827_v9 = vadd.f32 %v1826_v49, %v1825_v61  ;;  %v2022_v19 = vadd.f32 %v2021_v58, %v2020_v41 }
 0x19a   :  { %1730 = vst.msk [vmem:[%s3729_s2 + $0x80] sm:$0xf] %vm1697_vm1, %v2347_v26  ;;  %v2023_v45 = vsel %vm1762_vm2, %v1928_v53, 0.0  ;;  %v2348_v62 = vpack.c.bf16 %v1318_v57, %v1318_v57  ;;  %v1828_v2 = vsel %vm1762_vm2, %v1318_v57, 0.0  ;;  %v1929_v5 = vmul.f32 %v1318_v57, %v1318_v57 }
 0x19b   :  { %v2024_v13 = vadd.f32 %v2023_v45, %v2022_v19  ;;  %v1829_v14 = vadd.f32 %v1828_v2, %v1827_v9 }
 0x19c   :  { %1731 = vst.msk [vmem:[%s3729_s2 + $0x84] sm:$0xf] %vm1697_vm1, %v2348_v62  ;;  %v2025_v35 = vsel %vm1762_vm2, %v1929_v5, 0.0  ;;  %v1033_v10 = vpop.f32.mrb[68].mxu0  ;;  %v2455_v11 = vpop.f32.mrb[68].mxu1 }
 0x19d   :  { %v1323_v38 = vadd.f32 %v2451_v15, %v1033_v10  ;;  %v1035_v6 = vpop.f32.mrb[69].mxu0  ;;  %v1330_v50 = vpop.f32.mrb[69].mxu1  ;;  %v2026_v59 = vadd.f32 %v2025_v35, %v2024_v13 }
 0x19e   :  { %v1036_v17 = vpop.f32.mrb[70].mxu0  ;;  %v2456_v39 = vpop.f32.mrb[70].mxu1 }
 0x19f   :  { %v2349_v3 = vpack.c.bf16 %v1323_v38, %v1323_v38  ;;  %v1830_v51 = vsel %vm1762_vm2, %v1323_v38, 0.0  ;;  %v1930_v23 = vmul.f32 %v1323_v38, %v1323_v38  ;;  %v1038_v21 = vpop.f32.mrb[71].mxu0  ;;  %v1333_v22 = vpop.f32.mrb[71].mxu1  ;;  %v1326_v31 = vadd.f32 %v2452_v46, %v1036_v17 }
 0x1a0   :  { %v1831_v47 = vadd.f32 %v1830_v51, %v1829_v14 }
 0x1a1   :  { %1732 = vst.msk [vmem:[%s3729_s2 + $0x88] sm:$0xf] %vm1697_vm1, %v2349_v3  ;;  %v2027_v15 = vsel %vm1762_vm2, %v1930_v23, 0.0  ;;  %v2350_v7 = vpack.c.bf16 %v1326_v31, %v1326_v31  ;;  %v1832_v30 = vsel %vm1762_vm2, %v1326_v31, 0.0  ;;  %v1931_v63 = vmul.f32 %v1326_v31, %v1326_v31 }
 0x1a2   :  { %v2028_v1 = vadd.f32 %v2027_v15, %v2026_v59  ;;  %v1833_v34 = vadd.f32 %v1832_v30, %v1831_v47 }
 0x1a3   :  { %1733 = vst.msk [vmem:[%s3729_s2 + $0x8c] sm:$0xf] %vm1697_vm1, %v2350_v7  ;;  %v2029_v33 = vsel %vm1762_vm2, %v1931_v63, 0.0 }
 0x1a4   :  { %v1041_v37 = vpop.f32.mrb[72].mxu0  ;;  %v3410_v42 = vpop.f32.mrb[72].mxu1  ;;  %v2030_v25 = vadd.f32 %v2029_v33, %v2028_v1 }
 0x1a5   :  { %v1331_v46 = vadd.f32 %v1330_v50, %v1041_v37  ;;  %v1043_v18 = vpop.f32.mrb[73].mxu0  ;;  %v1346_v55 = vpop.f32.mrb[73].mxu1 }
 0x1a6   :  { %v1044_v29 = vpop.f32.mrb[74].mxu0  ;;  %v3412_v43 = vpop.f32.mrb[74].mxu1 }
 0x1a7   :  { %v2351_v27 = vpack.c.bf16 %v1331_v46, %v1331_v46  ;;  %v1834_v54 = vsel %vm1762_vm2, %v1331_v46, 0.0  ;;  %v1932_v26 = vmul.f32 %v1331_v46, %v1331_v46  ;;  %v1334_v49 = vadd.f32 %v1333_v22, %v1044_v29  ;;  %v1046_v53 = vpop.f32.mrb[75].mxu0  ;;  %v1349_v57 = vpop.f32.mrb[75].mxu1 }
 0x1a8   :  { %v1835_v58 = vadd.f32 %v1834_v54, %v1833_v34 }
 0x1a9   :  { %1734 = vst.msk [vmem:[%s3729_s2 + $0x90] sm:$0xf] %vm1697_vm1, %v2351_v27  ;;  %v2031_v41 = vsel %vm1762_vm2, %v1932_v26, 0.0  ;;  %v2352_v61 = vpack.c.bf16 %v1334_v49, %v1334_v49  ;;  %v1836_v45 = vsel %vm1762_vm2, %v1334_v49, 0.0  ;;  %v1933_v62 = vmul.f32 %v1334_v49, %v1334_v49 }
 0x1aa   :  { %v2032_v2 = vadd.f32 %v2031_v41, %v2030_v25  ;;  %v1837_v5 = vadd.f32 %v1836_v45, %v1835_v58 }
 0x1ab   :  { %1735 = vst.msk [vmem:[%s3729_s2 + $0x94] sm:$0xf] %vm1697_vm1, %v2352_v61  ;;  %v2033_v9 = vsel %vm1762_vm2, %v1933_v62, 0.0 }
 0x1ac   :  { %v2034_v19 = vadd.f32 %v2033_v9, %v2032_v2  ;;  %v1049_v35 = vpop.f32.mrb[76].mxu0  ;;  %v3426_v10 = vpop.f32.mrb[76].mxu1 }
 0x1ad   :  { %v1339_v13 = vadd.f32 %v2455_v11, %v1049_v35  ;;  %v1051_v14 = vpop.f32.mrb[77].mxu0  ;;  %v3428_v38 = vpop.f32.mrb[77].mxu1 }
 0x1ae   :  { %v1052_v6 = vpop.f32.mrb[78].mxu0  ;;  %v3430_v50 = vpop.f32.mrb[78].mxu1 }
 0x1af   :  { %v2353_v17 = vpack.c.bf16 %v1339_v13, %v1339_v13  ;;  %v1838_v59 = vsel %vm1762_vm2, %v1339_v13, 0.0  ;;  %v1934_v3 = vmul.f32 %v1339_v13, %v1339_v13  ;;  %v1342_v51 = vadd.f32 %v2456_v39, %v1052_v6  ;;  %v1054_v23 = vpop.f32.mrb[79].mxu0  ;;  %v3433_v21 = vpop.f32.mrb[79].mxu1 }
 0x1b0   :  { %v1839_v22 = vadd.f32 %v1838_v59, %v1837_v5 }
 0x1b1   :  { %1736 = vst.msk [vmem:[%s3729_s2 + $0x98] sm:$0xf] %vm1697_vm1, %v2353_v17  ;;  %v2035_v11 = vsel %vm1762_vm2, %v1934_v3, 0.0  ;;  %v2354_v47 = vpack.c.bf16 %v1342_v51, %v1342_v51  ;;  %v1840_v31 = vsel %vm1762_vm2, %v1342_v51, 0.0  ;;  %v1935_v15 = vmul.f32 %v1342_v51, %v1342_v51 }
 0x1b2   :  { %v2036_v1 = vadd.f32 %v2035_v11, %v2034_v19  ;;  %v1841_v7 = vadd.f32 %v1840_v31, %v1839_v22 }
 0x1b3   :  { %1737 = vst.msk [vmem:[%s3729_s2 + $0x9c] sm:$0xf] %vm1697_vm1, %v2354_v47  ;;  %v2037_v39 = vsel %vm1762_vm2, %v1935_v15, 0.0 }
 0x1b4   :  { %v2038_v30 = vadd.f32 %v2037_v39, %v2036_v1  ;;  %v1057_v63 = vpop.f32.mrb[80].mxu0  ;;  %v2467_v34 = vpop.f32.mrb[80].mxu1 }
 0x1b5   :  { %v1347_v33 = vadd.f32 %v1346_v55, %v1057_v63  ;;  %v3447_v37 = vadd.f32 %v2467_v34, %v3095_v60  ;;  %v1059_v25 = vpop.f32.mrb[81].mxu0  ;;  %v1378_v46 = vpop.f32.mrb[81].mxu1 }
 0x1b6   :  { %v3450_v18 = vadd.f32 %v1378_v46, %v3089_v52  ;;  %v1060_v29 = vpop.f32.mrb[82].mxu0  ;;  %v2468_v27 = vpop.f32.mrb[82].mxu1 }
 0x1b7   :  { %v2355_v54 = vpack.c.bf16 %v1347_v33, %v1347_v33  ;;  %v1842_v26 = vsel %vm1762_vm2, %v1347_v33, 0.0  ;;  %v1936_v49 = vmul.f32 %v1347_v33, %v1347_v33  ;;  %v2365_v53 = vpack.c.bf16 %v3447_v37, %v3447_v37  ;;  %v1062_v58 = vpop.f32.mrb[83].mxu0  ;;  %v1381_v41 = vpop.f32.mrb[83].mxu1 }
 0x1b8   :  { %v1843_v55 = vadd.f32 %v1842_v26, %v1841_v7  ;;  %v2363_v60 = vpack.c.bf16 %v3450_v18, %v3450_v18  ;;  %v1350_v61 = vadd.f32 %v1349_v57, %v1060_v29  ;;  %v3471_v62 = vadd.f32 %v2468_v27, %v3099_v0 }
 0x1b9   :  { %1738 = vst.msk [vmem:[%s3729_s2 + $0xa0] sm:$0xf] %vm1697_vm1, %v2355_v54  ;;  %v2039_v52 = vsel %vm1762_vm2, %v1936_v49, 0.0  ;;  %1748 = vst.msk [vmem:[%s3729_s2 + $0xc8] sm:$0xf] %vm1697_vm1, %v2365_v53  ;;  %v3474_v2 = vadd.f32 %v1381_v41, %v3093_v56 }
 0x1ba   :  { %v2040_v45 = vadd.f32 %v2039_v52, %v2038_v30  ;;  %1746 = vst.msk [vmem:[%s3729_s2 + $0xc0] sm:$0xf] %vm1697_vm1, %v2363_v60  ;;  %v2356_v5 = vpack.c.bf16 %v1350_v61, %v1350_v61  ;;  %v1844_v9 = vsel %vm1762_vm2, %v1350_v61, 0.0  ;;  %v1937_v19 = vmul.f32 %v1350_v61, %v1350_v61 }
 0x1bb   :  { %v1845_v35 = vadd.f32 %v1844_v9, %v1843_v55  ;;  %v2366_v57 = vpack.c.bf16 %v3471_v62, %v3471_v62  ;;  %v2364_v56 = vpack.c.bf16 %v3474_v2, %v3474_v2 }
 0x1bc   :  { %v1065_v13 = vpop.f32.mrb[84].mxu0  ;;  %v2471_v14 = vpop.f32.mrb[84].mxu1  ;;  %1739 = vst.msk [vmem:[%s3729_s2 + $0xa4] sm:$0xf] %vm1697_vm1, %v2356_v5  ;;  %v2041_v0 = vsel %vm1762_vm2, %v1937_v19, 0.0 }
 0x1bd   :  { %v1067_v6 = vpop.f32.mrb[85].mxu0  ;;  %v1394_v17 = vpop.f32.mrb[85].mxu1  ;;  %v2042_v59 = vadd.f32 %v2041_v0, %v2040_v45  ;;  %1749 = vst.msk [vmem:[%s3729_s2 + $0xcc] sm:$0xf] %vm1697_vm1, %v2366_v57  ;;  %v1355_v3 = vadd.f32 %v3410_v42, %v1065_v13  ;;  %v3492_v51 = vadd.f32 %v2471_v14, %v3111_v12  ;;  %1747 = vst.msk [vmem:[%s3729_s2 + $0xc4] sm:$0xf] %vm1697_vm1, %v2364_v56 }
 0x1be   :  { %v1068_v23 = vpop.f32.mrb[86].mxu0  ;;  %v2472_v22 = vpop.f32.mrb[86].mxu1  ;;  %v3499_v11 = vadd.f32 %v1394_v17, %v3103_v4 }
 0x1bf   :  { %v1358_v47 = vadd.f32 %v3412_v43, %v1068_v23  ;;  %v3503_v31 = vadd.f32 %v2472_v22, %v3115_v16  ;;  %v1070_v15 = vpop.f32.mrb[87].mxu0  ;;  %v1397_v42 = vpop.f32.mrb[87].mxu1  ;;  %v2357_v1 = vpack.c.bf16 %v1355_v3, %v1355_v3  ;;  %v1846_v12 = vsel %vm1762_vm2, %v1355_v3, 0.0 }
 0x1c0   :  { %v1938_v7 = vmul.f32 %v1355_v3, %v1355_v3  ;;  %v2369_v39 = vpack.c.bf16 %v3492_v51, %v3492_v51  ;;  %v1847_v30 = vadd.f32 %v1846_v12, %v1845_v35  ;;  %v2367_v63 = vpack.c.bf16 %v3499_v11, %v3499_v11 }
 0x1c1   :  { %1740 = vst.msk [vmem:[%s3729_s2 + $0xa8] sm:$0xf] %vm1697_vm1, %v2357_v1  ;;  %v2358_v16 = vpack.c.bf16 %v1358_v47, %v1358_v47  ;;  %v1848_v34 = vsel %vm1762_vm2, %v1358_v47, 0.0  ;;  %v1939_v33 = vmul.f32 %v1358_v47, %v1358_v47  ;;  %v2370_v46 = vpack.c.bf16 %v3503_v31, %v3503_v31 }
 0x1c2   :  { %v2043_v4 = vsel %vm1762_vm2, %v1938_v7, 0.0  ;;  %1752 = vst.msk [vmem:[%s3729_s2 + $0xd8] sm:$0xf] %vm1697_vm1, %v2369_v39  ;;  %1750 = vst.msk [vmem:[%s3729_s2 + $0xd0] sm:$0xf] %vm1697_vm1, %v2367_v63  ;;  %v1849_v25 = vadd.f32 %v1848_v34, %v1847_v30  ;;  %v3532_v26 = vadd.f32 %v1397_v42, %v3107_v8 }
 0x1c3   :  { %v2044_v43 = vadd.f32 %v2043_v4, %v2042_v59  ;;  %1741 = vst.msk [vmem:[%s3729_s2 + $0xac] sm:$0xf] %vm1697_vm1, %v2358_v16  ;;  %v2045_v54 = vsel %vm1762_vm2, %v1939_v33, 0.0  ;;  %1753 = vst.msk [vmem:[%s3729_s2 + $0xdc] sm:$0xf] %vm1697_vm1, %v2370_v46 }
 0x1c4   :  { %v1073_v29 = vpop.f32.mrb[88].mxu0  ;;  %v2475_v27 = vpop.f32.mrb[88].mxu1  ;;  %v2368_v8 = vpack.c.bf16 %v3532_v26, %v3532_v26 }
 0x1c5   :  { %v1363_v49 = vadd.f32 %v3428_v38, %v1073_v29  ;;  %v1075_v53 = vpop.f32.mrb[89].mxu0  ;;  %v1410_v58 = vpop.f32.mrb[89].mxu1  ;;  %v2046_v41 = vadd.f32 %v2045_v54, %v2044_v43  ;;  %v3540_v55 = vadd.f32 %v2475_v27, %v3127_v28  ;;  %v1944_v27 = vmul.f32 %v3450_v18, %v3450_v18 }
 0x1c6   :  { %v3543_v60 = vadd.f32 %v1410_v58, %v3119_v20  ;;  %v1076_v52 = vpop.f32.mrb[90].mxu0  ;;  %v2476_v61 = vpop.f32.mrb[90].mxu1  ;;  %1751 = vst.msk [vmem:[%s3729_s2 + $0xd4] sm:$0xf] %vm1697_vm1, %v2368_v8 }
 0x1c7   :  { %v1078_v38 = vpop.f32.mrb[91].mxu0  ;;  %v1413_v45 = vpop.f32.mrb[91].mxu1  ;;  %v2359_v5 = vpack.c.bf16 %v1363_v49, %v1363_v49  ;;  %v1850_v9 = vsel %vm1762_vm2, %v1363_v49, 0.0  ;;  %v1940_v19 = vmul.f32 %v1363_v49, %v1363_v49  ;;  %v2373_v35 = vpack.c.bf16 %v3540_v55, %v3540_v55 }
 0x1c8   :  { %v1851_v20 = vadd.f32 %v1850_v9, %v1849_v25  ;;  %v2371_v57 = vpack.c.bf16 %v3543_v60, %v3543_v60  ;;  %v1366_v14 = vadd.f32 %v3433_v21, %v1076_v52  ;;  %v3567_v0 = vadd.f32 %v2476_v61, %v3131_v32 }
 0x1c9   :  { %1742 = vst.msk [vmem:[%s3729_s2 + $0xb0] sm:$0xf] %vm1697_vm1, %v2359_v5  ;;  %v2047_v28 = vsel %vm1762_vm2, %v1940_v19, 0.0  ;;  %1756 = vst.msk [vmem:[%s3729_s2 + $0xe8] sm:$0xf] %vm1697_vm1, %v2373_v35  ;;  %v3574_v56 = vadd.f32 %v1413_v45, %v3123_v24  ;;  %v1858_v52 = vsel %vm1762_vm2, %v3450_v18, 0.0  ;;  %v1945_v61 = vmul.f32 %v3474_v2, %v3474_v2 }
 0x1ca   :  { %v2048_v13 = vadd.f32 %v2047_v28, %v2046_v41  ;;  %1754 = vst.msk [vmem:[%s3729_s2 + $0xe0] sm:$0xf] %vm1697_vm1, %v2371_v57  ;;  %v2360_v59 = vpack.c.bf16 %v1366_v14, %v1366_v14  ;;  %v1852_v3 = vsel %vm1762_vm2, %v1366_v14, 0.0  ;;  %v1941_v23 = vmul.f32 %v1366_v14, %v1366_v14 }
 0x1cb   :  { %v2374_v21 = vpack.c.bf16 %v3567_v0, %v3567_v0  ;;  %v1853_v47 = vadd.f32 %v1852_v3, %v1851_v20  ;;  %v2372_v15 = vpack.c.bf16 %v3574_v56, %v3574_v56  ;;  %v1946_v18 = vmul.f32 %v3447_v37, %v3447_v37 }
 0x1cc   :  { %v1081_v6 = vpop.f32.mrb[92].mxu0  ;;  %v2479_v17 = vpop.f32.mrb[92].mxu1  ;;  %1743 = vst.msk [vmem:[%s3729_s2 + $0xb4] sm:$0xf] %vm1697_vm1, %v2360_v59  ;;  %v2049_v24 = vsel %vm1762_vm2, %v1941_v23, 0.0  ;;  %v2055_v45 = vsel %vm1762_vm2, %v1944_v27, 0.0  ;;  %v1947_v20 = vmul.f32 %v3471_v62, %v3471_v62  ;;  %v1949_v23 = vmul.f32 %v3532_v26, %v3532_v26 }
 0x1cd   :  { %v1083_v22 = vpop.f32.mrb[93].mxu0  ;;  %v1426_v32 = vpop.f32.mrb[93].mxu1  ;;  %1757 = vst.msk [vmem:[%s3729_s2 + $0xec] sm:$0xf] %vm1697_vm1, %v2374_v21  ;;  %v1371_v12 = vadd.f32 %v3426_v10, %v1081_v6  ;;  %v2050_v30 = vadd.f32 %v2049_v24, %v2048_v13  ;;  %1755 = vst.msk [vmem:[%s3729_s2 + $0xe4] sm:$0xf] %vm1697_vm1, %v2372_v15  ;;  %v3596_v63 = vadd.f32 %v2479_v17, %v3143_v44 }
 0x1ce   :  { %v1084_v42 = vpop.f32.mrb[94].mxu0  ;;  %v2480_v1 = vpop.f32.mrb[94].mxu1  ;;  %v3599_v4 = vadd.f32 %v1426_v32, %v3135_v36  ;;  %v1860_v5 = vsel %vm1762_vm2, %v3474_v2, 0.0  ;;  %v1862_v35 = vsel %vm1762_vm2, %v3447_v37, 0.0  ;;  %v2057_v28 = vsel %vm1762_vm2, %v1945_v61, 0.0 }
 0x1cf   :  { %v1086_v7 = vpop.f32.mrb[95].mxu0  ;;  %v1429_v39 = vpop.f32.mrb[95].mxu1  ;;  %v2361_v16 = vpack.c.bf16 %v1371_v12, %v1371_v12  ;;  %v1854_v43 = vsel %vm1762_vm2, %v1371_v12, 0.0  ;;  %v1942_v34 = vmul.f32 %v1371_v12, %v1371_v12  ;;  %v2377_v10 = vpack.c.bf16 %v3596_v63, %v3596_v63 }
 0x1d0   :  { %v1855_v33 = vadd.f32 %v1854_v43, %v1853_v47  ;;  %v2375_v44 = vpack.c.bf16 %v3599_v4, %v3599_v4  ;;  %v1374_v46 = vadd.f32 %v3430_v50, %v1084_v42  ;;  %v3617_v29 = vadd.f32 %v2480_v1, %v3147_v48 }
 0x1d1   :  { %1744 = vst.msk [vmem:[%s3729_s2 + $0xb8] sm:$0xf] %vm1697_vm1, %v2361_v16  ;;  %v2051_v25 = vsel %vm1762_vm2, %v1942_v34, 0.0  ;;  %1760 = vst.msk [vmem:[%s3729_s2 + $0xf8] sm:$0xf] %vm1697_vm1, %v2377_v10  ;;  %v3626_v54 = vadd.f32 %v1429_v39, %v3139_v40  ;;  %v2059_v14 = vsel %vm1762_vm2, %v1946_v18, 0.0  ;;  %v1948_v2 = vmul.f32 %v3499_v11, %v3499_v11 }
 0x1d2   :  { %v2052_v36 = vadd.f32 %v2051_v25, %v2050_v30  ;;  %1758 = vst.msk [vmem:[%s3729_s2 + $0xf0] sm:$0xf] %vm1697_vm1, %v2375_v44  ;;  %v2362_v49 = vpack.c.bf16 %v1374_v46, %v1374_v46  ;;  %v1856_v53 = vsel %vm1762_vm2, %v1374_v46, 0.0  ;;  %v1943_v58 = vmul.f32 %v1374_v46, %v1374_v46 }
 0x1d3   :  { %v2378_v50 = vpack.c.bf16 %v3617_v29, %v3617_v29  ;;  %v1857_v48 = vadd.f32 %v1856_v53, %v1855_v33  ;;  %v2376_v41 = vpack.c.bf16 %v3626_v54, %v3626_v54  ;;  %v1864_v6 = vsel %vm1762_vm2, %v3471_v62, 0.0 }
 0x1d4   :  { %1745 = vst.msk [vmem:[%s3729_s2 + $0xbc] sm:$0xf] %vm1697_vm1, %v2362_v49  ;;  %v2053_v40 = vsel %vm1762_vm2, %v1943_v58, 0.0  ;;  %v2061_v3 = vsel %vm1762_vm2, %v1947_v20, 0.0  ;;  %v1866_v37 = vsel %vm1762_vm2, %v3499_v11, 0.0  ;;  %v1950_v32 = vmul.f32 %v3492_v51, %v3492_v51 }
 0x1d5   :  { %1761 = vst.msk [vmem:[%s3729_s2 + $0xfc] sm:$0xf] %vm1697_vm1, %v2378_v50  ;;  %v1859_v8 = vadd.f32 %v1858_v52, %v1857_v48  ;;  %v2054_v38 = vadd.f32 %v2053_v40, %v2052_v36  ;;  %1759 = vst.msk [vmem:[%s3729_s2 + $0xf4] sm:$0xf] %vm1697_vm1, %v2376_v41  ;;  %v2063_v62 = vsel %vm1762_vm2, %v1948_v2, 0.0  ;;  %v1868_v47 = vsel %vm1762_vm2, %v3532_v26, 0.0 }
 0x1d6   :  { %v1870_v1 = vsel %vm1762_vm2, %v3492_v51, 0.0  ;;  %v1951_v11 = vmul.f32 %v3503_v31, %v3503_v31  ;;  %v2065_v24 = vsel %vm1762_vm2, %v1949_v23, 0.0  ;;  %v2067_v39 = vsel %vm1762_vm2, %v1950_v32, 0.0 }
 0x1d7   :  { %v1861_v9 = vadd.f32 %v1860_v5, %v1859_v8  ;;  %v2056_v19 = vadd.f32 %v2055_v45, %v2054_v38  ;;  %v1872_v30 = vsel %vm1762_vm2, %v3503_v31, 0.0  ;;  %v1952_v26 = vmul.f32 %v3543_v60, %v3543_v60 }
 0x1d8   :  { %v2069_v34 = vsel %vm1762_vm2, %v1951_v11, 0.0  ;;  %v1874_v51 = vsel %vm1762_vm2, %v3543_v60, 0.0  ;;  %v1953_v33 = vmul.f32 %v3574_v56, %v3574_v56  ;;  %v1954_v44 = vmul.f32 %v3540_v55, %v3540_v55 }
 0x1d9   :  { %v1863_v57 = vadd.f32 %v1862_v35, %v1861_v9  ;;  %v2058_v13 = vadd.f32 %v2057_v28, %v2056_v19  ;;  %v2071_v31 = vsel %vm1762_vm2, %v1952_v26, 0.0  ;;  %v1876_v36 = vsel %vm1762_vm2, %v3574_v56, 0.0 }
 0x1da   :  { %v1878_v49 = vsel %vm1762_vm2, %v3540_v55, 0.0  ;;  %v1955_v60 = vmul.f32 %v3567_v0, %v3567_v0  ;;  %v2073_v53 = vsel %vm1762_vm2, %v1953_v33, 0.0  ;;  %v2075_v48 = vsel %vm1762_vm2, %v1954_v44, 0.0 }
 0x1db   :  { %v1865_v17 = vadd.f32 %v1864_v6, %v1863_v57  ;;  %v2060_v59 = vadd.f32 %v2059_v14, %v2058_v13  ;;  %v1880_v41 = vsel %vm1762_vm2, %v3567_v0, 0.0  ;;  %v1956_v56 = vmul.f32 %v3599_v4, %v3599_v4 }
 0x1dc   :  { %v2077_v40 = vsel %vm1762_vm2, %v1955_v60, 0.0  ;;  %v1882_v55 = vsel %vm1762_vm2, %v3599_v4, 0.0  ;;  %v1957_v8 = vmul.f32 %v3626_v54, %v3626_v54  ;;  %v1958_v45 = vmul.f32 %v3596_v63, %v3596_v63 }
 0x1dd   :  { %v1867_v21 = vadd.f32 %v1866_v37, %v1865_v17  ;;  %v2062_v22 = vadd.f32 %v2061_v3, %v2060_v59  ;;  %v2079_v0 = vsel %vm1762_vm2, %v1956_v56, 0.0  ;;  %v1884_v5 = vsel %vm1762_vm2, %v3626_v54, 0.0 }
 0x1de   :  { %v1886_v35 = vsel %vm1762_vm2, %v3596_v63, 0.0  ;;  %v1959_v4 = vmul.f32 %v3617_v29, %v3617_v29  ;;  %v2081_v20 = vsel %vm1762_vm2, %v1957_v8, 0.0  ;;  %v2083_v13 = vsel %vm1762_vm2, %v1958_v45, 0.0 }
 0x1df   :  { %v1869_v15 = vadd.f32 %v1868_v47, %v1867_v21  ;;  %v2064_v42 = vadd.f32 %v2063_v62, %v2062_v22  ;;  %v1888_v14 = vsel %vm1762_vm2, %v3617_v29, 0.0 }
 0x1e0   :  { %v2085_v54 = vsel %vm1762_vm2, %v1959_v4, 0.0 }
 0x1e1   :  { %v2066_v12 = vadd.f32 %v2065_v24, %v2064_v42  ;;  %v1871_v7 = vadd.f32 %v1870_v1, %v1869_v15 }
 0x1e3   :  { %v1873_v16 = vadd.f32 %v1872_v30, %v1871_v7  ;;  %v2068_v43 = vadd.f32 %v2067_v39, %v2066_v12 }
 0x1e5   :  { %v1875_v10 = vadd.f32 %v1874_v51, %v1873_v16  ;;  %v2070_v25 = vadd.f32 %v2069_v34, %v2068_v43 }
 0x1e7   :  { %v1877_v46 = vadd.f32 %v1876_v36, %v1875_v10  ;;  %v2072_v27 = vadd.f32 %v2071_v31, %v2070_v25 }
 0x1e9   :  { %v1879_v58 = vadd.f32 %v1878_v49, %v1877_v46  ;;  %v2074_v50 = vadd.f32 %v2073_v53, %v2072_v27 }
 0x1eb   :  { %v1881_v52 = vadd.f32 %v1880_v41, %v1879_v58  ;;  %v2076_v61 = vadd.f32 %v2075_v48, %v2074_v50 }
 0x1ed   :  { %v1883_v38 = vadd.f32 %v1882_v55, %v1881_v52  ;;  %v2078_v18 = vadd.f32 %v2077_v40, %v2076_v61 }
 0x1ef   :  { %v1885_v9 = vadd.f32 %v1884_v5, %v1883_v38  ;;  %v2080_v19 = vadd.f32 %v2079_v0, %v2078_v18 }
 0x1f1   :  { %v1887_v28 = vadd.f32 %v1886_v35, %v1885_v9  ;;  %v2082_v57 = vadd.f32 %v2081_v20, %v2080_v19 }
 0x1f3   :  { %v1889_v6 = vadd.f32 %v1888_v14, %v1887_v28  ;;  %v2084_v2 = vadd.f32 %v2083_v13, %v2082_v57 }
 0x1f5   :  { %v1890_v17 = vrot.slane %v1889_v6, 4  ;;  %v2086_v59 = vadd.f32 %v2085_v54, %v2084_v2 }
 0x1f7   :  { %v1891_v3 = vadd.f32 %v1890_v17, %v1889_v6  ;;  %v2087_v63 = vrot.slane %v2086_v59, 4 }
 0x1f9   :  { %v1892_v37 = vrot.slane %v1891_v3, 2  ;;  %v2088_v23 = vadd.f32 %v2087_v63, %v2086_v59 }
 0x1fb   :  { %v1893_v21 = vadd.f32 %v1892_v37, %v1891_v3  ;;  %v2089_v22 = vrot.slane %v2088_v23, 2 }
 0x1fd   :  { %v1894_v32 = vrot.slane %v1893_v21, 1  ;;  %v2090_v62 = vadd.f32 %v2089_v22, %v2088_v23 }
 0x1ff   :  { %v2091_v47 = vrot.slane %v2090_v62, 1  ;;  %v1895_v15 = vadd.f32 %v1894_v32, %v1893_v21 }
 0x201   :  { %v2092_v42 = vadd.f32 %v2091_v47, %v2090_v62 }
 0x203   :  { %v2094_v29 = vsel %vm2093_vm3, %v1895_v15, %v2092_v42 }
 0x204   :  { %2096 = vst.msk [vmem:[%s3730_s3] sm:$0x3] %vm2095_vm4, %v2094_v29 }

// kernel: _lambda_.42
= control target key start
LH: loop header
LB: loop body
LE: loop exit
PB: predicated region body
PF: predicated region fallthrough
CT: control target
= control target key end

     0   :  { %vm246_vm0 = vcmask 130048   ;;  %vm888_vm1 = vcmask 3072   ;;  %vm953_vm2 = vcmask 7168   ;;  %vm1284_vm3 = vcmask 1040384   ;;  %s2385_s1 = inlined_call_operand.vmem [shape: bf16[16,1], index: 1, kind: input, shape index: {}]   ;;  %s2386_s0 = inlined_call_operand.vmem [shape: bf16[512,16], index: 0, kind: input, shape index: {}]   ;;  %s2387_s2 = inlined_call_operand.vmem [shape: bf16[512,1], index: 2, kind: output, shape index: {0}]   ;;  %s2388_s3 = inlined_call_operand.vmem [shape: f32[1,2,1], index: 3, kind: output, shape index: {1}]  }
   0x1   :  { %v1590_v0 = vld [vmem:[%s2385_s1] sm:$0xff]   ;;  %v1592_v2 = vld [vmem:[%s2386_s0 + $0x8] sm:$0xff]   ;;  %v1593_v3 = vld [vmem:[%s2386_s0 + $0x10] sm:$0xff]   ;;  %vm1286_vm4 = vcmask 1024  }
   0x2   :  { %v1591_v1 = vld [vmem:[%s2386_s0] sm:$0xff]   ;;  %1522 = vmatprep.subr.bf16.mxu0 %v1590_v0  ;;  %1588 = vmatprep.subr.bf16.mxu1 %v1590_v0  ;;  %v1594_v4 = vld [vmem:[%s2386_s0 + $0x18] sm:$0xff]   ;;  %v1596_v6 = vld [vmem:[%s2386_s0 + $0x28] sm:$0xff]  }
   0x3   :  { %1523 = vmatpush3.bf16.msra.mxu0 %v1590_v0  ;;  %1524 = vmatprep.mubr.msk.bf16.mxu0 %vm246_vm0, %v1591_v1  ;;  %v1595_v5 = vld [vmem:[%s2386_s0 + $0x20] sm:$0xff]   ;;  %v1597_v7 = vld [vmem:[%s2386_s0 + $0x30] sm:$0xff]   ;;  %v1608_v9 = vld [vmem:[%s2386_s0 + $0x88] sm:$0xff]  }
   0x4   :  { %1589 = vmatpush3.bf16.msra.mxu1 %v1590_v0  ;;  %v1607_v8 = vld [vmem:[%s2386_s0 + $0x80] sm:$0xff]   ;;  %v1609_v10 = vld [vmem:[%s2386_s0 + $0x90] sm:$0xff]   ;;  %v1610_v11 = vld [vmem:[%s2386_s0 + $0x98] sm:$0xff]  }
   0x5   :  { %1556 = vmatprep.mubr.msk.bf16.mxu1 %vm246_vm0, %v1607_v8  ;;  %v1611_v12 = vld [vmem:[%s2386_s0 + $0xa0] sm:$0xff]   ;;  %v1598_v13 = vld [vmem:[%s2386_s0 + $0x38] sm:$0xff]   ;;  %v1612_v15 = vld [vmem:[%s2386_s0 + $0xa8] sm:$0xff]  }
   0x6   :  { %1525 = vmatmul.mubr.msk.bf16.vlgmr.msra.gmra.mrb[0].mxu0 %vm246_vm0, %v1592_v2  ;;  %v1599_v14 = vld [vmem:[%s2386_s0 + $0x40] sm:$0xff]   ;;  %v1613_v16 = vld [vmem:[%s2386_s0 + $0xb0] sm:$0xff]   ;;  %v1600_v17 = vld [vmem:[%s2386_s0 + $0x48] sm:$0xff]  }
   0x7   :  { %1528 = vmatprep.mubr.msk.bf16.mxu0 %vm246_vm0, %v1593_v3  ;;  %1557 = vmatmul.mubr.msk.bf16.vlgmr.msra.gmra.mrb[0].mxu1 %vm246_vm0, %v1608_v9  ;;  %v1601_v18 = vld [vmem:[%s2386_s0 + $0x50] sm:$0xff]   ;;  %v1614_v19 = vld [vmem:[%s2386_s0 + $0xb8] sm:$0xff]   ;;  %v1615_v20 = vld [vmem:[%s2386_s0 + $0xc0] sm:$0xff]  }
   0x8   :  { %1560 = vmatprep.mubr.msk.bf16.mxu1 %vm246_vm0, %v1609_v10  ;;  %v1602_v21 = vld [vmem:[%s2386_s0 + $0x58] sm:$0xff]   ;;  %v1603_v22 = vld [vmem:[%s2386_s0 + $0x60] sm:$0xff]   ;;  %v1616_v23 = vld [vmem:[%s2386_s0 + $0xc8] sm:$0xff]  }
   0x9   :  { %v1617_v24 = vld [vmem:[%s2386_s0 + $0xd0] sm:$0xff]   ;;  %v1604_v25 = vld [vmem:[%s2386_s0 + $0x68] sm:$0xff]   ;;  %v1618_v27 = vld [vmem:[%s2386_s0 + $0xd8] sm:$0xff]  }
   0xa   :  { %v1605_v26 = vld [vmem:[%s2386_s0 + $0x70] sm:$0xff]   ;;  %v1619_v28 = vld [vmem:[%s2386_s0 + $0xe0] sm:$0xff]   ;;  %v1606_v29 = vld [vmem:[%s2386_s0 + $0x78] sm:$0xff]  }
   0xb   :  { %v1620_v30 = vld [vmem:[%s2386_s0 + $0xe8] sm:$0xff]   ;;  %v1621_v31 = vld [vmem:[%s2386_s0 + $0xf0] sm:$0xff]   ;;  %v1622_v32 = vld [vmem:[%s2386_s0 + $0xf8] sm:$0xff]  }
   0xe   :  { %1529 = vmatmul.mubr.msk.bf16.gmra.mrb[4].mxu0 %vm246_vm0, %v1594_v4 }
   0xf   :  { %1532 = vmatprep.mubr.msk.bf16.mxu0 %vm246_vm0, %v1595_v5  ;;  %1561 = vmatmul.mubr.msk.bf16.gmra.mrb[4].mxu1 %vm246_vm0, %v1610_v11 }
  0x10   :  { %1564 = vmatprep.mubr.msk.bf16.mxu1 %vm246_vm0, %v1611_v12 }
  0x16   :  { %1533 = vmatmul.mubr.msk.bf16.gmra.mrb[8].mxu0 %vm246_vm0, %v1596_v6 }
  0x17   :  { %1536 = vmatprep.mubr.msk.bf16.mxu0 %vm246_vm0, %v1597_v7  ;;  %1565 = vmatmul.mubr.msk.bf16.gmra.mrb[8].mxu1 %vm246_vm0, %v1612_v15 }
  0x18   :  { %1568 = vmatprep.mubr.msk.bf16.mxu1 %vm246_vm0, %v1613_v16 }
  0x1e   :  { %1537 = vmatmul.mubr.msk.bf16.gmra.mrb[12].mxu0 %vm246_vm0, %v1598_v13 }
  0x1f   :  { %1540 = vmatprep.mubr.msk.bf16.mxu0 %vm246_vm0, %v1599_v14  ;;  %1569 = vmatmul.mubr.msk.bf16.gmra.mrb[12].mxu1 %vm246_vm0, %v1614_v19 }
  0x20   :  { %1572 = vmatprep.mubr.msk.bf16.mxu1 %vm246_vm0, %v1615_v20 }
  0x26   :  { %1541 = vmatmul.mubr.msk.bf16.gmra.mrb[16].mxu0 %vm246_vm0, %v1600_v17 }
  0x27   :  { %1544 = vmatprep.mubr.msk.bf16.mxu0 %vm246_vm0, %v1601_v18  ;;  %1573 = vmatmul.mubr.msk.bf16.gmra.mrb[16].mxu1 %vm246_vm0, %v1616_v23 }
  0x28   :  { %1576 = vmatprep.mubr.msk.bf16.mxu1 %vm246_vm0, %v1617_v24 }
  0x2e   :  { %1545 = vmatmul.mubr.msk.bf16.gmra.mrb[20].mxu0 %vm246_vm0, %v1602_v21 }
  0x2f   :  { %1548 = vmatprep.mubr.msk.bf16.mxu0 %vm246_vm0, %v1603_v22  ;;  %1577 = vmatmul.mubr.msk.bf16.gmra.mrb[20].mxu1 %vm246_vm0, %v1618_v27 }
  0x30   :  { %1580 = vmatprep.mubr.msk.bf16.mxu1 %vm246_vm0, %v1619_v28 }
  0x36   :  { %1549 = vmatmul.mubr.msk.bf16.gmra.mrb[24].mxu0 %vm246_vm0, %v1604_v25 }
  0x37   :  { %1552 = vmatprep.mubr.msk.bf16.mxu0 %vm246_vm0, %v1605_v26  ;;  %1581 = vmatmul.mubr.msk.bf16.gmra.mrb[24].mxu1 %vm246_vm0, %v1620_v30 }
  0x38   :  { %1584 = vmatprep.mubr.msk.bf16.mxu1 %vm246_vm0, %v1621_v31 }
  0x3e   :  { %1553 = vmatmul.mubr.msk.bf16.gmra.mrb[28].mxu0 %vm246_vm0, %v1606_v29 }
  0x3f   :  { %1585 = vmatmul.mubr.msk.bf16.gmra.mrb[28].mxu1 %vm246_vm0, %v1622_v32 }
  0xd9   :  { %v1526_v33 = vpop.f32.mrb[0].mxu0 }
  0xda   :  { %v1427_v34 = vpack.c.bf16 %v1526_v33, %v1526_v33  ;;  %v377_v35 = vpop.f32.mrb[1].mxu0  ;;  %v1089_v39 = vmul.f32 %v1526_v33, %v1526_v33  ;;  %v957_v48 = vsel %vm953_vm2, %v1526_v33, 0.0  ;;  %v1817_v12 = vpop.f32.mrb[0].mxu1 }
  0xdb   :  { %v1425_v36 = vpack.c.bf16 %v377_v35, %v377_v35  ;;  %v1087_v37 = vmul.f32 %v377_v35, %v377_v35  ;;  %v1527_v38 = vpop.f32.mrb[2].mxu0  ;;  %v954_v42 = vsel %vm953_vm2, %v377_v35, 0.0  ;;  %v1459_v16 = vpack.c.bf16 %v1817_v12, %v1817_v12  ;;  %v1823_v17 = vpop.f32.mrb[1].mxu1 }
  0xdc   :  { %891 = vst.msk [vmem:[%s2387_s2 + $0x8] sm:$0xf] %vm888_vm1, %v1427_v34  ;;  %v1428_v40 = vpack.c.bf16 %v1527_v38, %v1527_v38  ;;  %v380_v41 = vpop.f32.mrb[3].mxu0  ;;  %v1090_v46 = vmul.f32 %v1527_v38, %v1527_v38  ;;  %v1154_v53 = vsel %vm953_vm2, %v1089_v39, 0.0  ;;  %v959_v55 = vsel %vm953_vm2, %v1527_v38, 0.0  ;;  %v1827_v22 = vpop.f32.mrb[2].mxu1 }
  0xdd   :  { %889 = vst.msk [vmem:[%s2387_s2] sm:$0xf] %vm888_vm1, %v1425_v36  ;;  %v1426_v43 = vpack.c.bf16 %v380_v41, %v380_v41  ;;  %v955_v44 = vsel %vm953_vm2, %v380_v41, 0.0  ;;  %v1088_v45 = vmul.f32 %v380_v41, %v380_v41  ;;  %v1151_v49 = vsel %vm953_vm2, %v1087_v37, 0.0  ;;  %923 = vst.msk [vmem:[%s2387_s2 + $0x88] sm:$0xf] %vm888_vm1, %v1459_v16 }
  0xde   :  { %892 = vst.msk [vmem:[%s2387_s2 + $0xc] sm:$0xf] %vm888_vm1, %v1428_v40  ;;  %v956_v47 = vadd.f32 %v955_v44, %v954_v42  ;;  %v1156_v56 = vsel %vm953_vm2, %v1090_v46, 0.0  ;;  %v1457_v21 = vpack.c.bf16 %v1823_v17, %v1823_v17  ;;  %v1835_v27 = vpop.f32.mrb[3].mxu1  ;;  %v1460_v46 = vpack.c.bf16 %v1827_v22, %v1827_v22 }
  0xdf   :  { %890 = vst.msk [vmem:[%s2387_s2 + $0x4] sm:$0xf] %vm888_vm1, %v1426_v43  ;;  %v1152_v50 = vsel %vm953_vm2, %v1088_v45, 0.0 }
  0xe0   :  { %v958_v51 = vadd.f32 %v957_v48, %v956_v47  ;;  %v1153_v52 = vadd.f32 %v1152_v50, %v1151_v49  ;;  %921 = vst.msk [vmem:[%s2387_s2 + $0x80] sm:$0xf] %vm888_vm1, %v1457_v21  ;;  %924 = vst.msk [vmem:[%s2387_s2 + $0x8c] sm:$0xf] %vm888_vm1, %v1460_v46 }
  0xe1   :  { %v1530_v54 = vpop.f32.mrb[4].mxu0 }
  0xe2   :  { %v1155_v57 = vadd.f32 %v1154_v53, %v1153_v52  ;;  %v1431_v58 = vpack.c.bf16 %v1530_v54, %v1530_v54  ;;  %v393_v59 = vpop.f32.mrb[5].mxu0  ;;  %v960_v61 = vadd.f32 %v959_v55, %v958_v51  ;;  %v1093_v7 = vmul.f32 %v1530_v54, %v1530_v54  ;;  %v1863_v47 = vpop.f32.mrb[4].mxu1 }
  0xe3   :  { %v1429_v60 = vpack.c.bf16 %v393_v59, %v393_v59  ;;  %v961_v62 = vsel %vm953_vm2, %v393_v59, 0.0  ;;  %v1091_v63 = vmul.f32 %v393_v59, %v393_v59  ;;  %v1531_v0 = vpop.f32.mrb[6].mxu0  ;;  %v965_v13 = vsel %vm953_vm2, %v1530_v54, 0.0  ;;  %v1867_v51 = vpop.f32.mrb[5].mxu1 }
  0xe4   :  { %895 = vst.msk [vmem:[%s2387_s2 + $0x18] sm:$0xf] %vm888_vm1, %v1431_v58  ;;  %v1157_v1 = vadd.f32 %v1156_v56, %v1155_v57  ;;  %v1432_v2 = vpack.c.bf16 %v1531_v0, %v1531_v0  ;;  %v396_v3 = vpop.f32.mrb[7].mxu0  ;;  %v962_v4 = vadd.f32 %v961_v62, %v960_v61  ;;  %v1094_v14 = vmul.f32 %v1531_v0, %v1531_v0  ;;  %v1875_v56 = vpop.f32.mrb[6].mxu1 }
  0xe5   :  { %893 = vst.msk [vmem:[%s2387_s2 + $0x10] sm:$0xf] %vm888_vm1, %v1429_v60  ;;  %v1158_v5 = vsel %vm953_vm2, %v1091_v63, 0.0  ;;  %v1430_v6 = vpack.c.bf16 %v396_v3, %v396_v3  ;;  %v963_v9 = vsel %vm953_vm2, %v396_v3, 0.0  ;;  %v1092_v10 = vmul.f32 %v396_v3, %v396_v3  ;;  %v1879_v61 = vpop.f32.mrb[7].mxu1 }
  0xe6   :  { %v1159_v8 = vadd.f32 %v1158_v5, %v1157_v1  ;;  %896 = vst.msk [vmem:[%s2387_s2 + $0x1c] sm:$0xf] %vm888_vm1, %v1432_v2  ;;  %v964_v11 = vadd.f32 %v963_v9, %v962_v4  ;;  %v1162_v23 = vsel %vm953_vm2, %v1093_v7, 0.0  ;;  %v967_v24 = vsel %vm953_vm2, %v1531_v0, 0.0 }
  0xe7   :  { %894 = vst.msk [vmem:[%s2387_s2 + $0x14] sm:$0xf] %vm888_vm1, %v1430_v6  ;;  %v1160_v15 = vsel %vm953_vm2, %v1092_v10, 0.0  ;;  %v1164_v33 = vsel %vm953_vm2, %v1094_v14, 0.0  ;;  %v1458_v55 = vpack.c.bf16 %v1835_v27, %v1835_v27 }
  0xe8   :  { %v966_v18 = vadd.f32 %v965_v13, %v964_v11  ;;  %v1161_v19 = vadd.f32 %v1160_v15, %v1159_v8 }
  0xe9   :  { %v1534_v20 = vpop.f32.mrb[8].mxu0  ;;  %922 = vst.msk [vmem:[%s2387_s2 + $0x84] sm:$0xf] %vm888_vm1, %v1458_v55 }
  0xea   :  { %v1435_v25 = vpack.c.bf16 %v1534_v20, %v1534_v20  ;;  %v409_v26 = vpop.f32.mrb[9].mxu0  ;;  %v1163_v28 = vadd.f32 %v1162_v23, %v1161_v19  ;;  %v968_v30 = vadd.f32 %v967_v24, %v966_v18  ;;  %v1097_v40 = vmul.f32 %v1534_v20, %v1534_v20  ;;  %v1907_v19 = vpop.f32.mrb[8].mxu1 }
  0xeb   :  { %v1433_v29 = vpack.c.bf16 %v409_v26, %v409_v26  ;;  %v969_v31 = vsel %vm953_vm2, %v409_v26, 0.0  ;;  %v1535_v32 = vpop.f32.mrb[10].mxu0  ;;  %v1095_v34 = vmul.f32 %v409_v26, %v409_v26  ;;  %v973_v48 = vsel %vm953_vm2, %v1534_v20, 0.0  ;;  %v1911_v24 = vpop.f32.mrb[9].mxu1 }
  0xec   :  { %899 = vst.msk [vmem:[%s2387_s2 + $0x28] sm:$0xf] %vm888_vm1, %v1435_v25  ;;  %v1436_v35 = vpack.c.bf16 %v1535_v32, %v1535_v32  ;;  %v412_v36 = vpop.f32.mrb[11].mxu0  ;;  %v970_v37 = vadd.f32 %v969_v31, %v968_v30  ;;  %v1165_v38 = vadd.f32 %v1164_v33, %v1163_v28  ;;  %v1098_v49 = vmul.f32 %v1535_v32, %v1535_v32  ;;  %v1919_v30 = vpop.f32.mrb[10].mxu1 }
  0xed   :  { %897 = vst.msk [vmem:[%s2387_s2 + $0x20] sm:$0xf] %vm888_vm1, %v1433_v29  ;;  %v1434_v39 = vpack.c.bf16 %v412_v36, %v412_v36  ;;  %v1166_v41 = vsel %vm953_vm2, %v1095_v34, 0.0  ;;  %v971_v42 = vsel %vm953_vm2, %v412_v36, 0.0  ;;  %v1096_v43 = vmul.f32 %v412_v36, %v412_v36 }
  0xee   :  { %900 = vst.msk [vmem:[%s2387_s2 + $0x2c] sm:$0xf] %vm888_vm1, %v1436_v35  ;;  %v1167_v44 = vadd.f32 %v1166_v41, %v1165_v38  ;;  %v972_v45 = vadd.f32 %v971_v42, %v970_v37  ;;  %v1170_v57 = vsel %vm953_vm2, %v1097_v40, 0.0  ;;  %v975_v58 = vsel %vm953_vm2, %v1535_v32, 0.0  ;;  %v1923_v35 = vpop.f32.mrb[11].mxu1 }
  0xef   :  { %898 = vst.msk [vmem:[%s2387_s2 + $0x24] sm:$0xf] %vm888_vm1, %v1434_v39  ;;  %v1168_v50 = vsel %vm953_vm2, %v1096_v43, 0.0  ;;  %v1172_v3 = vsel %vm953_vm2, %v1098_v49, 0.0  ;;  %v1463_v18 = vpack.c.bf16 %v1863_v47, %v1863_v47  ;;  %v1461_v29 = vpack.c.bf16 %v1867_v51, %v1867_v51 }
  0xf0   :  { %v974_v52 = vadd.f32 %v973_v48, %v972_v45  ;;  %v1169_v53 = vadd.f32 %v1168_v50, %v1167_v44 }
  0xf1   :  { %v1538_v54 = vpop.f32.mrb[12].mxu0  ;;  %927 = vst.msk [vmem:[%s2387_s2 + $0x98] sm:$0xf] %vm888_vm1, %v1463_v18  ;;  %925 = vst.msk [vmem:[%s2387_s2 + $0x90] sm:$0xf] %vm888_vm1, %v1461_v29 }
  0xf2   :  { %v1439_v59 = vpack.c.bf16 %v1538_v54, %v1538_v54  ;;  %v425_v60 = vpop.f32.mrb[13].mxu0  ;;  %v1171_v62 = vadd.f32 %v1170_v57, %v1169_v53  ;;  %v976_v0 = vadd.f32 %v975_v58, %v974_v52  ;;  %v1101_v10 = vmul.f32 %v1538_v54, %v1538_v54  ;;  %v1951_v58 = vpop.f32.mrb[12].mxu1 }
  0xf3   :  { %v1437_v63 = vpack.c.bf16 %v425_v60, %v425_v60  ;;  %v977_v1 = vsel %vm953_vm2, %v425_v60, 0.0  ;;  %v1539_v2 = vpop.f32.mrb[14].mxu0  ;;  %v1099_v4 = vmul.f32 %v425_v60, %v425_v60  ;;  %v981_v20 = vsel %vm953_vm2, %v1538_v54, 0.0 }
  0xf4   :  { %903 = vst.msk [vmem:[%s2387_s2 + $0x38] sm:$0xf] %vm888_vm1, %v1439_v59  ;;  %v1440_v5 = vpack.c.bf16 %v1539_v2, %v1539_v2  ;;  %v428_v6 = vpop.f32.mrb[15].mxu0  ;;  %v978_v7 = vadd.f32 %v977_v1, %v976_v0  ;;  %v1173_v8 = vadd.f32 %v1172_v3, %v1171_v62  ;;  %v1102_v21 = vmul.f32 %v1539_v2, %v1539_v2 }
  0xf5   :  { %901 = vst.msk [vmem:[%s2387_s2 + $0x30] sm:$0xf] %vm888_vm1, %v1437_v63  ;;  %v1438_v9 = vpack.c.bf16 %v428_v6, %v428_v6  ;;  %v1174_v11 = vsel %vm953_vm2, %v1099_v4, 0.0  ;;  %v979_v13 = vsel %vm953_vm2, %v428_v6, 0.0  ;;  %v1100_v14 = vmul.f32 %v428_v6, %v428_v6  ;;  %v1955_v63 = vpop.f32.mrb[13].mxu1 }
  0xf6   :  { %904 = vst.msk [vmem:[%s2387_s2 + $0x3c] sm:$0xf] %vm888_vm1, %v1440_v5  ;;  %v1175_v15 = vadd.f32 %v1174_v11, %v1173_v8  ;;  %v980_v16 = vadd.f32 %v979_v13, %v978_v7  ;;  %v1178_v31 = vsel %vm953_vm2, %v1101_v10, 0.0  ;;  %v983_v32 = vsel %vm953_vm2, %v1539_v2, 0.0  ;;  %v1963_v4 = vpop.f32.mrb[14].mxu1 }
  0xf7   :  { %902 = vst.msk [vmem:[%s2387_s2 + $0x34] sm:$0xf] %vm888_vm1, %v1438_v9  ;;  %v1176_v23 = vsel %vm953_vm2, %v1100_v14, 0.0  ;;  %v1180_v41 = vsel %vm953_vm2, %v1102_v21, 0.0  ;;  %v1464_v57 = vpack.c.bf16 %v1875_v56, %v1875_v56  ;;  %v1462_v3 = vpack.c.bf16 %v1879_v61, %v1879_v61  ;;  %v1967_v9 = vpop.f32.mrb[15].mxu1 }
  0xf8   :  { %v982_v25 = vadd.f32 %v981_v20, %v980_v16  ;;  %v1177_v26 = vadd.f32 %v1176_v23, %v1175_v15 }
  0xf9   :  { %v1542_v28 = vpop.f32.mrb[16].mxu0  ;;  %928 = vst.msk [vmem:[%s2387_s2 + $0x9c] sm:$0xf] %vm888_vm1, %v1464_v57  ;;  %926 = vst.msk [vmem:[%s2387_s2 + $0x94] sm:$0xf] %vm888_vm1, %v1462_v3 }
  0xfa   :  { %v1443_v33 = vpack.c.bf16 %v1542_v28, %v1542_v28  ;;  %v441_v34 = vpop.f32.mrb[17].mxu0  ;;  %v1179_v36 = vadd.f32 %v1178_v31, %v1177_v26  ;;  %v984_v38 = vadd.f32 %v983_v32, %v982_v25  ;;  %v1105_v49 = vmul.f32 %v1542_v28, %v1542_v28 }
  0xfb   :  { %v1441_v37 = vpack.c.bf16 %v441_v34, %v441_v34  ;;  %v985_v39 = vsel %vm953_vm2, %v441_v34, 0.0  ;;  %v1543_v40 = vpop.f32.mrb[18].mxu0  ;;  %v1103_v42 = vmul.f32 %v441_v34, %v441_v34  ;;  %v989_v59 = vsel %vm953_vm2, %v1542_v28, 0.0 }
  0xfc   :  { %907 = vst.msk [vmem:[%s2387_s2 + $0x48] sm:$0xf] %vm888_vm1, %v1443_v33  ;;  %v1444_v43 = vpack.c.bf16 %v1543_v40, %v1543_v40  ;;  %v444_v44 = vpop.f32.mrb[19].mxu0  ;;  %v986_v45 = vadd.f32 %v985_v39, %v984_v38  ;;  %v1181_v46 = vadd.f32 %v1180_v41, %v1179_v36  ;;  %v1106_v60 = vmul.f32 %v1543_v40, %v1543_v40 }
  0xfd   :  { %905 = vst.msk [vmem:[%s2387_s2 + $0x40] sm:$0xf] %vm888_vm1, %v1441_v37  ;;  %v1442_v48 = vpack.c.bf16 %v444_v44, %v444_v44  ;;  %v1182_v50 = vsel %vm953_vm2, %v1103_v42, 0.0  ;;  %v987_v52 = vsel %vm953_vm2, %v444_v44, 0.0  ;;  %v1104_v53 = vmul.f32 %v444_v44, %v444_v44  ;;  %v1995_v37 = vpop.f32.mrb[16].mxu1 }
  0xfe   :  { %908 = vst.msk [vmem:[%s2387_s2 + $0x4c] sm:$0xf] %vm888_vm1, %v1444_v43  ;;  %v1183_v54 = vadd.f32 %v1182_v50, %v1181_v46  ;;  %v988_v55 = vadd.f32 %v987_v52, %v986_v45  ;;  %v1186_v5 = vsel %vm953_vm2, %v1105_v49, 0.0  ;;  %v991_v6 = vsel %vm953_vm2, %v1543_v40, 0.0  ;;  %v1999_v41 = vpop.f32.mrb[17].mxu1 }
  0xff   :  { %906 = vst.msk [vmem:[%s2387_s2 + $0x44] sm:$0xf] %vm888_vm1, %v1442_v48  ;;  %v1184_v62 = vsel %vm953_vm2, %v1104_v53, 0.0  ;;  %v1188_v16 = vsel %vm953_vm2, %v1106_v60, 0.0  ;;  %v1467_v36 = vpack.c.bf16 %v1907_v19, %v1907_v19  ;;  %v1465_v45 = vpack.c.bf16 %v1911_v24, %v1911_v24  ;;  %v2007_v46 = vpop.f32.mrb[18].mxu1 }
 0x100   :  { %v990_v0 = vadd.f32 %v989_v59, %v988_v55  ;;  %v1185_v1 = vadd.f32 %v1184_v62, %v1183_v54  ;;  %v2011_v53 = vpop.f32.mrb[19].mxu1 }
 0x101   :  { %v1546_v2 = vpop.f32.mrb[20].mxu0  ;;  %931 = vst.msk [vmem:[%s2387_s2 + $0xa8] sm:$0xf] %vm888_vm1, %v1467_v36  ;;  %929 = vst.msk [vmem:[%s2387_s2 + $0xa0] sm:$0xf] %vm888_vm1, %v1465_v45 }
 0x102   :  { %v1447_v7 = vpack.c.bf16 %v1546_v2, %v1546_v2  ;;  %v457_v8 = vpop.f32.mrb[21].mxu0  ;;  %v1187_v10 = vadd.f32 %v1186_v5, %v1185_v1  ;;  %v992_v13 = vadd.f32 %v991_v6, %v990_v0  ;;  %v1109_v28 = vmul.f32 %v1546_v2, %v1546_v2 }
 0x103   :  { %v1445_v11 = vpack.c.bf16 %v457_v8, %v457_v8  ;;  %v993_v14 = vsel %vm953_vm2, %v457_v8, 0.0  ;;  %v1547_v15 = vpop.f32.mrb[22].mxu0  ;;  %v1107_v18 = vmul.f32 %v457_v8, %v457_v8  ;;  %v997_v38 = vsel %vm953_vm2, %v1546_v2, 0.0 }
 0x104   :  { %911 = vst.msk [vmem:[%s2387_s2 + $0x58] sm:$0xf] %vm888_vm1, %v1447_v7  ;;  %v1448_v20 = vpack.c.bf16 %v1547_v15, %v1547_v15  ;;  %v460_v21 = vpop.f32.mrb[23].mxu0  ;;  %v994_v23 = vadd.f32 %v993_v14, %v992_v13  ;;  %v1189_v25 = vadd.f32 %v1188_v16, %v1187_v10  ;;  %v1110_v39 = vmul.f32 %v1547_v15, %v1547_v15  ;;  %v2039_v16 = vpop.f32.mrb[20].mxu1 }
 0x105   :  { %909 = vst.msk [vmem:[%s2387_s2 + $0x50] sm:$0xf] %vm888_vm1, %v1445_v11  ;;  %v1446_v26 = vpack.c.bf16 %v460_v21, %v460_v21  ;;  %v1190_v29 = vsel %vm953_vm2, %v1107_v18, 0.0  ;;  %v995_v31 = vsel %vm953_vm2, %v460_v21, 0.0  ;;  %v1108_v32 = vmul.f32 %v460_v21, %v460_v21 }
 0x106   :  { %912 = vst.msk [vmem:[%s2387_s2 + $0x5c] sm:$0xf] %vm888_vm1, %v1448_v20  ;;  %v1191_v33 = vadd.f32 %v1190_v29, %v1189_v25  ;;  %v996_v34 = vadd.f32 %v995_v31, %v994_v23  ;;  %v1194_v48 = vsel %vm953_vm2, %v1109_v28, 0.0  ;;  %v999_v49 = vsel %vm953_vm2, %v1547_v15, 0.0  ;;  %v2043_v23 = vpop.f32.mrb[21].mxu1 }
 0x107   :  { %910 = vst.msk [vmem:[%s2387_s2 + $0x54] sm:$0xf] %vm888_vm1, %v1446_v26  ;;  %v1192_v40 = vsel %vm953_vm2, %v1108_v32, 0.0  ;;  %v1196_v62 = vsel %vm953_vm2, %v1110_v39, 0.0  ;;  %v1468_v15 = vpack.c.bf16 %v1919_v30, %v1919_v30  ;;  %v1466_v29 = vpack.c.bf16 %v1923_v35, %v1923_v35  ;;  %v2051_v31 = vpop.f32.mrb[22].mxu1 }
 0x108   :  { %v998_v42 = vadd.f32 %v997_v38, %v996_v34  ;;  %v1193_v43 = vadd.f32 %v1192_v40, %v1191_v33  ;;  %v2055_v38 = vpop.f32.mrb[23].mxu1 }
 0x109   :  { %v1550_v44 = vpop.f32.mrb[24].mxu0  ;;  %932 = vst.msk [vmem:[%s2387_s2 + $0xac] sm:$0xf] %vm888_vm1, %v1468_v15  ;;  %930 = vst.msk [vmem:[%s2387_s2 + $0xa4] sm:$0xf] %vm888_vm1, %v1466_v29 }
 0x10a   :  { %v1451_v50 = vpack.c.bf16 %v1550_v44, %v1550_v44  ;;  %v473_v52 = vpop.f32.mrb[25].mxu0  ;;  %v1195_v54 = vadd.f32 %v1194_v48, %v1193_v43  ;;  %v1000_v57 = vadd.f32 %v999_v49, %v998_v42  ;;  %v1113_v7 = vmul.f32 %v1550_v44, %v1550_v44 }
 0x10b   :  { %v1449_v55 = vpack.c.bf16 %v473_v52, %v473_v52  ;;  %v1001_v59 = vsel %vm953_vm2, %v473_v52, 0.0  ;;  %v1551_v60 = vpop.f32.mrb[26].mxu0  ;;  %v1111_v0 = vmul.f32 %v473_v52, %v473_v52  ;;  %v1005_v18 = vsel %vm953_vm2, %v1550_v44, 0.0 }
 0x10c   :  { %915 = vst.msk [vmem:[%s2387_s2 + $0x68] sm:$0xf] %vm888_vm1, %v1451_v50  ;;  %v1452_v1 = vpack.c.bf16 %v1551_v60, %v1551_v60  ;;  %v476_v2 = vpop.f32.mrb[27].mxu0  ;;  %v1002_v3 = vadd.f32 %v1001_v59, %v1000_v57  ;;  %v1197_v5 = vadd.f32 %v1196_v62, %v1195_v54  ;;  %v1114_v20 = vmul.f32 %v1551_v60, %v1551_v60 }
 0x10d   :  { %913 = vst.msk [vmem:[%s2387_s2 + $0x60] sm:$0xf] %vm888_vm1, %v1449_v55  ;;  %v1450_v6 = vpack.c.bf16 %v476_v2, %v476_v2  ;;  %v1198_v8 = vsel %vm953_vm2, %v1111_v0, 0.0  ;;  %v1003_v10 = vsel %vm953_vm2, %v476_v2, 0.0  ;;  %v1112_v11 = vmul.f32 %v476_v2, %v476_v2 }
 0x10e   :  { %916 = vst.msk [vmem:[%s2387_s2 + $0x6c] sm:$0xf] %vm888_vm1, %v1452_v1  ;;  %v1199_v13 = vadd.f32 %v1198_v8, %v1197_v5  ;;  %v1004_v14 = vadd.f32 %v1003_v10, %v1002_v3  ;;  %v1202_v32 = vsel %vm953_vm2, %v1113_v7, 0.0  ;;  %v1007_v33 = vsel %vm953_vm2, %v1551_v60, 0.0  ;;  %v2083_v3 = vpop.f32.mrb[24].mxu1 }
 0x10f   :  { %914 = vst.msk [vmem:[%s2387_s2 + $0x64] sm:$0xf] %vm888_vm1, %v1450_v6  ;;  %v1200_v21 = vsel %vm953_vm2, %v1112_v11, 0.0  ;;  %v1204_v45 = vsel %vm953_vm2, %v1114_v20, 0.0  ;;  %v1471_v2 = vpack.c.bf16 %v1951_v58, %v1951_v58  ;;  %v1119_v8 = vmul.f32 %v1823_v17, %v1823_v17  ;;  %v2089_v10 = vpop.f32.mrb[25].mxu1 }
 0x110   :  { %v1006_v25 = vadd.f32 %v1005_v18, %v1004_v14  ;;  %v1201_v26 = vadd.f32 %v1200_v21, %v1199_v13  ;;  %v1469_v14 = vpack.c.bf16 %v1955_v63, %v1955_v63  ;;  %v2097_v15 = vpop.f32.mrb[26].mxu1  ;;  %v1017_v21 = vsel %vm953_vm2, %v1823_v17, 0.0 }
 0x111   :  { %v1554_v28 = vpop.f32.mrb[28].mxu0  ;;  %935 = vst.msk [vmem:[%s2387_s2 + $0xb8] sm:$0xf] %vm888_vm1, %v1471_v2  ;;  %v1120_v17 = vmul.f32 %v1835_v27, %v1835_v27  ;;  %v1025_v2 = vsel %vm953_vm2, %v1867_v51, 0.0 }
 0x112   :  { %v1455_v34 = vpack.c.bf16 %v1554_v28, %v1554_v28  ;;  %v489_v36 = vpop.f32.mrb[29].mxu0  ;;  %v1203_v39 = vadd.f32 %v1202_v32, %v1201_v26  ;;  %v1008_v42 = vadd.f32 %v1007_v33, %v1006_v25  ;;  %v1117_v57 = vmul.f32 %v1554_v28, %v1554_v28  ;;  %v2105_v26 = vpop.f32.mrb[27].mxu1  ;;  %933 = vst.msk [vmem:[%s2387_s2 + $0xb0] sm:$0xf] %vm888_vm1, %v1469_v14 }
 0x113   :  { %v1453_v40 = vpack.c.bf16 %v489_v36, %v489_v36  ;;  %v1009_v43 = vsel %vm953_vm2, %v489_v36, 0.0  ;;  %v1555_v44 = vpop.f32.mrb[30].mxu0  ;;  %v1115_v48 = vmul.f32 %v489_v36, %v489_v36  ;;  %v1013_v5 = vsel %vm953_vm2, %v1554_v28, 0.0 }
 0x114   :  { %919 = vst.msk [vmem:[%s2387_s2 + $0x78] sm:$0xf] %vm888_vm1, %v1455_v34  ;;  %v1456_v49 = vpack.c.bf16 %v1555_v44, %v1555_v44  ;;  %v492_v50 = vpop.f32.mrb[31].mxu0  ;;  %v1010_v52 = vadd.f32 %v1009_v43, %v1008_v42  ;;  %v1205_v54 = vadd.f32 %v1204_v45, %v1203_v39  ;;  %v1118_v6 = vmul.f32 %v1555_v44, %v1555_v44 }
 0x115   :  { %917 = vst.msk [vmem:[%s2387_s2 + $0x70] sm:$0xf] %vm888_vm1, %v1453_v40  ;;  %v1454_v55 = vpack.c.bf16 %v492_v50, %v492_v50  ;;  %v1206_v59 = vsel %vm953_vm2, %v1115_v48, 0.0  ;;  %v1011_v60 = vsel %vm953_vm2, %v492_v50, 0.0  ;;  %v1116_v62 = vmul.f32 %v492_v50, %v492_v50 }
 0x116   :  { %920 = vst.msk [vmem:[%s2387_s2 + $0x7c] sm:$0xf] %vm888_vm1, %v1456_v49  ;;  %v1207_v0 = vadd.f32 %v1206_v59, %v1205_v54  ;;  %v1012_v1 = vadd.f32 %v1011_v60, %v1010_v52  ;;  %v1210_v18 = vsel %vm953_vm2, %v1117_v57, 0.0  ;;  %v1015_v20 = vsel %vm953_vm2, %v1555_v44, 0.0  ;;  %v2141_v52 = vpop.f32.mrb[28].mxu1 }
 0x117   :  { %918 = vst.msk [vmem:[%s2387_s2 + $0x74] sm:$0xf] %vm888_vm1, %v1454_v55  ;;  %v1208_v7 = vsel %vm953_vm2, %v1116_v62, 0.0  ;;  %v1472_v25 = vpack.c.bf16 %v1963_v4, %v1963_v4  ;;  %v1470_v32 = vpack.c.bf16 %v1967_v9, %v1967_v9  ;;  %v1212_v33 = vsel %vm953_vm2, %v1118_v6, 0.0  ;;  %v2154_v57 = vpop.f32.mrb[29].mxu1 }
 0x118   :  { %v1014_v11 = vadd.f32 %v1013_v5, %v1012_v1  ;;  %v1209_v13 = vadd.f32 %v1208_v7, %v1207_v0  ;;  %v1214_v34 = vsel %vm953_vm2, %v1119_v8, 0.0  ;;  %v1475_v36 = vpack.c.bf16 %v1995_v37, %v1995_v37  ;;  %v2160_v62 = vpop.f32.mrb[30].mxu1 }
 0x119   :  { %936 = vst.msk [vmem:[%s2387_s2 + $0xbc] sm:$0xf] %vm888_vm1, %v1472_v25  ;;  %934 = vst.msk [vmem:[%s2387_s2 + $0xb4] sm:$0xf] %vm888_vm1, %v1470_v32  ;;  %v1121_v42 = vmul.f32 %v1817_v12, %v1817_v12  ;;  %v1019_v43 = vsel %vm953_vm2, %v1835_v27, 0.0  ;;  %v1473_v44 = vpack.c.bf16 %v1999_v41, %v1999_v41  ;;  %v1021_v45 = vsel %vm953_vm2, %v1817_v12, 0.0 }
 0x11a   :  { %v1211_v28 = vadd.f32 %v1210_v18, %v1209_v13  ;;  %v1016_v29 = vadd.f32 %v1015_v20, %v1014_v11  ;;  %939 = vst.msk [vmem:[%s2387_s2 + $0xc8] sm:$0xf] %vm888_vm1, %v1475_v36  ;;  %v1476_v50 = vpack.c.bf16 %v2007_v46, %v2007_v46  ;;  %v1122_v27 = vmul.f32 %v1827_v22, %v1827_v22  ;;  %v2173_v6 = vpop.f32.mrb[31].mxu1 }
 0x11b   :  { %v1216_v54 = vsel %vm953_vm2, %v1120_v17, 0.0  ;;  %v1123_v55 = vmul.f32 %v1867_v51, %v1867_v51  ;;  %937 = vst.msk [vmem:[%s2387_s2 + $0xc0] sm:$0xf] %vm888_vm1, %v1473_v44  ;;  %v1474_v12 = vpack.c.bf16 %v2011_v53, %v2011_v53  ;;  %v1218_v0 = vsel %vm953_vm2, %v1121_v42, 0.0 }
 0x11c   :  { %v1018_v39 = vadd.f32 %v1017_v21, %v1016_v29  ;;  %v1213_v40 = vadd.f32 %v1212_v33, %v1211_v28  ;;  %940 = vst.msk [vmem:[%s2387_s2 + $0xcc] sm:$0xf] %vm888_vm1, %v1476_v50  ;;  %v1023_v1 = vsel %vm953_vm2, %v1827_v22, 0.0  ;;  %v1479_v5 = vpack.c.bf16 %v2039_v16, %v2039_v16 }
 0x11d   :  { %938 = vst.msk [vmem:[%s2387_s2 + $0xc4] sm:$0xf] %vm888_vm1, %v1474_v12  ;;  %v1477_v11 = vpack.c.bf16 %v2043_v23, %v2043_v23  ;;  %v1220_v22 = vsel %vm953_vm2, %v1122_v27, 0.0  ;;  %v1222_v13 = vsel %vm953_vm2, %v1123_v55, 0.0  ;;  %v1124_v51 = vmul.f32 %v1879_v61, %v1879_v61 }
 0x11e   :  { %v1215_v48 = vadd.f32 %v1214_v34, %v1213_v40  ;;  %v1020_v49 = vadd.f32 %v1019_v43, %v1018_v39  ;;  %943 = vst.msk [vmem:[%s2387_s2 + $0xd8] sm:$0xf] %vm888_vm1, %v1479_v5  ;;  %v1480_v14 = vpack.c.bf16 %v2051_v31, %v2051_v31  ;;  %v1125_v21 = vmul.f32 %v1863_v47, %v1863_v47 }
 0x11f   :  { %941 = vst.msk [vmem:[%s2387_s2 + $0xd0] sm:$0xf] %vm888_vm1, %v1477_v11  ;;  %v1027_v25 = vsel %vm953_vm2, %v1879_v61, 0.0  ;;  %v1478_v28 = vpack.c.bf16 %v2055_v38, %v2055_v38  ;;  %v1029_v29 = vsel %vm953_vm2, %v1863_v47, 0.0  ;;  %v1483_v34 = vpack.c.bf16 %v2083_v3, %v2083_v3 }
 0x120   :  { %v1022_v59 = vadd.f32 %v1021_v45, %v1020_v49  ;;  %v1217_v60 = vadd.f32 %v1216_v54, %v1215_v48  ;;  %944 = vst.msk [vmem:[%s2387_s2 + $0xdc] sm:$0xf] %vm888_vm1, %v1480_v14  ;;  %v1126_v17 = vmul.f32 %v1875_v56, %v1875_v56  ;;  %v1224_v61 = vsel %vm953_vm2, %v1124_v51, 0.0 }
 0x121   :  { %v1127_v36 = vmul.f32 %v1911_v24, %v1911_v24  ;;  %942 = vst.msk [vmem:[%s2387_s2 + $0xd4] sm:$0xf] %vm888_vm1, %v1478_v28  ;;  %v1481_v47 = vpack.c.bf16 %v2089_v10, %v2089_v10  ;;  %947 = vst.msk [vmem:[%s2387_s2 + $0xe8] sm:$0xf] %vm888_vm1, %v1483_v34  ;;  %v1226_v42 = vsel %vm953_vm2, %v1125_v21, 0.0  ;;  %v1031_v43 = vsel %vm953_vm2, %v1875_v56, 0.0 }
 0x122   :  { %v1219_v7 = vadd.f32 %v1218_v0, %v1217_v60  ;;  %v1024_v8 = vadd.f32 %v1023_v1, %v1022_v59  ;;  %v1033_v44 = vsel %vm953_vm2, %v1911_v24, 0.0  ;;  %v1484_v45 = vpack.c.bf16 %v2097_v15, %v2097_v15 }
 0x123   :  { %945 = vst.msk [vmem:[%s2387_s2 + $0xe0] sm:$0xf] %vm888_vm1, %v1481_v47  ;;  %v1482_v50 = vpack.c.bf16 %v2105_v26, %v2105_v26  ;;  %v1228_v27 = vsel %vm953_vm2, %v1126_v17, 0.0  ;;  %v1230_v56 = vsel %vm953_vm2, %v1127_v36, 0.0  ;;  %v1128_v24 = vmul.f32 %v1923_v35, %v1923_v35 }
 0x124   :  { %v1026_v18 = vadd.f32 %v1025_v2, %v1024_v8  ;;  %v1221_v20 = vadd.f32 %v1220_v22, %v1219_v7  ;;  %948 = vst.msk [vmem:[%s2387_s2 + $0xec] sm:$0xf] %vm888_vm1, %v1484_v45  ;;  %v1487_v54 = vpack.c.bf16 %v2141_v52, %v2141_v52  ;;  %v1129_v59 = vmul.f32 %v1907_v19, %v1907_v19 }
 0x125   :  { %946 = vst.msk [vmem:[%s2387_s2 + $0xe4] sm:$0xf] %vm888_vm1, %v1482_v50  ;;  %v1035_v60 = vsel %vm953_vm2, %v1923_v35, 0.0  ;;  %v1485_v0 = vpack.c.bf16 %v2154_v57, %v2154_v57  ;;  %v1037_v1 = vsel %vm953_vm2, %v1907_v19, 0.0  ;;  %v1488_v7 = vpack.c.bf16 %v2160_v62, %v2160_v62 }
 0x126   :  { %v1223_v32 = vadd.f32 %v1222_v13, %v1221_v20  ;;  %v1028_v33 = vadd.f32 %v1027_v25, %v1026_v18  ;;  %951 = vst.msk [vmem:[%s2387_s2 + $0xf8] sm:$0xf] %vm888_vm1, %v1487_v54  ;;  %v1130_v8 = vmul.f32 %v1919_v30, %v1919_v30  ;;  %v1232_v35 = vsel %vm953_vm2, %v1128_v24, 0.0 }
 0x127   :  { %v1131_v11 = vmul.f32 %v1955_v63, %v1955_v63  ;;  %949 = vst.msk [vmem:[%s2387_s2 + $0xf0] sm:$0xf] %vm888_vm1, %v1485_v0  ;;  %v1486_v19 = vpack.c.bf16 %v2173_v6, %v2173_v6  ;;  %952 = vst.msk [vmem:[%s2387_s2 + $0xfc] sm:$0xf] %vm888_vm1, %v1488_v7  ;;  %v1234_v51 = vsel %vm953_vm2, %v1129_v59, 0.0  ;;  %v1039_v14 = vsel %vm953_vm2, %v1919_v30, 0.0 }
 0x128   :  { %v1030_v39 = vadd.f32 %v1029_v29, %v1028_v33  ;;  %v1225_v40 = vadd.f32 %v1224_v61, %v1223_v32  ;;  %v1041_v18 = vsel %vm953_vm2, %v1955_v63, 0.0  ;;  %v1236_v25 = vsel %vm953_vm2, %v1130_v8, 0.0 }
 0x129   :  { %950 = vst.msk [vmem:[%s2387_s2 + $0xf4] sm:$0xf] %vm888_vm1, %v1486_v19  ;;  %v1238_v28 = vsel %vm953_vm2, %v1131_v11, 0.0  ;;  %v1132_v29 = vmul.f32 %v1967_v9, %v1967_v9  ;;  %v1133_v30 = vmul.f32 %v1951_v58, %v1951_v58  ;;  %v1043_v63 = vsel %vm953_vm2, %v1967_v9, 0.0 }
 0x12a   :  { %v1227_v48 = vadd.f32 %v1226_v42, %v1225_v40  ;;  %v1032_v49 = vadd.f32 %v1031_v43, %v1030_v39  ;;  %v1045_v61 = vsel %vm953_vm2, %v1951_v58, 0.0  ;;  %v1134_v36 = vmul.f32 %v1963_v4, %v1963_v4 }
 0x12b   :  { %v1240_v47 = vsel %vm953_vm2, %v1132_v29, 0.0  ;;  %v1135_v39 = vmul.f32 %v1999_v41, %v1999_v41  ;;  %v1242_v43 = vsel %vm953_vm2, %v1133_v30, 0.0  ;;  %v1047_v9 = vsel %vm953_vm2, %v1963_v4, 0.0 }
 0x12c   :  { %v1034_v55 = vadd.f32 %v1033_v44, %v1032_v49  ;;  %v1229_v12 = vadd.f32 %v1228_v27, %v1227_v48  ;;  %v1049_v44 = vsel %vm953_vm2, %v1999_v41, 0.0  ;;  %v1244_v48 = vsel %vm953_vm2, %v1134_v36, 0.0 }
 0x12d   :  { %v1246_v49 = vsel %vm953_vm2, %v1135_v39, 0.0  ;;  %v1136_v50 = vmul.f32 %v2011_v53, %v2011_v53  ;;  %v1137_v24 = vmul.f32 %v1995_v37, %v1995_v37  ;;  %v1051_v4 = vsel %vm953_vm2, %v2011_v53, 0.0 }
 0x12e   :  { %v1231_v2 = vadd.f32 %v1230_v56, %v1229_v12  ;;  %v1036_v5 = vadd.f32 %v1035_v60, %v1034_v55  ;;  %v1053_v41 = vsel %vm953_vm2, %v1995_v37, 0.0  ;;  %v1138_v12 = vmul.f32 %v2007_v46, %v2007_v46 }
 0x12f   :  { %v1248_v59 = vsel %vm953_vm2, %v1136_v50, 0.0  ;;  %v1139_v60 = vmul.f32 %v2043_v23, %v2043_v23  ;;  %v1055_v53 = vsel %vm953_vm2, %v2007_v46, 0.0  ;;  %v1140_v11 = vmul.f32 %v2055_v38, %v2055_v38 }
 0x130   :  { %v1038_v22 = vadd.f32 %v1037_v1, %v1036_v5  ;;  %v1233_v13 = vadd.f32 %v1232_v35, %v1231_v2  ;;  %v1250_v2 = vsel %vm953_vm2, %v1137_v24, 0.0  ;;  %v1057_v5 = vsel %vm953_vm2, %v2043_v23, 0.0 }
 0x131   :  { %v1252_v8 = vsel %vm953_vm2, %v1138_v12, 0.0  ;;  %v1254_v35 = vsel %vm953_vm2, %v1139_v60, 0.0  ;;  %v1059_v46 = vsel %vm953_vm2, %v2055_v38, 0.0  ;;  %v1061_v23 = vsel %vm953_vm2, %v2039_v16, 0.0 }
 0x132   :  { %v1235_v20 = vadd.f32 %v1234_v51, %v1233_v13  ;;  %v1040_v21 = vadd.f32 %v1039_v14, %v1038_v22  ;;  %v1141_v13 = vmul.f32 %v2039_v16, %v2039_v16  ;;  %v1063_v38 = vsel %vm953_vm2, %v2051_v31, 0.0 }
 0x133   :  { %v1145_v36 = vmul.f32 %v2083_v3, %v2083_v3 }
 0x134   :  { %v1042_v32 = vadd.f32 %v1041_v18, %v1040_v21  ;;  %v1237_v33 = vadd.f32 %v1236_v25, %v1235_v20  ;;  %v1142_v18 = vmul.f32 %v2051_v31, %v2051_v31  ;;  %v1256_v20 = vsel %vm953_vm2, %v1140_v11, 0.0 }
 0x135   :  { %v1143_v21 = vmul.f32 %v2089_v10, %v2089_v10  ;;  %v1258_v29 = vsel %vm953_vm2, %v1141_v13, 0.0  ;;  %v1067_v31 = vsel %vm953_vm2, %v2105_v26, 0.0 }
 0x136   :  { %v1239_v34 = vadd.f32 %v1238_v28, %v1237_v33  ;;  %v1044_v17 = vadd.f32 %v1043_v63, %v1042_v32  ;;  %v1065_v32 = vsel %vm953_vm2, %v2089_v10, 0.0  ;;  %v1260_v30 = vsel %vm953_vm2, %v1142_v18, 0.0 }
 0x137   :  { %v1262_v63 = vsel %vm953_vm2, %v1143_v21, 0.0  ;;  %v1069_v10 = vsel %vm953_vm2, %v2083_v3, 0.0 }
 0x138   :  { %v1046_v40 = vadd.f32 %v1045_v61, %v1044_v17  ;;  %v1241_v42 = vadd.f32 %v1240_v47, %v1239_v34  ;;  %v1144_v34 = vmul.f32 %v2105_v26, %v2105_v26  ;;  %v1071_v26 = vsel %vm953_vm2, %v2097_v15, 0.0 }
 0x13a   :  { %v1243_v45 = vadd.f32 %v1242_v43, %v1241_v42  ;;  %v1048_v58 = vadd.f32 %v1047_v9, %v1046_v40  ;;  %v1146_v40 = vmul.f32 %v2097_v15, %v2097_v15  ;;  %v1264_v42 = vsel %vm953_vm2, %v1144_v34, 0.0 }
 0x13b   :  { %v1147_v43 = vmul.f32 %v2154_v57, %v2154_v57  ;;  %v1075_v15 = vsel %vm953_vm2, %v2173_v6, 0.0 }
 0x13c   :  { %v1050_v27 = vadd.f32 %v1049_v44, %v1048_v58  ;;  %v1245_v56 = vadd.f32 %v1244_v48, %v1243_v45  ;;  %v1266_v45 = vsel %vm953_vm2, %v1145_v36, 0.0  ;;  %v1073_v58 = vsel %vm953_vm2, %v2154_v57, 0.0 }
 0x13d   :  { %v1270_v50 = vsel %vm953_vm2, %v1147_v43, 0.0  ;;  %v1077_v57 = vsel %vm953_vm2, %v2141_v52, 0.0 }
 0x13e   :  { %v1247_v54 = vadd.f32 %v1246_v49, %v1245_v56  ;;  %v1052_v55 = vadd.f32 %v1051_v4, %v1050_v27  ;;  %v1268_v49 = vsel %vm953_vm2, %v1146_v40, 0.0  ;;  %v1148_v27 = vmul.f32 %v2173_v6, %v2173_v6 }
 0x13f   :  { %v1149_v4 = vmul.f32 %v2141_v52, %v2141_v52 }
 0x140   :  { %v1054_v0 = vadd.f32 %v1053_v41, %v1052_v55  ;;  %v1249_v1 = vadd.f32 %v1248_v59, %v1247_v54  ;;  %v1150_v41 = vmul.f32 %v2160_v62, %v2160_v62  ;;  %v1272_v12 = vsel %vm953_vm2, %v1148_v27, 0.0 }
 0x142   :  { %v1251_v7 = vadd.f32 %v1250_v2, %v1249_v1  ;;  %v1056_v37 = vadd.f32 %v1055_v53, %v1054_v0  ;;  %v1274_v0 = vsel %vm953_vm2, %v1149_v4, 0.0  ;;  %v1079_v1 = vsel %vm953_vm2, %v2160_v62, 0.0 }
 0x143   :  { %v1276_v6 = vsel %vm953_vm2, %v1150_v41, 0.0 }
 0x144   :  { %v1058_v19 = vadd.f32 %v1057_v5, %v1056_v37  ;;  %v1253_v22 = vadd.f32 %v1252_v8, %v1251_v7 }
 0x146   :  { %v1255_v51 = vadd.f32 %v1254_v35, %v1253_v22  ;;  %v1060_v14 = vadd.f32 %v1059_v46, %v1058_v19 }
 0x148   :  { %v1062_v25 = vadd.f32 %v1061_v23, %v1060_v14  ;;  %v1257_v28 = vadd.f32 %v1256_v20, %v1255_v51 }
 0x14a   :  { %v1259_v33 = vadd.f32 %v1258_v29, %v1257_v28  ;;  %v1064_v16 = vadd.f32 %v1063_v38, %v1062_v25 }
 0x14c   :  { %v1066_v17 = vadd.f32 %v1065_v32, %v1064_v16  ;;  %v1261_v61 = vadd.f32 %v1260_v30, %v1259_v33 }
 0x14e   :  { %v1263_v47 = vadd.f32 %v1262_v63, %v1261_v61  ;;  %v1068_v39 = vadd.f32 %v1067_v31, %v1066_v17 }
 0x150   :  { %v1070_v9 = vadd.f32 %v1069_v10, %v1068_v39  ;;  %v1265_v44 = vadd.f32 %v1264_v42, %v1263_v47 }
 0x152   :  { %v1267_v48 = vadd.f32 %v1266_v45, %v1265_v44  ;;  %v1072_v3 = vadd.f32 %v1071_v26, %v1070_v9 }
 0x154   :  { %v1074_v56 = vadd.f32 %v1073_v58, %v1072_v3  ;;  %v1269_v24 = vadd.f32 %v1268_v49, %v1267_v48 }
 0x156   :  { %v1271_v54 = vadd.f32 %v1270_v50, %v1269_v24  ;;  %v1076_v55 = vadd.f32 %v1075_v15, %v1074_v56 }
 0x158   :  { %v1078_v59 = vadd.f32 %v1077_v57, %v1076_v55  ;;  %v1273_v60 = vadd.f32 %v1272_v12, %v1271_v54 }
 0x15a   :  { %v1080_v2 = vadd.f32 %v1079_v1, %v1078_v59  ;;  %v1275_v53 = vadd.f32 %v1274_v0, %v1273_v60 }
 0x15c   :  { %v1081_v5 = vrot.slane %v1080_v2, 4  ;;  %v1277_v7 = vadd.f32 %v1276_v6, %v1275_v53 }
 0x15e   :  { %v1082_v37 = vadd.f32 %v1081_v5, %v1080_v2  ;;  %v1278_v52 = vrot.slane %v1277_v7, 4 }
 0x160   :  { %v1083_v8 = vrot.slane %v1082_v37, 2  ;;  %v1279_v35 = vadd.f32 %v1278_v52, %v1277_v7 }
 0x162   :  { %v1084_v11 = vadd.f32 %v1083_v8, %v1082_v37  ;;  %v1280_v19 = vrot.slane %v1279_v35, 2 }
 0x164   :  { %v1085_v22 = vrot.slane %v1084_v11, 1  ;;  %v1281_v13 = vadd.f32 %v1280_v19, %v1279_v35 }
 0x166   :  { %v1282_v46 = vrot.slane %v1281_v13, 1  ;;  %v1086_v51 = vadd.f32 %v1085_v22, %v1084_v11 }
 0x168   :  { %v1283_v14 = vadd.f32 %v1282_v46, %v1281_v13 }
 0x16a   :  { %v1285_v62 = vsel %vm1284_vm3, %v1086_v51, %v1283_v14 }
 0x16b   :  { %1287 = vst.msk [vmem:[%s2388_s3] sm:$0x3] %vm1286_vm4, %v1285_v62 }

// kernel: _lambda_.43
= control target key start
LH: loop header
LB: loop body
LE: loop exit
PB: predicated region body
PF: predicated region fallthrough
CT: control target
= control target key end

     0   :  { %v617_v8 = vmov 1966171168   ;;  %v37_v10 = vlaneseq  ;;  %vm386_vm0 = vcmask 7168   ;;  %s1406_s0 = inlined_call_operand.vmem [shape: f32[1,2,1], index: 0, kind: input, shape index: {}]   ;;  %s1407_s1 = inlined_call_operand.<no memory space> [shape: f32[1,1], index: 1, kind: input, shape index: {}]   ;;  %s1408_s2 = inlined_call_operand.<no memory space> [shape: f32[1,1], index: 2, kind: input, shape index: {}]   ;;  %s1409_s3 = inlined_call_operand.vmem [shape: bf16[512,1], index: 3, kind: input, shape index: {}]   ;;  %s1410_s4 = inlined_call_operand.vmem [shape: f32[512,1], index: 4, kind: output, shape index: {}]  }
   0x1   :  { %v9_v0 = vstv %s1407_s1  ;;  %v21_v1 = vld [vmem:[%s1406_s0] sm:$0x3]  ;;  %v11_v2 = vstv %s1408_s2  ;;  %v35_v9 = vunpack.c.l.s4 %v617_v8  ;;  %v665_v13 = vld [vmem:[%s1409_s3 + $0x8] sm:$0xff]  }
   0x2   :  { %10 = vst [vmem:[#allocation2] sm:$0x1] %v9_v0  ;;  %v652_v3 = vmul.f32 0.001953125, %v21_v1  ;;  %12 = vst [vmem:[#allocation3] sm:$0x1] %v11_v2  ;;  %v660_v12 = vld [vmem:[%s1409_s3] sm:$0xff]   ;;  %v461_v21 = vunpack.c.l.bf16 %v665_v13  ;;  %v462_v22 = vunpack.c.h.bf16 %v665_v13 }
   0x3   :  { %v36_v14 = vunpack.c.0.s8 %v35_v9  ;;  %v667_v15 = vshrl.u32 %v37_v10, 7  ;;  %v672_v16 = vld [vmem:[%s1409_s3 + $0x10] sm:$0xff]   ;;  %v677_v17 = vld [vmem:[%s1409_s3 + $0x18] sm:$0xff]   ;;  %v682_v18 = vld [vmem:[%s1409_s3 + $0x20] sm:$0xff]   ;;  %v457_v19 = vunpack.c.l.bf16 %v660_v12  ;;  %v458_v20 = vunpack.c.h.bf16 %v660_v12 }
   0x4   :  { %v24_v4 = vmul.f32 %v652_v3, %v652_v3  ;;  %v691_v23 = vld [vmem:[%s1409_s3 + $0x28] sm:$0xff]   ;;  %v696_v24 = vld [vmem:[%s1409_s3 + $0x30] sm:$0xff]   ;;  %v465_v26 = vunpack.c.l.bf16 %v672_v16  ;;  %v466_v27 = vunpack.c.h.bf16 %v672_v16  ;;  %v469_v28 = vunpack.c.l.bf16 %v677_v17  ;;  %v705_v29 = vld [vmem:[%s1409_s3 + $0x38] sm:$0xff]  }
   0x5   :  { %v185_v25 = vsub.s32 0, %v667_v15  ;;  %v710_v30 = vld [vmem:[%s1409_s3 + $0x40] sm:$0xff]   ;;  %v39_v31 = vsub.s32 %v36_v14, %v667_v15  ;;  %v470_v32 = vunpack.c.h.bf16 %v677_v17  ;;  %v473_v33 = vunpack.c.l.bf16 %v682_v18  ;;  %v719_v35 = vld [vmem:[%s1409_s3 + $0x48] sm:$0xff]   ;;  %v724_v36 = vld [vmem:[%s1409_s3 + $0x50] sm:$0xff]  }
   0x6   :  { %v26_v5 = vrot.slane %v24_v4, 7  ;;  %v474_v34 = vunpack.c.h.bf16 %v682_v18  ;;  %v477_v37 = vunpack.c.l.bf16 %v691_v23  ;;  %v478_v38 = vunpack.c.h.bf16 %v691_v23  ;;  %v733_v41 = vld [vmem:[%s1409_s3 + $0x58] sm:$0xff]   ;;  %v738_v42 = vld [vmem:[%s1409_s3 + $0x60] sm:$0xff]   ;;  %v747_v47 = vld [vmem:[%s1409_s3 + $0x68] sm:$0xff]  }
   0x7   :  { %v481_v39 = vunpack.c.l.bf16 %v696_v24  ;;  %v482_v40 = vunpack.c.h.bf16 %v696_v24  ;;  %v485_v43 = vunpack.c.l.bf16 %v705_v29  ;;  %v486_v44 = vunpack.c.h.bf16 %v705_v29  ;;  %v752_v48 = vld [vmem:[%s1409_s3 + $0x70] sm:$0xff]   ;;  %v761_v53 = vld [vmem:[%s1409_s3 + $0x78] sm:$0xff]   ;;  %v766_v54 = vld [vmem:[%s1409_s3 + $0x80] sm:$0xff]  }
   0x8   :  { %v28_v6 = vsub.f32 %v652_v3, %v26_v5  ;;  %v489_v45 = vunpack.c.l.bf16 %v710_v30  ;;  %v775_v59 = vld [vmem:[%s1409_s3 + $0x88] sm:$0xff]   ;;  %v780_v60 = vld [vmem:[%s1409_s3 + $0x90] sm:$0xff]   ;;  %v789_v2 = vld [vmem:[%s1409_s3 + $0x98] sm:$0xff]  }
   0x9   :  { %v797_v8 = vld [vmem:[%s1409_s3 + $0xa0] sm:$0xff]   ;;  %v802_v9 = vld [vmem:[%s1409_s3 + $0xa8] sm:$0xff]   ;;  %v873_v57 = vld [vmem:[%s1409_s3 + $0xf8] sm:$0xff]  }
   0xa   :  { %v29_v7 = vmax.f32 %v28_v6, 0.0  ;;  %v816_v6 = vld [vmem:[%s1409_s3 + $0xb8] sm:$0xff]   ;;  %v829_v14 = vld [vmem:[%s1409_s3 + $0xc8] sm:$0xff]   ;;  %v30_v0 = vld [vmem:[#allocation2] sm:$0x1]  ;;  %v582_v55 = vunpack.c.h.bf16 %v873_v57 }
   0xb   :  { %v851_v10 = vld [vmem:[%s1409_s3 + $0xe0] sm:$0xff]   ;;  %v860_v56 = vld [vmem:[%s1409_s3 + $0xe8] sm:$0xff]  }
   0xc   :  { %v31_v11 = vadd.f32 1e-05, %v29_v7  ;;  %v811_v7 = vld [vmem:[%s1409_s3 + $0xb0] sm:$0xff]   ;;  %v573_v51 = vunpack.c.l.bf16 %v860_v56  ;;  %v574_v50 = vunpack.c.h.bf16 %v860_v56 }
   0xe   :  { %615 = vrsqrt.f32 %v31_v11  ;;  %v838_v11 = vld [vmem:[%s1409_s3 + $0xd0] sm:$0xff]  }
  0x18   :  { %v616_v61 = vpop.eup %615 }
  0x19   :  { %v40_v4 = vrot.slane %v616_v61, %v39_v31  ;;  %v824_v61 = vld [vmem:[%s1409_s3 + $0xc0] sm:$0xff]  }
  0x1b   :  { %v41_v5 = vcombine.high %v40_v4, %v40_v4  ;;  %v846_v4 = vld [vmem:[%s1409_s3 + $0xd8] sm:$0xff]  }
  0x1d   :  { %v48_v62 = vrot.slane %v41_v5, %v39_v31  ;;  %v868_v31 = vld [vmem:[%s1409_s3 + $0xf0] sm:$0xff]   ;;  %v51_v5 = vld [vmem:[#allocation3] sm:$0x1] }
  0x1e   :  { %v577_v49 = vunpack.c.l.bf16 %v868_v31  ;;  %v1452_v56 = vunpack.c.h.bf16 %v868_v31 }
  0x1f   :  { %v50_v58 = vmul.f32 %v48_v62, %v30_v0  ;;  %v581_v0 = vunpack.c.l.bf16 %v873_v57 }
  0x21   :  { %v881_v63 = vrot.slane %v50_v58, %v185_v25  ;;  %v52_v1 = vmul.f32 %v50_v58, %v652_v3 }
  0x23   :  { %v53_v46 = vsub.f32 %v51_v5, %v52_v1  ;;  %v188_v52 = vmul.f32 %v457_v19, %v881_v63  ;;  %v189_v3 = vmul.f32 %v458_v20, %v881_v63  ;;  %v190_v58 = vmul.f32 %v461_v21, %v881_v63 }
  0x24   :  { %v191_v62 = vmul.f32 %v462_v22, %v881_v63  ;;  %v192_v1 = vmul.f32 %v465_v26, %v881_v63  ;;  %v193_v19 = vmul.f32 %v466_v27, %v881_v63  ;;  %v194_v12 = vmul.f32 %v469_v28, %v881_v63 }
  0x25   :  { %v913_v20 = vrot.slane %v53_v46, %v185_v25  ;;  %v195_v13 = vmul.f32 %v470_v32, %v881_v63  ;;  %v196_v21 = vmul.f32 %v473_v33, %v881_v63  ;;  %v197_v16 = vmul.f32 %v474_v34, %v881_v63 }
  0x26   :  { %v198_v22 = vmul.f32 %v477_v37, %v881_v63  ;;  %v199_v15 = vmul.f32 %v478_v38, %v881_v63  ;;  %v200_v17 = vmul.f32 %v481_v39, %v881_v63  ;;  %v201_v25 = vmul.f32 %v482_v40, %v881_v63 }
  0x27   :  { %v258_v26 = vadd.f32 %v913_v20, %v188_v52  ;;  %v259_v18 = vadd.f32 %v913_v20, %v189_v3  ;;  %v260_v27 = vadd.f32 %v913_v20, %v190_v58  ;;  %v261_v28 = vadd.f32 %v913_v20, %v191_v62 }
  0x28   :  { %v262_v32 = vadd.f32 %v913_v20, %v192_v1  ;;  %v263_v23 = vadd.f32 %v913_v20, %v193_v19  ;;  %v264_v33 = vadd.f32 %v913_v20, %v194_v12  ;;  %v265_v34 = vadd.f32 %v913_v20, %v195_v13 }
  0x29   :  { %v322_v37 = vmax.f32 %v258_v26, 0.0  ;;  %v323_v38 = vmax.f32 %v259_v18, 0.0  ;;  %v324_v24 = vmax.f32 %v260_v27, 0.0  ;;  %v325_v39 = vmax.f32 %v261_v28, 0.0 }
  0x2a   :  { %v326_v40 = vmax.f32 %v262_v32, 0.0  ;;  %v327_v46 = vmax.f32 %v263_v23, 0.0  ;;  %v328_v52 = vmax.f32 %v264_v33, 0.0  ;;  %v329_v5 = vmax.f32 %v265_v34, 0.0 }
  0x2b   :  { %387 = vst.msk [vmem:[%s1410_s4] sm:$0xff] %vm386_vm0, %v322_v37  ;;  %388 = vst.msk [vmem:[%s1410_s4 + $0x8] sm:$0xff] %vm386_vm0, %v323_v38  ;;  %v266_v62 = vadd.f32 %v913_v20, %v196_v21  ;;  %v267_v3 = vadd.f32 %v913_v20, %v197_v16  ;;  %v268_v58 = vadd.f32 %v913_v20, %v198_v22  ;;  %v1413_v23 = vunpack.c.h.bf16 %v719_v35 }
  0x2c   :  { %389 = vst.msk [vmem:[%s1410_s4 + $0x10] sm:$0xff] %vm386_vm0, %v324_v24  ;;  %390 = vst.msk [vmem:[%s1410_s4 + $0x18] sm:$0xff] %vm386_vm0, %v325_v39  ;;  %v269_v1 = vadd.f32 %v913_v20, %v199_v15  ;;  %v270_v19 = vadd.f32 %v913_v20, %v200_v17  ;;  %v271_v12 = vadd.f32 %v913_v20, %v201_v25  ;;  %v1412_v25 = vunpack.c.l.bf16 %v719_v35 }
  0x2d   :  { %391 = vst.msk [vmem:[%s1410_s4 + $0x20] sm:$0xff] %vm386_vm0, %v326_v40  ;;  %392 = vst.msk [vmem:[%s1410_s4 + $0x28] sm:$0xff] %vm386_vm0, %v327_v46  ;;  %v202_v13 = vmul.f32 %v485_v43, %v881_v63  ;;  %v203_v21 = vmul.f32 %v486_v44, %v881_v63  ;;  %v330_v16 = vmax.f32 %v266_v62, 0.0  ;;  %v331_v22 = vmax.f32 %v267_v3, 0.0 }
  0x2e   :  { %393 = vst.msk [vmem:[%s1410_s4 + $0x30] sm:$0xff] %vm386_vm0, %v328_v52  ;;  %394 = vst.msk [vmem:[%s1410_s4 + $0x38] sm:$0xff] %vm386_vm0, %v329_v5  ;;  %v332_v15 = vmax.f32 %v268_v58, 0.0  ;;  %v333_v26 = vmax.f32 %v269_v1, 0.0  ;;  %v334_v18 = vmax.f32 %v270_v19, 0.0  ;;  %v335_v27 = vmax.f32 %v271_v12, 0.0 }
  0x2f   :  { %v272_v28 = vadd.f32 %v913_v20, %v202_v13  ;;  %v273_v17 = vadd.f32 %v913_v20, %v203_v21  ;;  %395 = vst.msk [vmem:[%s1410_s4 + $0x40] sm:$0xff] %vm386_vm0, %v330_v16  ;;  %396 = vst.msk [vmem:[%s1410_s4 + $0x48] sm:$0xff] %vm386_vm0, %v331_v22  ;;  %v204_v29 = vmul.f32 %v489_v45, %v881_v63  ;;  %v1411_v43 = vunpack.c.h.bf16 %v710_v30 }
  0x30   :  { %397 = vst.msk [vmem:[%s1410_s4 + $0x50] sm:$0xff] %vm386_vm0, %v332_v15  ;;  %398 = vst.msk [vmem:[%s1410_s4 + $0x58] sm:$0xff] %vm386_vm0, %v333_v26  ;;  %v206_v32 = vmul.f32 %v1412_v25, %v881_v63  ;;  %v207_v33 = vmul.f32 %v1413_v23, %v881_v63  ;;  %v1414_v34 = vunpack.c.l.bf16 %v724_v36  ;;  %v1415_v35 = vunpack.c.h.bf16 %v724_v36 }
  0x31   :  { %v205_v44 = vmul.f32 %v1411_v43, %v881_v63  ;;  %399 = vst.msk [vmem:[%s1410_s4 + $0x60] sm:$0xff] %vm386_vm0, %v334_v18  ;;  %400 = vst.msk [vmem:[%s1410_s4 + $0x68] sm:$0xff] %vm386_vm0, %v335_v27  ;;  %v336_v30 = vmax.f32 %v272_v28, 0.0  ;;  %v337_v45 = vmax.f32 %v273_v17, 0.0  ;;  %v274_v24 = vadd.f32 %v913_v20, %v204_v29 }
  0x32   :  { %v208_v37 = vmul.f32 %v1414_v34, %v881_v63  ;;  %v209_v38 = vmul.f32 %v1415_v35, %v881_v63  ;;  %v276_v40 = vadd.f32 %v913_v20, %v206_v32  ;;  %v277_v46 = vadd.f32 %v913_v20, %v207_v33 }
  0x33   :  { %v275_v39 = vadd.f32 %v913_v20, %v205_v44  ;;  %401 = vst.msk [vmem:[%s1410_s4 + $0x70] sm:$0xff] %vm386_vm0, %v336_v30  ;;  %402 = vst.msk [vmem:[%s1410_s4 + $0x78] sm:$0xff] %vm386_vm0, %v337_v45  ;;  %v1416_v5 = vunpack.c.l.bf16 %v733_v41  ;;  %v1417_v3 = vunpack.c.h.bf16 %v733_v41  ;;  %v338_v1 = vmax.f32 %v274_v24, 0.0 }
  0x34   :  { %v278_v36 = vadd.f32 %v913_v20, %v208_v37  ;;  %v279_v52 = vadd.f32 %v913_v20, %v209_v38  ;;  %v340_v12 = vmax.f32 %v276_v40, 0.0  ;;  %v341_v13 = vmax.f32 %v277_v46, 0.0 }
  0x35   :  { %v210_v62 = vmul.f32 %v1416_v5, %v881_v63  ;;  %v211_v58 = vmul.f32 %v1417_v3, %v881_v63  ;;  %v339_v19 = vmax.f32 %v275_v39, 0.0  ;;  %403 = vst.msk [vmem:[%s1410_s4 + $0x80] sm:$0xff] %vm386_vm0, %v338_v1  ;;  %v1418_v41 = vunpack.c.l.bf16 %v738_v42 }
  0x36   :  { %v342_v21 = vmax.f32 %v278_v36, 0.0  ;;  %v343_v16 = vmax.f32 %v279_v52, 0.0  ;;  %405 = vst.msk [vmem:[%s1410_s4 + $0x90] sm:$0xff] %vm386_vm0, %v340_v12  ;;  %406 = vst.msk [vmem:[%s1410_s4 + $0x98] sm:$0xff] %vm386_vm0, %v341_v13  ;;  %v1419_v18 = vunpack.c.h.bf16 %v738_v42  ;;  %v1420_v28 = vunpack.c.l.bf16 %v747_v47 }
  0x37   :  { %v280_v22 = vadd.f32 %v913_v20, %v210_v62  ;;  %v281_v15 = vadd.f32 %v913_v20, %v211_v58  ;;  %404 = vst.msk [vmem:[%s1410_s4 + $0x88] sm:$0xff] %vm386_vm0, %v339_v19  ;;  %v212_v26 = vmul.f32 %v1418_v41, %v881_v63  ;;  %v1421_v29 = vunpack.c.h.bf16 %v747_v47 }
  0x38   :  { %v213_v27 = vmul.f32 %v1419_v18, %v881_v63  ;;  %v214_v17 = vmul.f32 %v1420_v28, %v881_v63  ;;  %407 = vst.msk [vmem:[%s1410_s4 + $0xa0] sm:$0xff] %vm386_vm0, %v342_v21  ;;  %408 = vst.msk [vmem:[%s1410_s4 + $0xa8] sm:$0xff] %vm386_vm0, %v343_v16  ;;  %v1422_v25 = vunpack.c.l.bf16 %v752_v48  ;;  %v1423_v47 = vunpack.c.h.bf16 %v752_v48 }
  0x39   :  { %v215_v43 = vmul.f32 %v1421_v29, %v881_v63  ;;  %v344_v42 = vmax.f32 %v280_v22, 0.0  ;;  %v345_v44 = vmax.f32 %v281_v15, 0.0  ;;  %v282_v33 = vadd.f32 %v913_v20, %v212_v26 }
  0x3a   :  { %v216_v32 = vmul.f32 %v1422_v25, %v881_v63  ;;  %v217_v23 = vmul.f32 %v1423_v47, %v881_v63  ;;  %v283_v30 = vadd.f32 %v913_v20, %v213_v27  ;;  %v284_v45 = vadd.f32 %v913_v20, %v214_v17 }
  0x3b   :  { %v285_v34 = vadd.f32 %v913_v20, %v215_v43  ;;  %409 = vst.msk [vmem:[%s1410_s4 + $0xb0] sm:$0xff] %vm386_vm0, %v344_v42  ;;  %410 = vst.msk [vmem:[%s1410_s4 + $0xb8] sm:$0xff] %vm386_vm0, %v345_v44  ;;  %v1424_v35 = vunpack.c.l.bf16 %v761_v53  ;;  %v1425_v24 = vunpack.c.h.bf16 %v761_v53  ;;  %v346_v40 = vmax.f32 %v282_v33, 0.0 }
  0x3c   :  { %v286_v48 = vadd.f32 %v913_v20, %v216_v32  ;;  %v287_v37 = vadd.f32 %v913_v20, %v217_v23  ;;  %v347_v46 = vmax.f32 %v283_v30, 0.0  ;;  %v348_v36 = vmax.f32 %v284_v45, 0.0 }
  0x3d   :  { %v218_v38 = vmul.f32 %v1424_v35, %v881_v63  ;;  %v219_v39 = vmul.f32 %v1425_v24, %v881_v63  ;;  %v349_v52 = vmax.f32 %v285_v34, 0.0  ;;  %411 = vst.msk [vmem:[%s1410_s4 + $0xc0] sm:$0xff] %vm386_vm0, %v346_v40  ;;  %v1426_v53 = vunpack.c.l.bf16 %v766_v54 }
  0x3e   :  { %v350_v5 = vmax.f32 %v286_v48, 0.0  ;;  %v351_v62 = vmax.f32 %v287_v37, 0.0  ;;  %412 = vst.msk [vmem:[%s1410_s4 + $0xc8] sm:$0xff] %vm386_vm0, %v347_v46  ;;  %413 = vst.msk [vmem:[%s1410_s4 + $0xd0] sm:$0xff] %vm386_vm0, %v348_v36  ;;  %v1427_v19 = vunpack.c.h.bf16 %v766_v54  ;;  %v1428_v13 = vunpack.c.l.bf16 %v775_v59 }
  0x3f   :  { %v288_v3 = vadd.f32 %v913_v20, %v218_v38  ;;  %v289_v58 = vadd.f32 %v913_v20, %v219_v39  ;;  %414 = vst.msk [vmem:[%s1410_s4 + $0xd8] sm:$0xff] %vm386_vm0, %v349_v52  ;;  %v220_v1 = vmul.f32 %v1426_v53, %v881_v63  ;;  %v1429_v16 = vunpack.c.h.bf16 %v775_v59 }
  0x40   :  { %v221_v12 = vmul.f32 %v1427_v19, %v881_v63  ;;  %v222_v21 = vmul.f32 %v1428_v13, %v881_v63  ;;  %415 = vst.msk [vmem:[%s1410_s4 + $0xe0] sm:$0xff] %vm386_vm0, %v350_v5  ;;  %416 = vst.msk [vmem:[%s1410_s4 + $0xe8] sm:$0xff] %vm386_vm0, %v351_v62  ;;  %v1430_v41 = vunpack.c.l.bf16 %v780_v60  ;;  %v1431_v59 = vunpack.c.h.bf16 %v780_v60 }
  0x41   :  { %v223_v22 = vmul.f32 %v1429_v16, %v881_v63  ;;  %v352_v54 = vmax.f32 %v288_v3, 0.0  ;;  %v353_v15 = vmax.f32 %v289_v58, 0.0  ;;  %v290_v27 = vadd.f32 %v913_v20, %v220_v1 }
  0x42   :  { %v224_v26 = vmul.f32 %v1430_v41, %v881_v63  ;;  %v225_v18 = vmul.f32 %v1431_v59, %v881_v63  ;;  %v291_v28 = vadd.f32 %v913_v20, %v221_v12  ;;  %v292_v17 = vadd.f32 %v913_v20, %v222_v21 }
  0x43   :  { %v293_v29 = vadd.f32 %v913_v20, %v223_v22  ;;  %417 = vst.msk [vmem:[%s1410_s4 + $0xf0] sm:$0xff] %vm386_vm0, %v352_v54  ;;  %418 = vst.msk [vmem:[%s1410_s4 + $0xf8] sm:$0xff] %vm386_vm0, %v353_v15  ;;  %v1432_v42 = vunpack.c.l.bf16 %v789_v2  ;;  %v1433_v25 = vunpack.c.h.bf16 %v789_v2  ;;  %v354_v47 = vmax.f32 %v290_v27, 0.0 }
  0x44   :  { %v294_v60 = vadd.f32 %v913_v20, %v224_v26  ;;  %v295_v43 = vadd.f32 %v913_v20, %v225_v18  ;;  %v355_v23 = vmax.f32 %v291_v28, 0.0  ;;  %v356_v33 = vmax.f32 %v292_v17, 0.0 }
  0x45   :  { %v226_v44 = vmul.f32 %v1432_v42, %v881_v63  ;;  %v227_v32 = vmul.f32 %v1433_v25, %v881_v63  ;;  %v357_v30 = vmax.f32 %v293_v29, 0.0  ;;  %419 = vst.msk [vmem:[%s1410_s4 + $0x100] sm:$0xff] %vm386_vm0, %v354_v47  ;;  %v1434_v2 = vunpack.c.l.bf16 %v797_v8 }
  0x46   :  { %v358_v45 = vmax.f32 %v294_v60, 0.0  ;;  %v359_v34 = vmax.f32 %v295_v43, 0.0  ;;  %420 = vst.msk [vmem:[%s1410_s4 + $0x108] sm:$0xff] %vm386_vm0, %v355_v23  ;;  %421 = vst.msk [vmem:[%s1410_s4 + $0x110] sm:$0xff] %vm386_vm0, %v356_v33  ;;  %v1435_v38 = vunpack.c.h.bf16 %v797_v8  ;;  %v1436_v39 = vunpack.c.l.bf16 %v802_v9 }
  0x47   :  { %v296_v48 = vadd.f32 %v913_v20, %v226_v44  ;;  %v297_v37 = vadd.f32 %v913_v20, %v227_v32  ;;  %422 = vst.msk [vmem:[%s1410_s4 + $0x118] sm:$0xff] %vm386_vm0, %v357_v30  ;;  %v228_v35 = vmul.f32 %v1434_v2, %v881_v63  ;;  %v1437_v46 = vunpack.c.h.bf16 %v802_v9 }
  0x48   :  { %v229_v24 = vmul.f32 %v1435_v38, %v881_v63  ;;  %v230_v40 = vmul.f32 %v1436_v39, %v881_v63  ;;  %423 = vst.msk [vmem:[%s1410_s4 + $0x120] sm:$0xff] %vm386_vm0, %v358_v45  ;;  %424 = vst.msk [vmem:[%s1410_s4 + $0x128] sm:$0xff] %vm386_vm0, %v359_v34  ;;  %v1438_v5 = vunpack.c.l.bf16 %v811_v7  ;;  %v1439_v9 = vunpack.c.h.bf16 %v811_v7 }
  0x49   :  { %v231_v36 = vmul.f32 %v1437_v46, %v881_v63  ;;  %v360_v8 = vmax.f32 %v296_v48, 0.0  ;;  %v361_v52 = vmax.f32 %v297_v37, 0.0  ;;  %v298_v58 = vadd.f32 %v913_v20, %v228_v35 }
  0x4a   :  { %v232_v62 = vmul.f32 %v1438_v5, %v881_v63  ;;  %v233_v3 = vmul.f32 %v1439_v9, %v881_v63  ;;  %v299_v53 = vadd.f32 %v913_v20, %v229_v24  ;;  %v300_v1 = vadd.f32 %v913_v20, %v230_v40 }
  0x4b   :  { %v301_v19 = vadd.f32 %v913_v20, %v231_v36  ;;  %425 = vst.msk [vmem:[%s1410_s4 + $0x130] sm:$0xff] %vm386_vm0, %v360_v8  ;;  %426 = vst.msk [vmem:[%s1410_s4 + $0x138] sm:$0xff] %vm386_vm0, %v361_v52  ;;  %v1440_v13 = vunpack.c.l.bf16 %v816_v6  ;;  %v1441_v16 = vunpack.c.h.bf16 %v816_v6  ;;  %v362_v54 = vmax.f32 %v298_v58, 0.0 }
  0x4c   :  { %v302_v7 = vadd.f32 %v913_v20, %v232_v62  ;;  %v303_v12 = vadd.f32 %v913_v20, %v233_v3  ;;  %v363_v15 = vmax.f32 %v299_v53, 0.0  ;;  %v364_v41 = vmax.f32 %v300_v1, 0.0 }
  0x4d   :  { %v234_v21 = vmul.f32 %v1440_v13, %v881_v63  ;;  %v235_v22 = vmul.f32 %v1441_v16, %v881_v63  ;;  %v365_v26 = vmax.f32 %v301_v19, 0.0  ;;  %427 = vst.msk [vmem:[%s1410_s4 + $0x140] sm:$0xff] %vm386_vm0, %v362_v54  ;;  %v1442_v6 = vunpack.c.l.bf16 %v824_v61 }
  0x4e   :  { %v366_v59 = vmax.f32 %v302_v7, 0.0  ;;  %v367_v18 = vmax.f32 %v303_v12, 0.0  ;;  %428 = vst.msk [vmem:[%s1410_s4 + $0x148] sm:$0xff] %vm386_vm0, %v363_v15  ;;  %429 = vst.msk [vmem:[%s1410_s4 + $0x150] sm:$0xff] %vm386_vm0, %v364_v41  ;;  %v1443_v29 = vunpack.c.h.bf16 %v824_v61  ;;  %v1444_v43 = vunpack.c.l.bf16 %v829_v14 }
  0x4f   :  { %v304_v27 = vadd.f32 %v913_v20, %v234_v21  ;;  %v305_v28 = vadd.f32 %v913_v20, %v235_v22  ;;  %430 = vst.msk [vmem:[%s1410_s4 + $0x158] sm:$0xff] %vm386_vm0, %v365_v26  ;;  %v236_v17 = vmul.f32 %v1442_v6, %v881_v63  ;;  %v1445_v44 = vunpack.c.h.bf16 %v829_v14 }
  0x50   :  { %v237_v60 = vmul.f32 %v1443_v29, %v881_v63  ;;  %v238_v42 = vmul.f32 %v1444_v43, %v881_v63  ;;  %431 = vst.msk [vmem:[%s1410_s4 + $0x160] sm:$0xff] %vm386_vm0, %v366_v59  ;;  %432 = vst.msk [vmem:[%s1410_s4 + $0x168] sm:$0xff] %vm386_vm0, %v367_v18  ;;  %v1446_v47 = vunpack.c.l.bf16 %v838_v11  ;;  %v1447_v14 = vunpack.c.h.bf16 %v838_v11 }
  0x51   :  { %v239_v25 = vmul.f32 %v1445_v44, %v881_v63  ;;  %v368_v61 = vmax.f32 %v304_v27, 0.0  ;;  %v369_v32 = vmax.f32 %v305_v28, 0.0  ;;  %v306_v30 = vadd.f32 %v913_v20, %v236_v17 }
  0x52   :  { %v240_v23 = vmul.f32 %v1446_v47, %v881_v63  ;;  %v241_v33 = vmul.f32 %v1447_v14, %v881_v63  ;;  %v307_v45 = vadd.f32 %v913_v20, %v237_v60  ;;  %v308_v34 = vadd.f32 %v913_v20, %v238_v42 }
  0x53   :  { %v309_v48 = vadd.f32 %v913_v20, %v239_v25  ;;  %433 = vst.msk [vmem:[%s1410_s4 + $0x170] sm:$0xff] %vm386_vm0, %v368_v61  ;;  %434 = vst.msk [vmem:[%s1410_s4 + $0x178] sm:$0xff] %vm386_vm0, %v369_v32  ;;  %v1448_v2 = vunpack.c.l.bf16 %v846_v4  ;;  %v1449_v38 = vunpack.c.h.bf16 %v846_v4  ;;  %v370_v39 = vmax.f32 %v306_v30, 0.0 }
  0x54   :  { %v310_v11 = vadd.f32 %v913_v20, %v240_v23  ;;  %v311_v37 = vadd.f32 %v913_v20, %v241_v33  ;;  %v371_v40 = vmax.f32 %v307_v45, 0.0  ;;  %v372_v46 = vmax.f32 %v308_v34, 0.0 }
  0x55   :  { %v242_v35 = vmul.f32 %v1448_v2, %v881_v63  ;;  %v243_v24 = vmul.f32 %v1449_v38, %v881_v63  ;;  %v373_v36 = vmax.f32 %v309_v48, 0.0  ;;  %435 = vst.msk [vmem:[%s1410_s4 + $0x180] sm:$0xff] %vm386_vm0, %v370_v39  ;;  %v1450_v4 = vunpack.c.l.bf16 %v851_v10 }
  0x56   :  { %v374_v8 = vmax.f32 %v310_v11, 0.0  ;;  %v375_v52 = vmax.f32 %v311_v37, 0.0  ;;  %436 = vst.msk [vmem:[%s1410_s4 + $0x188] sm:$0xff] %vm386_vm0, %v371_v40  ;;  %437 = vst.msk [vmem:[%s1410_s4 + $0x190] sm:$0xff] %vm386_vm0, %v372_v46  ;;  %v1451_v3 = vunpack.c.h.bf16 %v851_v10  ;;  %v246_v53 = vmul.f32 %v573_v51, %v881_v63 }
  0x57   :  { %v312_v5 = vadd.f32 %v913_v20, %v242_v35  ;;  %v313_v62 = vadd.f32 %v913_v20, %v243_v24  ;;  %438 = vst.msk [vmem:[%s1410_s4 + $0x198] sm:$0xff] %vm386_vm0, %v373_v36  ;;  %v244_v9 = vmul.f32 %v1450_v4, %v881_v63  ;;  %v247_v1 = vmul.f32 %v574_v50, %v881_v63 }
  0x58   :  { %v245_v58 = vmul.f32 %v1451_v3, %v881_v63  ;;  %439 = vst.msk [vmem:[%s1410_s4 + $0x1a0] sm:$0xff] %vm386_vm0, %v374_v8  ;;  %440 = vst.msk [vmem:[%s1410_s4 + $0x1a8] sm:$0xff] %vm386_vm0, %v375_v52  ;;  %v248_v51 = vmul.f32 %v577_v49, %v881_v63  ;;  %v249_v50 = vmul.f32 %v1452_v56, %v881_v63 }
  0x59   :  { %v376_v10 = vmax.f32 %v312_v5, 0.0  ;;  %v377_v19 = vmax.f32 %v313_v62, 0.0  ;;  %v314_v7 = vadd.f32 %v913_v20, %v244_v9  ;;  %v316_v13 = vadd.f32 %v913_v20, %v246_v53 }
  0x5a   :  { %v315_v12 = vadd.f32 %v913_v20, %v245_v58  ;;  %v317_v21 = vadd.f32 %v913_v20, %v247_v1  ;;  %v318_v49 = vadd.f32 %v913_v20, %v248_v51  ;;  %v319_v31 = vadd.f32 %v913_v20, %v249_v50 }
  0x5b   :  { %441 = vst.msk [vmem:[%s1410_s4 + $0x1b0] sm:$0xff] %vm386_vm0, %v376_v10  ;;  %442 = vst.msk [vmem:[%s1410_s4 + $0x1b8] sm:$0xff] %vm386_vm0, %v377_v19  ;;  %v250_v16 = vmul.f32 %v581_v0, %v881_v63  ;;  %v251_v22 = vmul.f32 %v582_v55, %v881_v63  ;;  %v378_v54 = vmax.f32 %v314_v7, 0.0  ;;  %v380_v41 = vmax.f32 %v316_v13, 0.0 }
  0x5c   :  { %v379_v15 = vmax.f32 %v315_v12, 0.0  ;;  %v381_v26 = vmax.f32 %v317_v21, 0.0  ;;  %v382_v59 = vmax.f32 %v318_v49, 0.0  ;;  %v383_v18 = vmax.f32 %v319_v31, 0.0 }
  0x5d   :  { %v320_v27 = vadd.f32 %v913_v20, %v250_v16  ;;  %v321_v28 = vadd.f32 %v913_v20, %v251_v22  ;;  %443 = vst.msk [vmem:[%s1410_s4 + $0x1c0] sm:$0xff] %vm386_vm0, %v378_v54  ;;  %445 = vst.msk [vmem:[%s1410_s4 + $0x1d0] sm:$0xff] %vm386_vm0, %v380_v41 }
  0x5e   :  { %444 = vst.msk [vmem:[%s1410_s4 + $0x1c8] sm:$0xff] %vm386_vm0, %v379_v15  ;;  %446 = vst.msk [vmem:[%s1410_s4 + $0x1d8] sm:$0xff] %vm386_vm0, %v381_v26 }
  0x5f   :  { %447 = vst.msk [vmem:[%s1410_s4 + $0x1e0] sm:$0xff] %vm386_vm0, %v382_v59  ;;  %448 = vst.msk [vmem:[%s1410_s4 + $0x1e8] sm:$0xff] %vm386_vm0, %v383_v18  ;;  %v384_v55 = vmax.f32 %v320_v27, 0.0  ;;  %v385_v57 = vmax.f32 %v321_v28, 0.0 }
  0x61   :  { %449 = vst.msk [vmem:[%s1410_s4 + $0x1f0] sm:$0xff] %vm386_vm0, %v384_v55  ;;  %450 = vst.msk [vmem:[%s1410_s4 + $0x1f8] sm:$0xff] %vm386_vm0, %v385_v57 }

</bundles_post_ra>
